<compile_context>
chip_gen: v5e
topology: v5e:2x2
jax: 0.10.0
libtpu: 0.0.40
codegen_flags: <defaults>
</compile_context>

<pallas_src>
import functools

import jax
import jax.numpy as jnp
from jax.experimental import pallas as pl
from jax.experimental.pallas import tpu as pltpu

LN_EPS = 1e-5  # torch.nn.LayerNorm default


def _layernorm(y, gamma, beta):
    inv_d = 1.0 / y.shape[-1]
    mean = jnp.sum(y, axis=-1, keepdims=True) * inv_d
    c = y - mean
    var = jnp.sum(c * c, axis=-1, keepdims=True) * inv_d
    return c * jax.lax.rsqrt(var + LN_EPS) * gamma + beta


# -----------------------------------------------------------------------------
# Fused block kernel: one grid step == one batch tile; the T time steps are a
# statically-unrolled loop inside the kernel (LIF membranes carried as values).
# Grid = (B // batch_tile,)  (pure "parallel" axis).
# -----------------------------------------------------------------------------
def _block_kernel(x_ref,
                  wqkv_ref, pqkv_ref,
                  hmask_ref,
                  wl_ref, plast_ref,
                  w1_ref, p1_ref,
                  w2_ref, p2_ref,
                  o_ref,
                  *, tau, thr):
    f32, bf16 = jnp.float32, jnp.bfloat16
    inv_tau = 1.0 / tau
    attn_thr = 0.5 * thr            # attn_lif v_threshold = common_thr / 2

    Bt, T, L, D = x_ref.shape
    Hm = w1_ref.shape[1]
    N = Bt * L                      # rows per time step
    NA = Bt * T * L                 # rows over all time steps

    # ---- load every parameter exactly once, before the unrolled time loop ----
    wqkv = wqkv_ref[...]                                  # (D, 3D) bf16
    pq = pqkv_ref[...]                                    # (3, 3D) f32
    bq3, gq3, be3 = pq[0:1], pq[1:2], pq[2:3]
    hmask = hmask_ref[...]                                # (D, D) f32 (scale folded in)
    wl = wl_ref[...]                                      # (D, D) bf16
    plp = plast_ref[...]
    bl, gl, bel = plp[0:1], plp[1:2], plp[2:3]
    w1 = w1_ref[...]                                      # (D, Hm) bf16
    p1 = p1_ref[...]
    b1, g1, be1 = p1[0:1], p1[1:2], p1[2:3]
    w2 = w2_ref[...]                                      # (Hm, D) bf16
    p2 = p2_ref[...]
    b2, g2, be2 = p2[0:1], p2[1:2], p2[2:3]

    x = x_ref[...]                                        # (Bt, T, L, D) f32
    x_flat = x.reshape(NA, D)

    # ---- T-invariant work hoisted: fused q/k/v projection + per-token LN ----
    y3 = jnp.dot(x_flat.astype(bf16), wqkv,
                 preferred_element_type=f32) + bq3        # (NA, 3D)
    q_in = _layernorm(y3[:, 0 * D:1 * D], gq3[:, 0 * D:1 * D], be3[:, 0 * D:1 * D])
    k_in = _layernorm(y3[:, 1 * D:2 * D], gq3[:, 1 * D:2 * D], be3[:, 1 * D:2 * D])
    v_in = _layernorm(y3[:, 2 * D:3 * D], gq3[:, 2 * D:3 * D], be3[:, 2 * D:3 * D])
    q_in = q_in.reshape(Bt, T, L, D)
    k_in = k_in.reshape(Bt, T, L, D)
    v_in = v_in.reshape(Bt, T, L, D)

    def lif(v, y, threshold):
        v = v + (y - v) * inv_tau
        spk = y_ge = v >= threshold
        return spk, jnp.where(y_ge, 0.0, v)               # hard reset to 0

    zD = jnp.zeros((N, D), f32)
    vq = vk = vv = va = vlm = v2m = zD                     # 6 membranes, dim D
    v1m = jnp.zeros((N, Hm), f32)                          # fc1 membrane, dim Hm

    for t in range(T):   # static unroll: t is a Python int -> static slices only
        qs, vq = lif(vq, q_in[:, t].reshape(N, D), thr)
        ks, vk = lif(vk, k_in[:, t].reshape(N, D), thr)
        vs, vv = lif(vv, v_in[:, t].reshape(N, D), thr)

        # ---- spiking attention, reassociated (no softmax => exact):
        #      y = q @ ((k^T v) ⊙ block-diag-head-mask * qk_scale)
        # spikes are exactly 0/1, so the bf16 matmuls here are lossless.
        qb = qs.astype(bf16).reshape(Bt, L, D)
        kb = ks.astype(bf16).reshape(Bt, L, D)
        vb = vs.astype(bf16).reshape(Bt, L, D)
        kv = jnp.einsum('bld,ble->bde', kb, vb,
                        preferred_element_type=f32)        # (Bt, D, D), no k transpose
        kv = kv * hmask
        y = jnp.einsum('bld,bde->ble', qb, kv.astype(bf16),
                       preferred_element_type=f32)         # (Bt, L, D)
        sa, va = lif(va, y.reshape(N, D), attn_thr)

        # ---- last projection + LN + LIF, first residual ----
        yl = jnp.dot(sa.astype(bf16), wl, preferred_element_type=f32) + bl
        sl, vlm = lif(vlm, _layernorm(yl, gl, bel), thr)
        x1 = x[:, t].reshape(N, D) + sl.astype(f32)

        # ---- spiking MLP (fc1 -> LN -> LIF -> fc2 -> LN -> LIF), 2nd residual ----
        h = jnp.dot(x1.astype(bf16), w1, preferred_element_type=f32) + b1
        s1, v1m = lif(v1m, _layernorm(h, g1, be1), thr)
        o = jnp.dot(s1.astype(bf16), w2, preferred_element_type=f32) + b2
        s2, v2m = lif(v2m, _layernorm(o, g2, be2), thr)

        o_ref[:, t:t + 1, :, :] = (x1 + s2.astype(f32)).reshape(Bt, 1, L, D)


# -----------------------------------------------------------------------------
# Parameters (deterministic, torch-like init: Linear uniform(+-1/sqrt(fan_in)),
# LayerNorm gamma=1 / beta=0).
# -----------------------------------------------------------------------------
def init_params(key, dim, hidden):
    keys = jax.random.split(key, 6)

    def lin(k, din, dout):
        kw, kb = jax.random.split(k)
        bound = float(din) ** -0.5
        w = jax.random.uniform(kw, (din, dout), jnp.float32, -bound, bound)
        b = jax.random.uniform(kb, (dout,), jnp.float32, -bound, bound)
        return w, b

    p = {}
    for i, name in enumerate(['q', 'k', 'v', 'last']):
        w, b = lin(keys[i], dim, dim)
        p[f'{name}_w'], p[f'{name}_b'] = w, b
        p[f'{name}_g'] = jnp.ones((dim,), jnp.float32)
        p[f'{name}_beta'] = jnp.zeros((dim,), jnp.float32)

    w1, b1 = lin(keys[4], dim, hidden)
    p['fc1_w'], p['fc1_b'] = w1, b1
    p['ln1_g'] = jnp.ones((hidden,), jnp.float32)
    p['ln1_beta'] = jnp.zeros((hidden,), jnp.float32)

    w2, b2 = lin(keys[5], hidden, dim)
    p['fc2_w'], p['fc2_b'] = w2, b2
    p['ln2_g'] = jnp.ones((dim,), jnp.float32)
    p['ln2_beta'] = jnp.zeros((dim,), jnp.float32)
    return p


# -----------------------------------------------------------------------------
# Full `block` forward.  x: (B, T, L, D) -> (B, T, L, D).  The PyTorch module's
# internal transpose(0,1) is absorbed by processing T inside the kernel.
# batch_tile: None -> full batch (one grid step; best on v5e/v6e single TC).
#             On v7x pass B//2 so both TensorCores get a batch tile.
# -----------------------------------------------------------------------------
def block_forward(x, p, *, tau, thr, heads, qk_scale, batch_tile=None):
    B, T, L, D = x.shape
    Dh = D // heads
    Hm = p['fc1_w'].shape[1]

    tb = B if batch_tile is None else batch_tile
    assert B % tb == 0, "batch_tile must divide the batch size"
    f32, bf16 = jnp.float32, jnp.bfloat16

    # Fused q/k/v parameters: one (D, 3D) weight; bias/gamma/beta packed (3, 3D).
    wqkv = jnp.concatenate([p['q_w'], p['k_w'], p['v_w']], axis=1).astype(bf16)
    pqkv = jnp.stack([
        jnp.concatenate([p['q_b'], p['k_b'], p['v_b']]),
        jnp.concatenate([p['q_g'], p['k_g'], p['v_g']]),
        jnp.concatenate([p['q_beta'], p['k_beta'], p['v_beta']]),
    ])                                                          # (3, 3D)

    # Block-diagonal per-head mask (qk_scale folded in): keeping only same-head
    # (d, e) entries of k^T v makes q @ (k^T v ⊙ mask) identical to the per-head
    # (q k^T) v of the reference.
    head_id = jnp.arange(D, dtype=jnp.int32) // Dh
    hmask = (head_id[:, None] == head_id[None, :]).astype(f32) * qk_scale

    plast = jnp.stack([p['last_b'], p['last_g'], p['last_beta']])   # (3, D)
    p1 = jnp.stack([p['fc1_b'], p['ln1_g'], p['ln1_beta']])          # (3, Hm)
    p2 = jnp.stack([p['fc2_b'], p['ln2_g'], p['ln2_beta']])          # (3, D)

    kernel = functools.partial(_block_kernel, tau=tau, thr=thr)

    x_spec = pl.BlockSpec((tb, T, L, D), lambda nb: (nb, 0, 0, 0))

    def rep(shape):  # resident parameter block: same (zero) index every step
        return pl.BlockSpec(shape, lambda nb, _n=len(shape): (0,) * _n)

    return pl.pallas_call(
        kernel,
        out_shape=jax.ShapeDtypeStruct((B, T, L, D), f32),
        grid_spec=pltpu.PrefetchScalarGridSpec(
            num_scalar_prefetch=0,
            grid=(B // tb,),
            in_specs=[
                x_spec,
                rep((D, 3 * D)), rep((3, 3 * D)),        # fused qkv
                rep((D, D)),                             # head mask
                rep((D, D)), rep((3, D)),                # last_m
                rep((D, Hm)), rep((3, Hm)),              # fc1 / ln1
                rep((Hm, D)), rep((3, D)),               # fc2 / ln2
            ],
            out_specs=x_spec,
        ),
        compiler_params=pltpu.CompilerParams(
            dimension_semantics=("parallel",),           # batch tiles independent
        ),
    )(x, wqkv, pqkv, hmask,
      p['last_w'].astype(bf16), plast,
      p['fc1_w'].astype(bf16), p1,
      p['fc2_w'].astype(bf16), p2)


if __name__ == "__main__":
    B, T, L, D, H = 2, 4, 16, 32, 4        # batch, time-steps, tokens, dim, heads
    hidden = 4 * D
    tau, common_thr, qk_scale = 2.0, 0.5, 0.125

    key = jax.random.PRNGKey(0)
    kx, kp = jax.random.split(key)
    x = jax.random.normal(kx, (B, T, L, D), jnp.float32)
    params = init_params(kp, D, hidden)

    # batch_tile=None -> full batch, one grid step (v5e/v6e tuning; use B//2 on v7x).
    fwd = jax.jit(functools.partial(
        block_forward, tau=tau, thr=common_thr, heads=H, qk_scale=qk_scale,
        batch_tile=None))
    out = fwd(x, params)
    jax.block_until_ready(out)
    assert out.shape == (B, T, L, D)
    assert bool(jnp.all(jnp.isfinite(out)))
    print("KERNEL_OK")
</pallas_src>

<mosaic_0001>
module attributes {stable_mosaic.version = 11 : i64} {
  func.func @_block_kernel(%arg0: i32, %arg1: memref<2x4x16x32xf32, #tpu.memory_space<vmem>>, %arg2: memref<32x96xbf16, #tpu.memory_space<vmem>>, %arg3: memref<3x96xf32, #tpu.memory_space<vmem>>, %arg4: memref<32x32xf32, #tpu.memory_space<vmem>>, %arg5: memref<32x32xbf16, #tpu.memory_space<vmem>>, %arg6: memref<3x32xf32, #tpu.memory_space<vmem>>, %arg7: memref<32x128xbf16, #tpu.memory_space<vmem>>, %arg8: memref<3x128xf32, #tpu.memory_space<vmem>>, %arg9: memref<128x32xbf16, #tpu.memory_space<vmem>>, %arg10: memref<3x32xf32, #tpu.memory_space<vmem>>, %arg11: memref<2x4x16x32xf32, #tpu.memory_space<vmem>>) attributes {dimension_semantics = [#tpu.dimension_semantics<parallel>], iteration_bounds = array<i64: 1>, scalar_prefetch = 0 : i64, scratch_operands = 0 : i64, tpu.core_type = #tpu.core_type<tc>, window_params = [{transform_indices = @transform_0, window_bounds = array<i64: 2, 4, 16, 32>}, {pipeline_mode = #tpu.pipeline_mode<synchronous>, transform_indices = @transform_1, window_bounds = array<i64: 32, 96>}, {pipeline_mode = #tpu.pipeline_mode<synchronous>, transform_indices = @transform_2, window_bounds = array<i64: 3, 96>}, {pipeline_mode = #tpu.pipeline_mode<synchronous>, transform_indices = @transform_3, window_bounds = array<i64: 32, 32>}, {pipeline_mode = #tpu.pipeline_mode<synchronous>, transform_indices = @transform_4, window_bounds = array<i64: 32, 32>}, {pipeline_mode = #tpu.pipeline_mode<synchronous>, transform_indices = @transform_5, window_bounds = array<i64: 3, 32>}, {pipeline_mode = #tpu.pipeline_mode<synchronous>, transform_indices = @transform_6, window_bounds = array<i64: 32, 128>}, {pipeline_mode = #tpu.pipeline_mode<synchronous>, transform_indices = @transform_7, window_bounds = array<i64: 3, 128>}, {pipeline_mode = #tpu.pipeline_mode<synchronous>, transform_indices = @transform_8, window_bounds = array<i64: 128, 32>}, {pipeline_mode = #tpu.pipeline_mode<synchronous>, transform_indices = @transform_9, window_bounds = array<i64: 3, 32>}, {transform_indices = @transform_10, window_bounds = array<i64: 2, 4, 16, 32>}]} {
    %c0 = arith.constant 0 : index
    %c0_0 = arith.constant 0 : index
    %0 = vector.load %arg2[%c0, %c0_0] : memref<32x96xbf16, #tpu.memory_space<vmem>>, vector<32x96xbf16>
    %c0_1 = arith.constant 0 : index
    %c0_2 = arith.constant 0 : index
    %1 = vector.load %arg3[%c0_1, %c0_2] : memref<3x96xf32, #tpu.memory_space<vmem>>, vector<3x96xf32>
    %2 = vector.extract_strided_slice %1 {offsets = [0, 0], sizes = [1, 96], strides = [1, 1]} : vector<3x96xf32> to vector<1x96xf32>
    %3 = vector.extract_strided_slice %1 {offsets = [1, 0], sizes = [1, 96], strides = [1, 1]} : vector<3x96xf32> to vector<1x96xf32>
    %4 = vector.extract_strided_slice %1 {offsets = [2, 0], sizes = [1, 96], strides = [1, 1]} : vector<3x96xf32> to vector<1x96xf32>
    %c0_3 = arith.constant 0 : index
    %c0_4 = arith.constant 0 : index
    %5 = vector.load %arg4[%c0_3, %c0_4] : memref<32x32xf32, #tpu.memory_space<vmem>>, vector<32x32xf32>
    %c0_5 = arith.constant 0 : index
    %c0_6 = arith.constant 0 : index
    %6 = vector.load %arg5[%c0_5, %c0_6] : memref<32x32xbf16, #tpu.memory_space<vmem>>, vector<32x32xbf16>
    %c0_7 = arith.constant 0 : index
    %c0_8 = arith.constant 0 : index
    %7 = vector.load %arg6[%c0_7, %c0_8] : memref<3x32xf32, #tpu.memory_space<vmem>>, vector<3x32xf32>
    %8 = vector.extract_strided_slice %7 {offsets = [0, 0], sizes = [1, 32], strides = [1, 1]} : vector<3x32xf32> to vector<1x32xf32>
    %9 = vector.extract_strided_slice %7 {offsets = [1, 0], sizes = [1, 32], strides = [1, 1]} : vector<3x32xf32> to vector<1x32xf32>
    %10 = vector.extract_strided_slice %7 {offsets = [2, 0], sizes = [1, 32], strides = [1, 1]} : vector<3x32xf32> to vector<1x32xf32>
    %c0_9 = arith.constant 0 : index
    %c0_10 = arith.constant 0 : index
    %11 = vector.load %arg7[%c0_9, %c0_10] : memref<32x128xbf16, #tpu.memory_space<vmem>>, vector<32x128xbf16>
    %c0_11 = arith.constant 0 : index
    %c0_12 = arith.constant 0 : index
    %12 = vector.load %arg8[%c0_11, %c0_12] : memref<3x128xf32, #tpu.memory_space<vmem>>, vector<3x128xf32>
    %13 = vector.extract_strided_slice %12 {offsets = [0, 0], sizes = [1, 128], strides = [1, 1]} : vector<3x128xf32> to vector<1x128xf32>
    %14 = vector.extract_strided_slice %12 {offsets = [1, 0], sizes = [1, 128], strides = [1, 1]} : vector<3x128xf32> to vector<1x128xf32>
    %15 = vector.extract_strided_slice %12 {offsets = [2, 0], sizes = [1, 128], strides = [1, 1]} : vector<3x128xf32> to vector<1x128xf32>
    %c0_13 = arith.constant 0 : index
    %c0_14 = arith.constant 0 : index
    %16 = vector.load %arg9[%c0_13, %c0_14] : memref<128x32xbf16, #tpu.memory_space<vmem>>, vector<128x32xbf16>
    %c0_15 = arith.constant 0 : index
    %c0_16 = arith.constant 0 : index
    %17 = vector.load %arg10[%c0_15, %c0_16] : memref<3x32xf32, #tpu.memory_space<vmem>>, vector<3x32xf32>
    %18 = vector.extract_strided_slice %17 {offsets = [0, 0], sizes = [1, 32], strides = [1, 1]} : vector<3x32xf32> to vector<1x32xf32>
    %19 = vector.extract_strided_slice %17 {offsets = [1, 0], sizes = [1, 32], strides = [1, 1]} : vector<3x32xf32> to vector<1x32xf32>
    %20 = vector.extract_strided_slice %17 {offsets = [2, 0], sizes = [1, 32], strides = [1, 1]} : vector<3x32xf32> to vector<1x32xf32>
    %c0_17 = arith.constant 0 : index
    %c0_18 = arith.constant 0 : index
    %c0_19 = arith.constant 0 : index
    %c0_20 = arith.constant 0 : index
    %21 = vector.load %arg1[%c0_17, %c0_18, %c0_19, %c0_20] : memref<2x4x16x32xf32, #tpu.memory_space<vmem>>, vector<2x4x16x32xf32>
    %22 = vector.shape_cast %21 : vector<2x4x16x32xf32> to vector<128x32xf32>
    %23 = arith.truncf %22 : vector<128x32xf32> to vector<128x32xbf16>
    %cst = arith.constant dense<0.000000e+00> : vector<128x96xf32>
    %24 = tpu.matmul %23, %0, %cst {dimension_numbers = #tpu.dot_dimension_numbers<[1], [0], [0], [1], [0, 0, 1, 1], [], []>} : vector<128x32xbf16>, vector<32x96xbf16>, vector<128x96xf32> -> vector<128x96xf32>
    %25 = vector.broadcast %2 : vector<1x96xf32> to vector<128x96xf32>
    %26 = arith.addf %24, %25 : vector<128x96xf32>
    %27 = vector.extract_strided_slice %26 {offsets = [0, 0], sizes = [128, 32], strides = [1, 1]} : vector<128x96xf32> to vector<128x32xf32>
    %28 = vector.extract_strided_slice %3 {offsets = [0, 0], sizes = [1, 32], strides = [1, 1]} : vector<1x96xf32> to vector<1x32xf32>
    %29 = vector.extract_strided_slice %4 {offsets = [0, 0], sizes = [1, 32], strides = [1, 1]} : vector<1x96xf32> to vector<1x32xf32>
    %cst_21 = arith.constant dense<0.000000e+00> : vector<128xf32>
    %30 = vector.multi_reduction <add>, %27, %cst_21 [1] : vector<128x32xf32> to vector<128xf32>
    %31 = vector.shape_cast %30 : vector<128xf32> to vector<128x1xf32>
    %cst_22 = arith.constant 3.125000e-02 : f32
    %32 = vector.broadcast %cst_22 : f32 to vector<128x1xf32>
    %33 = arith.mulf %31, %32 : vector<128x1xf32>
    %34 = vector.broadcast %33 : vector<128x1xf32> to vector<128x32xf32>
    %35 = arith.subf %27, %34 : vector<128x32xf32>
    %36 = arith.mulf %35, %35 : vector<128x32xf32>
    %cst_23 = arith.constant dense<0.000000e+00> : vector<128xf32>
    %37 = vector.multi_reduction <add>, %36, %cst_23 [1] : vector<128x32xf32> to vector<128xf32>
    %38 = vector.shape_cast %37 : vector<128xf32> to vector<128x1xf32>
    %cst_24 = arith.constant 3.125000e-02 : f32
    %39 = vector.broadcast %cst_24 : f32 to vector<128x1xf32>
    %40 = arith.mulf %38, %39 : vector<128x1xf32>
    %cst_25 = arith.constant 9.99999974E-6 : f32
    %41 = vector.broadcast %cst_25 : f32 to vector<128x1xf32>
    %42 = arith.addf %40, %41 : vector<128x1xf32>
    %43 = math.rsqrt %42 : vector<128x1xf32>
    %44 = vector.broadcast %43 : vector<128x1xf32> to vector<128x32xf32>
    %45 = arith.mulf %35, %44 : vector<128x32xf32>
    %46 = vector.broadcast %28 : vector<1x32xf32> to vector<128x32xf32>
    %47 = arith.mulf %45, %46 : vector<128x32xf32>
    %48 = vector.broadcast %29 : vector<1x32xf32> to vector<128x32xf32>
    %49 = arith.addf %47, %48 : vector<128x32xf32>
    %50 = vector.extract_strided_slice %26 {offsets = [0, 32], sizes = [128, 32], strides = [1, 1]} : vector<128x96xf32> to vector<128x32xf32>
    %51 = vector.extract_strided_slice %3 {offsets = [0, 32], sizes = [1, 32], strides = [1, 1]} : vector<1x96xf32> to vector<1x32xf32>
    %52 = vector.extract_strided_slice %4 {offsets = [0, 32], sizes = [1, 32], strides = [1, 1]} : vector<1x96xf32> to vector<1x32xf32>
    %cst_26 = arith.constant dense<0.000000e+00> : vector<128xf32>
    %53 = vector.multi_reduction <add>, %50, %cst_26 [1] : vector<128x32xf32> to vector<128xf32>
    %54 = vector.shape_cast %53 : vector<128xf32> to vector<128x1xf32>
    %cst_27 = arith.constant 3.125000e-02 : f32
    %55 = vector.broadcast %cst_27 : f32 to vector<128x1xf32>
    %56 = arith.mulf %54, %55 : vector<128x1xf32>
    %57 = vector.broadcast %56 : vector<128x1xf32> to vector<128x32xf32>
    %58 = arith.subf %50, %57 : vector<128x32xf32>
    %59 = arith.mulf %58, %58 : vector<128x32xf32>
    %cst_28 = arith.constant dense<0.000000e+00> : vector<128xf32>
    %60 = vector.multi_reduction <add>, %59, %cst_28 [1] : vector<128x32xf32> to vector<128xf32>
    %61 = vector.shape_cast %60 : vector<128xf32> to vector<128x1xf32>
    %cst_29 = arith.constant 3.125000e-02 : f32
    %62 = vector.broadcast %cst_29 : f32 to vector<128x1xf32>
    %63 = arith.mulf %61, %62 : vector<128x1xf32>
    %cst_30 = arith.constant 9.99999974E-6 : f32
    %64 = vector.broadcast %cst_30 : f32 to vector<128x1xf32>
    %65 = arith.addf %63, %64 : vector<128x1xf32>
    %66 = math.rsqrt %65 : vector<128x1xf32>
    %67 = vector.broadcast %66 : vector<128x1xf32> to vector<128x32xf32>
    %68 = arith.mulf %58, %67 : vector<128x32xf32>
    %69 = vector.broadcast %51 : vector<1x32xf32> to vector<128x32xf32>
    %70 = arith.mulf %68, %69 : vector<128x32xf32>
    %71 = vector.broadcast %52 : vector<1x32xf32> to vector<128x32xf32>
    %72 = arith.addf %70, %71 : vector<128x32xf32>
    %73 = vector.extract_strided_slice %26 {offsets = [0, 64], sizes = [128, 32], strides = [1, 1]} : vector<128x96xf32> to vector<128x32xf32>
    %74 = vector.extract_strided_slice %3 {offsets = [0, 64], sizes = [1, 32], strides = [1, 1]} : vector<1x96xf32> to vector<1x32xf32>
    %75 = vector.extract_strided_slice %4 {offsets = [0, 64], sizes = [1, 32], strides = [1, 1]} : vector<1x96xf32> to vector<1x32xf32>
    %cst_31 = arith.constant dense<0.000000e+00> : vector<128xf32>
    %76 = vector.multi_reduction <add>, %73, %cst_31 [1] : vector<128x32xf32> to vector<128xf32>
    %77 = vector.shape_cast %76 : vector<128xf32> to vector<128x1xf32>
    %cst_32 = arith.constant 3.125000e-02 : f32
    %78 = vector.broadcast %cst_32 : f32 to vector<128x1xf32>
    %79 = arith.mulf %77, %78 : vector<128x1xf32>
    %80 = vector.broadcast %79 : vector<128x1xf32> to vector<128x32xf32>
    %81 = arith.subf %73, %80 : vector<128x32xf32>
    %82 = arith.mulf %81, %81 : vector<128x32xf32>
    %cst_33 = arith.constant dense<0.000000e+00> : vector<128xf32>
    %83 = vector.multi_reduction <add>, %82, %cst_33 [1] : vector<128x32xf32> to vector<128xf32>
    %84 = vector.shape_cast %83 : vector<128xf32> to vector<128x1xf32>
    %cst_34 = arith.constant 3.125000e-02 : f32
    %85 = vector.broadcast %cst_34 : f32 to vector<128x1xf32>
    %86 = arith.mulf %84, %85 : vector<128x1xf32>
    %cst_35 = arith.constant 9.99999974E-6 : f32
    %87 = vector.broadcast %cst_35 : f32 to vector<128x1xf32>
    %88 = arith.addf %86, %87 : vector<128x1xf32>
    %89 = math.rsqrt %88 : vector<128x1xf32>
    %90 = vector.broadcast %89 : vector<128x1xf32> to vector<128x32xf32>
    %91 = arith.mulf %81, %90 : vector<128x32xf32>
    %92 = vector.broadcast %74 : vector<1x32xf32> to vector<128x32xf32>
    %93 = arith.mulf %91, %92 : vector<128x32xf32>
    %94 = vector.broadcast %75 : vector<1x32xf32> to vector<128x32xf32>
    %95 = arith.addf %93, %94 : vector<128x32xf32>
    %96 = vector.shape_cast %49 : vector<128x32xf32> to vector<2x4x16x32xf32>
    %97 = vector.shape_cast %72 : vector<128x32xf32> to vector<2x4x16x32xf32>
    %98 = vector.shape_cast %95 : vector<128x32xf32> to vector<2x4x16x32xf32>
    %cst_36 = arith.constant 0.000000e+00 : f32
    %99 = vector.broadcast %cst_36 : f32 to vector<32x32xf32>
    %cst_37 = arith.constant 0.000000e+00 : f32
    %100 = vector.broadcast %cst_37 : f32 to vector<32x128xf32>
    %101 = vector.extract_strided_slice %96 {offsets = [0, 0, 0, 0], sizes = [2, 1, 16, 32], strides = [1, 1, 1, 1]} : vector<2x4x16x32xf32> to vector<2x1x16x32xf32>
    %102 = vector.shape_cast %101 : vector<2x1x16x32xf32> to vector<2x16x32xf32>
    %103 = vector.shape_cast %102 : vector<2x16x32xf32> to vector<32x32xf32>
    %104 = arith.subf %103, %99 : vector<32x32xf32>
    %cst_38 = arith.constant 5.000000e-01 : f32
    %105 = vector.broadcast %cst_38 : f32 to vector<32x32xf32>
    %106 = arith.mulf %104, %105 : vector<32x32xf32>
    %107 = arith.addf %99, %106 : vector<32x32xf32>
    %cst_39 = arith.constant 5.000000e-01 : f32
    %108 = vector.broadcast %cst_39 : f32 to vector<32x32xf32>
    %109 = arith.cmpf oge, %107, %108 : vector<32x32xf32>
    %cst_40 = arith.constant 0.000000e+00 : f32
    %110 = vector.broadcast %cst_40 : f32 to vector<32x32xf32>
    %111 = arith.select %109, %110, %107 : vector<32x32xi1>, vector<32x32xf32>
    %112 = vector.extract_strided_slice %97 {offsets = [0, 0, 0, 0], sizes = [2, 1, 16, 32], strides = [1, 1, 1, 1]} : vector<2x4x16x32xf32> to vector<2x1x16x32xf32>
    %113 = vector.shape_cast %112 : vector<2x1x16x32xf32> to vector<2x16x32xf32>
    %114 = vector.shape_cast %113 : vector<2x16x32xf32> to vector<32x32xf32>
    %115 = arith.subf %114, %99 : vector<32x32xf32>
    %cst_41 = arith.constant 5.000000e-01 : f32
    %116 = vector.broadcast %cst_41 : f32 to vector<32x32xf32>
    %117 = arith.mulf %115, %116 : vector<32x32xf32>
    %118 = arith.addf %99, %117 : vector<32x32xf32>
    %cst_42 = arith.constant 5.000000e-01 : f32
    %119 = vector.broadcast %cst_42 : f32 to vector<32x32xf32>
    %120 = arith.cmpf oge, %118, %119 : vector<32x32xf32>
    %cst_43 = arith.constant 0.000000e+00 : f32
    %121 = vector.broadcast %cst_43 : f32 to vector<32x32xf32>
    %122 = arith.select %120, %121, %118 : vector<32x32xi1>, vector<32x32xf32>
    %123 = vector.extract_strided_slice %98 {offsets = [0, 0, 0, 0], sizes = [2, 1, 16, 32], strides = [1, 1, 1, 1]} : vector<2x4x16x32xf32> to vector<2x1x16x32xf32>
    %124 = vector.shape_cast %123 : vector<2x1x16x32xf32> to vector<2x16x32xf32>
    %125 = vector.shape_cast %124 : vector<2x16x32xf32> to vector<32x32xf32>
    %126 = arith.subf %125, %99 : vector<32x32xf32>
    %cst_44 = arith.constant 5.000000e-01 : f32
    %127 = vector.broadcast %cst_44 : f32 to vector<32x32xf32>
    %128 = arith.mulf %126, %127 : vector<32x32xf32>
    %129 = arith.addf %99, %128 : vector<32x32xf32>
    %cst_45 = arith.constant 5.000000e-01 : f32
    %130 = vector.broadcast %cst_45 : f32 to vector<32x32xf32>
    %131 = arith.cmpf oge, %129, %130 : vector<32x32xf32>
    %cst_46 = arith.constant 0.000000e+00 : f32
    %132 = vector.broadcast %cst_46 : f32 to vector<32x32xf32>
    %133 = arith.select %131, %132, %129 : vector<32x32xi1>, vector<32x32xf32>
    %134 = arith.extui %109 : vector<32x32xi1> to vector<32x32xi32>
    %135 = arith.sitofp %134 : vector<32x32xi32> to vector<32x32xf32>
    %136 = arith.truncf %135 : vector<32x32xf32> to vector<32x32xbf16>
    %137 = vector.shape_cast %136 : vector<32x32xbf16> to vector<2x16x32xbf16>
    %138 = arith.extui %120 : vector<32x32xi1> to vector<32x32xi32>
    %139 = arith.sitofp %138 : vector<32x32xi32> to vector<32x32xf32>
    %140 = arith.truncf %139 : vector<32x32xf32> to vector<32x32xbf16>
    %141 = vector.shape_cast %140 : vector<32x32xbf16> to vector<2x16x32xbf16>
    %142 = arith.extui %131 : vector<32x32xi1> to vector<32x32xi32>
    %143 = arith.sitofp %142 : vector<32x32xi32> to vector<32x32xf32>
    %144 = arith.truncf %143 : vector<32x32xf32> to vector<32x32xbf16>
    %145 = vector.shape_cast %144 : vector<32x32xbf16> to vector<2x16x32xbf16>
    "tpu.trace_start"() <{level = 10 : i32, message = "bld,ble->bde"}> : () -> ()
    %cst_47 = arith.constant dense<0.000000e+00> : vector<2x32x32xf32>
    %146 = tpu.matmul %141, %145, %cst_47 {dimension_numbers = #tpu.dot_dimension_numbers<[1], [1], [2], [2], [0, 0, 0, 2, 1, 2], [0], [0]>} : vector<2x16x32xbf16>, vector<2x16x32xbf16>, vector<2x32x32xf32> -> vector<2x32x32xf32>
    "tpu.trace_stop"() : () -> ()
    %147 = vector.shape_cast %5 : vector<32x32xf32> to vector<1x32x32xf32>
    %148 = vector.broadcast %147 : vector<1x32x32xf32> to vector<2x32x32xf32>
    %149 = arith.mulf %146, %148 : vector<2x32x32xf32>
    %150 = arith.truncf %149 : vector<2x32x32xf32> to vector<2x32x32xbf16>
    "tpu.trace_start"() <{level = 10 : i32, message = "bld,bde->ble"}> : () -> ()
    %cst_48 = arith.constant dense<0.000000e+00> : vector<2x16x32xf32>
    %151 = tpu.matmul %137, %150, %cst_48 {dimension_numbers = #tpu.dot_dimension_numbers<[2], [1], [1], [2], [0, 0, 0, 1, 1, 2], [0], [0]>} : vector<2x16x32xbf16>, vector<2x32x32xbf16>, vector<2x16x32xf32> -> vector<2x16x32xf32>
    "tpu.trace_stop"() : () -> ()
    %152 = vector.shape_cast %151 : vector<2x16x32xf32> to vector<32x32xf32>
    %153 = arith.subf %152, %99 : vector<32x32xf32>
    %cst_49 = arith.constant 5.000000e-01 : f32
    %154 = vector.broadcast %cst_49 : f32 to vector<32x32xf32>
    %155 = arith.mulf %153, %154 : vector<32x32xf32>
    %156 = arith.addf %99, %155 : vector<32x32xf32>
    %cst_50 = arith.constant 2.500000e-01 : f32
    %157 = vector.broadcast %cst_50 : f32 to vector<32x32xf32>
    %158 = arith.cmpf oge, %156, %157 : vector<32x32xf32>
    %cst_51 = arith.constant 0.000000e+00 : f32
    %159 = vector.broadcast %cst_51 : f32 to vector<32x32xf32>
    %160 = arith.select %158, %159, %156 : vector<32x32xi1>, vector<32x32xf32>
    %161 = arith.extui %158 : vector<32x32xi1> to vector<32x32xi32>
    %162 = arith.sitofp %161 : vector<32x32xi32> to vector<32x32xf32>
    %163 = arith.truncf %162 : vector<32x32xf32> to vector<32x32xbf16>
    %cst_52 = arith.constant dense<0.000000e+00> : vector<32x32xf32>
    %164 = tpu.matmul %163, %6, %cst_52 {dimension_numbers = #tpu.dot_dimension_numbers<[1], [0], [0], [1], [0, 0, 1, 1], [], []>} : vector<32x32xbf16>, vector<32x32xbf16>, vector<32x32xf32> -> vector<32x32xf32>
    %165 = vector.broadcast %8 : vector<1x32xf32> to vector<32x32xf32>
    %166 = arith.addf %164, %165 : vector<32x32xf32>
    %cst_53 = arith.constant dense<0.000000e+00> : vector<32xf32>
    %167 = vector.multi_reduction <add>, %166, %cst_53 [1] : vector<32x32xf32> to vector<32xf32>
    %168 = vector.shape_cast %167 : vector<32xf32> to vector<32x1xf32>
    %cst_54 = arith.constant 3.125000e-02 : f32
    %169 = vector.broadcast %cst_54 : f32 to vector<32x1xf32>
    %170 = arith.mulf %168, %169 : vector<32x1xf32>
    %171 = vector.broadcast %170 : vector<32x1xf32> to vector<32x32xf32>
    %172 = arith.subf %166, %171 : vector<32x32xf32>
    %173 = arith.mulf %172, %172 : vector<32x32xf32>
    %cst_55 = arith.constant dense<0.000000e+00> : vector<32xf32>
    %174 = vector.multi_reduction <add>, %173, %cst_55 [1] : vector<32x32xf32> to vector<32xf32>
    %175 = vector.shape_cast %174 : vector<32xf32> to vector<32x1xf32>
    %cst_56 = arith.constant 3.125000e-02 : f32
    %176 = vector.broadcast %cst_56 : f32 to vector<32x1xf32>
    %177 = arith.mulf %175, %176 : vector<32x1xf32>
    %cst_57 = arith.constant 9.99999974E-6 : f32
    %178 = vector.broadcast %cst_57 : f32 to vector<32x1xf32>
    %179 = arith.addf %177, %178 : vector<32x1xf32>
    %180 = math.rsqrt %179 : vector<32x1xf32>
    %181 = vector.broadcast %180 : vector<32x1xf32> to vector<32x32xf32>
    %182 = arith.mulf %172, %181 : vector<32x32xf32>
    %183 = vector.broadcast %9 : vector<1x32xf32> to vector<32x32xf32>
    %184 = arith.mulf %182, %183 : vector<32x32xf32>
    %185 = vector.broadcast %10 : vector<1x32xf32> to vector<32x32xf32>
    %186 = arith.addf %184, %185 : vector<32x32xf32>
    %187 = arith.subf %186, %99 : vector<32x32xf32>
    %cst_58 = arith.constant 5.000000e-01 : f32
    %188 = vector.broadcast %cst_58 : f32 to vector<32x32xf32>
    %189 = arith.mulf %187, %188 : vector<32x32xf32>
    %190 = arith.addf %99, %189 : vector<32x32xf32>
    %cst_59 = arith.constant 5.000000e-01 : f32
    %191 = vector.broadcast %cst_59 : f32 to vector<32x32xf32>
    %192 = arith.cmpf oge, %190, %191 : vector<32x32xf32>
    %cst_60 = arith.constant 0.000000e+00 : f32
    %193 = vector.broadcast %cst_60 : f32 to vector<32x32xf32>
    %194 = arith.select %192, %193, %190 : vector<32x32xi1>, vector<32x32xf32>
    %195 = vector.extract_strided_slice %21 {offsets = [0, 0, 0, 0], sizes = [2, 1, 16, 32], strides = [1, 1, 1, 1]} : vector<2x4x16x32xf32> to vector<2x1x16x32xf32>
    %196 = vector.shape_cast %195 : vector<2x1x16x32xf32> to vector<2x16x32xf32>
    %197 = vector.shape_cast %196 : vector<2x16x32xf32> to vector<32x32xf32>
    %198 = arith.extui %192 : vector<32x32xi1> to vector<32x32xi32>
    %199 = arith.sitofp %198 : vector<32x32xi32> to vector<32x32xf32>
    %200 = arith.addf %197, %199 : vector<32x32xf32>
    %201 = arith.truncf %200 : vector<32x32xf32> to vector<32x32xbf16>
    %cst_61 = arith.constant dense<0.000000e+00> : vector<32x128xf32>
    %202 = tpu.matmul %201, %11, %cst_61 {dimension_numbers = #tpu.dot_dimension_numbers<[1], [0], [0], [1], [0, 0, 1, 1], [], []>} : vector<32x32xbf16>, vector<32x128xbf16>, vector<32x128xf32> -> vector<32x128xf32>
    %203 = vector.broadcast %13 : vector<1x128xf32> to vector<32x128xf32>
    %204 = arith.addf %202, %203 : vector<32x128xf32>
    %cst_62 = arith.constant dense<0.000000e+00> : vector<32xf32>
    %205 = vector.multi_reduction <add>, %204, %cst_62 [1] : vector<32x128xf32> to vector<32xf32>
    %206 = vector.shape_cast %205 : vector<32xf32> to vector<32x1xf32>
    %cst_63 = arith.constant 7.812500e-03 : f32
    %207 = vector.broadcast %cst_63 : f32 to vector<32x1xf32>
    %208 = arith.mulf %206, %207 : vector<32x1xf32>
    %209 = vector.broadcast %208 : vector<32x1xf32> to vector<32x128xf32>
    %210 = arith.subf %204, %209 : vector<32x128xf32>
    %211 = arith.mulf %210, %210 : vector<32x128xf32>
    %cst_64 = arith.constant dense<0.000000e+00> : vector<32xf32>
    %212 = vector.multi_reduction <add>, %211, %cst_64 [1] : vector<32x128xf32> to vector<32xf32>
    %213 = vector.shape_cast %212 : vector<32xf32> to vector<32x1xf32>
    %cst_65 = arith.constant 7.812500e-03 : f32
    %214 = vector.broadcast %cst_65 : f32 to vector<32x1xf32>
    %215 = arith.mulf %213, %214 : vector<32x1xf32>
    %cst_66 = arith.constant 9.99999974E-6 : f32
    %216 = vector.broadcast %cst_66 : f32 to vector<32x1xf32>
    %217 = arith.addf %215, %216 : vector<32x1xf32>
    %218 = math.rsqrt %217 : vector<32x1xf32>
    %219 = vector.broadcast %218 : vector<32x1xf32> to vector<32x128xf32>
    %220 = arith.mulf %210, %219 : vector<32x128xf32>
    %221 = vector.broadcast %14 : vector<1x128xf32> to vector<32x128xf32>
    %222 = arith.mulf %220, %221 : vector<32x128xf32>
    %223 = vector.broadcast %15 : vector<1x128xf32> to vector<32x128xf32>
    %224 = arith.addf %222, %223 : vector<32x128xf32>
    %225 = arith.subf %224, %100 : vector<32x128xf32>
    %cst_67 = arith.constant 5.000000e-01 : f32
    %226 = vector.broadcast %cst_67 : f32 to vector<32x128xf32>
    %227 = arith.mulf %225, %226 : vector<32x128xf32>
    %228 = arith.addf %100, %227 : vector<32x128xf32>
    %cst_68 = arith.constant 5.000000e-01 : f32
    %229 = vector.broadcast %cst_68 : f32 to vector<32x128xf32>
    %230 = arith.cmpf oge, %228, %229 : vector<32x128xf32>
    %cst_69 = arith.constant 0.000000e+00 : f32
    %231 = vector.broadcast %cst_69 : f32 to vector<32x128xf32>
    %232 = arith.select %230, %231, %228 : vector<32x128xi1>, vector<32x128xf32>
    %233 = arith.extui %230 : vector<32x128xi1> to vector<32x128xi32>
    %234 = arith.sitofp %233 : vector<32x128xi32> to vector<32x128xf32>
    %235 = arith.truncf %234 : vector<32x128xf32> to vector<32x128xbf16>
    %cst_70 = arith.constant dense<0.000000e+00> : vector<32x32xf32>
    %236 = tpu.matmul %235, %16, %cst_70 {dimension_numbers = #tpu.dot_dimension_numbers<[1], [0], [0], [1], [0, 0, 1, 1], [], []>} : vector<32x128xbf16>, vector<128x32xbf16>, vector<32x32xf32> -> vector<32x32xf32>
    %237 = vector.broadcast %18 : vector<1x32xf32> to vector<32x32xf32>
    %238 = arith.addf %236, %237 : vector<32x32xf32>
    %cst_71 = arith.constant dense<0.000000e+00> : vector<32xf32>
    %239 = vector.multi_reduction <add>, %238, %cst_71 [1] : vector<32x32xf32> to vector<32xf32>
    %240 = vector.shape_cast %239 : vector<32xf32> to vector<32x1xf32>
    %cst_72 = arith.constant 3.125000e-02 : f32
    %241 = vector.broadcast %cst_72 : f32 to vector<32x1xf32>
    %242 = arith.mulf %240, %241 : vector<32x1xf32>
    %243 = vector.broadcast %242 : vector<32x1xf32> to vector<32x32xf32>
    %244 = arith.subf %238, %243 : vector<32x32xf32>
    %245 = arith.mulf %244, %244 : vector<32x32xf32>
    %cst_73 = arith.constant dense<0.000000e+00> : vector<32xf32>
    %246 = vector.multi_reduction <add>, %245, %cst_73 [1] : vector<32x32xf32> to vector<32xf32>
    %247 = vector.shape_cast %246 : vector<32xf32> to vector<32x1xf32>
    %cst_74 = arith.constant 3.125000e-02 : f32
    %248 = vector.broadcast %cst_74 : f32 to vector<32x1xf32>
    %249 = arith.mulf %247, %248 : vector<32x1xf32>
    %cst_75 = arith.constant 9.99999974E-6 : f32
    %250 = vector.broadcast %cst_75 : f32 to vector<32x1xf32>
    %251 = arith.addf %249, %250 : vector<32x1xf32>
    %252 = math.rsqrt %251 : vector<32x1xf32>
    %253 = vector.broadcast %252 : vector<32x1xf32> to vector<32x32xf32>
    %254 = arith.mulf %244, %253 : vector<32x32xf32>
    %255 = vector.broadcast %19 : vector<1x32xf32> to vector<32x32xf32>
    %256 = arith.mulf %254, %255 : vector<32x32xf32>
    %257 = vector.broadcast %20 : vector<1x32xf32> to vector<32x32xf32>
    %258 = arith.addf %256, %257 : vector<32x32xf32>
    %259 = arith.subf %258, %99 : vector<32x32xf32>
    %cst_76 = arith.constant 5.000000e-01 : f32
    %260 = vector.broadcast %cst_76 : f32 to vector<32x32xf32>
    %261 = arith.mulf %259, %260 : vector<32x32xf32>
    %262 = arith.addf %99, %261 : vector<32x32xf32>
    %cst_77 = arith.constant 5.000000e-01 : f32
    %263 = vector.broadcast %cst_77 : f32 to vector<32x32xf32>
    %264 = arith.cmpf oge, %262, %263 : vector<32x32xf32>
    %cst_78 = arith.constant 0.000000e+00 : f32
    %265 = vector.broadcast %cst_78 : f32 to vector<32x32xf32>
    %266 = arith.select %264, %265, %262 : vector<32x32xi1>, vector<32x32xf32>
    %267 = arith.extui %264 : vector<32x32xi1> to vector<32x32xi32>
    %268 = arith.sitofp %267 : vector<32x32xi32> to vector<32x32xf32>
    %269 = arith.addf %200, %268 : vector<32x32xf32>
    %270 = vector.shape_cast %269 : vector<32x32xf32> to vector<2x1x16x32xf32>
    %c0_79 = arith.constant 0 : index
    %c0_80 = arith.constant 0 : index
    %c0_81 = arith.constant 0 : index
    %c0_82 = arith.constant 0 : index
    %271 = vector.load %arg11[%c0_79, %c0_80, %c0_81, %c0_82] : memref<2x4x16x32xf32, #tpu.memory_space<vmem>>, vector<2x1x16x32xf32>
    tpu.vector_store %arg11[%c0_79, %c0_80, %c0_81, %c0_82], %270 {strides = array<i32>} : memref<2x4x16x32xf32, #tpu.memory_space<vmem>>, vector<2x1x16x32xf32>,
    %272 = vector.extract_strided_slice %96 {offsets = [0, 1, 0, 0], sizes = [2, 1, 16, 32], strides = [1, 1, 1, 1]} : vector<2x4x16x32xf32> to vector<2x1x16x32xf32>
    %273 = vector.shape_cast %272 : vector<2x1x16x32xf32> to vector<2x16x32xf32>
    %274 = vector.shape_cast %273 : vector<2x16x32xf32> to vector<32x32xf32>
    %275 = arith.subf %274, %111 : vector<32x32xf32>
    %cst_83 = arith.constant 5.000000e-01 : f32
    %276 = vector.broadcast %cst_83 : f32 to vector<32x32xf32>
    %277 = arith.mulf %275, %276 : vector<32x32xf32>
    %278 = arith.addf %111, %277 : vector<32x32xf32>
    %cst_84 = arith.constant 5.000000e-01 : f32
    %279 = vector.broadcast %cst_84 : f32 to vector<32x32xf32>
    %280 = arith.cmpf oge, %278, %279 : vector<32x32xf32>
    %cst_85 = arith.constant 0.000000e+00 : f32
    %281 = vector.broadcast %cst_85 : f32 to vector<32x32xf32>
    %282 = arith.select %280, %281, %278 : vector<32x32xi1>, vector<32x32xf32>
    %283 = vector.extract_strided_slice %97 {offsets = [0, 1, 0, 0], sizes = [2, 1, 16, 32], strides = [1, 1, 1, 1]} : vector<2x4x16x32xf32> to vector<2x1x16x32xf32>
    %284 = vector.shape_cast %283 : vector<2x1x16x32xf32> to vector<2x16x32xf32>
    %285 = vector.shape_cast %284 : vector<2x16x32xf32> to vector<32x32xf32>
    %286 = arith.subf %285, %122 : vector<32x32xf32>
    %cst_86 = arith.constant 5.000000e-01 : f32
    %287 = vector.broadcast %cst_86 : f32 to vector<32x32xf32>
    %288 = arith.mulf %286, %287 : vector<32x32xf32>
    %289 = arith.addf %122, %288 : vector<32x32xf32>
    %cst_87 = arith.constant 5.000000e-01 : f32
    %290 = vector.broadcast %cst_87 : f32 to vector<32x32xf32>
    %291 = arith.cmpf oge, %289, %290 : vector<32x32xf32>
    %cst_88 = arith.constant 0.000000e+00 : f32
    %292 = vector.broadcast %cst_88 : f32 to vector<32x32xf32>
    %293 = arith.select %291, %292, %289 : vector<32x32xi1>, vector<32x32xf32>
    %294 = vector.extract_strided_slice %98 {offsets = [0, 1, 0, 0], sizes = [2, 1, 16, 32], strides = [1, 1, 1, 1]} : vector<2x4x16x32xf32> to vector<2x1x16x32xf32>
    %295 = vector.shape_cast %294 : vector<2x1x16x32xf32> to vector<2x16x32xf32>
    %296 = vector.shape_cast %295 : vector<2x16x32xf32> to vector<32x32xf32>
    %297 = arith.subf %296, %133 : vector<32x32xf32>
    %cst_89 = arith.constant 5.000000e-01 : f32
    %298 = vector.broadcast %cst_89 : f32 to vector<32x32xf32>
    %299 = arith.mulf %297, %298 : vector<32x32xf32>
    %300 = arith.addf %133, %299 : vector<32x32xf32>
    %cst_90 = arith.constant 5.000000e-01 : f32
    %301 = vector.broadcast %cst_90 : f32 to vector<32x32xf32>
    %302 = arith.cmpf oge, %300, %301 : vector<32x32xf32>
    %cst_91 = arith.constant 0.000000e+00 : f32
    %303 = vector.broadcast %cst_91 : f32 to vector<32x32xf32>
    %304 = arith.select %302, %303, %300 : vector<32x32xi1>, vector<32x32xf32>
    %305 = arith.extui %280 : vector<32x32xi1> to vector<32x32xi32>
    %306 = arith.sitofp %305 : vector<32x32xi32> to vector<32x32xf32>
    %307 = arith.truncf %306 : vector<32x32xf32> to vector<32x32xbf16>
    %308 = vector.shape_cast %307 : vector<32x32xbf16> to vector<2x16x32xbf16>
    %309 = arith.extui %291 : vector<32x32xi1> to vector<32x32xi32>
    %310 = arith.sitofp %309 : vector<32x32xi32> to vector<32x32xf32>
    %311 = arith.truncf %310 : vector<32x32xf32> to vector<32x32xbf16>
    %312 = vector.shape_cast %311 : vector<32x32xbf16> to vector<2x16x32xbf16>
    %313 = arith.extui %302 : vector<32x32xi1> to vector<32x32xi32>
    %314 = arith.sitofp %313 : vector<32x32xi32> to vector<32x32xf32>
    %315 = arith.truncf %314 : vector<32x32xf32> to vector<32x32xbf16>
    %316 = vector.shape_cast %315 : vector<32x32xbf16> to vector<2x16x32xbf16>
    "tpu.trace_start"() <{level = 10 : i32, message = "bld,ble->bde"}> : () -> ()
    %cst_92 = arith.constant dense<0.000000e+00> : vector<2x32x32xf32>
    %317 = tpu.matmul %312, %316, %cst_92 {dimension_numbers = #tpu.dot_dimension_numbers<[1], [1], [2], [2], [0, 0, 0, 2, 1, 2], [0], [0]>} : vector<2x16x32xbf16>, vector<2x16x32xbf16>, vector<2x32x32xf32> -> vector<2x32x32xf32>
    "tpu.trace_stop"() : () -> ()
    %318 = vector.shape_cast %5 : vector<32x32xf32> to vector<1x32x32xf32>
    %319 = vector.broadcast %318 : vector<1x32x32xf32> to vector<2x32x32xf32>
    %320 = arith.mulf %317, %319 : vector<2x32x32xf32>
    %321 = arith.truncf %320 : vector<2x32x32xf32> to vector<2x32x32xbf16>
    "tpu.trace_start"() <{level = 10 : i32, message = "bld,bde->ble"}> : () -> ()
    %cst_93 = arith.constant dense<0.000000e+00> : vector<2x16x32xf32>
    %322 = tpu.matmul %308, %321, %cst_93 {dimension_numbers = #tpu.dot_dimension_numbers<[2], [1], [1], [2], [0, 0, 0, 1, 1, 2], [0], [0]>} : vector<2x16x32xbf16>, vector<2x32x32xbf16>, vector<2x16x32xf32> -> vector<2x16x32xf32>
    "tpu.trace_stop"() : () -> ()
    %323 = vector.shape_cast %322 : vector<2x16x32xf32> to vector<32x32xf32>
    %324 = arith.subf %323, %160 : vector<32x32xf32>
    %cst_94 = arith.constant 5.000000e-01 : f32
    %325 = vector.broadcast %cst_94 : f32 to vector<32x32xf32>
    %326 = arith.mulf %324, %325 : vector<32x32xf32>
    %327 = arith.addf %160, %326 : vector<32x32xf32>
    %cst_95 = arith.constant 2.500000e-01 : f32
    %328 = vector.broadcast %cst_95 : f32 to vector<32x32xf32>
    %329 = arith.cmpf oge, %327, %328 : vector<32x32xf32>
    %cst_96 = arith.constant 0.000000e+00 : f32
    %330 = vector.broadcast %cst_96 : f32 to vector<32x32xf32>
    %331 = arith.select %329, %330, %327 : vector<32x32xi1>, vector<32x32xf32>
    %332 = arith.extui %329 : vector<32x32xi1> to vector<32x32xi32>
    %333 = arith.sitofp %332 : vector<32x32xi32> to vector<32x32xf32>
    %334 = arith.truncf %333 : vector<32x32xf32> to vector<32x32xbf16>
    %cst_97 = arith.constant dense<0.000000e+00> : vector<32x32xf32>
    %335 = tpu.matmul %334, %6, %cst_97 {dimension_numbers = #tpu.dot_dimension_numbers<[1], [0], [0], [1], [0, 0, 1, 1], [], []>} : vector<32x32xbf16>, vector<32x32xbf16>, vector<32x32xf32> -> vector<32x32xf32>
    %336 = vector.broadcast %8 : vector<1x32xf32> to vector<32x32xf32>
    %337 = arith.addf %335, %336 : vector<32x32xf32>
    %cst_98 = arith.constant dense<0.000000e+00> : vector<32xf32>
    %338 = vector.multi_reduction <add>, %337, %cst_98 [1] : vector<32x32xf32> to vector<32xf32>
    %339 = vector.shape_cast %338 : vector<32xf32> to vector<32x1xf32>
    %cst_99 = arith.constant 3.125000e-02 : f32
    %340 = vector.broadcast %cst_99 : f32 to vector<32x1xf32>
    %341 = arith.mulf %339, %340 : vector<32x1xf32>
    %342 = vector.broadcast %341 : vector<32x1xf32> to vector<32x32xf32>
    %343 = arith.subf %337, %342 : vector<32x32xf32>
    %344 = arith.mulf %343, %343 : vector<32x32xf32>
    %cst_100 = arith.constant dense<0.000000e+00> : vector<32xf32>
    %345 = vector.multi_reduction <add>, %344, %cst_100 [1] : vector<32x32xf32> to vector<32xf32>
    %346 = vector.shape_cast %345 : vector<32xf32> to vector<32x1xf32>
    %cst_101 = arith.constant 3.125000e-02 : f32
    %347 = vector.broadcast %cst_101 : f32 to vector<32x1xf32>
    %348 = arith.mulf %346, %347 : vector<32x1xf32>
    %cst_102 = arith.constant 9.99999974E-6 : f32
    %349 = vector.broadcast %cst_102 : f32 to vector<32x1xf32>
    %350 = arith.addf %348, %349 : vector<32x1xf32>
    %351 = math.rsqrt %350 : vector<32x1xf32>
    %352 = vector.broadcast %351 : vector<32x1xf32> to vector<32x32xf32>
    %353 = arith.mulf %343, %352 : vector<32x32xf32>
    %354 = vector.broadcast %9 : vector<1x32xf32> to vector<32x32xf32>
    %355 = arith.mulf %353, %354 : vector<32x32xf32>
    %356 = vector.broadcast %10 : vector<1x32xf32> to vector<32x32xf32>
    %357 = arith.addf %355, %356 : vector<32x32xf32>
    %358 = arith.subf %357, %194 : vector<32x32xf32>
    %cst_103 = arith.constant 5.000000e-01 : f32
    %359 = vector.broadcast %cst_103 : f32 to vector<32x32xf32>
    %360 = arith.mulf %358, %359 : vector<32x32xf32>
    %361 = arith.addf %194, %360 : vector<32x32xf32>
    %cst_104 = arith.constant 5.000000e-01 : f32
    %362 = vector.broadcast %cst_104 : f32 to vector<32x32xf32>
    %363 = arith.cmpf oge, %361, %362 : vector<32x32xf32>
    %cst_105 = arith.constant 0.000000e+00 : f32
    %364 = vector.broadcast %cst_105 : f32 to vector<32x32xf32>
    %365 = arith.select %363, %364, %361 : vector<32x32xi1>, vector<32x32xf32>
    %366 = vector.extract_strided_slice %21 {offsets = [0, 1, 0, 0], sizes = [2, 1, 16, 32], strides = [1, 1, 1, 1]} : vector<2x4x16x32xf32> to vector<2x1x16x32xf32>
    %367 = vector.shape_cast %366 : vector<2x1x16x32xf32> to vector<2x16x32xf32>
    %368 = vector.shape_cast %367 : vector<2x16x32xf32> to vector<32x32xf32>
    %369 = arith.extui %363 : vector<32x32xi1> to vector<32x32xi32>
    %370 = arith.sitofp %369 : vector<32x32xi32> to vector<32x32xf32>
    %371 = arith.addf %368, %370 : vector<32x32xf32>
    %372 = arith.truncf %371 : vector<32x32xf32> to vector<32x32xbf16>
    %cst_106 = arith.constant dense<0.000000e+00> : vector<32x128xf32>
    %373 = tpu.matmul %372, %11, %cst_106 {dimension_numbers = #tpu.dot_dimension_numbers<[1], [0], [0], [1], [0, 0, 1, 1], [], []>} : vector<32x32xbf16>, vector<32x128xbf16>, vector<32x128xf32> -> vector<32x128xf32>
    %374 = vector.broadcast %13 : vector<1x128xf32> to vector<32x128xf32>
    %375 = arith.addf %373, %374 : vector<32x128xf32>
    %cst_107 = arith.constant dense<0.000000e+00> : vector<32xf32>
    %376 = vector.multi_reduction <add>, %375, %cst_107 [1] : vector<32x128xf32> to vector<32xf32>
    %377 = vector.shape_cast %376 : vector<32xf32> to vector<32x1xf32>
    %cst_108 = arith.constant 7.812500e-03 : f32
    %378 = vector.broadcast %cst_108 : f32 to vector<32x1xf32>
    %379 = arith.mulf %377, %378 : vector<32x1xf32>
    %380 = vector.broadcast %379 : vector<32x1xf32> to vector<32x128xf32>
    %381 = arith.subf %375, %380 : vector<32x128xf32>
    %382 = arith.mulf %381, %381 : vector<32x128xf32>
    %cst_109 = arith.constant dense<0.000000e+00> : vector<32xf32>
    %383 = vector.multi_reduction <add>, %382, %cst_109 [1] : vector<32x128xf32> to vector<32xf32>
    %384 = vector.shape_cast %383 : vector<32xf32> to vector<32x1xf32>
    %cst_110 = arith.constant 7.812500e-03 : f32
    %385 = vector.broadcast %cst_110 : f32 to vector<32x1xf32>
    %386 = arith.mulf %384, %385 : vector<32x1xf32>
    %cst_111 = arith.constant 9.99999974E-6 : f32
    %387 = vector.broadcast %cst_111 : f32 to vector<32x1xf32>
    %388 = arith.addf %386, %387 : vector<32x1xf32>
    %389 = math.rsqrt %388 : vector<32x1xf32>
    %390 = vector.broadcast %389 : vector<32x1xf32> to vector<32x128xf32>
    %391 = arith.mulf %381, %390 : vector<32x128xf32>
    %392 = vector.broadcast %14 : vector<1x128xf32> to vector<32x128xf32>
    %393 = arith.mulf %391, %392 : vector<32x128xf32>
    %394 = vector.broadcast %15 : vector<1x128xf32> to vector<32x128xf32>
    %395 = arith.addf %393, %394 : vector<32x128xf32>
    %396 = arith.subf %395, %232 : vector<32x128xf32>
    %cst_112 = arith.constant 5.000000e-01 : f32
    %397 = vector.broadcast %cst_112 : f32 to vector<32x128xf32>
    %398 = arith.mulf %396, %397 : vector<32x128xf32>
    %399 = arith.addf %232, %398 : vector<32x128xf32>
    %cst_113 = arith.constant 5.000000e-01 : f32
    %400 = vector.broadcast %cst_113 : f32 to vector<32x128xf32>
    %401 = arith.cmpf oge, %399, %400 : vector<32x128xf32>
    %cst_114 = arith.constant 0.000000e+00 : f32
    %402 = vector.broadcast %cst_114 : f32 to vector<32x128xf32>
    %403 = arith.select %401, %402, %399 : vector<32x128xi1>, vector<32x128xf32>
    %404 = arith.extui %401 : vector<32x128xi1> to vector<32x128xi32>
    %405 = arith.sitofp %404 : vector<32x128xi32> to vector<32x128xf32>
    %406 = arith.truncf %405 : vector<32x128xf32> to vector<32x128xbf16>
    %cst_115 = arith.constant dense<0.000000e+00> : vector<32x32xf32>
    %407 = tpu.matmul %406, %16, %cst_115 {dimension_numbers = #tpu.dot_dimension_numbers<[1], [0], [0], [1], [0, 0, 1, 1], [], []>} : vector<32x128xbf16>, vector<128x32xbf16>, vector<32x32xf32> -> vector<32x32xf32>
    %408 = vector.broadcast %18 : vector<1x32xf32> to vector<32x32xf32>
    %409 = arith.addf %407, %408 : vector<32x32xf32>
    %cst_116 = arith.constant dense<0.000000e+00> : vector<32xf32>
    %410 = vector.multi_reduction <add>, %409, %cst_116 [1] : vector<32x32xf32> to vector<32xf32>
    %411 = vector.shape_cast %410 : vector<32xf32> to vector<32x1xf32>
    %cst_117 = arith.constant 3.125000e-02 : f32
    %412 = vector.broadcast %cst_117 : f32 to vector<32x1xf32>
    %413 = arith.mulf %411, %412 : vector<32x1xf32>
    %414 = vector.broadcast %413 : vector<32x1xf32> to vector<32x32xf32>
    %415 = arith.subf %409, %414 : vector<32x32xf32>
    %416 = arith.mulf %415, %415 : vector<32x32xf32>
    %cst_118 = arith.constant dense<0.000000e+00> : vector<32xf32>
    %417 = vector.multi_reduction <add>, %416, %cst_118 [1] : vector<32x32xf32> to vector<32xf32>
    %418 = vector.shape_cast %417 : vector<32xf32> to vector<32x1xf32>
    %cst_119 = arith.constant 3.125000e-02 : f32
    %419 = vector.broadcast %cst_119 : f32 to vector<32x1xf32>
    %420 = arith.mulf %418, %419 : vector<32x1xf32>
    %cst_120 = arith.constant 9.99999974E-6 : f32
    %421 = vector.broadcast %cst_120 : f32 to vector<32x1xf32>
    %422 = arith.addf %420, %421 : vector<32x1xf32>
    %423 = math.rsqrt %422 : vector<32x1xf32>
    %424 = vector.broadcast %423 : vector<32x1xf32> to vector<32x32xf32>
    %425 = arith.mulf %415, %424 : vector<32x32xf32>
    %426 = vector.broadcast %19 : vector<1x32xf32> to vector<32x32xf32>
    %427 = arith.mulf %425, %426 : vector<32x32xf32>
    %428 = vector.broadcast %20 : vector<1x32xf32> to vector<32x32xf32>
    %429 = arith.addf %427, %428 : vector<32x32xf32>
    %430 = arith.subf %429, %266 : vector<32x32xf32>
    %cst_121 = arith.constant 5.000000e-01 : f32
    %431 = vector.broadcast %cst_121 : f32 to vector<32x32xf32>
    %432 = arith.mulf %430, %431 : vector<32x32xf32>
    %433 = arith.addf %266, %432 : vector<32x32xf32>
    %cst_122 = arith.constant 5.000000e-01 : f32
    %434 = vector.broadcast %cst_122 : f32 to vector<32x32xf32>
    %435 = arith.cmpf oge, %433, %434 : vector<32x32xf32>
    %cst_123 = arith.constant 0.000000e+00 : f32
    %436 = vector.broadcast %cst_123 : f32 to vector<32x32xf32>
    %437 = arith.select %435, %436, %433 : vector<32x32xi1>, vector<32x32xf32>
    %438 = arith.extui %435 : vector<32x32xi1> to vector<32x32xi32>
    %439 = arith.sitofp %438 : vector<32x32xi32> to vector<32x32xf32>
    %440 = arith.addf %371, %439 : vector<32x32xf32>
    %441 = vector.shape_cast %440 : vector<32x32xf32> to vector<2x1x16x32xf32>
    %c0_124 = arith.constant 0 : index
    %c1 = arith.constant 1 : index
    %c0_125 = arith.constant 0 : index
    %c0_126 = arith.constant 0 : index
    %442 = vector.load %arg11[%c0_124, %c1, %c0_125, %c0_126] : memref<2x4x16x32xf32, #tpu.memory_space<vmem>>, vector<2x1x16x32xf32>
    tpu.vector_store %arg11[%c0_124, %c1, %c0_125, %c0_126], %441 {strides = array<i32>} : memref<2x4x16x32xf32, #tpu.memory_space<vmem>>, vector<2x1x16x32xf32>,
    %443 = vector.extract_strided_slice %96 {offsets = [0, 2, 0, 0], sizes = [2, 1, 16, 32], strides = [1, 1, 1, 1]} : vector<2x4x16x32xf32> to vector<2x1x16x32xf32>
    %444 = vector.shape_cast %443 : vector<2x1x16x32xf32> to vector<2x16x32xf32>
    %445 = vector.shape_cast %444 : vector<2x16x32xf32> to vector<32x32xf32>
    %446 = arith.subf %445, %282 : vector<32x32xf32>
    %cst_127 = arith.constant 5.000000e-01 : f32
    %447 = vector.broadcast %cst_127 : f32 to vector<32x32xf32>
    %448 = arith.mulf %446, %447 : vector<32x32xf32>
    %449 = arith.addf %282, %448 : vector<32x32xf32>
    %cst_128 = arith.constant 5.000000e-01 : f32
    %450 = vector.broadcast %cst_128 : f32 to vector<32x32xf32>
    %451 = arith.cmpf oge, %449, %450 : vector<32x32xf32>
    %cst_129 = arith.constant 0.000000e+00 : f32
    %452 = vector.broadcast %cst_129 : f32 to vector<32x32xf32>
    %453 = arith.select %451, %452, %449 : vector<32x32xi1>, vector<32x32xf32>
    %454 = vector.extract_strided_slice %97 {offsets = [0, 2, 0, 0], sizes = [2, 1, 16, 32], strides = [1, 1, 1, 1]} : vector<2x4x16x32xf32> to vector<2x1x16x32xf32>
    %455 = vector.shape_cast %454 : vector<2x1x16x32xf32> to vector<2x16x32xf32>
    %456 = vector.shape_cast %455 : vector<2x16x32xf32> to vector<32x32xf32>
    %457 = arith.subf %456, %293 : vector<32x32xf32>
    %cst_130 = arith.constant 5.000000e-01 : f32
    %458 = vector.broadcast %cst_130 : f32 to vector<32x32xf32>
    %459 = arith.mulf %457, %458 : vector<32x32xf32>
    %460 = arith.addf %293, %459 : vector<32x32xf32>
    %cst_131 = arith.constant 5.000000e-01 : f32
    %461 = vector.broadcast %cst_131 : f32 to vector<32x32xf32>
    %462 = arith.cmpf oge, %460, %461 : vector<32x32xf32>
    %cst_132 = arith.constant 0.000000e+00 : f32
    %463 = vector.broadcast %cst_132 : f32 to vector<32x32xf32>
    %464 = arith.select %462, %463, %460 : vector<32x32xi1>, vector<32x32xf32>
    %465 = vector.extract_strided_slice %98 {offsets = [0, 2, 0, 0], sizes = [2, 1, 16, 32], strides = [1, 1, 1, 1]} : vector<2x4x16x32xf32> to vector<2x1x16x32xf32>
    %466 = vector.shape_cast %465 : vector<2x1x16x32xf32> to vector<2x16x32xf32>
    %467 = vector.shape_cast %466 : vector<2x16x32xf32> to vector<32x32xf32>
    %468 = arith.subf %467, %304 : vector<32x32xf32>
    %cst_133 = arith.constant 5.000000e-01 : f32
    %469 = vector.broadcast %cst_133 : f32 to vector<32x32xf32>
    %470 = arith.mulf %468, %469 : vector<32x32xf32>
    %471 = arith.addf %304, %470 : vector<32x32xf32>
    %cst_134 = arith.constant 5.000000e-01 : f32
    %472 = vector.broadcast %cst_134 : f32 to vector<32x32xf32>
    %473 = arith.cmpf oge, %471, %472 : vector<32x32xf32>
    %cst_135 = arith.constant 0.000000e+00 : f32
    %474 = vector.broadcast %cst_135 : f32 to vector<32x32xf32>
    %475 = arith.select %473, %474, %471 : vector<32x32xi1>, vector<32x32xf32>
    %476 = arith.extui %451 : vector<32x32xi1> to vector<32x32xi32>
    %477 = arith.sitofp %476 : vector<32x32xi32> to vector<32x32xf32>
    %478 = arith.truncf %477 : vector<32x32xf32> to vector<32x32xbf16>
    %479 = vector.shape_cast %478 : vector<32x32xbf16> to vector<2x16x32xbf16>
    %480 = arith.extui %462 : vector<32x32xi1> to vector<32x32xi32>
    %481 = arith.sitofp %480 : vector<32x32xi32> to vector<32x32xf32>
    %482 = arith.truncf %481 : vector<32x32xf32> to vector<32x32xbf16>
    %483 = vector.shape_cast %482 : vector<32x32xbf16> to vector<2x16x32xbf16>
    %484 = arith.extui %473 : vector<32x32xi1> to vector<32x32xi32>
    %485 = arith.sitofp %484 : vector<32x32xi32> to vector<32x32xf32>
    %486 = arith.truncf %485 : vector<32x32xf32> to vector<32x32xbf16>
    %487 = vector.shape_cast %486 : vector<32x32xbf16> to vector<2x16x32xbf16>
    "tpu.trace_start"() <{level = 10 : i32, message = "bld,ble->bde"}> : () -> ()
    %cst_136 = arith.constant dense<0.000000e+00> : vector<2x32x32xf32>
    %488 = tpu.matmul %483, %487, %cst_136 {dimension_numbers = #tpu.dot_dimension_numbers<[1], [1], [2], [2], [0, 0, 0, 2, 1, 2], [0], [0]>} : vector<2x16x32xbf16>, vector<2x16x32xbf16>, vector<2x32x32xf32> -> vector<2x32x32xf32>
    "tpu.trace_stop"() : () -> ()
    %489 = vector.shape_cast %5 : vector<32x32xf32> to vector<1x32x32xf32>
    %490 = vector.broadcast %489 : vector<1x32x32xf32> to vector<2x32x32xf32>
    %491 = arith.mulf %488, %490 : vector<2x32x32xf32>
    %492 = arith.truncf %491 : vector<2x32x32xf32> to vector<2x32x32xbf16>
    "tpu.trace_start"() <{level = 10 : i32, message = "bld,bde->ble"}> : () -> ()
    %cst_137 = arith.constant dense<0.000000e+00> : vector<2x16x32xf32>
    %493 = tpu.matmul %479, %492, %cst_137 {dimension_numbers = #tpu.dot_dimension_numbers<[2], [1], [1], [2], [0, 0, 0, 1, 1, 2], [0], [0]>} : vector<2x16x32xbf16>, vector<2x32x32xbf16>, vector<2x16x32xf32> -> vector<2x16x32xf32>
    "tpu.trace_stop"() : () -> ()
    %494 = vector.shape_cast %493 : vector<2x16x32xf32> to vector<32x32xf32>
    %495 = arith.subf %494, %331 : vector<32x32xf32>
    %cst_138 = arith.constant 5.000000e-01 : f32
    %496 = vector.broadcast %cst_138 : f32 to vector<32x32xf32>
    %497 = arith.mulf %495, %496 : vector<32x32xf32>
    %498 = arith.addf %331, %497 : vector<32x32xf32>
    %cst_139 = arith.constant 2.500000e-01 : f32
    %499 = vector.broadcast %cst_139 : f32 to vector<32x32xf32>
    %500 = arith.cmpf oge, %498, %499 : vector<32x32xf32>
    %cst_140 = arith.constant 0.000000e+00 : f32
    %501 = vector.broadcast %cst_140 : f32 to vector<32x32xf32>
    %502 = arith.select %500, %501, %498 : vector<32x32xi1>, vector<32x32xf32>
    %503 = arith.extui %500 : vector<32x32xi1> to vector<32x32xi32>
    %504 = arith.sitofp %503 : vector<32x32xi32> to vector<32x32xf32>
    %505 = arith.truncf %504 : vector<32x32xf32> to vector<32x32xbf16>
    %cst_141 = arith.constant dense<0.000000e+00> : vector<32x32xf32>
    %506 = tpu.matmul %505, %6, %cst_141 {dimension_numbers = #tpu.dot_dimension_numbers<[1], [0], [0], [1], [0, 0, 1, 1], [], []>} : vector<32x32xbf16>, vector<32x32xbf16>, vector<32x32xf32> -> vector<32x32xf32>
    %507 = vector.broadcast %8 : vector<1x32xf32> to vector<32x32xf32>
    %508 = arith.addf %506, %507 : vector<32x32xf32>
    %cst_142 = arith.constant dense<0.000000e+00> : vector<32xf32>
    %509 = vector.multi_reduction <add>, %508, %cst_142 [1] : vector<32x32xf32> to vector<32xf32>
    %510 = vector.shape_cast %509 : vector<32xf32> to vector<32x1xf32>
    %cst_143 = arith.constant 3.125000e-02 : f32
    %511 = vector.broadcast %cst_143 : f32 to vector<32x1xf32>
    %512 = arith.mulf %510, %511 : vector<32x1xf32>
    %513 = vector.broadcast %512 : vector<32x1xf32> to vector<32x32xf32>
    %514 = arith.subf %508, %513 : vector<32x32xf32>
    %515 = arith.mulf %514, %514 : vector<32x32xf32>
    %cst_144 = arith.constant dense<0.000000e+00> : vector<32xf32>
    %516 = vector.multi_reduction <add>, %515, %cst_144 [1] : vector<32x32xf32> to vector<32xf32>
    %517 = vector.shape_cast %516 : vector<32xf32> to vector<32x1xf32>
    %cst_145 = arith.constant 3.125000e-02 : f32
    %518 = vector.broadcast %cst_145 : f32 to vector<32x1xf32>
    %519 = arith.mulf %517, %518 : vector<32x1xf32>
    %cst_146 = arith.constant 9.99999974E-6 : f32
    %520 = vector.broadcast %cst_146 : f32 to vector<32x1xf32>
    %521 = arith.addf %519, %520 : vector<32x1xf32>
    %522 = math.rsqrt %521 : vector<32x1xf32>
    %523 = vector.broadcast %522 : vector<32x1xf32> to vector<32x32xf32>
    %524 = arith.mulf %514, %523 : vector<32x32xf32>
    %525 = vector.broadcast %9 : vector<1x32xf32> to vector<32x32xf32>
    %526 = arith.mulf %524, %525 : vector<32x32xf32>
    %527 = vector.broadcast %10 : vector<1x32xf32> to vector<32x32xf32>
    %528 = arith.addf %526, %527 : vector<32x32xf32>
    %529 = arith.subf %528, %365 : vector<32x32xf32>
    %cst_147 = arith.constant 5.000000e-01 : f32
    %530 = vector.broadcast %cst_147 : f32 to vector<32x32xf32>
    %531 = arith.mulf %529, %530 : vector<32x32xf32>
    %532 = arith.addf %365, %531 : vector<32x32xf32>
    %cst_148 = arith.constant 5.000000e-01 : f32
    %533 = vector.broadcast %cst_148 : f32 to vector<32x32xf32>
    %534 = arith.cmpf oge, %532, %533 : vector<32x32xf32>
    %cst_149 = arith.constant 0.000000e+00 : f32
    %535 = vector.broadcast %cst_149 : f32 to vector<32x32xf32>
    %536 = arith.select %534, %535, %532 : vector<32x32xi1>, vector<32x32xf32>
    %537 = vector.extract_strided_slice %21 {offsets = [0, 2, 0, 0], sizes = [2, 1, 16, 32], strides = [1, 1, 1, 1]} : vector<2x4x16x32xf32> to vector<2x1x16x32xf32>
    %538 = vector.shape_cast %537 : vector<2x1x16x32xf32> to vector<2x16x32xf32>
    %539 = vector.shape_cast %538 : vector<2x16x32xf32> to vector<32x32xf32>
    %540 = arith.extui %534 : vector<32x32xi1> to vector<32x32xi32>
    %541 = arith.sitofp %540 : vector<32x32xi32> to vector<32x32xf32>
    %542 = arith.addf %539, %541 : vector<32x32xf32>
    %543 = arith.truncf %542 : vector<32x32xf32> to vector<32x32xbf16>
    %cst_150 = arith.constant dense<0.000000e+00> : vector<32x128xf32>
    %544 = tpu.matmul %543, %11, %cst_150 {dimension_numbers = #tpu.dot_dimension_numbers<[1], [0], [0], [1], [0, 0, 1, 1], [], []>} : vector<32x32xbf16>, vector<32x128xbf16>, vector<32x128xf32> -> vector<32x128xf32>
    %545 = vector.broadcast %13 : vector<1x128xf32> to vector<32x128xf32>
    %546 = arith.addf %544, %545 : vector<32x128xf32>
    %cst_151 = arith.constant dense<0.000000e+00> : vector<32xf32>
    %547 = vector.multi_reduction <add>, %546, %cst_151 [1] : vector<32x128xf32> to vector<32xf32>
    %548 = vector.shape_cast %547 : vector<32xf32> to vector<32x1xf32>
    %cst_152 = arith.constant 7.812500e-03 : f32
    %549 = vector.broadcast %cst_152 : f32 to vector<32x1xf32>
    %550 = arith.mulf %548, %549 : vector<32x1xf32>
    %551 = vector.broadcast %550 : vector<32x1xf32> to vector<32x128xf32>
    %552 = arith.subf %546, %551 : vector<32x128xf32>
    %553 = arith.mulf %552, %552 : vector<32x128xf32>
    %cst_153 = arith.constant dense<0.000000e+00> : vector<32xf32>
    %554 = vector.multi_reduction <add>, %553, %cst_153 [1] : vector<32x128xf32> to vector<32xf32>
    %555 = vector.shape_cast %554 : vector<32xf32> to vector<32x1xf32>
    %cst_154 = arith.constant 7.812500e-03 : f32
    %556 = vector.broadcast %cst_154 : f32 to vector<32x1xf32>
    %557 = arith.mulf %555, %556 : vector<32x1xf32>
    %cst_155 = arith.constant 9.99999974E-6 : f32
    %558 = vector.broadcast %cst_155 : f32 to vector<32x1xf32>
    %559 = arith.addf %557, %558 : vector<32x1xf32>
    %560 = math.rsqrt %559 : vector<32x1xf32>
    %561 = vector.broadcast %560 : vector<32x1xf32> to vector<32x128xf32>
    %562 = arith.mulf %552, %561 : vector<32x128xf32>
    %563 = vector.broadcast %14 : vector<1x128xf32> to vector<32x128xf32>
    %564 = arith.mulf %562, %563 : vector<32x128xf32>
    %565 = vector.broadcast %15 : vector<1x128xf32> to vector<32x128xf32>
    %566 = arith.addf %564, %565 : vector<32x128xf32>
    %567 = arith.subf %566, %403 : vector<32x128xf32>
    %cst_156 = arith.constant 5.000000e-01 : f32
    %568 = vector.broadcast %cst_156 : f32 to vector<32x128xf32>
    %569 = arith.mulf %567, %568 : vector<32x128xf32>
    %570 = arith.addf %403, %569 : vector<32x128xf32>
    %cst_157 = arith.constant 5.000000e-01 : f32
    %571 = vector.broadcast %cst_157 : f32 to vector<32x128xf32>
    %572 = arith.cmpf oge, %570, %571 : vector<32x128xf32>
    %cst_158 = arith.constant 0.000000e+00 : f32
    %573 = vector.broadcast %cst_158 : f32 to vector<32x128xf32>
    %574 = arith.select %572, %573, %570 : vector<32x128xi1>, vector<32x128xf32>
    %575 = arith.extui %572 : vector<32x128xi1> to vector<32x128xi32>
    %576 = arith.sitofp %575 : vector<32x128xi32> to vector<32x128xf32>
    %577 = arith.truncf %576 : vector<32x128xf32> to vector<32x128xbf16>
    %cst_159 = arith.constant dense<0.000000e+00> : vector<32x32xf32>
    %578 = tpu.matmul %577, %16, %cst_159 {dimension_numbers = #tpu.dot_dimension_numbers<[1], [0], [0], [1], [0, 0, 1, 1], [], []>} : vector<32x128xbf16>, vector<128x32xbf16>, vector<32x32xf32> -> vector<32x32xf32>
    %579 = vector.broadcast %18 : vector<1x32xf32> to vector<32x32xf32>
    %580 = arith.addf %578, %579 : vector<32x32xf32>
    %cst_160 = arith.constant dense<0.000000e+00> : vector<32xf32>
    %581 = vector.multi_reduction <add>, %580, %cst_160 [1] : vector<32x32xf32> to vector<32xf32>
    %582 = vector.shape_cast %581 : vector<32xf32> to vector<32x1xf32>
    %cst_161 = arith.constant 3.125000e-02 : f32
    %583 = vector.broadcast %cst_161 : f32 to vector<32x1xf32>
    %584 = arith.mulf %582, %583 : vector<32x1xf32>
    %585 = vector.broadcast %584 : vector<32x1xf32> to vector<32x32xf32>
    %586 = arith.subf %580, %585 : vector<32x32xf32>
    %587 = arith.mulf %586, %586 : vector<32x32xf32>
    %cst_162 = arith.constant dense<0.000000e+00> : vector<32xf32>
    %588 = vector.multi_reduction <add>, %587, %cst_162 [1] : vector<32x32xf32> to vector<32xf32>
    %589 = vector.shape_cast %588 : vector<32xf32> to vector<32x1xf32>
    %cst_163 = arith.constant 3.125000e-02 : f32
    %590 = vector.broadcast %cst_163 : f32 to vector<32x1xf32>
    %591 = arith.mulf %589, %590 : vector<32x1xf32>
    %cst_164 = arith.constant 9.99999974E-6 : f32
    %592 = vector.broadcast %cst_164 : f32 to vector<32x1xf32>
    %593 = arith.addf %591, %592 : vector<32x1xf32>
    %594 = math.rsqrt %593 : vector<32x1xf32>
    %595 = vector.broadcast %594 : vector<32x1xf32> to vector<32x32xf32>
    %596 = arith.mulf %586, %595 : vector<32x32xf32>
    %597 = vector.broadcast %19 : vector<1x32xf32> to vector<32x32xf32>
    %598 = arith.mulf %596, %597 : vector<32x32xf32>
    %599 = vector.broadcast %20 : vector<1x32xf32> to vector<32x32xf32>
    %600 = arith.addf %598, %599 : vector<32x32xf32>
    %601 = arith.subf %600, %437 : vector<32x32xf32>
    %cst_165 = arith.constant 5.000000e-01 : f32
    %602 = vector.broadcast %cst_165 : f32 to vector<32x32xf32>
    %603 = arith.mulf %601, %602 : vector<32x32xf32>
    %604 = arith.addf %437, %603 : vector<32x32xf32>
    %cst_166 = arith.constant 5.000000e-01 : f32
    %605 = vector.broadcast %cst_166 : f32 to vector<32x32xf32>
    %606 = arith.cmpf oge, %604, %605 : vector<32x32xf32>
    %cst_167 = arith.constant 0.000000e+00 : f32
    %607 = vector.broadcast %cst_167 : f32 to vector<32x32xf32>
    %608 = arith.select %606, %607, %604 : vector<32x32xi1>, vector<32x32xf32>
    %609 = arith.extui %606 : vector<32x32xi1> to vector<32x32xi32>
    %610 = arith.sitofp %609 : vector<32x32xi32> to vector<32x32xf32>
    %611 = arith.addf %542, %610 : vector<32x32xf32>
    %612 = vector.shape_cast %611 : vector<32x32xf32> to vector<2x1x16x32xf32>
    %c0_168 = arith.constant 0 : index
    %c2 = arith.constant 2 : index
    %c0_169 = arith.constant 0 : index
    %c0_170 = arith.constant 0 : index
    %613 = vector.load %arg11[%c0_168, %c2, %c0_169, %c0_170] : memref<2x4x16x32xf32, #tpu.memory_space<vmem>>, vector<2x1x16x32xf32>
    tpu.vector_store %arg11[%c0_168, %c2, %c0_169, %c0_170], %612 {strides = array<i32>} : memref<2x4x16x32xf32, #tpu.memory_space<vmem>>, vector<2x1x16x32xf32>,
    %614 = vector.extract_strided_slice %96 {offsets = [0, 3, 0, 0], sizes = [2, 1, 16, 32], strides = [1, 1, 1, 1]} : vector<2x4x16x32xf32> to vector<2x1x16x32xf32>
    %615 = vector.shape_cast %614 : vector<2x1x16x32xf32> to vector<2x16x32xf32>
    %616 = vector.shape_cast %615 : vector<2x16x32xf32> to vector<32x32xf32>
    %617 = arith.subf %616, %453 : vector<32x32xf32>
    %cst_171 = arith.constant 5.000000e-01 : f32
    %618 = vector.broadcast %cst_171 : f32 to vector<32x32xf32>
    %619 = arith.mulf %617, %618 : vector<32x32xf32>
    %620 = arith.addf %453, %619 : vector<32x32xf32>
    %cst_172 = arith.constant 5.000000e-01 : f32
    %621 = vector.broadcast %cst_172 : f32 to vector<32x32xf32>
    %622 = arith.cmpf oge, %620, %621 : vector<32x32xf32>
    %623 = vector.extract_strided_slice %97 {offsets = [0, 3, 0, 0], sizes = [2, 1, 16, 32], strides = [1, 1, 1, 1]} : vector<2x4x16x32xf32> to vector<2x1x16x32xf32>
    %624 = vector.shape_cast %623 : vector<2x1x16x32xf32> to vector<2x16x32xf32>
    %625 = vector.shape_cast %624 : vector<2x16x32xf32> to vector<32x32xf32>
    %626 = arith.subf %625, %464 : vector<32x32xf32>
    %cst_173 = arith.constant 5.000000e-01 : f32
    %627 = vector.broadcast %cst_173 : f32 to vector<32x32xf32>
    %628 = arith.mulf %626, %627 : vector<32x32xf32>
    %629 = arith.addf %464, %628 : vector<32x32xf32>
    %cst_174 = arith.constant 5.000000e-01 : f32
    %630 = vector.broadcast %cst_174 : f32 to vector<32x32xf32>
    %631 = arith.cmpf oge, %629, %630 : vector<32x32xf32>
    %632 = vector.extract_strided_slice %98 {offsets = [0, 3, 0, 0], sizes = [2, 1, 16, 32], strides = [1, 1, 1, 1]} : vector<2x4x16x32xf32> to vector<2x1x16x32xf32>
    %633 = vector.shape_cast %632 : vector<2x1x16x32xf32> to vector<2x16x32xf32>
    %634 = vector.shape_cast %633 : vector<2x16x32xf32> to vector<32x32xf32>
    %635 = arith.subf %634, %475 : vector<32x32xf32>
    %cst_175 = arith.constant 5.000000e-01 : f32
    %636 = vector.broadcast %cst_175 : f32 to vector<32x32xf32>
    %637 = arith.mulf %635, %636 : vector<32x32xf32>
    %638 = arith.addf %475, %637 : vector<32x32xf32>
    %cst_176 = arith.constant 5.000000e-01 : f32
    %639 = vector.broadcast %cst_176 : f32 to vector<32x32xf32>
    %640 = arith.cmpf oge, %638, %639 : vector<32x32xf32>
    %641 = arith.extui %622 : vector<32x32xi1> to vector<32x32xi32>
    %642 = arith.sitofp %641 : vector<32x32xi32> to vector<32x32xf32>
    %643 = arith.truncf %642 : vector<32x32xf32> to vector<32x32xbf16>
    %644 = vector.shape_cast %643 : vector<32x32xbf16> to vector<2x16x32xbf16>
    %645 = arith.extui %631 : vector<32x32xi1> to vector<32x32xi32>
    %646 = arith.sitofp %645 : vector<32x32xi32> to vector<32x32xf32>
    %647 = arith.truncf %646 : vector<32x32xf32> to vector<32x32xbf16>
    %648 = vector.shape_cast %647 : vector<32x32xbf16> to vector<2x16x32xbf16>
    %649 = arith.extui %640 : vector<32x32xi1> to vector<32x32xi32>
    %650 = arith.sitofp %649 : vector<32x32xi32> to vector<32x32xf32>
    %651 = arith.truncf %650 : vector<32x32xf32> to vector<32x32xbf16>
    %652 = vector.shape_cast %651 : vector<32x32xbf16> to vector<2x16x32xbf16>
    "tpu.trace_start"() <{level = 10 : i32, message = "bld,ble->bde"}> : () -> ()
    %cst_177 = arith.constant dense<0.000000e+00> : vector<2x32x32xf32>
    %653 = tpu.matmul %648, %652, %cst_177 {dimension_numbers = #tpu.dot_dimension_numbers<[1], [1], [2], [2], [0, 0, 0, 2, 1, 2], [0], [0]>} : vector<2x16x32xbf16>, vector<2x16x32xbf16>, vector<2x32x32xf32> -> vector<2x32x32xf32>
    "tpu.trace_stop"() : () -> ()
    %654 = vector.shape_cast %5 : vector<32x32xf32> to vector<1x32x32xf32>
    %655 = vector.broadcast %654 : vector<1x32x32xf32> to vector<2x32x32xf32>
    %656 = arith.mulf %653, %655 : vector<2x32x32xf32>
    %657 = arith.truncf %656 : vector<2x32x32xf32> to vector<2x32x32xbf16>
    "tpu.trace_start"() <{level = 10 : i32, message = "bld,bde->ble"}> : () -> ()
    %cst_178 = arith.constant dense<0.000000e+00> : vector<2x16x32xf32>
    %658 = tpu.matmul %644, %657, %cst_178 {dimension_numbers = #tpu.dot_dimension_numbers<[2], [1], [1], [2], [0, 0, 0, 1, 1, 2], [0], [0]>} : vector<2x16x32xbf16>, vector<2x32x32xbf16>, vector<2x16x32xf32> -> vector<2x16x32xf32>
    "tpu.trace_stop"() : () -> ()
    %659 = vector.shape_cast %658 : vector<2x16x32xf32> to vector<32x32xf32>
    %660 = arith.subf %659, %502 : vector<32x32xf32>
    %cst_179 = arith.constant 5.000000e-01 : f32
    %661 = vector.broadcast %cst_179 : f32 to vector<32x32xf32>
    %662 = arith.mulf %660, %661 : vector<32x32xf32>
    %663 = arith.addf %502, %662 : vector<32x32xf32>
    %cst_180 = arith.constant 2.500000e-01 : f32
    %664 = vector.broadcast %cst_180 : f32 to vector<32x32xf32>
    %665 = arith.cmpf oge, %663, %664 : vector<32x32xf32>
    %666 = arith.extui %665 : vector<32x32xi1> to vector<32x32xi32>
    %667 = arith.sitofp %666 : vector<32x32xi32> to vector<32x32xf32>
    %668 = arith.truncf %667 : vector<32x32xf32> to vector<32x32xbf16>
    %cst_181 = arith.constant dense<0.000000e+00> : vector<32x32xf32>
    %669 = tpu.matmul %668, %6, %cst_181 {dimension_numbers = #tpu.dot_dimension_numbers<[1], [0], [0], [1], [0, 0, 1, 1], [], []>} : vector<32x32xbf16>, vector<32x32xbf16>, vector<32x32xf32> -> vector<32x32xf32>
    %670 = vector.broadcast %8 : vector<1x32xf32> to vector<32x32xf32>
    %671 = arith.addf %669, %670 : vector<32x32xf32>
    %cst_182 = arith.constant dense<0.000000e+00> : vector<32xf32>
    %672 = vector.multi_reduction <add>, %671, %cst_182 [1] : vector<32x32xf32> to vector<32xf32>
    %673 = vector.shape_cast %672 : vector<32xf32> to vector<32x1xf32>
    %cst_183 = arith.constant 3.125000e-02 : f32
    %674 = vector.broadcast %cst_183 : f32 to vector<32x1xf32>
    %675 = arith.mulf %673, %674 : vector<32x1xf32>
    %676 = vector.broadcast %675 : vector<32x1xf32> to vector<32x32xf32>
    %677 = arith.subf %671, %676 : vector<32x32xf32>
    %678 = arith.mulf %677, %677 : vector<32x32xf32>
    %cst_184 = arith.constant dense<0.000000e+00> : vector<32xf32>
    %679 = vector.multi_reduction <add>, %678, %cst_184 [1] : vector<32x32xf32> to vector<32xf32>
    %680 = vector.shape_cast %679 : vector<32xf32> to vector<32x1xf32>
    %cst_185 = arith.constant 3.125000e-02 : f32
    %681 = vector.broadcast %cst_185 : f32 to vector<32x1xf32>
    %682 = arith.mulf %680, %681 : vector<32x1xf32>
    %cst_186 = arith.constant 9.99999974E-6 : f32
    %683 = vector.broadcast %cst_186 : f32 to vector<32x1xf32>
    %684 = arith.addf %682, %683 : vector<32x1xf32>
    %685 = math.rsqrt %684 : vector<32x1xf32>
    %686 = vector.broadcast %685 : vector<32x1xf32> to vector<32x32xf32>
    %687 = arith.mulf %677, %686 : vector<32x32xf32>
    %688 = vector.broadcast %9 : vector<1x32xf32> to vector<32x32xf32>
    %689 = arith.mulf %687, %688 : vector<32x32xf32>
    %690 = vector.broadcast %10 : vector<1x32xf32> to vector<32x32xf32>
    %691 = arith.addf %689, %690 : vector<32x32xf32>
    %692 = arith.subf %691, %536 : vector<32x32xf32>
    %cst_187 = arith.constant 5.000000e-01 : f32
    %693 = vector.broadcast %cst_187 : f32 to vector<32x32xf32>
    %694 = arith.mulf %692, %693 : vector<32x32xf32>
    %695 = arith.addf %536, %694 : vector<32x32xf32>
    %cst_188 = arith.constant 5.000000e-01 : f32
    %696 = vector.broadcast %cst_188 : f32 to vector<32x32xf32>
    %697 = arith.cmpf oge, %695, %696 : vector<32x32xf32>
    %698 = vector.extract_strided_slice %21 {offsets = [0, 3, 0, 0], sizes = [2, 1, 16, 32], strides = [1, 1, 1, 1]} : vector<2x4x16x32xf32> to vector<2x1x16x32xf32>
    %699 = vector.shape_cast %698 : vector<2x1x16x32xf32> to vector<2x16x32xf32>
    %700 = vector.shape_cast %699 : vector<2x16x32xf32> to vector<32x32xf32>
    %701 = arith.extui %697 : vector<32x32xi1> to vector<32x32xi32>
    %702 = arith.sitofp %701 : vector<32x32xi32> to vector<32x32xf32>
    %703 = arith.addf %700, %702 : vector<32x32xf32>
    %704 = arith.truncf %703 : vector<32x32xf32> to vector<32x32xbf16>
    %cst_189 = arith.constant dense<0.000000e+00> : vector<32x128xf32>
    %705 = tpu.matmul %704, %11, %cst_189 {dimension_numbers = #tpu.dot_dimension_numbers<[1], [0], [0], [1], [0, 0, 1, 1], [], []>} : vector<32x32xbf16>, vector<32x128xbf16>, vector<32x128xf32> -> vector<32x128xf32>
    %706 = vector.broadcast %13 : vector<1x128xf32> to vector<32x128xf32>
    %707 = arith.addf %705, %706 : vector<32x128xf32>
    %cst_190 = arith.constant dense<0.000000e+00> : vector<32xf32>
    %708 = vector.multi_reduction <add>, %707, %cst_190 [1] : vector<32x128xf32> to vector<32xf32>
    %709 = vector.shape_cast %708 : vector<32xf32> to vector<32x1xf32>
    %cst_191 = arith.constant 7.812500e-03 : f32
    %710 = vector.broadcast %cst_191 : f32 to vector<32x1xf32>
    %711 = arith.mulf %709, %710 : vector<32x1xf32>
    %712 = vector.broadcast %711 : vector<32x1xf32> to vector<32x128xf32>
    %713 = arith.subf %707, %712 : vector<32x128xf32>
    %714 = arith.mulf %713, %713 : vector<32x128xf32>
    %cst_192 = arith.constant dense<0.000000e+00> : vector<32xf32>
    %715 = vector.multi_reduction <add>, %714, %cst_192 [1] : vector<32x128xf32> to vector<32xf32>
    %716 = vector.shape_cast %715 : vector<32xf32> to vector<32x1xf32>
    %cst_193 = arith.constant 7.812500e-03 : f32
    %717 = vector.broadcast %cst_193 : f32 to vector<32x1xf32>
    %718 = arith.mulf %716, %717 : vector<32x1xf32>
    %cst_194 = arith.constant 9.99999974E-6 : f32
    %719 = vector.broadcast %cst_194 : f32 to vector<32x1xf32>
    %720 = arith.addf %718, %719 : vector<32x1xf32>
    %721 = math.rsqrt %720 : vector<32x1xf32>
    %722 = vector.broadcast %721 : vector<32x1xf32> to vector<32x128xf32>
    %723 = arith.mulf %713, %722 : vector<32x128xf32>
    %724 = vector.broadcast %14 : vector<1x128xf32> to vector<32x128xf32>
    %725 = arith.mulf %723, %724 : vector<32x128xf32>
    %726 = vector.broadcast %15 : vector<1x128xf32> to vector<32x128xf32>
    %727 = arith.addf %725, %726 : vector<32x128xf32>
    %728 = arith.subf %727, %574 : vector<32x128xf32>
    %cst_195 = arith.constant 5.000000e-01 : f32
    %729 = vector.broadcast %cst_195 : f32 to vector<32x128xf32>
    %730 = arith.mulf %728, %729 : vector<32x128xf32>
    %731 = arith.addf %574, %730 : vector<32x128xf32>
    %cst_196 = arith.constant 5.000000e-01 : f32
    %732 = vector.broadcast %cst_196 : f32 to vector<32x128xf32>
    %733 = arith.cmpf oge, %731, %732 : vector<32x128xf32>
    %734 = arith.extui %733 : vector<32x128xi1> to vector<32x128xi32>
    %735 = arith.sitofp %734 : vector<32x128xi32> to vector<32x128xf32>
    %736 = arith.truncf %735 : vector<32x128xf32> to vector<32x128xbf16>
    %cst_197 = arith.constant dense<0.000000e+00> : vector<32x32xf32>
    %737 = tpu.matmul %736, %16, %cst_197 {dimension_numbers = #tpu.dot_dimension_numbers<[1], [0], [0], [1], [0, 0, 1, 1], [], []>} : vector<32x128xbf16>, vector<128x32xbf16>, vector<32x32xf32> -> vector<32x32xf32>
    %738 = vector.broadcast %18 : vector<1x32xf32> to vector<32x32xf32>
    %739 = arith.addf %737, %738 : vector<32x32xf32>
    %cst_198 = arith.constant dense<0.000000e+00> : vector<32xf32>
    %740 = vector.multi_reduction <add>, %739, %cst_198 [1] : vector<32x32xf32> to vector<32xf32>
    %741 = vector.shape_cast %740 : vector<32xf32> to vector<32x1xf32>
    %cst_199 = arith.constant 3.125000e-02 : f32
    %742 = vector.broadcast %cst_199 : f32 to vector<32x1xf32>
    %743 = arith.mulf %741, %742 : vector<32x1xf32>
    %744 = vector.broadcast %743 : vector<32x1xf32> to vector<32x32xf32>
    %745 = arith.subf %739, %744 : vector<32x32xf32>
    %746 = arith.mulf %745, %745 : vector<32x32xf32>
    %cst_200 = arith.constant dense<0.000000e+00> : vector<32xf32>
    %747 = vector.multi_reduction <add>, %746, %cst_200 [1] : vector<32x32xf32> to vector<32xf32>
    %748 = vector.shape_cast %747 : vector<32xf32> to vector<32x1xf32>
    %cst_201 = arith.constant 3.125000e-02 : f32
    %749 = vector.broadcast %cst_201 : f32 to vector<32x1xf32>
    %750 = arith.mulf %748, %749 : vector<32x1xf32>
    %cst_202 = arith.constant 9.99999974E-6 : f32
    %751 = vector.broadcast %cst_202 : f32 to vector<32x1xf32>
    %752 = arith.addf %750, %751 : vector<32x1xf32>
    %753 = math.rsqrt %752 : vector<32x1xf32>
    %754 = vector.broadcast %753 : vector<32x1xf32> to vector<32x32xf32>
    %755 = arith.mulf %745, %754 : vector<32x32xf32>
    %756 = vector.broadcast %19 : vector<1x32xf32> to vector<32x32xf32>
    %757 = arith.mulf %755, %756 : vector<32x32xf32>
    %758 = vector.broadcast %20 : vector<1x32xf32> to vector<32x32xf32>
    %759 = arith.addf %757, %758 : vector<32x32xf32>
    %760 = arith.subf %759, %608 : vector<32x32xf32>
    %cst_203 = arith.constant 5.000000e-01 : f32
    %761 = vector.broadcast %cst_203 : f32 to vector<32x32xf32>
    %762 = arith.mulf %760, %761 : vector<32x32xf32>
    %763 = arith.addf %608, %762 : vector<32x32xf32>
    %cst_204 = arith.constant 5.000000e-01 : f32
    %764 = vector.broadcast %cst_204 : f32 to vector<32x32xf32>
    %765 = arith.cmpf oge, %763, %764 : vector<32x32xf32>
    %766 = arith.extui %765 : vector<32x32xi1> to vector<32x32xi32>
    %767 = arith.sitofp %766 : vector<32x32xi32> to vector<32x32xf32>
    %768 = arith.addf %703, %767 : vector<32x32xf32>
    %769 = vector.shape_cast %768 : vector<32x32xf32> to vector<2x1x16x32xf32>
    %c0_205 = arith.constant 0 : index
    %c3 = arith.constant 3 : index
    %c0_206 = arith.constant 0 : index
    %c0_207 = arith.constant 0 : index
    %770 = vector.load %arg11[%c0_205, %c3, %c0_206, %c0_207] : memref<2x4x16x32xf32, #tpu.memory_space<vmem>>, vector<2x1x16x32xf32>
    tpu.vector_store %arg11[%c0_205, %c3, %c0_206, %c0_207], %769 {strides = array<i32>} : memref<2x4x16x32xf32, #tpu.memory_space<vmem>>, vector<2x1x16x32xf32>,
    return
  }
  func.func @transform_0(%arg0: i32) -> (i32, i32, i32, i32) {
    %c0_i32 = arith.constant 0 : i32
    %c0_i32_0 = arith.constant 0 : i32
    %c0_i32_1 = arith.constant 0 : i32
    %c0_i32_2 = arith.constant 0 : i32
    return %arg0, %c0_i32, %c0_i32_0, %c0_i32_1 : i32, i32, i32, i32
  }
  func.func @transform_1(%arg0: i32) -> (i32, i32) {
    %c0_i32 = arith.constant 0 : i32
    %c0_i32_0 = arith.constant 0 : i32
    %c0_i32_1 = arith.constant 0 : i32
    return %c0_i32, %c0_i32_0 : i32, i32
  }
  func.func @transform_2(%arg0: i32) -> (i32, i32) {
    %c0_i32 = arith.constant 0 : i32
    %c0_i32_0 = arith.constant 0 : i32
    %c0_i32_1 = arith.constant 0 : i32
    return %c0_i32, %c0_i32_0 : i32, i32
  }
  func.func @transform_3(%arg0: i32) -> (i32, i32) {
    %c0_i32 = arith.constant 0 : i32
    %c0_i32_0 = arith.constant 0 : i32
    %c0_i32_1 = arith.constant 0 : i32
    return %c0_i32, %c0_i32_0 : i32, i32
  }
  func.func @transform_4(%arg0: i32) -> (i32, i32) {
    %c0_i32 = arith.constant 0 : i32
    %c0_i32_0 = arith.constant 0 : i32
    %c0_i32_1 = arith.constant 0 : i32
    return %c0_i32, %c0_i32_0 : i32, i32
  }
  func.func @transform_5(%arg0: i32) -> (i32, i32) {
    %c0_i32 = arith.constant 0 : i32
    %c0_i32_0 = arith.constant 0 : i32
    %c0_i32_1 = arith.constant 0 : i32
    return %c0_i32, %c0_i32_0 : i32, i32
  }
  func.func @transform_6(%arg0: i32) -> (i32, i32) {
    %c0_i32 = arith.constant 0 : i32
    %c0_i32_0 = arith.constant 0 : i32
    %c0_i32_1 = arith.constant 0 : i32
    return %c0_i32, %c0_i32_0 : i32, i32
  }
  func.func @transform_7(%arg0: i32) -> (i32, i32) {
    %c0_i32 = arith.constant 0 : i32
    %c0_i32_0 = arith.constant 0 : i32
    %c0_i32_1 = arith.constant 0 : i32
    return %c0_i32, %c0_i32_0 : i32, i32
  }
  func.func @transform_8(%arg0: i32) -> (i32, i32) {
    %c0_i32 = arith.constant 0 : i32
    %c0_i32_0 = arith.constant 0 : i32
    %c0_i32_1 = arith.constant 0 : i32
    return %c0_i32, %c0_i32_0 : i32, i32
  }
  func.func @transform_9(%arg0: i32) -> (i32, i32) {
    %c0_i32 = arith.constant 0 : i32
    %c0_i32_0 = arith.constant 0 : i32
    %c0_i32_1 = arith.constant 0 : i32
    return %c0_i32, %c0_i32_0 : i32, i32
  }
  func.func @transform_10(%arg0: i32) -> (i32, i32, i32, i32) {
    %c0_i32 = arith.constant 0 : i32
    %c0_i32_0 = arith.constant 0 : i32
    %c0_i32_1 = arith.constant 0 : i32
    %c0_i32_2 = arith.constant 0 : i32
    return %arg0, %c0_i32, %c0_i32_0, %c0_i32_1 : i32, i32, i32, i32
  }
}

</mosaic_0001>

<bundles_post_ra>
// kernel: block_forward.1
= control target key start
LH: loop header
LB: loop body
LE: loop exit
PB: predicated region body
PF: predicated region fallthrough
CT: control target
= control target key end

     0   :  { %s7692_s0 = inlined_call_operand.vmem [shape: f32[2,4,16,32], index: 0, kind: input, shape index: {}]   ;;  %s7693_s1 = inlined_call_operand.vmem [shape: bf16[32,96], index: 1, kind: input, shape index: {}]   ;;  %s7694_s2 = inlined_call_operand.vmem [shape: f32[3,96], index: 2, kind: input, shape index: {}]   ;;  %s7695_s3 = inlined_call_operand.vmem [shape: f32[32,32], index: 3, kind: input, shape index: {}]   ;;  %s7696_s4 = inlined_call_operand.vmem [shape: bf16[32,32], index: 4, kind: input, shape index: {}]   ;;  %s7697_s5 = inlined_call_operand.vmem [shape: f32[3,32], index: 5, kind: input, shape index: {}]   ;;  %s7698_s6 = inlined_call_operand.vmem [shape: bf16[32,128], index: 6, kind: input, shape index: {}]   ;;  %s7699_s7 = inlined_call_operand.vmem [shape: f32[3,128], index: 7, kind: input, shape index: {}]   ;;  %s7700_s8 = inlined_call_operand.vmem [shape: bf16[128,32], index: 8, kind: input, shape index: {}]   ;;  %s7701_s9 = inlined_call_operand.vmem [shape: f32[3,32], index: 9, kind: input, shape index: {}]   ;;  %s7702_s10 = inlined_call_operand.hbm [shape: f32[2,4,16,32], index: 10, kind: output, shape index: {}]  }
   0x1   :  { %v4950_v0 = vld [vmem:[%s7693_s1 + $0x8] sm:$0xff]  ;;  %v4949_v1 = vld [vmem:[%s7693_s1] sm:$0xff] }
   0x2   :  { %141 = vmatpush.bf16.msra.mxu0 %v4950_v0  ;;  %v73_v2 = vld [vmem:[%s7692_s0] sm:$0xff]  ;;  %v74_v3 = vld [vmem:[%s7692_s0 + $0x8] sm:$0xff] }
   0x3   :  { %15 = vsyncpa [#allocation3], 0  ;;  %v89_v4 = vpack.c.bf16 %v74_v3, %v73_v2  ;;  %vm110_vm0 = vcmask 261120   ;;  %v75_v5 = vld [vmem:[%s7692_s0 + $0x10] sm:$0xff]  ;;  %v76_v6 = vld [vmem:[%s7692_s0 + $0x18] sm:$0xff]  ;;  %s5257_s18 = smov 64  }
   0x4   :  { %v90_v7 = vpack.c.bf16 %v76_v6, %v75_v5  ;;  %v77_v8 = vld [vmem:[%s7692_s0 + $0x20] sm:$0xff]  ;;  %v78_v9 = vld [vmem:[%s7692_s0 + $0x28] sm:$0xff]  ;;  %v79_v11 = vld [vmem:[%s7692_s0 + $0x30] sm:$0xff]  ;;  %s5258_s19 = smov 96   ;;  %s4705_s15 = sshll.u32 %s7702_s10, 4  ;;  %s4706_s15 = int_to_ptr.hbm [resolvable:$true] %s4705_s15 }
   0x5   :  { %v91_v10 = vpack.c.bf16 %v78_v9, %v77_v8  ;;  %v80_v12 = vld [vmem:[%s7692_s0 + $0x38] sm:$0xff]  ;;  %v81_v14 = vld [vmem:[%s7692_s0 + $0x40] sm:$0xff]  ;;  %v82_v15 = vld [vmem:[%s7692_s0 + $0x48] sm:$0xff] }
   0x6   :  { %142 = vmatpush.bf16.msra.mxu0 %v4949_v1  ;;  %v92_v13 = vpack.c.bf16 %v80_v12, %v79_v11  ;;  %v93_v16 = vpack.c.bf16 %v82_v15, %v81_v14  ;;  %v5363_v17 = vld [vmem:[%s7694_s2] sm:$0x7] }
   0x7   :  { %v5366_v18 = vperm.slane %v5363_v17, 0 }
   0x9   :  { %4725 = vmatmul.msk.bf16.vlgmr.msra.gmra.mxu0 %vm110_vm0, %v89_v4 }
  0x19   :  { %4726 = vmatmul.msk.bf16.gmra.mxu0 %vm110_vm0, %v90_v7 }
  0x29   :  { %4727 = vmatmul.msk.bf16.gmra.mxu0 %vm110_vm0, %v91_v10 }
  0x39   :  { %4728 = vmatmul.msk.bf16.gmra.mxu0 %vm110_vm0, %v92_v13 }
  0x49   :  { %4729 = vmatmul.msk.bf16.gmra.mxu0 %vm110_vm0, %v93_v16 }
  0x86   :  { %v144_v19 = vpop.f32.mrf.mxu0 }
  0x87   :  { %v5369_v20 = vadd.f32 %v144_v19, %v5366_v18 }
  0x89   :  { %1082 = vrot.lane.b32.xlu2 %v5369_v20, %s5257_s18  ;;  %586 = vrot.lane.b32.xlu0 %v5369_v20, %s5258_s19 }
  0x8e   :  { %v146_v21 = vpop.f32.mrf.mxu0 }
  0x8f   :  { %v5376_v22 = vadd.f32 %v146_v21, %v5366_v18 }
  0x91   :  { %1084 = vrot.lane.b32.xlu2 %v5376_v22, %s5257_s18  ;;  %588 = vrot.lane.b32.xlu0 %v5376_v22, %s5258_s19 }
  0x96   :  { %v5382_v23 = vpop.f32.mrf.mxu0 }
  0x9e   :  { %v5384_v24 = vpop.f32.mrf.mxu0 }
  0xa6   :  { %v5386_v25 = vpop.f32.mrf.mxu0 }
  0xae   :  { %v5388_v26 = vpop.f32.mrf.mxu0 }
  0xb6   :  { %v5390_v27 = vpop.f32.mrf.mxu0 }
  0xb7   :  { %7737 = vst [vmem:[#allocation5_spill] sm:$0xff] %v5390_v27 }
  0xbe   :  { %v5392_v28 = vpop.f32.mrf.mxu0 }
  0xc6   :  { %v164_v29 = vpop.f32.mrf.mxu0 }
  0xc7   :  { %v5395_v30 = vadd.f32 %v164_v29, %v5366_v18 }
  0xc9   :  { %602 = vrot.lane.b32.xlu1 %v5395_v30, %s5258_s19  ;;  %1098 = vrot.lane.b32.xlu0 %v5395_v30, %s5257_s18 }
  0xce   :  { %v166_v31 = vpop.f32.mrf.mxu0 }
  0xcf   :  { %v5402_v32 = vadd.f32 %v166_v31, %v5366_v18 }
  0xd1   :  { %604 = vrot.lane.b32.xlu1 %v5402_v32, %s5258_s19 }
  0xd9   :  { %1100 = vrot.lane.b32.xlu1 %v5402_v32, %s5257_s18 }
  0xe3   :  { %v1083_v35 = vpop.permute.xlu2 %1082 }
  0xe4   :  { %v1130_v37 = vsel %vm110_vm0, %v1083_v35, 0.0 }
  0xeb   :  { %v1085_v39 = vpop.permute.xlu2 %1084 }
  0xec   :  { %v1133_v40 = vsel %vm110_vm0, %v1085_v39, 0.0 }
  0xfb   :  { %v587_v33 = vpop.permute.xlu0 %586 }
  0xfc   :  { %v634_v34 = vsel %vm110_vm0, %v587_v33, 0.0 }
  0xfd   :  { %635 = vadd.xlane.f32.xlu2 %v634_v34 }
 0x103   :  { %v589_v36 = vpop.permute.xlu0 %588 }
 0x104   :  { %v637_v38 = vsel %vm110_vm0, %v589_v36, 0.0 }
 0x105   :  { %1131 = vadd.xlane.f32.xlu2 %v1130_v37  ;;  %638 = vadd.xlane.f32.xlu0 %v637_v38 }
 0x10d   :  { %1134 = vadd.xlane.f32.xlu0 %v1133_v40 }
 0x13b   :  { %v603_v41 = vpop.permute.xlu1 %602  ;;  %v1099_v43 = vpop.permute.xlu0 %1098 }
 0x13c   :  { %v658_v42 = vsel %vm110_vm0, %v603_v41, 0.0  ;;  %v1154_v46 = vsel %vm110_vm0, %v1099_v43, 0.0 }
 0x13d   :  { %659 = vadd.xlane.f32.xlu1 %v658_v42 }
 0x143   :  { %v605_v44 = vpop.permute.xlu1 %604 }
 0x144   :  { %v661_v45 = vsel %vm110_vm0, %v605_v44, 0.0 }
 0x145   :  { %662 = vadd.xlane.f32.xlu2 %v661_v45  ;;  %1155 = vadd.xlane.f32.xlu1 %v1154_v46 }
 0x14b   :  { %v1101_v47 = vpop.permute.xlu1 %1100 }
 0x14c   :  { %v1157_v48 = vsel %vm110_vm0, %v1101_v47, 0.0 }
 0x14d   :  { %1158 = vadd.xlane.f32.xlu2 %v1157_v48 }
 0x170   :  { %v636_v49 = vpop.xlane.xlu2 %635 }
 0x171   :  { %v682_v50 = vmul.f32 0.03125, %v636_v49 }
 0x173   :  { %v5417_v51 = vsub.f32 %v5369_v20, %v682_v50 }
 0x175   :  { %v714_v52 = vmul.f32 %v5417_v51, %v5417_v51 }
 0x177   :  { %746 = vrot.lane.b32.xlu0 %v714_v52, %s5258_s19 }
 0x178   :  { %v639_v53 = vpop.xlane.xlu0 %638  ;;  %v1132_v55 = vpop.xlane.xlu2 %1131 }
 0x179   :  { %v683_v54 = vmul.f32 0.03125, %v639_v53  ;;  %v1178_v57 = vmul.f32 0.03125, %v1132_v55 }
 0x17b   :  { %v5423_v56 = vsub.f32 %v5376_v22, %v683_v54  ;;  %v5429_v59 = vsub.f32 %v5369_v20, %v1178_v57 }
 0x17d   :  { %v715_v58 = vmul.f32 %v5423_v56, %v5423_v56  ;;  %v1210_v60 = vmul.f32 %v5429_v59, %v5429_v59 }
 0x17f   :  { %748 = vrot.lane.b32.xlu1 %v715_v58, %s5258_s19 }
 0x180   :  { %v1135_v5 = vpop.xlane.xlu0 %1134 }
 0x181   :  { %v1179_v8 = vmul.f32 0.03125, %v1135_v5 }
 0x183   :  { %v5453_v12 = vsub.f32 %v5376_v22, %v1179_v8  ;;  %v5473_v8 = vperm.slane %v5363_v17, 1 }
 0x185   :  { %v1211_v16 = vmul.f32 %v5453_v12, %v5453_v12 }
 0x187   :  { %1242 = vrot.lane.b32.xlu1 %v1210_v60, %s5257_s18 }
 0x1b0   :  { %v660_v61 = vpop.xlane.xlu1 %659 }
 0x1b1   :  { %v690_v62 = vmul.f32 0.03125, %v660_v61 }
 0x1b3   :  { %v5435_v63 = vsub.f32 %v5395_v30, %v690_v62 }
 0x1b5   :  { %v722_v0 = vmul.f32 %v5435_v63, %v5435_v63 }
 0x1b7   :  { %762 = vrot.lane.b32.xlu2 %v722_v0, %s5258_s19 }
 0x1b8   :  { %v663_v1 = vpop.xlane.xlu2 %662  ;;  %v1156_v2 = vpop.xlane.xlu1 %1155 }
 0x1b9   :  { %v691_v3 = vmul.f32 0.03125, %v663_v1  ;;  %v1186_v4 = vmul.f32 0.03125, %v1156_v2 }
 0x1bb   :  { %v5441_v6 = vsub.f32 %v5402_v32, %v691_v3  ;;  %v5444_v7 = vsub.f32 %v5395_v30, %v1186_v4 }
 0x1bd   :  { %v723_v9 = vmul.f32 %v5441_v6, %v5441_v6  ;;  %v1218_v10 = vmul.f32 %v5444_v7, %v5444_v7 }
 0x1bf   :  { %764 = vrot.lane.b32.xlu0 %v723_v9, %s5258_s19  ;;  %1258 = vrot.lane.b32.xlu2 %v1218_v10, %s5257_s18 }
 0x1c0   :  { %v1159_v11 = vpop.xlane.xlu2 %1158 }
 0x1c1   :  { %v1187_v13 = vmul.f32 0.03125, %v1159_v11 }
 0x1c3   :  { %v5456_v14 = vsub.f32 %v5402_v32, %v1187_v13  ;;  %v5476_v13 = vperm.slane %v5363_v17, 2 }
 0x1c5   :  { %v1219_v15 = vmul.f32 %v5456_v14, %v5456_v14 }
 0x1c7   :  { %1260 = vrot.lane.b32.xlu1 %v1219_v15, %s5257_s18  ;;  %1244 = vrot.lane.b32.xlu0 %v1211_v16, %s5257_s18 }
 0x1e9   :  { %v747_v19 = vpop.permute.xlu0 %746 }
 0x1ea   :  { %v794_v21 = vsel %vm110_vm0, %v747_v19, 0.0 }
 0x1f1   :  { %v749_v29 = vpop.permute.xlu1 %748  ;;  %795 = vadd.xlane.f32.xlu0 %v794_v21 }
 0x1f2   :  { %v797_v31 = vsel %vm110_vm0, %v749_v29, 0.0 }
 0x1f3   :  { %798 = vadd.xlane.f32.xlu2 %v797_v31 }
 0x1f9   :  { %v1243_v33 = vpop.permute.xlu1 %1242 }
 0x1fa   :  { %v1290_v34 = vsel %vm110_vm0, %v1243_v33, 0.0 }
 0x1fb   :  { %1291 = vadd.xlane.f32.xlu2 %v1290_v34 }
 0x211   :  { %v763_v35 = vpop.permute.xlu2 %762 }
 0x212   :  { %v818_v36 = vsel %vm110_vm0, %v763_v35, 0.0 }
 0x213   :  { %819 = vadd.xlane.f32.xlu1 %v818_v36 }
 0x219   :  { %v1259_v39 = vpop.permute.xlu2 %1258 }
 0x21a   :  { %v1314_v43 = vsel %vm110_vm0, %v1259_v39, 0.0  ;;  %v7703_v39 = vmov 0.0  }
 0x231   :  { %v765_v37 = vpop.permute.xlu0 %764 }
 0x232   :  { %v821_v38 = vsel %vm110_vm0, %v765_v37, 0.0 }
 0x233   :  { %822 = vadd.xlane.f32.xlu0 %v821_v38 }
 0x239   :  { %v1261_v40 = vpop.permute.xlu1 %1260  ;;  %v1245_v41 = vpop.permute.xlu0 %1244 }
 0x23a   :  { %v1317_v42 = vsel %vm110_vm0, %v1261_v40, 0.0  ;;  %v1293_v44 = vsel %vm110_vm0, %v1245_v41, 0.0 }
 0x23b   :  { %1318 = vadd.xlane.f32.xlu2 %v1317_v42  ;;  %1315 = vadd.xlane.f32.xlu0 %v1314_v43 }
 0x23c   :  { %1294 = vadd.xlane.f32.xlu1 %v1293_v44 }
 0x264   :  { %v796_v45 = vpop.xlane.xlu0 %795 }
 0x265   :  { %v842_v46 = vmul.f32 0.03125, %v796_v45 }
 0x266   :  { %v799_v47 = vpop.xlane.xlu2 %798 }
 0x267   :  { %v858_v48 = vadd.f32 1e-05, %v842_v46  ;;  %v843_v49 = vmul.f32 0.03125, %v799_v47 }
 0x269   :  { %4986 = vrsqrt.f32 %v858_v48  ;;  %v859_v50 = vadd.f32 1e-05, %v843_v49  ;;  %vm880_vm2 = vweird.f32 %v858_v48 }
 0x26b   :  { %4988 = vrsqrt.f32 %v859_v50  ;;  %vm890_vm5 = vweird.f32 %v859_v50 }
 0x26e   :  { %v1292_v52 = vpop.xlane.xlu2 %1291 }
 0x26f   :  { %v4987_v53 = vpop.eup %4986  ;;  %v1338_v54 = vmul.f32 0.03125, %v1292_v52 }
 0x270   :  { %v875_v55 = vmul.f32 %v4987_v53, %v858_v48  ;;  %vm881_vm1 = vweird.f32 %v4987_v53 }
 0x271   :  { %v4989_v57 = vpop.eup %4988  ;;  %v1354_v58 = vadd.f32 1e-05, %v1338_v54  ;;  %vm882_vm4 = vmor %vm880_vm2, %vm881_vm1 }
 0x272   :  { %v876_v60 = vmul.f32 %v4987_v53, %v875_v55  ;;  %v885_v61 = vmul.f32 %v4989_v57, %v859_v50  ;;  %vm891_vm3 = vweird.f32 %v4989_v57 }
 0x273   :  { %4990 = vrsqrt.f32 %v1354_v58  ;;  %vm892_vm6 = vmor %vm890_vm5, %vm891_vm3  ;;  %vm1376_vm8 = vweird.f32 %v1354_v58 }
 0x274   :  { %v877_v62 = vmul.f32 0.5, %v876_v60  ;;  %v886_v0 = vmul.f32 %v4989_v57, %v885_v61 }
 0x276   :  { %v878_v1 = vsub.f32 1.5, %v877_v62  ;;  %v887_v2 = vmul.f32 0.5, %v886_v0 }
 0x278   :  { %v879_v3 = vmul.f32 %v4987_v53, %v878_v1  ;;  %v888_v4 = vsub.f32 1.5, %v887_v2 }
 0x279   :  { %v4991_v5 = vpop.eup %4990 }
 0x27a   :  { %v883_v9 = vsel %vm882_vm4, %v4987_v53, %v879_v3  ;;  %v889_v10 = vmul.f32 %v4989_v57, %v888_v4  ;;  %v1371_v11 = vmul.f32 %v4991_v5, %v1354_v58  ;;  %vm1377_vm7 = vweird.f32 %v4991_v5 }
 0x27b   :  { %v1034_v15 = vmul.f32 %v883_v9, %v5417_v51  ;;  %vm1378_vm9 = vmor %vm1376_vm8, %vm1377_vm7 }
 0x27c   :  { %v893_v16 = vsel %vm892_vm6, %v4989_v57, %v889_v10  ;;  %v1372_v19 = vmul.f32 %v4991_v5, %v1371_v11 }
 0x27d   :  { %v1035_v21 = vmul.f32 %v893_v16, %v5423_v56  ;;  %v1050_v29 = vmul.f32 %v1034_v15, %v5473_v8 }
 0x27e   :  { %v1373_v31 = vmul.f32 0.5, %v1372_v19 }
 0x27f   :  { %v1051_v33 = vmul.f32 %v1035_v21, %v5473_v8  ;;  %v1066_v34 = vadd.f32 %v1050_v29, %v5476_v13 }
 0x280   :  { %v1374_v35 = vsub.f32 1.5, %v1373_v31 }
 0x281   :  { %v1067_v36 = vadd.f32 %v1051_v33, %v5476_v13  ;;  %v1594_v17 = vmul.f32 0.5, %v1066_v34 }
 0x282   :  { %v1375_v37 = vmul.f32 %v4991_v5, %v1374_v35 }
 0x283   :  { %v1595_v51 = vmul.f32 0.5, %v1067_v36  ;;  %vm1602_vm10 = vcmp.ge.f32.partialorder %v1594_v17, 0.5 }
 0x284   :  { %v1379_v38 = vsel %vm1378_vm9, %v4991_v5, %v1375_v37  ;;  %v4737_v56 = vsel %vm1602_vm10, 1.0, %v7703_v39  ;;  %v5485_v40 = vsel %vm1602_vm10, 0.0, %v1594_v17 }
 0x285   :  { %v1530_v41 = vmul.f32 %v1379_v38, %v5429_v59  ;;  %vm1603_vm11 = vcmp.ge.f32.partialorder %v1595_v51, 0.5  ;;  %v1646_v42 = vpack.c.bf16 %v4737_v56, %v4737_v56 }
 0x286   :  { %v820_v43 = vpop.xlane.xlu1 %819  ;;  %v5488_v44 = vsel %vm1603_vm11, 0.0, %v1595_v51  ;;  %v4738_v45 = vsel %vm1603_vm11, 1.0, %v7703_v39 }
 0x287   :  { %v850_v46 = vmul.f32 0.03125, %v820_v43  ;;  %v1647_v47 = vpack.c.bf16 %v4738_v45, %v4738_v45  ;;  %v1546_v48 = vmul.f32 %v1530_v41, %v5473_v8  ;;  %v1664_v50 = vunpack.c.l.b16 %v1646_v42 }
 0x289   :  { %v866_v49 = vadd.f32 1e-05, %v850_v46  ;;  %v1665_v52 = vunpack.c.l.b16 %v1647_v47  ;;  %v1562_v53 = vadd.f32 %v1546_v48, %v5476_v13 }
 0x28b   :  { %4992 = vrsqrt.f32 %v866_v49  ;;  %v1666_v54 = vpack.c.b16 %v1665_v52, %v1664_v50  ;;  %v5493_v55 = vmul.f32 0.5, %v1562_v53  ;;  %vm960_vm14 = vweird.f32 %v866_v49 }
 0x28d   :  { %1667 = vrot.lane.b32.xlu1 %v1666_v54, %s5258_s19  ;;  %vm1618_vm12 = vcmp.ge.f32.partialorder %v5493_v55, 0.5 }
 0x28e   :  { %v5500_v59 = vsel %vm1618_vm12, 0.0, %v5493_v55 }
 0x291   :  { %v4993_v57 = vpop.eup %4992 }
 0x292   :  { %v955_v58 = vmul.f32 %v4993_v57, %v866_v49  ;;  %vm961_vm13 = vweird.f32 %v4993_v57 }
 0x293   :  { %vm962_vm15 = vmor %vm960_vm14, %vm961_vm13 }
 0x294   :  { %v956_v60 = vmul.f32 %v4993_v57, %v955_v58 }
 0x296   :  { %v957_v61 = vmul.f32 0.5, %v956_v60 }
 0x298   :  { %v958_v62 = vsub.f32 1.5, %v957_v61 }
 0x29a   :  { %v959_v0 = vmul.f32 %v4993_v57, %v958_v62 }
 0x29c   :  { %v963_v1 = vsel %vm962_vm15, %v4993_v57, %v959_v0 }
 0x29d   :  { %v1042_v2 = vmul.f32 %v963_v1, %v5435_v63 }
 0x29f   :  { %v1058_v3 = vmul.f32 %v1042_v2, %v5473_v8 }
 0x2a1   :  { %v1074_v4 = vadd.f32 %v1058_v3, %v5476_v13 }
 0x2a3   :  { %v1596_v5 = vmul.f32 0.5, %v1074_v4 }
 0x2a5   :  { %vm1604_vm1 = vcmp.ge.f32.partialorder %v1596_v5, 0.5 }
 0x2a6   :  { %v823_v9 = vpop.xlane.xlu0 %822  ;;  %v5506_v10 = vsel %vm1604_vm1, 0.0, %v1596_v5  ;;  %v4739_v1 = vsel %vm1604_vm1, 1.0, %v7703_v39 }
 0x2a7   :  { %v851_v11 = vmul.f32 0.03125, %v823_v9 }
 0x2a9   :  { %v867_v15 = vadd.f32 1e-05, %v851_v11 }
 0x2ab   :  { %4994 = vrsqrt.f32 %v867_v15  ;;  %vm970_vm3 = vweird.f32 %v867_v15 }
 0x2ae   :  { %v1319_v16 = vpop.xlane.xlu2 %1318  ;;  %v1316_v19 = vpop.xlane.xlu0 %1315 }
 0x2af   :  { %v1347_v21 = vmul.f32 0.03125, %v1319_v16  ;;  %v1295_v29 = vpop.xlane.xlu1 %1294  ;;  %v1346_v31 = vmul.f32 0.03125, %v1316_v19  ;;  %v1648_v19 = vpack.c.bf16 %v4739_v1, %v4739_v1  ;;  %v84_v1 = vld [vmem:[%s7692_s0 + $0x58] sm:$0xff] }
 0x2b0   :  { %v1339_v33 = vmul.f32 0.03125, %v1295_v29 }
 0x2b1   :  { %v4995_v63 = vpop.eup %4994  ;;  %v1363_v34 = vadd.f32 1e-05, %v1347_v21  ;;  %v1362_v35 = vadd.f32 1e-05, %v1346_v31 }
 0x2b2   :  { %v965_v36 = vmul.f32 %v4995_v63, %v867_v15  ;;  %v1355_v17 = vadd.f32 1e-05, %v1339_v33  ;;  %vm971_vm2 = vweird.f32 %v4995_v63 }
 0x2b3   :  { %4996 = vrsqrt.f32 %v1363_v34  ;;  %vm972_vm4 = vmor %vm970_vm3, %vm971_vm2  ;;  %vm1466_vm7 = vweird.f32 %v1363_v34  ;;  %vm1456_vm13 = vweird.f32 %v1362_v35 }
 0x2b4   :  { %v966_v37 = vmul.f32 %v4995_v63, %v965_v36  ;;  %4998 = vrsqrt.f32 %v1355_v17  ;;  %vm1386_vm10 = vweird.f32 %v1355_v17  ;;  %v1722_v36 = vunpack.c.l.b16 %v1648_v19 }
 0x2b5   :  { %5000 = vrsqrt.f32 %v1362_v35 }
 0x2b6   :  { %v967_v51 = vmul.f32 0.5, %v966_v37 }
 0x2b8   :  { %v968_v38 = vsub.f32 1.5, %v967_v51 }
 0x2b9   :  { %v4997_v56 = vpop.eup %4996 }
 0x2ba   :  { %v4999_v41 = vpop.eup %4998  ;;  %v969_v42 = vmul.f32 %v4995_v63, %v968_v38  ;;  %v1461_v43 = vmul.f32 %v4997_v56, %v1363_v34  ;;  %vm1467_vm5 = vweird.f32 %v4997_v56  ;;  %v4741_v38 = vsel %vm1618_vm12, 1.0, %v7703_v39 }
 0x2bb   :  { %v5001_v45 = vpop.eup %5000  ;;  %v1381_v46 = vmul.f32 %v4999_v41, %v1355_v17  ;;  %vm1387_vm6 = vweird.f32 %v4999_v41  ;;  %vm1468_vm9 = vmor %vm1466_vm7, %vm1467_vm5  ;;  %vm1694_vm12 = vcmask 130048  }
 0x2bc   :  { %v973_v47 = vsel %vm972_vm4, %v4995_v63, %v969_v42  ;;  %v1462_v48 = vmul.f32 %v4997_v56, %v1461_v43  ;;  %v1451_v49 = vmul.f32 %v5001_v45, %v1362_v35  ;;  %vm1457_vm8 = vweird.f32 %v5001_v45  ;;  %vm1388_vm11 = vmor %vm1386_vm10, %vm1387_vm6 }
 0x2bd   :  { %v1043_v50 = vmul.f32 %v973_v47, %v5441_v6  ;;  %v1382_v52 = vmul.f32 %v4999_v41, %v1381_v46  ;;  %vm1458_vm14 = vmor %vm1456_vm13, %vm1457_vm8  ;;  %v1658_v43 = vpack.c.bf16 %v4741_v38, %v4741_v38 }
 0x2be   :  { %v1463_v53 = vmul.f32 0.5, %v1462_v48  ;;  %v1452_v54 = vmul.f32 %v5001_v45, %v1451_v49 }
 0x2bf   :  { %v1383_v57 = vmul.f32 0.5, %v1382_v52  ;;  %v1059_v58 = vmul.f32 %v1043_v50, %v5473_v8 }
 0x2c0   :  { %v1464_v60 = vsub.f32 1.5, %v1463_v53  ;;  %v1453_v61 = vmul.f32 0.5, %v1452_v54 }
 0x2c1   :  { %v1384_v62 = vsub.f32 1.5, %v1383_v57  ;;  %v1075_v0 = vadd.f32 %v1059_v58, %v5476_v13  ;;  %v1688_v57 = vunpack.c.l.b16 %v1658_v43 }
 0x2c2   :  { %v1465_v2 = vmul.f32 %v4997_v56, %v1464_v60  ;;  %v1454_v3 = vsub.f32 1.5, %v1453_v61 }
 0x2c3   :  { %v1385_v6 = vmul.f32 %v4999_v41, %v1384_v62  ;;  %v1597_v4 = vmul.f32 0.5, %v1075_v0  ;;  %v83_v0 = vld [vmem:[%s7692_s0 + $0x50] sm:$0xff] }
 0x2c4   :  { %v1469_v9 = vsel %vm1468_vm9, %v4997_v56, %v1465_v2  ;;  %v1455_v11 = vmul.f32 %v5001_v45, %v1454_v3  ;;  %v94_v2 = vpack.c.bf16 %v84_v1, %v83_v0  ;;  %v184_v3 = vsel %vm110_vm0, %v5369_v20, 0.0 }
 0x2c5   :  { %v1539_v15 = vmul.f32 %v1469_v9, %v5456_v14  ;;  %v1389_v16 = vsel %vm1388_vm11, %v4999_v41, %v1385_v6  ;;  %vm1605_vm15 = vcmp.ge.f32.partialorder %v1597_v4, 0.5  ;;  %v187_v6 = vsel %vm110_vm0, %v5376_v22, 0.0 }
 0x2c6   :  { %v1531_v5 = vmul.f32 %v1389_v16, %v5453_v12  ;;  %v1459_v21 = vsel %vm1458_vm14, %v5001_v45, %v1455_v11  ;;  %v4740_v29 = vsel %vm1605_vm15, 1.0, %v7703_v39  ;;  %v5516_v31 = vsel %vm1605_vm15, 0.0, %v1597_v4  ;;  %4730 = vmatmul.msk.bf16.gmra.mxu0 %vm110_vm0, %v94_v2 }
 0x2c7   :  { %v1538_v33 = vmul.f32 %v1459_v21, %v5444_v7  ;;  %v1649_v63 = vpack.c.bf16 %v4740_v29, %v4740_v29  ;;  %v1555_v34 = vmul.f32 %v1539_v15, %v5473_v8  ;;  %v208_v4 = vsel %vm110_vm0, %v5395_v30, 0.0 }
 0x2c8   :  { %v1547_v35 = vmul.f32 %v1531_v5, %v5473_v8  ;;  %v211_v9 = vsel %vm110_vm0, %v5402_v32, 0.0 }
 0x2c9   :  { %v1723_v14 = vunpack.c.l.b16 %v1649_v63  ;;  %v1554_v17 = vmul.f32 %v1538_v33, %v5473_v8  ;;  %v1571_v37 = vadd.f32 %v1555_v34, %v5476_v13 }
 0x2ca   :  { %v1563_v12 = vadd.f32 %v1547_v35, %v5476_v13 }
 0x2cb   :  { %v1724_v51 = vpack.c.b16 %v1723_v14, %v1722_v36  ;;  %v1570_v7 = vadd.f32 %v1554_v17, %v5476_v13  ;;  %v1613_v56 = vmul.f32 0.5, %v1571_v37 }
 0x2cc   :  { %v1611_v41 = vmul.f32 0.5, %v1563_v12 }
 0x2cd   :  { %1725 = vrot.lane.b32.xlu0 %v1724_v51, %s5258_s19  ;;  %v1612_v42 = vmul.f32 0.5, %v1570_v7  ;;  %vm1621_vm1 = vcmp.ge.f32.partialorder %v1613_v56, 0.5 }
 0x2ce   :  { %vm1619_vm2 = vcmp.ge.f32.partialorder %v1611_v41, 0.5  ;;  %v5529_v45 = vsel %vm1621_vm1, 0.0, %v1613_v56  ;;  %v4744_v46 = vsel %vm1621_vm1, 1.0, %v7703_v39 }
 0x2cf   :  { %v4742_v47 = vsel %vm1619_vm2, 1.0, %v7703_v39  ;;  %v5533_v48 = vsel %vm1619_vm2, 0.0, %v1611_v41  ;;  %vm1620_vm3 = vcmp.ge.f32.partialorder %v1612_v42, 0.5  ;;  %v1661_v55 = vpack.c.bf16 %v4744_v46, %v4744_v46 }
 0x2d0   :  { %v1659_v49 = vpack.c.bf16 %v4742_v47, %v4742_v47  ;;  %v4743_v50 = vsel %vm1620_vm3, 1.0, %v7703_v39  ;;  %v5536_v52 = vsel %vm1620_vm3, 0.0, %v1612_v42 }
 0x2d1   :  { %v1660_v53 = vpack.c.bf16 %v4743_v50, %v4743_v50  ;;  %v1747_v54 = vunpack.c.l.b16 %v1661_v55 }
 0x2d2   :  { %v1689_v58 = vunpack.c.l.b16 %v1659_v49 }
 0x2d3   :  { %v1746_v60 = vunpack.c.l.b16 %v1660_v53 }
 0x2d4   :  { %v1690_v61 = vpack.c.b16 %v1689_v58, %v1688_v57 }
 0x2d5   :  { %v1748_v62 = vpack.c.b16 %v1747_v54, %v1746_v60 }
 0x2d6   :  { %1691 = vrot.lane.b32.xlu2 %v1690_v61, %s5257_s18 }
 0x2d7   :  { %1749 = vrot.lane.b32.xlu0 %v1748_v62, %s5257_s18 }
 0x2ff   :  { %185 = vadd.xlane.f32.xlu2 %v184_v3  ;;  %v1668_v15 = vpop.permute.xlu1 %1667 }
 0x301   :  { %188 = vadd.xlane.f32.xlu0 %v187_v6 }
 0x307   :  { %209 = vadd.xlane.f32.xlu2 %v208_v4 }
 0x309   :  { %212 = vadd.xlane.f32.xlu0 %v211_v9 }
 0x330   :  { %v1692_v11 = vpop.permute.xlu2 %1691 }
 0x331   :  { %1708 = vmatpush.bf16.msra.mxu1 %v1692_v11 }
 0x33f   :  { %v1726_v16 = vpop.permute.xlu0 %1725 }
 0x340   :  { %4971 = vxpose.binary.xlu1.c.b16.start.end [1/2] (short) (narrow) %v1726_v16, %v1668_v15, 32 }
 0x343   :  { %v169_v56 = vpop.f32.mrf.mxu0 }
 0x344   :  { %v5584_v41 = vadd.f32 %v169_v56, %v5366_v18 }
 0x349   :  { %v1750_v19 = vpop.permute.xlu0 %1749 }
 0x34a   :  { %1765 = vmatpush.bf16.msra.mxu2 %v1750_v19 }
 0x34b   :  { %v171_v42 = vpop.f32.mrf.mxu0 }
 0x372   :  { %v186_v5 = vpop.xlane.xlu2 %185 }
 0x373   :  { %v232_v43 = vmul.f32 0.03125, %v186_v5 }
 0x374   :  { %v189_v21 = vpop.xlane.xlu0 %188 }
 0x375   :  { %v233_v29 = vmul.f32 0.03125, %v189_v21 }
 0x377   :  { %v5556_v33 = vsub.f32 %v5376_v22, %v233_v29 }
 0x379   :  { %v265_v63 = vmul.f32 %v5556_v33, %v5556_v33 }
 0x37a   :  { %v210_v34 = vpop.xlane.xlu2 %209 }
 0x37b   :  { %v240_v35 = vmul.f32 0.03125, %v210_v34  ;;  %v283_v36 = vsel %vm110_vm0, %v265_v63, 0.0 }
 0x37c   :  { %v213_v14 = vpop.xlane.xlu0 %212  ;;  %284 = vadd.xlane.f32.xlu2 %v283_v36 }
 0x37d   :  { %v5562_v17 = vsub.f32 %v5395_v30, %v240_v35  ;;  %v241_v37 = vmul.f32 0.03125, %v213_v14  ;;  %v5575_v30 = vadd.f32 %v5382_v23, %v5366_v18  ;;  %v5591_v23 = vadd.f32 %v171_v42, %v5366_v18 }
 0x37f   :  { %v5565_v12 = vsub.f32 %v5402_v32, %v241_v37  ;;  %v272_v22 = vmul.f32 %v5562_v17, %v5562_v17  ;;  %v5581_v32 = vadd.f32 %v5384_v24, %v5366_v18  ;;  %v5598_v24 = vsub.f32 %v5369_v20, %v232_v43 }
 0x381   :  { %v304_v51 = vsel %vm110_vm0, %v272_v22, 0.0  ;;  %v273_v38 = vmul.f32 %v5565_v12, %v5565_v12  ;;  %v264_v46 = vmul.f32 %v5598_v24, %v5598_v24 }
 0x382   :  { %305 = vadd.xlane.f32.xlu0 %v304_v51 }
 0x383   :  { %v307_v7 = vsel %vm110_vm0, %v273_v38, 0.0  ;;  %v280_v47 = vsel %vm110_vm0, %v264_v46, 0.0 }
 0x384   :  { %308 = vadd.xlane.f32.xlu2 %v307_v7 }
 0x396   :  { %590 = vrot.lane.b32.xlu0 %v5575_v30, %s5258_s19 }
 0x39c   :  { %592 = vrot.lane.b32.xlu2 %v5581_v32, %s5258_s19 }
 0x39e   :  { %606 = vrot.lane.b32.xlu0 %v5584_v41, %s5258_s19 }
 0x3a4   :  { %1086 = vrot.lane.b32.xlu2 %v5575_v30, %s5257_s18 }
 0x3a6   :  { %608 = vrot.lane.b32.xlu0 %v5591_v23, %s5258_s19 }
 0x3ac   :  { %1102 = vrot.lane.b32.xlu2 %v5584_v41, %s5257_s18 }
 0x3ae   :  { %1088 = vrot.lane.b32.xlu0 %v5581_v32, %s5257_s18 }
 0x3b0   :  { %281 = vadd.xlane.f32.xlu1 %v280_v47 }
 0x3b6   :  { %1104 = vrot.lane.b32.xlu0 %v5591_v23, %s5257_s18 }
 0x3ec   :  { %v4972_v55 = vpop.trf.xlu1 }
 0x3ed   :  { %4745 = vmatmul.msk.bf16.vlgmr.msra.gmra.mxu1 %vm1694_vm12, %v4972_v55 }
 0x3ef   :  { %v285_v20 = vpop.xlane.xlu2 %284 }
 0x3f0   :  { %v329_v49 = vmul.f32 0.03125, %v285_v20 }
 0x3f2   :  { %v345_v50 = vadd.f32 1e-05, %v329_v49 }
 0x3f4   :  { %5002 = vrsqrt.f32 %v345_v50  ;;  %v4973_v53 = vpop.trf.xlu1  ;;  %vm376_vm5 = vweird.f32 %v345_v50 }
 0x3f5   :  { %v306_v54 = vpop.xlane.xlu0 %305  ;;  %4747 = vmatmul.msk.bf16.vlgmr.msra.gmra.mxu2 %vm1694_vm12, %v4973_v53 }
 0x3f6   :  { %v336_v57 = vmul.f32 0.03125, %v306_v54 }
 0x3f7   :  { %v309_v58 = vpop.xlane.xlu2 %308 }
 0x3f8   :  { %v352_v60 = vadd.f32 1e-05, %v336_v57  ;;  %v337_v61 = vmul.f32 0.03125, %v309_v58 }
 0x3fa   :  { %v5003_v62 = vpop.eup %5002  ;;  %5004 = vrsqrt.f32 %v352_v60  ;;  %v353_v0 = vadd.f32 1e-05, %v337_v61  ;;  %vm446_vm8 = vweird.f32 %v352_v60 }
 0x3fb   :  { %v371_v1 = vmul.f32 %v5003_v62, %v345_v50  ;;  %vm377_vm4 = vweird.f32 %v5003_v62 }
 0x3fc   :  { %5006 = vrsqrt.f32 %v353_v0  ;;  %v4974_v2 = vpop.trf.xlu1  ;;  %vm378_vm6 = vmor %vm376_vm5, %vm377_vm4  ;;  %vm456_vm11 = vweird.f32 %v353_v0 }
 0x3fd   :  { %v372_v3 = vmul.f32 %v5003_v62, %v371_v1  ;;  %4746 = vmatmul.msk.bf16.gmra.mxu1 %vm1694_vm12, %v4974_v2 }
 0x3ff   :  { %v373_v6 = vmul.f32 0.5, %v372_v3  ;;  %v593_v4 = vpop.permute.xlu2 %592 }
 0x400   :  { %v5005_v9 = vpop.eup %5004  ;;  %v643_v11 = vsel %vm110_vm0, %v593_v4, 0.0 }
 0x401   :  { %v374_v15 = vsub.f32 1.5, %v373_v6  ;;  %v441_v16 = vmul.f32 %v5005_v9, %v352_v60  ;;  %644 = vadd.xlane.f32.xlu1 %v643_v11  ;;  %vm447_vm7 = vweird.f32 %v5005_v9 }
 0x402   :  { %v5007_v19 = vpop.eup %5006  ;;  %vm448_vm10 = vmor %vm446_vm8, %vm447_vm7 }
 0x403   :  { %v375_v5 = vmul.f32 %v5003_v62, %v374_v15  ;;  %v442_v21 = vmul.f32 %v5005_v9, %v441_v16  ;;  %v451_v29 = vmul.f32 %v5007_v19, %v353_v0  ;;  %vm457_vm9 = vweird.f32 %v5007_v19 }
 0x404   :  { %v4975_v63 = vpop.trf.xlu1  ;;  %vm458_vm13 = vmor %vm456_vm11, %vm457_vm9 }
 0x405   :  { %v379_v34 = vsel %vm378_vm6, %v5003_v62, %v375_v5  ;;  %v443_v35 = vmul.f32 0.5, %v442_v21  ;;  %v452_v36 = vmul.f32 %v5007_v19, %v451_v29  ;;  %4748 = vmatmul.msk.bf16.gmra.mxu2 %vm1694_vm12, %v4975_v63 }
 0x406   :  { %v521_v14 = vmul.f32 %v379_v34, %v5556_v33 }
 0x407   :  { %v444_v37 = vsub.f32 1.5, %v443_v35  ;;  %v453_v22 = vmul.f32 0.5, %v452_v36  ;;  %v1087_v3 = vpop.permute.xlu2 %1086 }
 0x408   :  { %v591_v51 = vpop.permute.xlu0 %590  ;;  %v538_v38 = vmul.f32 %v5473_v8, %v521_v14  ;;  %v1136_v4 = vsel %vm110_vm0, %v1087_v3, 0.0 }
 0x409   :  { %v445_v7 = vmul.f32 %v5005_v9, %v444_v37  ;;  %v454_v56 = vsub.f32 1.5, %v453_v22  ;;  %v640_v42 = vsel %vm110_vm0, %v591_v51, 0.0 }
 0x40a   :  { %641 = vadd.xlane.f32.xlu0 %v640_v42  ;;  %v555_v43 = vadd.f32 %v5476_v13, %v538_v38 }
 0x40b   :  { %v449_v46 = vsel %vm448_vm10, %v5005_v9, %v445_v7  ;;  %v455_v47 = vmul.f32 %v5007_v19, %v454_v56 }
 0x40c   :  { %v528_v33 = vmul.f32 %v449_v46, %v5562_v17  ;;  %v5619_v55 = vmul.f32 0.5, %v555_v43 }
 0x40d   :  { %v459_v20 = vsel %vm458_vm13, %v5007_v19, %v455_v47 }
 0x40e   :  { %v545_v49 = vmul.f32 %v5473_v8, %v528_v33  ;;  %v529_v50 = vmul.f32 %v459_v20, %v5565_v12  ;;  %vm1587_vm14 = vcmp.ge.f32.partialorder %v5619_v55, 0.5 }
 0x40f   :  { %v5627_v53 = vsel %vm1587_vm14, 0.0, %v5619_v55  ;;  %v1103_v21 = vpop.permute.xlu2 %1102 }
 0x410   :  { %v546_v54 = vmul.f32 %v5473_v8, %v529_v50  ;;  %v607_v57 = vpop.permute.xlu0 %606  ;;  %v562_v17 = vadd.f32 %v5476_v13, %v545_v49  ;;  %v1160_v34 = vsel %vm110_vm0, %v1103_v21, 0.0 }
 0x411   :  { %v664_v58 = vsel %vm110_vm0, %v607_v57, 0.0 }
 0x412   :  { %665 = vadd.xlane.f32.xlu1 %v664_v58  ;;  %v563_v60 = vadd.f32 %v5476_v13, %v546_v54  ;;  %v5633_v61 = vmul.f32 0.5, %v562_v17  ;;  %v44_v54 = vld [vmem:[%s7695_s3 + $0x10] sm:$0xff]  ;;  %v43_v17 = vld [vmem:[%s7695_s3 + $0x8] sm:$0xff] }
 0x414   :  { %v5635_v12 = vmul.f32 0.5, %v563_v60  ;;  %vm1588_vm15 = vcmp.ge.f32.partialorder %v5633_v61, 0.5 }
 0x415   :  { %v5641_v62 = vsel %vm1588_vm15, 0.0, %v5633_v61  ;;  %v5700_v61 = vld [vmem:[%s7696_s4 + $0x8] sm:$0xff] }
 0x416   :  { %vm1589_vm1 = vcmp.ge.f32.partialorder %v5635_v12, 0.5  ;;  %1912 = vmatpush.bf16.msrb.mxu1 %v5700_v61 }
 0x417   :  { %v5647_v0 = vsel %vm1589_vm1, 0.0, %v5635_v12  ;;  %v5706_v12 = vld [vmem:[%s7696_s4] sm:$0xff] }
 0x418   :  { %v609_v1 = vpop.permute.xlu0 %608 }
 0x419   :  { %v667_v2 = vsel %vm110_vm0, %v609_v1, 0.0  ;;  %v42_v1 = vld [vmem:[%s7695_s3] sm:$0xff] }
 0x41a   :  { %668 = vadd.xlane.f32.xlu1 %v667_v2  ;;  %1913 = vmatpush.bf16.msrb.mxu1 %v5706_v12 }
 0x420   :  { %v1089_v6 = vpop.permute.xlu0 %1088 }
 0x421   :  { %v1139_v19 = vsel %vm110_vm0, %v1089_v6, 0.0  ;;  %v45_v6 = vld [vmem:[%s7695_s3 + $0x18] sm:$0xff] }
 0x422   :  { %1137 = vadd.xlane.f32.xlu1 %v1136_v4 }
 0x423   :  { %v282_v9 = vpop.xlane.xlu1 %281 }
 0x424   :  { %v328_v11 = vmul.f32 0.03125, %v282_v9 }
 0x426   :  { %v344_v15 = vadd.f32 1e-05, %v328_v11 }
 0x428   :  { %5008 = vrsqrt.f32 %v344_v15  ;;  %v1105_v16 = vpop.permute.xlu0 %1104  ;;  %vm366_vm3 = vweird.f32 %v344_v15 }
 0x429   :  { %v1163_v5 = vsel %vm110_vm0, %v1105_v16, 0.0 }
 0x42a   :  { %1140 = vadd.xlane.f32.xlu1 %v1139_v19  ;;  %1164 = vadd.xlane.f32.xlu2 %v1163_v5 }
 0x42e   :  { %v5009_v29 = vpop.eup %5008 }
 0x42f   :  { %v361_v63 = vmul.f32 %v5009_v29, %v344_v15  ;;  %vm367_vm2 = vweird.f32 %v5009_v29 }
 0x430   :  { %vm368_vm4 = vmor %vm366_vm3, %vm367_vm2 }
 0x431   :  { %v362_v35 = vmul.f32 %v5009_v29, %v361_v63 }
 0x432   :  { %1161 = vadd.xlane.f32.xlu1 %v1160_v34 }
 0x433   :  { %v363_v36 = vmul.f32 0.5, %v362_v35 }
 0x435   :  { %v364_v14 = vsub.f32 1.5, %v363_v36  ;;  %v4734_v36 = vsel %vm1587_vm14, 1.0, %v7703_v39 }
 0x437   :  { %v365_v37 = vmul.f32 %v5009_v29, %v364_v14 }
 0x439   :  { %v369_v22 = vsel %vm368_vm4, %v5009_v29, %v365_v37 }
 0x43a   :  { %v520_v51 = vmul.f32 %v369_v22, %v5598_v24 }
 0x43c   :  { %v537_v38 = vmul.f32 %v5473_v8, %v520_v51 }
 0x43e   :  { %v554_v7 = vadd.f32 %v5476_v13, %v537_v38  ;;  %v1635_v38 = vpack.c.bf16 %v4734_v36, %v4734_v36 }
 0x440   :  { %v1578_v56 = vmul.f32 0.5, %v554_v7 }
 0x442   :  { %vm1586_vm5 = vcmp.ge.f32.partialorder %v1578_v56, 0.5 }
 0x443   :  { %v5658_v42 = vsel %vm1586_vm5, 0.0, %v1578_v56  ;;  %v4733_v29 = vsel %vm1586_vm5, 1.0, %v7703_v39 }
 0x444   :  { %v1634_v37 = vpack.c.bf16 %v4733_v29, %v4733_v29 }
 0x46a   :  { %v1710_v43 = vpop.f32.mrf.mxu1 }
 0x46b   :  { %v1777_v15 = vmul.f32 %v1710_v43, %v42_v1  ;;  %v1795_v43 = vunpack.c.l.b16 %v1634_v37 }
 0x46d   :  { %v1785_v63 = vpack.c.bf16 %v1777_v15, %v1777_v15 }
 0x46f   :  { %v1802_v7 = vunpack.c.l.b16 %v1785_v63 }
 0x472   :  { %v1712_v46 = vpop.f32.mrf.mxu1 }
 0x473   :  { %v1778_v4 = vmul.f32 %v1712_v46, %v43_v17 }
 0x474   :  { %v645_v47 = vpop.xlane.xlu1 %644 }
 0x475   :  { %v685_v33 = vmul.f32 0.03125, %v645_v47  ;;  %v1786_v5 = vpack.c.bf16 %v1778_v4, %v1778_v4 }
 0x477   :  { %v5661_v20 = vsub.f32 %v5581_v32, %v685_v33  ;;  %v1803_v22 = vunpack.c.l.b16 %v1786_v5  ;;  %v1796_v33 = vunpack.c.l.b16 %v1635_v38 }
 0x478   :  { %v1767_v49 = vpop.f32.mrf.mxu2 }
 0x479   :  { %v717_v24 = vmul.f32 %v5661_v20, %v5661_v20  ;;  %v1806_v47 = vpack.c.b16 %v1803_v22, %v1802_v7 }
 0x47a   :  { %v1715_v50 = vpop.f32.mrf.mxu1 }
 0x47b   :  { %752 = vrot.lane.b32.xlu0 %v717_v24, %s5258_s19  ;;  %v1779_v60 = vmul.f32 %v1715_v50, %v44_v54  ;;  %v1797_v50 = vpack.c.b16 %v1796_v33, %v1795_v43 }
 0x47d   :  { %v642_v57 = vpop.xlane.xlu0 %641  ;;  %v1787_v16 = vpack.c.bf16 %v1779_v60, %v1779_v60 }
 0x47e   :  { %v684_v58 = vmul.f32 0.03125, %v642_v57  ;;  %v1781_v57 = vmul.f32 %v1767_v49, %v42_v1 }
 0x47f   :  { %v1804_v34 = vunpack.c.l.b16 %v1787_v16 }
 0x480   :  { %v5676_v2 = vsub.f32 %v5575_v30, %v684_v58  ;;  %v1769_v3 = vpop.f32.mrf.mxu2 }
 0x481   :  { %v1782_v56 = vmul.f32 %v1769_v3, %v43_v17  ;;  %v4736_v17 = vsel %vm1589_vm1, 1.0, %v7703_v39 }
 0x482   :  { %v1717_v9 = vpop.f32.mrf.mxu1  ;;  %v716_v11 = vmul.f32 %v5676_v2, %v5676_v2  ;;  %v1637_v1 = vpack.c.bf16 %v4736_v17, %v4736_v17 }
 0x483   :  { %v1780_v19 = vmul.f32 %v1717_v9, %v45_v6  ;;  %v1790_v55 = vpack.c.bf16 %v1782_v56, %v1782_v56  ;;  %v4735_v9 = vsel %vm1588_vm15, 1.0, %v7703_v39 }
 0x484   :  { %750 = vrot.lane.b32.xlu2 %v716_v11, %s5258_s19  ;;  %v1789_v11 = vpack.c.bf16 %v1781_v57, %v1781_v57  ;;  %v1636_v49 = vpack.c.bf16 %v4735_v9, %v4735_v9 }
 0x485   :  { %v1788_v21 = vpack.c.bf16 %v1780_v19, %v1780_v19  ;;  %v1837_v3 = vunpack.c.l.b16 %v1790_v55  ;;  %v666_v55 = vpop.xlane.xlu1 %665 }
 0x486   :  { %v1829_v5 = vunpack.c.l.b16 %v1636_v49 }
 0x487   :  { %v1805_v35 = vunpack.c.l.b16 %v1788_v21  ;;  %v1830_v21 = vunpack.c.l.b16 %v1637_v1 }
 0x488   :  { %v1772_v14 = vpop.f32.mrf.mxu2 }
 0x489   :  { %v1807_v51 = vpack.c.b16 %v1805_v35, %v1804_v34  ;;  %v1783_v46 = vmul.f32 %v1772_v14, %v44_v54  ;;  %v1831_v29 = vpack.c.b16 %v1830_v21, %v1829_v5 }
 0x48b   :  { %1819 = vmatpush.bf16.msra.mxu3 %v1807_v51  ;;  %v1791_v58 = vpack.c.bf16 %v1783_v46, %v1783_v46 }
 0x48d   :  { %v1838_v15 = vunpack.c.l.b16 %v1791_v58  ;;  %v5726_v58 = vld [vmem:[%s7697_s5] sm:$0x7]  ;;  %s5262_s5 = smov 128  }
 0x48f   :  { %1820 = vmatpush.bf16.msra.mxu3 %v1806_v47 }
 0x490   :  { %v1774_v24 = vpop.f32.mrf.mxu2 }
 0x491   :  { %v1784_v60 = vmul.f32 %v1774_v24, %v45_v6  ;;  %v1836_v6 = vunpack.c.l.b16 %v1789_v11 }
 0x492   :  { %4749 = vmatmul.msk.bf16.vlgmr.msra.gmra.mxu3 %vm110_vm0, %v1797_v50 }
 0x493   :  { %v1792_v4 = vpack.c.bf16 %v1784_v60, %v1784_v60  ;;  %v1840_v19 = vpack.c.b16 %v1837_v3, %v1836_v6  ;;  %v5729_v60 = vperm.slane %v5726_v58, 0 }
 0x495   :  { %v1839_v54 = vunpack.c.l.b16 %v1792_v4  ;;  %7738 = vst [vmem:[#allocation6_spill] sm:$0xff] %v5729_v60 }
 0x497   :  { %v1841_v16 = vpack.c.b16 %v1839_v54, %v1838_v15  ;;  %v669_v54 = vpop.xlane.xlu1 %668 }
 0x499   :  { %1853 = vmatpush.bf16.msrb.mxu3 %v1841_v16 }
 0x49d   :  { %1854 = vmatpush.bf16.msrb.mxu3 %v1840_v19 }
 0x49f   :  { %v1138_v1 = vpop.xlane.xlu1 %1137 }
 0x4a0   :  { %v1180_v19 = vmul.f32 0.03125, %v1138_v1 }
 0x4a2   :  { %4750 = vmatmul.msk.bf16.vlgmr.msrb.gmra.mxu3 %vm110_vm0, %v1831_v29  ;;  %v5739_v29 = vsub.f32 %v5575_v30, %v1180_v19 }
 0x515   :  { %v1822_v63 = vpop.f32.mrf.mxu3 }
 0x516   :  { %v1861_v34 = vmul.f32 0.5, %v1822_v63 }
 0x518   :  { %vm1869_vm6 = vcmp.ge.f32.partialorder %v1861_v34, 0.25 }
 0x519   :  { %v5709_v35 = vsel %vm1869_vm6, 0.0, %v1861_v34  ;;  %v4751_v37 = vsel %vm1869_vm6, 1.0, %v7703_v39  ;;  %v1212_v34 = vmul.f32 %v5739_v29, %v5739_v29 }
 0x51d   :  { %v1824_v36 = vpop.f32.mrf.mxu3 }
 0x51e   :  { %v1862_v14 = vmul.f32 0.5, %v1824_v36  ;;  %v692_v36 = vmul.f32 0.03125, %v666_v55 }
 0x520   :  { %vm1870_vm7 = vcmp.ge.f32.partialorder %v1862_v14, 0.25 }
 0x521   :  { %v4752_v22 = vsel %vm1870_vm7, 1.0, %v7703_v39  ;;  %v5713_v51 = vsel %vm1870_vm7, 0.0, %v1862_v14  ;;  %v5746_v14 = vsub.f32 %v5584_v41, %v692_v36 }
 0x522   :  { %v1885_v38 = vpack.c.bf16 %v4752_v22, %v4751_v37  ;;  %v693_v37 = vmul.f32 0.03125, %v669_v54 }
 0x523   :  { %v724_v22 = vmul.f32 %v5746_v14, %v5746_v14 }
 0x524   :  { %4763 = vmatmul.msk.bf16.vlgmr.msrb.gmra.mxu1 %vm110_vm0, %v1885_v38  ;;  %v5752_v38 = vsub.f32 %v5591_v23, %v693_v37 }
 0x525   :  { %v1856_v7 = vpop.f32.mrf.mxu3 }
 0x526   :  { %v1863_v43 = vmul.f32 0.5, %v1856_v7  ;;  %v725_v7 = vmul.f32 %v5752_v38, %v5752_v38 }
 0x528   :  { %vm1871_vm8 = vcmp.ge.f32.partialorder %v1863_v43, 0.25 }
 0x529   :  { %v5716_v46 = vsel %vm1871_vm8, 0.0, %v1863_v43  ;;  %v4753_v56 = vsel %vm1871_vm8, 1.0, %v7703_v39  ;;  %v1165_v43 = vpop.xlane.xlu2 %1164 }
 0x52d   :  { %v1858_v47 = vpop.f32.mrf.mxu3 }
 0x52e   :  { %v1864_v33 = vmul.f32 0.5, %v1858_v47 }
 0x530   :  { %vm1872_vm9 = vcmp.ge.f32.partialorder %v1864_v33, 0.25 }
 0x531   :  { %v4754_v24 = vsel %vm1872_vm9, 1.0, %v7703_v39  ;;  %v5720_v50 = vsel %vm1872_vm9, 0.0, %v1864_v33  ;;  %v751_v47 = vpop.permute.xlu2 %750  ;;  %v1141_v33 = vpop.xlane.xlu1 %1140 }
 0x532   :  { %v1886_v57 = vpack.c.bf16 %v4754_v24, %v4753_v56  ;;  %v753_v56 = vpop.permute.xlu0 %752 }
 0x534   :  { %4764 = vmatmul.msk.bf16.gmra.mxu1 %vm110_vm0, %v1886_v57 }
 0x5a1   :  { %v1915_v4 = vpop.f32.mrf.mxu1 }
 0x5a2   :  { %v1916_v9 = vadd.f32 %v1915_v4, %v5729_v60 }
 0x5a4   :  { %v1925_v11 = vsel %vm110_vm0, %v1916_v9, 0.0 }
 0x5a5   :  { %1926 = vadd.xlane.f32.xlu2 %v1925_v11 }
 0x5a9   :  { %v1917_v15 = vpop.f32.mrf.mxu1 }
 0x5aa   :  { %v1918_v17 = vadd.f32 %v1917_v15, %v5729_v60  ;;  %v1162_v15 = vpop.xlane.xlu1 %1161 }
 0x5ac   :  { %v1928_v3 = vsel %vm110_vm0, %v1918_v17, 0.0 }
 0x5ad   :  { %1929 = vadd.xlane.f32.xlu0 %v1928_v3 }
 0x5b1   :  { %v1920_v16 = vpop.f32.mrf.mxu1 }
 0x5b2   :  { %v1921_v49 = vadd.f32 %v1920_v16, %v5729_v60 }
 0x5b4   :  { %v1931_v6 = vsel %vm110_vm0, %v1921_v49, 0.0 }
 0x5b5   :  { %1932 = vadd.xlane.f32.xlu1 %v1931_v6 }
 0x5b9   :  { %v1922_v5 = vpop.f32.mrf.mxu1 }
 0x5ba   :  { %v1923_v21 = vadd.f32 %v1922_v5, %v5729_v60 }
 0x5bc   :  { %v1934_v63 = vsel %vm110_vm0, %v1923_v21, 0.0 }
 0x5bd   :  { %1935 = vadd.xlane.f32.xlu2 %v1934_v63 }
 0x5c1   :  { %1246 = vrot.lane.b32.xlu0 %v1212_v34, %s5257_s18  ;;  %v1188_v34 = vmul.f32 0.03125, %v1162_v15 }
 0x5ce   :  { %766 = vrot.lane.b32.xlu1 %v724_v22, %s5258_s19  ;;  %v5773_v22 = vsub.f32 %v5584_v41, %v1188_v34 }
 0x5d5   :  { %768 = vrot.lane.b32.xlu2 %v725_v7, %s5258_s19 }
 0x618   :  { %v1927_v24 = vpop.xlane.xlu2 %1926 }
 0x619   :  { %v1937_v57 = vmul.f32 0.03125, %v1927_v24 }
 0x61b   :  { %v5757_v55 = vsub.f32 %v1916_v9, %v1937_v57 }
 0x61d   :  { %v1945_v4 = vmul.f32 %v5757_v55, %v5757_v55 }
 0x61f   :  { %v1949_v11 = vsel %vm110_vm0, %v1945_v4, 0.0  ;;  %v1189_v4 = vmul.f32 0.03125, %v1165_v43 }
 0x620   :  { %v1930_v54 = vpop.xlane.xlu0 %1929  ;;  %1950 = vadd.xlane.f32.xlu2 %v1949_v11 }
 0x621   :  { %v1938_v3 = vmul.f32 0.03125, %v1930_v54  ;;  %v5784_v11 = vsub.f32 %v5591_v23, %v1189_v4 }
 0x623   :  { %v5762_v16 = vsub.f32 %v1918_v17, %v1938_v3  ;;  %v1221_v15 = vmul.f32 %v5784_v11, %v5784_v11 }
 0x625   :  { %v1946_v1 = vmul.f32 %v5762_v16, %v5762_v16 }
 0x627   :  { %v1952_v6 = vsel %vm110_vm0, %v1946_v1, 0.0  ;;  %v803_v1 = vsel %vm110_vm0, %v753_v56, 0.0  ;;  %v4954_v56 = vld [vmem:[%s7698_s6 + $0x8] sm:$0xff] }
 0x628   :  { %1953 = vadd.xlane.f32.xlu0 %v1952_v6  ;;  %v1933_v19 = vpop.xlane.xlu1 %1932  ;;  %2078 = vmatpush.bf16.msrb.mxu2 %v4954_v56 }
 0x629   :  { %v1939_v9 = vmul.f32 0.03125, %v1933_v19 }
 0x62b   :  { %v5767_v5 = vsub.f32 %v1921_v49, %v1939_v9  ;;  %v1220_v49 = vmul.f32 %v5773_v22, %v5773_v22 }
 0x62d   :  { %v1947_v63 = vmul.f32 %v5767_v5, %v5767_v5 }
 0x62f   :  { %v1955_v36 = vsel %vm110_vm0, %v1947_v63, 0.0 }
 0x630   :  { %1956 = vadd.xlane.f32.xlu0 %v1955_v36  ;;  %v1936_v37 = vpop.xlane.xlu2 %1935 }
 0x631   :  { %v1940_v17 = vmul.f32 0.03125, %v1936_v37 }
 0x633   :  { %v5775_v7 = vsub.f32 %v1923_v21, %v1940_v17  ;;  %v1181_v21 = vmul.f32 0.03125, %v1141_v33  ;;  %v1247_v43 = vpop.permute.xlu0 %1246  ;;  %v800_v33 = vsel %vm110_vm0, %v751_v47, 0.0  ;;  %v4953_v47 = vld [vmem:[%s7698_s6] sm:$0xff] }
 0x634   :  { %v1296_v6 = vsel %vm110_vm0, %v1247_v43, 0.0  ;;  %2079 = vmatpush.bf16.msrb.mxu2 %v4953_v47 }
 0x635   :  { %v1948_v24 = vmul.f32 %v5775_v7, %v5775_v7  ;;  %v5790_v54 = vsub.f32 %v5581_v32, %v1181_v21 }
 0x637   :  { %v1958_v57 = vsel %vm110_vm0, %v1948_v24, 0.0  ;;  %v1213_v3 = vmul.f32 %v5790_v54, %v5790_v54 }
 0x638   :  { %1262 = vrot.lane.b32.xlu2 %v1220_v49, %s5257_s18  ;;  %1959 = vadd.xlane.f32.xlu1 %v1958_v57  ;;  %v769_v63 = vpop.permute.xlu2 %768 }
 0x639   :  { %v827_v34 = vsel %vm110_vm0, %v769_v63, 0.0 }
 0x640   :  { %v767_v19 = vpop.permute.xlu1 %766 }
 0x641   :  { %v824_v9 = vsel %vm110_vm0, %v767_v19, 0.0 }
 0x644   :  { %1264 = vrot.lane.b32.xlu0 %v1221_v15, %s5257_s18 }
 0x651   :  { %1248 = vrot.lane.b32.xlu1 %v1213_v3, %s5257_s18 }
 0x661   :  { %804 = vadd.xlane.f32.xlu2 %v803_v1 }
 0x669   :  { %1297 = vadd.xlane.f32.xlu2 %v1296_v6 }
 0x66e   :  { %825 = vadd.xlane.f32.xlu0 %v824_v9 }
 0x67b   :  { %801 = vadd.xlane.f32.xlu1 %v800_v33 }
 0x683   :  { %828 = vadd.xlane.f32.xlu1 %v827_v34 }
 0x693   :  { %v1951_v36 = vpop.xlane.xlu2 %1950 }
 0x694   :  { %v1961_v37 = vmul.f32 0.03125, %v1951_v36 }
 0x696   :  { %v1965_v17 = vadd.f32 1e-05, %v1961_v37  ;;  %v5808_v37 = vperm.slane %v5726_v58, 1 }
 0x698   :  { %5010 = vrsqrt.f32 %v1965_v17  ;;  %vm1975_vm11 = vweird.f32 %v1965_v17 }
 0x69b   :  { %v1954_v24 = vpop.xlane.xlu0 %1953  ;;  %v1263_v49 = vpop.permute.xlu2 %1262 }
 0x69c   :  { %v1962_v57 = vmul.f32 0.03125, %v1954_v24  ;;  %v1320_v4 = vsel %vm110_vm0, %v1263_v49, 0.0  ;;  %v5811_v49 = vperm.slane %v5726_v58, 2 }
 0x69d   :  { %1321 = vadd.xlane.f32.xlu1 %v1320_v4 }
 0x69e   :  { %v5011_v15 = vpop.eup %5010  ;;  %v1966_v21 = vadd.f32 1e-05, %v1962_v57 }
 0x69f   :  { %v1970_v3 = vmul.f32 %v5011_v15, %v1965_v17  ;;  %vm1976_vm10 = vweird.f32 %v5011_v15 }
 0x6a0   :  { %5012 = vrsqrt.f32 %v1966_v21  ;;  %vm1977_vm13 = vmor %vm1975_vm11, %vm1976_vm10  ;;  %vm1985_vm15 = vweird.f32 %v1966_v21 }
 0x6a1   :  { %v1971_v1 = vmul.f32 %v5011_v15, %v1970_v3 }
 0x6a3   :  { %v1972_v43 = vmul.f32 0.5, %v1971_v1  ;;  %v1957_v6 = vpop.xlane.xlu0 %1956 }
 0x6a4   :  { %v1963_v19 = vmul.f32 0.03125, %v1957_v6 }
 0x6a5   :  { %v1973_v9 = vsub.f32 1.5, %v1972_v43 }
 0x6a6   :  { %v5013_v33 = vpop.eup %5012  ;;  %v1967_v63 = vadd.f32 1e-05, %v1963_v19 }
 0x6a7   :  { %v1974_v34 = vmul.f32 %v5011_v15, %v1973_v9  ;;  %v1980_v36 = vmul.f32 %v5013_v33, %v1966_v21  ;;  %vm1986_vm14 = vweird.f32 %v5013_v33 }
 0x6a8   :  { %5014 = vrsqrt.f32 %v1967_v63  ;;  %vm1987_vm1 = vmor %vm1985_vm15, %vm1986_vm14  ;;  %vm1995_vm4 = vweird.f32 %v1967_v63 }
 0x6a9   :  { %v1978_v56 = vsel %vm1977_vm13, %v5011_v15, %v1974_v34  ;;  %v1981_v24 = vmul.f32 %v5013_v33, %v1980_v36 }
 0x6aa   :  { %v2009_v57 = vmul.f32 %v1978_v56, %v5757_v55 }
 0x6ab   :  { %v1982_v4 = vmul.f32 0.5, %v1981_v24  ;;  %v1960_v47 = vpop.xlane.xlu1 %1959 }
 0x6ac   :  { %v2014_v3 = vmul.f32 %v5808_v37, %v2009_v57  ;;  %v1964_v1 = vmul.f32 0.03125, %v1960_v47 }
 0x6ad   :  { %v1983_v43 = vsub.f32 1.5, %v1982_v4 }
 0x6ae   :  { %v5015_v17 = vpop.eup %5014  ;;  %v1968_v6 = vadd.f32 1e-05, %v1964_v1  ;;  %v2019_v19 = vadd.f32 %v5811_v49, %v2014_v3 }
 0x6af   :  { %v1984_v9 = vmul.f32 %v5013_v33, %v1983_v43  ;;  %v1990_v15 = vmul.f32 %v5015_v17, %v1967_v63  ;;  %vm1996_vm3 = vweird.f32 %v5015_v17  ;;  %v5178_v63 = vld [vmem:[%s7692_s0] sm:$0xff] }
 0x6b0   :  { %5016 = vrsqrt.f32 %v1968_v6  ;;  %v2023_v58 = vmul.f32 0.5, %v2019_v19  ;;  %vm1997_vm5 = vmor %vm1995_vm4, %vm1996_vm3  ;;  %vm2005_vm8 = vweird.f32 %v1968_v6 }
 0x6b1   :  { %v1988_v34 = vsel %vm1987_vm1, %v5013_v33, %v1984_v9  ;;  %v1991_v36 = vmul.f32 %v5015_v17, %v1990_v15 }
 0x6b2   :  { %v2010_v55 = vmul.f32 %v1988_v34, %v5762_v16  ;;  %vm2031_vm2 = vcmp.ge.f32.partialorder %v2023_v58, 0.5 }
 0x6b3   :  { %v1992_v56 = vmul.f32 0.5, %v1991_v36  ;;  %v5818_v24 = vsel %vm2031_vm2, 0.0, %v2023_v58  ;;  %v4765_v15 = vsel %vm2031_vm2, 1.0, %v7703_v39 }
 0x6b4   :  { %v2015_v57 = vmul.f32 %v5808_v37, %v2010_v55 }
 0x6b5   :  { %v1993_v4 = vsub.f32 1.5, %v1992_v56 }
 0x6b6   :  { %v5017_v47 = vpop.eup %5016  ;;  %v1265_v3 = vpop.permute.xlu0 %1264  ;;  %v2020_v21 = vadd.f32 %v5811_v49, %v2015_v57  ;;  %v5832_v57 = vadd.f32 %v5178_v63, %v4765_v15 }
 0x6b7   :  { %v1994_v1 = vmul.f32 %v5015_v17, %v1993_v4  ;;  %v2000_v43 = vmul.f32 %v5017_v47, %v1968_v6  ;;  %v1323_v33 = vsel %vm110_vm0, %v1265_v3, 0.0  ;;  %vm2006_vm7 = vweird.f32 %v5017_v47 }
 0x6b8   :  { %1324 = vadd.xlane.f32.xlu2 %v1323_v33  ;;  %v2024_v16 = vmul.f32 0.5, %v2020_v21  ;;  %7739 = vst [vmem:[#allocation7_spill] sm:$0xff] %v5832_v57  ;;  %vm2007_vm9 = vmor %vm2005_vm8, %vm2006_vm7 }
 0x6b9   :  { %v1998_v19 = vsel %vm1997_vm5, %v5015_v17, %v1994_v1  ;;  %v2001_v9 = vmul.f32 %v5017_v47, %v2000_v43  ;;  %v5179_v17 = vld [vmem:[%s7692_s0 + $0x8] sm:$0xff] }
 0x6ba   :  { %v2011_v34 = vmul.f32 %v1998_v19, %v5767_v5  ;;  %vm2032_vm6 = vcmp.ge.f32.partialorder %v2024_v16, 0.5 }
 0x6bb   :  { %v2002_v36 = vmul.f32 0.5, %v2001_v9  ;;  %v5826_v55 = vsel %vm2032_vm6, 0.0, %v2024_v16  ;;  %v4766_v56 = vsel %vm2032_vm6, 1.0, %v7703_v39 }
 0x6bc   :  { %v5837_v58 = vadd.f32 %v5179_v17, %v4766_v56  ;;  %v2016_v5 = vmul.f32 %v5808_v37, %v2011_v34 }
 0x6bd   :  { %v2003_v4 = vsub.f32 1.5, %v2002_v36 }
 0x6be   :  { %7740 = vst [vmem:[#allocation8_spill] sm:$0xff] %v5837_v58  ;;  %v2051_v3 = vpack.c.bf16 %v5837_v58, %v5832_v57  ;;  %v2021_v21 = vadd.f32 %v5811_v49, %v2016_v5  ;;  %v5181_v5 = vld [vmem:[%s7692_s0 + $0x48] sm:$0xff] }
 0x6bf   :  { %v2004_v1 = vmul.f32 %v5017_v47, %v2003_v4 }
 0x6c0   :  { %4777 = vmatmul.msk.bf16.vlgmr.msrb.gmra.mxu2 %vm110_vm0, %v2051_v3  ;;  %v2025_v43 = vmul.f32 0.5, %v2021_v21 }
 0x6c1   :  { %v2008_v33 = vsel %vm2007_vm9, %v5017_v47, %v2004_v1 }
 0x6c2   :  { %v2012_v16 = vmul.f32 %v2008_v33, %v5775_v7  ;;  %vm2033_vm10 = vcmp.ge.f32.partialorder %v2025_v43, 0.5  ;;  %v5180_v7 = vld [vmem:[%s7692_s0 + $0x40] sm:$0xff] }
 0x6c3   :  { %v1249_v19 = vpop.permute.xlu1 %1248  ;;  %v5845_v9 = vsel %vm2033_vm10, 0.0, %v2025_v43  ;;  %v4767_v6 = vsel %vm2033_vm10, 1.0, %v7703_v39 }
 0x6c4   :  { %v1299_v15 = vsel %vm110_vm0, %v1249_v19, 0.0  ;;  %v2017_v34 = vmul.f32 %v5808_v37, %v2012_v16  ;;  %v5857_v17 = vadd.f32 %v5180_v7, %v4767_v6 }
 0x6c5   :  { %1300 = vadd.xlane.f32.xlu0 %v1299_v15 }
 0x6c6   :  { %v2022_v36 = vadd.f32 %v5811_v49, %v2017_v34  ;;  %7741 = vst [vmem:[#allocation9_spill] sm:$0xff] %v5857_v17 }
 0x6c8   :  { %v2026_v56 = vmul.f32 0.5, %v2022_v36 }
 0x6ca   :  { %vm2034_vm11 = vcmp.ge.f32.partialorder %v2026_v56, 0.5 }
 0x6cb   :  { %v5851_v63 = vsel %vm2034_vm11, 0.0, %v2026_v56  ;;  %v4768_v47 = vsel %vm2034_vm11, 1.0, %v7703_v39 }
 0x6cc   :  { %v5862_v4 = vadd.f32 %v5181_v5, %v4768_v47 }
 0x6ce   :  { %7742 = vst [vmem:[#allocation10_spill] sm:$0xff] %v5862_v4  ;;  %v2052_v3 = vpack.c.bf16 %v5862_v4, %v5857_v17 }
 0x6d0   :  { %4778 = vmatmul.msk.bf16.gmra.mxu2 %vm110_vm0, %v2052_v3 }
 0x6d4   :  { %v805_v21 = vpop.xlane.xlu2 %804 }
 0x6d5   :  { %v845_v1 = vmul.f32 0.03125, %v805_v21 }
 0x6d7   :  { %v861_v43 = vadd.f32 1e-05, %v845_v1 }
 0x6d9   :  { %5018 = vrsqrt.f32 %v861_v43  ;;  %vm910_vm14 = vweird.f32 %v861_v43 }
 0x6dc   :  { %v1298_v33 = vpop.xlane.xlu2 %1297 }
 0x6dd   :  { %v1340_v16 = vmul.f32 0.03125, %v1298_v33 }
 0x6df   :  { %v5019_v19 = vpop.eup %5018  ;;  %v1356_v15 = vadd.f32 1e-05, %v1340_v16 }
 0x6e0   :  { %v905_v34 = vmul.f32 %v5019_v19, %v861_v43  ;;  %vm911_vm13 = vweird.f32 %v5019_v19 }
 0x6e1   :  { %5020 = vrsqrt.f32 %v1356_v15  ;;  %v826_v36 = vpop.xlane.xlu0 %825  ;;  %vm912_vm15 = vmor %vm910_vm14, %vm911_vm13  ;;  %vm1396_vm2 = vweird.f32 %v1356_v15 }
 0x6e2   :  { %v906_v56 = vmul.f32 %v5019_v19, %v905_v34  ;;  %v852_v6 = vmul.f32 0.03125, %v826_v36 }
 0x6e4   :  { %v907_v47 = vmul.f32 0.5, %v906_v56  ;;  %v868_v7 = vadd.f32 1e-05, %v852_v6 }
 0x6e6   :  { %v908_v5 = vsub.f32 1.5, %v907_v47  ;;  %5022 = vrsqrt.f32 %v868_v7  ;;  %vm980_vm5 = vweird.f32 %v868_v7 }
 0x6e7   :  { %v5021_v39 = vpop.eup %5020 }
 0x6e8   :  { %v909_v3 = vmul.f32 %v5019_v19, %v908_v5  ;;  %v1391_v21 = vmul.f32 %v5021_v39, %v1356_v15  ;;  %vm1397_vm1 = vweird.f32 %v5021_v39 }
 0x6e9   :  { %vm1398_vm3 = vmor %vm1396_vm2, %vm1397_vm1 }
 0x6ea   :  { %v913_v1 = vsel %vm912_vm15, %v5019_v19, %v909_v3  ;;  %v1392_v17 = vmul.f32 %v5021_v39, %v1391_v21 }
 0x6eb   :  { %v1037_v33 = vmul.f32 %v913_v1, %v5661_v20 }
 0x6ec   :  { %v5023_v16 = vpop.eup %5022  ;;  %v1393_v4 = vmul.f32 0.5, %v1392_v17 }
 0x6ed   :  { %v1053_v58 = vmul.f32 %v1037_v33, %v5473_v8  ;;  %v975_v34 = vmul.f32 %v5023_v16, %v868_v7  ;;  %vm981_vm4 = vweird.f32 %v5023_v16 }
 0x6ee   :  { %v1394_v36 = vsub.f32 1.5, %v1393_v4  ;;  %v802_v56 = vpop.xlane.xlu1 %801  ;;  %vm982_vm6 = vmor %vm980_vm5, %vm981_vm4 }
 0x6ef   :  { %v976_v6 = vmul.f32 %v5023_v16, %v975_v34  ;;  %v844_v47 = vmul.f32 0.03125, %v802_v56  ;;  %v1069_v57 = vadd.f32 %v1053_v58, %v5476_v13 }
 0x6f0   :  { %v1395_v5 = vmul.f32 %v5021_v39, %v1394_v36 }
 0x6f1   :  { %v977_v43 = vmul.f32 0.5, %v976_v6  ;;  %v860_v19 = vadd.f32 1e-05, %v844_v47  ;;  %v2426_v3 = vsub.f32 %v1069_v57, %v5488_v44 }
 0x6f2   :  { %v1399_v20 = vsel %vm1398_vm3, %v5021_v39, %v1395_v5 }
 0x6f3   :  { %v1532_v17 = vmul.f32 %v1399_v20, %v5739_v29  ;;  %v978_v21 = vsub.f32 1.5, %v977_v43  ;;  %5024 = vrsqrt.f32 %v860_v19  ;;  %v2430_v4 = vmul.f32 0.5, %v2426_v3 }
 0x6f4   :  { %vm900_vm10 = vweird.f32 %v860_v19 }
 0x6f5   :  { %v1548_v1 = vmul.f32 %v1532_v17, %v5473_v8  ;;  %v979_v33 = vmul.f32 %v5023_v16, %v978_v21  ;;  %v2434_v15 = vadd.f32 %v2430_v4, %v5488_v44 }
 0x6f6   :  { %v829_v58 = vpop.xlane.xlu1 %828 }
 0x6f7   :  { %v983_v34 = vsel %vm982_vm6, %v5023_v16, %v979_v33  ;;  %v853_v36 = vmul.f32 0.03125, %v829_v58  ;;  %v1564_v56 = vadd.f32 %v1548_v1, %v5476_v13  ;;  %vm2438_vm7 = vcmp.ge.f32.partialorder %v2434_v15, 0.5 }
 0x6f8   :  { %v1044_v39 = vmul.f32 %v983_v34, %v5746_v14  ;;  %v5877_v6 = vsel %vm2438_vm7, 0.0, %v2434_v15 }
 0x6f9   :  { %v5025_v29 = vpop.eup %5024  ;;  %v869_v57 = vadd.f32 1e-05, %v853_v36  ;;  %v2445_v47 = vsub.f32 %v1564_v56, %v5500_v59 }
 0x6fa   :  { %v1060_v7 = vmul.f32 %v1044_v39, %v5473_v8  ;;  %v895_v5 = vmul.f32 %v5025_v29, %v860_v19  ;;  %vm901_vm9 = vweird.f32 %v5025_v29 }
 0x6fb   :  { %5026 = vrsqrt.f32 %v869_v57  ;;  %v2449_v43 = vmul.f32 0.5, %v2445_v47  ;;  %vm902_vm11 = vmor %vm900_vm10, %vm901_vm9  ;;  %vm990_vm15 = vweird.f32 %v869_v57 }
 0x6fc   :  { %v896_v44 = vmul.f32 %v5025_v29, %v895_v5  ;;  %v1076_v16 = vadd.f32 %v1060_v7, %v5476_v13 }
 0x6fd   :  { %v5883_v3 = vadd.f32 %v2449_v43, %v5500_v59 }
 0x6fe   :  { %v897_v14 = vmul.f32 0.5, %v896_v44  ;;  %v2427_v20 = vsub.f32 %v1076_v16, %v5506_v10 }
 0x6ff   :  { %vm2457_vm8 = vcmp.ge.f32.partialorder %v5883_v3, 0.5 }
 0x700   :  { %v898_v17 = vsub.f32 1.5, %v897_v14  ;;  %v2431_v21 = vmul.f32 0.5, %v2427_v20  ;;  %v5890_v4 = vsel %vm2457_vm8, 0.0, %v5883_v3 }
 0x701   :  { %v5027_v1 = vpop.eup %5026 }
 0x702   :  { %v899_v33 = vmul.f32 %v5025_v29, %v898_v17  ;;  %v985_v58 = vmul.f32 %v5027_v1, %v869_v57  ;;  %v2435_v59 = vadd.f32 %v2431_v21, %v5506_v10  ;;  %vm991_vm14 = vweird.f32 %v5027_v1 }
 0x703   :  { %vm992_vm1 = vmor %vm990_vm15, %vm991_vm14 }
 0x704   :  { %v903_v34 = vsel %vm902_vm11, %v5025_v29, %v899_v33  ;;  %v986_v36 = vmul.f32 %v5027_v1, %v985_v58  ;;  %vm2439_vm13 = vcmp.ge.f32.partialorder %v2435_v59, 0.5 }
 0x705   :  { %v1036_v56 = vmul.f32 %v903_v34, %v5676_v2  ;;  %v5895_v39 = vsel %vm2439_vm13, 0.0, %v2435_v59  ;;  %v7743_v2 = vmov 0.0  }
 0x706   :  { %v987_v47 = vmul.f32 0.5, %v986_v36  ;;  %v4828_v14 = vsel %vm2438_vm7, 1.0, %v7743_v2 }
 0x707   :  { %v1052_v7 = vmul.f32 %v1036_v56, %v5473_v8  ;;  %v2486_v58 = vpack.c.bf16 %v4828_v14, %v4828_v14 }
 0x708   :  { %v988_v5 = vsub.f32 1.5, %v987_v47 }
 0x709   :  { %v1068_v43 = vadd.f32 %v1052_v7, %v5476_v13  ;;  %v2504_v47 = vunpack.c.l.b16 %v2486_v58 }
 0x70a   :  { %v989_v19 = vmul.f32 %v5027_v1, %v988_v5 }
 0x70b   :  { %v2425_v10 = vsub.f32 %v1068_v43, %v5485_v40 }
 0x70c   :  { %v993_v29 = vsel %vm992_vm1, %v5027_v1, %v989_v19 }
 0x70d   :  { %v1045_v44 = vmul.f32 %v993_v29, %v5752_v38  ;;  %v2429_v16 = vmul.f32 0.5, %v2425_v10 }
 0x70f   :  { %v1061_v20 = vmul.f32 %v1045_v44, %v5473_v8  ;;  %v2433_v17 = vadd.f32 %v2429_v16, %v5485_v40  ;;  %v4829_v40 = vsel %vm2439_vm13, 1.0, %v7743_v2 }
 0x710   :  { %v1322_v21 = vpop.xlane.xlu1 %1321  ;;  %v2487_v19 = vpack.c.bf16 %v4829_v40, %v4829_v40 }
 0x711   :  { %v1348_v33 = vmul.f32 0.03125, %v1322_v21  ;;  %vm2437_vm2 = vcmp.ge.f32.partialorder %v2433_v17, 0.5  ;;  %v1077_v57 = vadd.f32 %v1061_v20, %v5476_v13 }
 0x712   :  { %v5906_v34 = vsel %vm2437_vm2, 0.0, %v2433_v17  ;;  %v4827_v1 = vsel %vm2437_vm2, 1.0, %v7743_v2  ;;  %v2560_v20 = vunpack.c.l.b16 %v2487_v19 }
 0x713   :  { %v1364_v36 = vadd.f32 1e-05, %v1348_v33  ;;  %v2485_v38 = vpack.c.bf16 %v4827_v1, %v4827_v1  ;;  %v2428_v56 = vsub.f32 %v1077_v57, %v5516_v31 }
 0x715   :  { %5028 = vrsqrt.f32 %v1364_v36  ;;  %v2503_v15 = vunpack.c.l.b16 %v2485_v38  ;;  %v2432_v7 = vmul.f32 0.5, %v2428_v56  ;;  %vm1476_vm5 = vweird.f32 %v1364_v36 }
 0x717   :  { %v2505_v5 = vpack.c.b16 %v2504_v47, %v2503_v15  ;;  %v2436_v43 = vadd.f32 %v2432_v7, %v5516_v31 }
 0x719   :  { %2506 = vrot.lane.b32.xlu0 %v2505_v5, %s5258_s19  ;;  %vm2440_vm3 = vcmp.ge.f32.partialorder %v2436_v43, 0.5 }
 0x71a   :  { %v5914_v10 = vsel %vm2440_vm3, 0.0, %v2436_v43  ;;  %v4830_v29 = vsel %vm2440_vm3, 1.0, %v7743_v2 }
 0x71b   :  { %v5029_v44 = vpop.eup %5028  ;;  %v2488_v16 = vpack.c.bf16 %v4830_v29, %v4830_v29 }
 0x71c   :  { %v1471_v14 = vmul.f32 %v5029_v44, %v1364_v36  ;;  %vm1477_vm4 = vweird.f32 %v5029_v44 }
 0x71d   :  { %v2561_v17 = vunpack.c.l.b16 %v2488_v16  ;;  %vm1478_vm6 = vmor %vm1476_vm5, %vm1477_vm4 }
 0x71e   :  { %v1472_v21 = vmul.f32 %v5029_v44, %v1471_v14 }
 0x71f   :  { %v2562_v33 = vpack.c.b16 %v2561_v17, %v2560_v20 }
 0x720   :  { %v1473_v59 = vmul.f32 0.5, %v1472_v21 }
 0x721   :  { %2563 = vrot.lane.b32.xlu1 %v2562_v33, %s5258_s19 }
 0x722   :  { %v1474_v58 = vsub.f32 1.5, %v1473_v59 }
 0x724   :  { %v1475_v31 = vmul.f32 %v5029_v44, %v1474_v58 }
 0x726   :  { %v1479_v57 = vsel %vm1478_vm6, %v5029_v44, %v1475_v31 }
 0x727   :  { %v1540_v1 = vmul.f32 %v1479_v57, %v5773_v22 }
 0x729   :  { %v1556_v38 = vmul.f32 %v1540_v1, %v5473_v8 }
 0x72b   :  { %v1325_v56 = vpop.xlane.xlu2 %1324  ;;  %v1572_v15 = vadd.f32 %v1556_v38, %v5476_v13 }
 0x72c   :  { %v1349_v47 = vmul.f32 0.03125, %v1325_v56  ;;  %v5932_v56 = vld [vmem:[%s7699_s7] sm:$0x7] }
 0x72d   :  { %v2447_v7 = vsub.f32 %v1572_v15, %v5536_v52 }
 0x72e   :  { %v1365_v40 = vadd.f32 1e-05, %v1349_v47 }
 0x72f   :  { %v2451_v5 = vmul.f32 0.5, %v2447_v7 }
 0x730   :  { %5030 = vrsqrt.f32 %v1365_v40  ;;  %vm1486_vm10 = vweird.f32 %v1365_v40 }
 0x731   :  { %v2455_v43 = vadd.f32 %v2451_v5, %v5536_v52 }
 0x733   :  { %vm2459_vm7 = vcmp.ge.f32.partialorder %v2455_v43, 0.5 }
 0x734   :  { %v5924_v36 = vsel %vm2459_vm7, 0.0, %v2455_v43 }
 0x736   :  { %v5031_v19 = vpop.eup %5030 }
 0x737   :  { %v1481_v29 = vmul.f32 %v5031_v19, %v1365_v40  ;;  %vm1487_vm9 = vweird.f32 %v5031_v19 }
 0x738   :  { %v1301_v22 = vpop.xlane.xlu0 %1300  ;;  %vm1488_vm11 = vmor %vm1486_vm10, %vm1487_vm9 }
 0x739   :  { %v1482_v44 = vmul.f32 %v5031_v19, %v1481_v29  ;;  %v1341_v16 = vmul.f32 0.03125, %v1301_v22 }
 0x73b   :  { %v1483_v14 = vmul.f32 0.5, %v1482_v44  ;;  %v1357_v20 = vadd.f32 1e-05, %v1341_v16 }
 0x73d   :  { %v1484_v17 = vsub.f32 1.5, %v1483_v14  ;;  %5032 = vrsqrt.f32 %v1357_v20  ;;  %vm1406_vm14 = vweird.f32 %v1357_v20 }
 0x73f   :  { %v1485_v21 = vmul.f32 %v5031_v19, %v1484_v17 }
 0x741   :  { %v1489_v33 = vsel %vm1488_vm11, %v5031_v19, %v1485_v21  ;;  %v4833_v19 = vsel %vm2459_vm7, 1.0, %v7743_v2 }
 0x742   :  { %v1541_v52 = vmul.f32 %v1489_v33, %v5784_v11  ;;  %v5936_v11 = vperm.slane %v5932_v56, 0  ;;  %v2499_v14 = vpack.c.bf16 %v4833_v19, %v4833_v19 }
 0x743   :  { %v5033_v59 = vpop.eup %5032  ;;  %v2081_v58 = vpop.f32.mrf.mxu2 }
 0x744   :  { %v1557_v31 = vmul.f32 %v1541_v52, %v5473_v8  ;;  %v1401_v57 = vmul.f32 %v5033_v59, %v1357_v20  ;;  %vm1407_vm13 = vweird.f32 %v5033_v59  ;;  %7744 = vst [vmem:[#allocation11_spill] sm:$0xff] %v5936_v11 }
 0x745   :  { %vm1408_vm15 = vmor %vm1406_vm14, %vm1407_vm13 }
 0x746   :  { %v1402_v1 = vmul.f32 %v5033_v59, %v1401_v57  ;;  %v1573_v38 = vadd.f32 %v1557_v31, %v5476_v13  ;;  %v2584_v31 = vunpack.c.l.b16 %v2499_v14  ;;  %v2082_v14 = vadd.f32 %v2081_v58, %v5936_v11  ;;  %v85_v58 = vld [vmem:[%s7692_s0 + $0x60] sm:$0xff] }
 0x748   :  { %v1403_v15 = vmul.f32 0.5, %v1402_v1  ;;  %v2448_v47 = vsub.f32 %v1573_v38, %v5529_v45  ;;  %v4831_v38 = vsel %vm2457_vm8, 1.0, %v7743_v2 }
 0x74a   :  { %v1404_v7 = vsub.f32 1.5, %v1403_v15  ;;  %v2452_v40 = vmul.f32 0.5, %v2448_v47  ;;  %v2497_v47 = vpack.c.bf16 %v4831_v38, %v4831_v38 }
 0x74b   :  { %v2083_v5 = vpop.f32.mrf.mxu2 }
 0x74c   :  { %v1405_v29 = vmul.f32 %v5033_v59, %v1404_v7  ;;  %v2084_v22 = vadd.f32 %v2083_v5, %v5936_v11  ;;  %v2456_v44 = vadd.f32 %v2452_v40, %v5529_v45  ;;  %v190_v45 = vsel %vm110_vm0, %v5575_v30, 0.0 }
 0x74d   :  { %v214_v5 = vsel %vm110_vm0, %v5584_v41, 0.0 }
 0x74e   :  { %v1409_v16 = vsel %vm1408_vm15, %v5033_v59, %v1405_v29  ;;  %2093 = vadd.xlane.f32.xlu1 %v2084_v22  ;;  %vm2460_vm1 = vcmp.ge.f32.partialorder %v2456_v44, 0.5  ;;  %v2527_v29 = vunpack.c.l.b16 %v2497_v47 }
 0x74f   :  { %v1533_v17 = vmul.f32 %v1409_v16, %v5790_v54  ;;  %v4834_v21 = vsel %vm2460_vm1, 1.0, %v7743_v2  ;;  %v5944_v33 = vsel %vm2460_vm1, 0.0, %v2456_v44 }
 0x750   :  { %v2500_v52 = vpack.c.bf16 %v4834_v21, %v4834_v21 }
 0x751   :  { %v1549_v43 = vmul.f32 %v1533_v17, %v5473_v8 }
 0x752   :  { %v2585_v20 = vunpack.c.l.b16 %v2500_v52 }
 0x753   :  { %v1565_v57 = vadd.f32 %v1549_v43, %v5476_v13  ;;  %v2086_v3 = vpop.f32.mrf.mxu2  ;;  %v193_v43 = vsel %vm110_vm0, %v5581_v32, 0.0 }
 0x754   :  { %v2586_v1 = vpack.c.b16 %v2585_v20, %v2584_v31  ;;  %v217_v31 = vsel %vm110_vm0, %v5591_v23, 0.0  ;;  %v86_v20 = vld [vmem:[%s7692_s0 + $0x68] sm:$0xff] }
 0x755   :  { %v2446_v59 = vsub.f32 %v1565_v57, %v5533_v48  ;;  %v95_v57 = vpack.c.bf16 %v86_v20, %v85_v58  ;;  %v6003_v20 = vadd.f32 %v5388_v26, %v5366_v18 }
 0x756   :  { %191 = vadd.xlane.f32.xlu1 %v190_v45  ;;  %2587 = vrot.lane.b32.xlu0 %v2586_v1, %s5257_s18 }
 0x757   :  { %v2450_v54 = vmul.f32 0.5, %v2446_v59  ;;  %4731 = vmatmul.msk.bf16.gmra.mxu0 %vm110_vm0, %v95_v57 }
 0x759   :  { %v2454_v15 = vadd.f32 %v2450_v54, %v5533_v48 }
 0x75b   :  { %vm2458_vm2 = vcmp.ge.f32.partialorder %v2454_v15, 0.5  ;;  %v2088_v48 = vpop.f32.mrf.mxu2 }
 0x75c   :  { %v5956_v7 = vsel %vm2458_vm2, 0.0, %v2454_v15  ;;  %v4832_v40 = vsel %vm2458_vm2, 1.0, %v7743_v2  ;;  %v2089_v17 = vadd.f32 %v2088_v48, %v5936_v11 }
 0x75d   :  { %v2498_v19 = vpack.c.bf16 %v4832_v40, %v4832_v40 }
 0x75e   :  { %215 = vadd.xlane.f32.xlu1 %v214_v5 }
 0x75f   :  { %v2528_v44 = vunpack.c.l.b16 %v2498_v19 }
 0x761   :  { %v2529_v16 = vpack.c.b16 %v2528_v44, %v2527_v29 }
 0x763   :  { %2530 = vrot.lane.b32.xlu2 %v2529_v16, %s5257_s18 }
 0x78b   :  { %v2507_v52 = vpop.permute.xlu0 %2506 }
 0x78c   :  { %2091 = vadd.xlane.f32.xlu2 %v2082_v14 }
 0x793   :  { %v2564_v21 = vpop.permute.xlu1 %2563 }
 0x794   :  { %2097 = vadd.xlane.f32.xlu2 %v2089_v17 }
 0x795   :  { %4976 = vxpose.binary.xlu0.c.b16.start.end [1/2] (short) (narrow) %v2564_v21, %v2507_v52, 32 }
 0x79c   :  { %194 = vadd.xlane.f32.xlu2 %v193_v43 }
 0x7a4   :  { %218 = vadd.xlane.f32.xlu2 %v217_v31 }
 0x7bd   :  { %v2531_v1 = vpop.permute.xlu2 %2530 }
 0x7be   :  { %2546 = vmatpush.bf16.msra.mxu1 %v2531_v1 }
 0x7c1   :  { %v2094_v45 = vpop.xlane.xlu1 %2093 }
 0x7c2   :  { %v2100_v59 = vmul.f32 0.0078125, %v2094_v45 }
 0x7c4   :  { %v2104_v54 = vsub.f32 %v2084_v22, %v2100_v59 }
 0x7c6   :  { %v2108_v38 = vmul.f32 %v2104_v54, %v2104_v54 }
 0x7c8   :  { %2113 = vadd.xlane.f32.xlu2 %v2108_v38  ;;  %v2588_v15 = vpop.permute.xlu0 %2587 }
 0x7c9   :  { %2603 = vmatpush.bf16.msra.mxu2 %v2588_v15 }
 0x7cd   :  { %2741 = vmatpush.bf16.msrb.mxu2 %v5700_v61 }
 0x7d1   :  { %2742 = vmatpush.bf16.msrb.mxu2 %v5706_v12 }
 0x7ff   :  { %v2092_v47 = vpop.xlane.xlu2 %2091 }
 0x800   :  { %v2099_v40 = vmul.f32 0.0078125, %v2092_v47 }
 0x802   :  { %v5977_v5 = vsub.f32 %v2082_v14, %v2099_v40  ;;  %v5989_v14 = vadd.f32 %v2086_v3, %v5936_v11  ;;  %v174_v3 = vpop.f32.mrf.mxu0 }
 0x803   :  { %v6006_v57 = vadd.f32 %v174_v3, %v5366_v18 }
 0x804   :  { %v2107_v19 = vmul.f32 %v5977_v5, %v5977_v5 }
 0x806   :  { %2111 = vadd.xlane.f32.xlu1 %v2107_v19 }
 0x807   :  { %v2098_v29 = vpop.xlane.xlu2 %2097 }
 0x808   :  { %v2102_v44 = vmul.f32 0.0078125, %v2098_v29 }
 0x80a   :  { %v5981_v16 = vsub.f32 %v2089_v17, %v2102_v44  ;;  %v176_v59 = vpop.f32.mrf.mxu0 }
 0x80b   :  { %v6016_v26 = vadd.f32 %v176_v59, %v5366_v18  ;;  %v4959_v59 = vld [vmem:[%s7700_s8 + $0x20] sm:$0xff] }
 0x80c   :  { %v2110_v22 = vmul.f32 %v5981_v16, %v5981_v16 }
 0x80e   :  { %2117 = vadd.xlane.f32.xlu2 %v2110_v22 }
 0x80f   :  { %v195_v48 = vpop.xlane.xlu2 %194 }
 0x810   :  { %v235_v61 = vmul.f32 0.03125, %v195_v48  ;;  %v6022_v48 = vperm.slane %v5932_v56, 1 }
 0x812   :  { %v5986_v12 = vsub.f32 %v5581_v32, %v235_v61 }
 0x814   :  { %v267_v21 = vmul.f32 %v5986_v12, %v5986_v12 }
 0x816   :  { %2095 = vadd.xlane.f32.xlu0 %v5989_v14  ;;  %v289_v17 = vsel %vm110_vm0, %v267_v21, 0.0 }
 0x817   :  { %290 = vadd.xlane.f32.xlu2 %v289_v17  ;;  %v219_v52 = vpop.xlane.xlu2 %218  ;;  %v6025_v17 = vperm.slane %v5932_v56, 2 }
 0x818   :  { %v243_v43 = vmul.f32 0.03125, %v219_v52 }
 0x81a   :  { %v5996_v31 = vsub.f32 %v5591_v23, %v243_v43 }
 0x81c   :  { %v275_v32 = vmul.f32 %v5996_v31, %v5996_v31 }
 0x81e   :  { %v313_v58 = vsel %vm110_vm0, %v275_v32, 0.0 }
 0x81f   :  { %314 = vadd.xlane.f32.xlu2 %v313_v58 }
 0x82a   :  { %1106 = vrot.lane.b32.xlu0 %v6006_v57, %s5257_s18 }
 0x837   :  { %596 = vrot.lane.b32.xlu2 %v6003_v20, %s5258_s19 }
 0x83b   :  { %v2114_v23 = vpop.xlane.xlu2 %2113 }
 0x83c   :  { %v2120_v1 = vmul.f32 0.0078125, %v2114_v23  ;;  %v4962_v23 = vld [vmem:[%s7700_s8 + $0x38] sm:$0xff] }
 0x83d   :  { %2256 = vmatpush.bf16.msra.mxu3 %v4962_v23  ;;  %3027 = vmatpush.bf16.msrb.mxu1 %v4962_v23 }
 0x83e   :  { %v2124_v45 = vadd.f32 1e-05, %v2120_v1  ;;  %v4960_v1 = vld [vmem:[%s7700_s8 + $0x28] sm:$0xff] }
 0x83f   :  { %1092 = vrot.lane.b32.xlu2 %v6003_v20, %s5257_s18 }
 0x840   :  { %5034 = vrsqrt.f32 %v2124_v45  ;;  %vm2143_vm3 = vweird.f32 %v2124_v45 }
 0x841   :  { %v4977_v38 = vpop.trf.xlu0 }
 0x842   :  { %4835 = vmatmul.msk.bf16.vlgmr.msra.gmra.mxu1 %vm1694_vm12, %v4977_v38  ;;  %v4958_v38 = vld [vmem:[%s7700_s8 + $0x18] sm:$0xff] }
 0x846   :  { %v5035_v15 = vpop.eup %5034 }
 0x847   :  { %v2138_v47 = vmul.f32 %v5035_v15, %v2124_v45  ;;  %612 = vrot.lane.b32.xlu2 %v6016_v26, %s5258_s19  ;;  %vm2144_vm8 = vweird.f32 %v5035_v15  ;;  %v192_v45 = vpop.xlane.xlu1 %191 }
 0x848   :  { %vm2145_vm4 = vmor %vm2143_vm3, %vm2144_vm8 }
 0x849   :  { %v2139_v40 = vmul.f32 %v5035_v15, %v2138_v47  ;;  %v4978_v19 = vpop.trf.xlu0 }
 0x84a   :  { %4837 = vmatmul.msk.bf16.vlgmr.msra.gmra.mxu2 %vm1694_vm12, %v4978_v19  ;;  %v4955_v19 = vld [vmem:[%s7700_s8] sm:$0xff] }
 0x84b   :  { %v2140_v29 = vmul.f32 0.5, %v2139_v40  ;;  %v4956_v40 = vld [vmem:[%s7700_s8 + $0x8] sm:$0xff] }
 0x84d   :  { %v2141_v44 = vsub.f32 1.5, %v2140_v29 }
 0x84f   :  { %v2142_v22 = vmul.f32 %v5035_v15, %v2141_v44  ;;  %v216_v47 = vpop.xlane.xlu1 %215 }
 0x851   :  { %v2146_v61 = vsel %vm2145_vm4, %v5035_v15, %v2142_v22  ;;  %v4979_v21 = vpop.trf.xlu0  ;;  %v4957_v15 = vld [vmem:[%s7700_s8 + $0x10] sm:$0xff]  ;;  %v5182_v22 = vld [vmem:[%s7696_s4 + $0x8] sm:$0xff] }
 0x852   :  { %v2168_v52 = vmul.f32 %v2146_v61, %v2104_v54  ;;  %4836 = vmatmul.msk.bf16.gmra.mxu1 %vm1694_vm12, %v4979_v21  ;;  %v4961_v54 = vld [vmem:[%s7700_s8 + $0x30] sm:$0xff]  ;;  %v5183_v21 = vld [vmem:[%s7696_s4] sm:$0xff] }
 0x853   :  { %2257 = vmatpush.bf16.msra.mxu3 %v4961_v54  ;;  %3028 = vmatpush.bf16.msrb.mxu1 %v4961_v54 }
 0x854   :  { %v2173_v43 = vmul.f32 %v6022_v48, %v2168_v52 }
 0x856   :  { %v2178_v32 = vadd.f32 %v6025_v17, %v2173_v43 }
 0x857   :  { %2258 = vmatpush.bf16.msra.mxu3 %v4960_v1  ;;  %3029 = vmatpush.bf16.msrb.mxu1 %v4960_v1 }
 0x858   :  { %v6030_v58 = vmul.f32 0.5, %v2178_v32 }
 0x859   :  { %v4980_v3 = vpop.trf.xlu0 }
 0x85a   :  { %4838 = vmatmul.msk.bf16.gmra.mxu2 %vm1694_vm12, %v4980_v3  ;;  %vm2190_vm5 = vcmp.ge.f32.partialorder %v6030_v58, 0.5 }
 0x85b   :  { %v6040_v56 = vsel %vm2190_vm5, 0.0, %v6030_v58  ;;  %2259 = vmatpush.bf16.msra.mxu3 %v4959_v59  ;;  %3030 = vmatpush.bf16.msrb.mxu1 %v4959_v59 }
 0x85c   :  { %7745 = vst [vmem:[#allocation12_spill] sm:$0xff] %v6040_v56 }
 0x85f   :  { %2260 = vmatpush.bf16.msra.mxu3 %v4958_v38  ;;  %3031 = vmatpush.bf16.msrb.mxu1 %v4958_v38  ;;  %v234_v38 = vmul.f32 0.03125, %v192_v45 }
 0x863   :  { %2261 = vmatpush.bf16.msra.mxu3 %v4957_v15  ;;  %3032 = vmatpush.bf16.msrb.mxu1 %v4957_v15 }
 0x867   :  { %2262 = vmatpush.bf16.msra.mxu3 %v4956_v40  ;;  %3033 = vmatpush.bf16.msrb.mxu1 %v4956_v40 }
 0x86b   :  { %2263 = vmatpush.bf16.msra.mxu3 %v4955_v19  ;;  %3034 = vmatpush.bf16.msrb.mxu1 %v4955_v19 }
 0x86f   :  { %3515 = vmatpush.bf16.msra.mxu1 %v5182_v22 }
 0x873   :  { %3516 = vmatpush.bf16.msra.mxu1 %v5183_v21  ;;  %v6077_v21 = vsub.f32 %v5575_v30, %v234_v38 }
 0x879   :  { %v2112_v29 = vpop.xlane.xlu1 %2111 }
 0x87a   :  { %v2119_v44 = vmul.f32 0.0078125, %v2112_v29 }
 0x87c   :  { %v2123_v61 = vadd.f32 1e-05, %v2119_v44 }
 0x87e   :  { %5036 = vrsqrt.f32 %v2123_v61  ;;  %vm2133_vm7 = vweird.f32 %v2123_v61 }
 0x881   :  { %v6069_v52 = vpop.xlane.xlu2 %2117 }
 0x884   :  { %v5037_v43 = vpop.eup %5036 }
 0x885   :  { %v2128_v32 = vmul.f32 %v5037_v43, %v2123_v61  ;;  %vm2134_vm6 = vweird.f32 %v5037_v43  ;;  %v266_v61 = vmul.f32 %v6077_v21, %v6077_v21 }
 0x886   :  { %vm2135_vm9 = vmor %vm2133_vm7, %vm2134_vm6 }
 0x887   :  { %v2129_v3 = vmul.f32 %v5037_v43, %v2128_v32 }
 0x889   :  { %v2130_v23 = vmul.f32 0.5, %v2129_v3  ;;  %v2096_v54 = vpop.xlane.xlu0 %2095 }
 0x88a   :  { %v2101_v1 = vmul.f32 0.0078125, %v2096_v54  ;;  %v291_v59 = vpop.xlane.xlu2 %290 }
 0x88b   :  { %v2131_v15 = vsub.f32 1.5, %v2130_v23  ;;  %v331_v40 = vmul.f32 0.03125, %v291_v59 }
 0x88c   :  { %v6072_v19 = vsub.f32 %v5989_v14, %v2101_v1  ;;  %v242_v14 = vmul.f32 0.03125, %v216_v47 }
 0x88d   :  { %v2132_v29 = vmul.f32 %v5037_v43, %v2131_v15  ;;  %v347_v44 = vadd.f32 1e-05, %v331_v40 }
 0x88e   :  { %v2109_v22 = vmul.f32 %v6072_v19, %v6072_v19 }
 0x88f   :  { %v2136_v32 = vsel %vm2135_vm9, %v5037_v43, %v2132_v29  ;;  %5038 = vrsqrt.f32 %v347_v44  ;;  %v6085_v43 = vsub.f32 %v5584_v41, %v242_v14  ;;  %vm396_vm14 = vweird.f32 %v347_v44 }
 0x890   :  { %v2167_v45 = vmul.f32 %v2136_v32, %v5977_v5  ;;  %2115 = vadd.xlane.f32.xlu1 %v2109_v22  ;;  %v286_v5 = vsel %vm110_vm0, %v266_v61, 0.0  ;;  %v7709_v22 = vmov 1.0|1.0  }
 0x891   :  { %v274_v41 = vmul.f32 %v6085_v43, %v6085_v43 }
 0x892   :  { %v315_v3 = vpop.xlane.xlu2 %314  ;;  %v2172_v23 = vmul.f32 %v6022_v48, %v2167_v45 }
 0x893   :  { %v339_v54 = vmul.f32 0.03125, %v315_v3  ;;  %v310_v58 = vsel %vm110_vm0, %v274_v41, 0.0 }
 0x894   :  { %v2177_v1 = vadd.f32 %v6025_v17, %v2172_v23 }
 0x895   :  { %v5039_v59 = vpop.eup %5038  ;;  %v355_v15 = vadd.f32 1e-05, %v339_v54 }
 0x896   :  { %v391_v40 = vmul.f32 %v5039_v59, %v347_v44  ;;  %v2181_v30 = vmul.f32 0.5, %v2177_v1  ;;  %vm397_vm13 = vweird.f32 %v5039_v59 }
 0x897   :  { %5040 = vrsqrt.f32 %v355_v15  ;;  %vm398_vm15 = vmor %vm396_vm14, %vm397_vm13  ;;  %vm476_vm2 = vweird.f32 %v355_v15 }
 0x898   :  { %v392_v38 = vmul.f32 %v5039_v59, %v391_v40  ;;  %287 = vadd.xlane.f32.xlu1 %v286_v5  ;;  %vm2189_vm10 = vcmp.ge.f32.partialorder %v2181_v30, 0.5 }
 0x899   :  { %v6088_v47 = vsel %vm2189_vm10, 0.0, %v2181_v30  ;;  %vm4815_vm11 = vmpackc.low %vm2190_vm5, %vm2189_vm10 }
 0x89a   :  { %7746 = vst [vmem:[#allocation13_spill] sm:$0xff] %v6088_v47  ;;  %v393_v29 = vmul.f32 0.5, %v392_v38  ;;  %4816 = vmatmul.msk.bf16.vlgmr.msra.gmra.mxu3 %vm4815_vm11, %v7709_v22  ;;  %v597_v32 = vpop.permute.xlu2 %596 }
 0x89b   :  { %v649_v45 = vsel %vm110_vm0, %v597_v32, 0.0 }
 0x89c   :  { %v394_v3 = vsub.f32 1.5, %v393_v29  ;;  %650 = vadd.xlane.f32.xlu2 %v649_v45 }
 0x89d   :  { %v5041_v23 = vpop.eup %5040 }
 0x89e   :  { %v395_v14 = vmul.f32 %v5039_v59, %v394_v3  ;;  %v471_v54 = vmul.f32 %v5041_v23, %v355_v15  ;;  %vm477_vm1 = vweird.f32 %v5041_v23 }
 0x89f   :  { %vm478_vm8 = vmor %vm476_vm2, %vm477_vm1 }
 0x8a0   :  { %v399_v61 = vsel %vm398_vm15, %v5039_v59, %v395_v14  ;;  %v472_v1 = vmul.f32 %v5041_v23, %v471_v54  ;;  %311 = vadd.xlane.f32.xlu1 %v310_v58 }
 0x8a1   :  { %v523_v40 = vmul.f32 %v399_v61, %v5986_v12 }
 0x8a2   :  { %v473_v30 = vmul.f32 0.5, %v472_v1  ;;  %v1093_v5 = vpop.permute.xlu2 %1092 }
 0x8a3   :  { %v540_v38 = vmul.f32 %v5473_v8, %v523_v40  ;;  %v1145_v29 = vsel %vm110_vm0, %v1093_v5, 0.0 }
 0x8a4   :  { %v474_v32 = vsub.f32 1.5, %v473_v30  ;;  %1146 = vadd.xlane.f32.xlu0 %v1145_v29 }
 0x8a5   :  { %v557_v44 = vadd.f32 %v5476_v13, %v540_v38  ;;  %v5184_v38 = vld [vmem:[%s7695_s3 + $0x10] sm:$0xff] }
 0x8a6   :  { %v475_v45 = vmul.f32 %v5041_v23, %v474_v32 }
 0x8a7   :  { %v2406_v41 = vsub.f32 %v557_v44, %v5627_v53  ;;  %v5186_v44 = vld [vmem:[%s7695_s3 + $0x8] sm:$0xff] }
 0x8a8   :  { %v479_v59 = vsel %vm478_vm8, %v5041_v23, %v475_v45 }
 0x8a9   :  { %v2410_v3 = vmul.f32 0.5, %v2406_v41  ;;  %v531_v12 = vmul.f32 %v479_v59, %v5996_v31  ;;  %v6126_v31 = vadd.f32 %v5386_v25, %v5366_v18  ;;  %v5185_v25 = vld [vmem:[%s7695_s3] sm:$0xff] }
 0x8ab   :  { %v548_v14 = vmul.f32 %v5473_v8, %v531_v12  ;;  %v6105_v54 = vadd.f32 %v2410_v3, %v5627_v53 }
 0x8ad   :  { %v565_v58 = vadd.f32 %v5476_v13, %v548_v14  ;;  %vm2418_vm3 = vcmp.ge.f32.partialorder %v6105_v54, 0.5 }
 0x8ae   :  { %v6112_v15 = vsel %vm2418_vm3, 0.0, %v6105_v54 }
 0x8af   :  { %7747 = vst [vmem:[#allocation14_spill] sm:$0xff] %v6112_v15  ;;  %v2408_v61 = vsub.f32 %v565_v58, %v5647_v0  ;;  %v5187_v58 = vld [vmem:[%s7695_s3 + $0x18] sm:$0xff] }
 0x8b1   :  { %v2412_v23 = vmul.f32 0.5, %v2408_v61 }
 0x8b3   :  { %v6116_v1 = vadd.f32 %v2412_v23, %v5647_v0 }
 0x8b5   :  { %vm2420_vm4 = vcmp.ge.f32.partialorder %v6116_v1, 0.5 }
 0x8b6   :  { %v6122_v53 = vsel %vm2420_vm4, 0.0, %v6116_v1 }
 0x8b7   :  { %7748 = vst [vmem:[#allocation15_spill] sm:$0xff] %v6122_v53 }
 0x8b9   :  { %594 = vrot.lane.b32.xlu1 %v6126_v31, %s5258_s19 }
 0x8bf   :  { %v2548_v40 = vpop.f32.mrf.mxu1 }
 0x8c0   :  { %v2615_v32 = vmul.f32 %v5185_v25, %v2548_v40 }
 0x8c1   :  { %1090 = vrot.lane.b32.xlu1 %v6126_v31, %s5257_s18 }
 0x8c2   :  { %v2623_v12 = vpack.c.bf16 %v2615_v32, %v2615_v32 }
 0x8c4   :  { %v2640_v22 = vunpack.c.l.b16 %v2623_v12 }
 0x8c7   :  { %v2550_v0 = vpop.f32.mrf.mxu1 }
 0x8c8   :  { %v2616_v45 = vmul.f32 %v5186_v44, %v2550_v0 }
 0x8c9   :  { %610 = vrot.lane.b32.xlu1 %v6006_v57, %s5258_s19 }
 0x8ca   :  { %v2624_v14 = vpack.c.bf16 %v2616_v45, %v2616_v45  ;;  %v6149_v45 = vld [vmem:[%s7698_s6 + $0x8] sm:$0xff] }
 0x8cc   :  { %v2641_v56 = vunpack.c.l.b16 %v2624_v14 }
 0x8cd   :  { %v2605_v30 = vpop.f32.mrf.mxu2 }
 0x8ce   :  { %v2644_v53 = vpack.c.b16 %v2641_v56, %v2640_v22  ;;  %v2619_v0 = vmul.f32 %v5185_v25, %v2605_v30  ;;  %v2122_v56 = vmul.f32 0.0078125, %v6069_v52 }
 0x8cf   :  { %v2553_v5 = vpop.f32.mrf.mxu1 }
 0x8d0   :  { %v2617_v29 = vmul.f32 %v5184_v38, %v2553_v5  ;;  %v2126_v30 = vadd.f32 1e-05, %v2122_v56 }
 0x8d2   :  { %v2625_v59 = vpack.c.bf16 %v2617_v29, %v2617_v29  ;;  %5042 = vrsqrt.f32 %v2126_v30  ;;  %vm2163_vm6 = vweird.f32 %v2126_v30 }
 0x8d4   :  { %v2642_v23 = vunpack.c.l.b16 %v2625_v59  ;;  %v2627_v59 = vpack.c.bf16 %v2619_v0, %v2619_v0 }
 0x8d5   :  { %v2607_v41 = vpop.f32.mrf.mxu2 }
 0x8d6   :  { %v2620_v29 = vmul.f32 %v5186_v44, %v2607_v41 }
 0x8d7   :  { %v2555_v3 = vpop.f32.mrf.mxu1 }
 0x8d8   :  { %v2618_v61 = vmul.f32 %v5187_v58, %v2555_v3  ;;  %v2628_v3 = vpack.c.bf16 %v2620_v29, %v2620_v29 }
 0x8da   :  { %v2626_v5 = vpack.c.bf16 %v2618_v61, %v2618_v61  ;;  %v2675_v22 = vunpack.c.l.b16 %v2628_v3  ;;  %v88_v3 = vld [vmem:[%s7692_s0 + $0x78] sm:$0xff] }
 0x8dc   :  { %v2643_v40 = vunpack.c.l.b16 %v2626_v5  ;;  %v6159_v5 = vpop.permute.xlu2 %612 }
 0x8dd   :  { %v2610_v47 = vpop.f32.mrf.mxu2 }
 0x8de   :  { %v2645_v27 = vpack.c.b16 %v2643_v40, %v2642_v23  ;;  %v2621_v15 = vmul.f32 %v5184_v38, %v2610_v47  ;;  %v2674_v47 = vunpack.c.l.b16 %v2627_v59  ;;  %v87_v59 = vld [vmem:[%s7692_s0 + $0x70] sm:$0xff] }
 0x8e0   :  { %2657 = vmatpush.bf16.msrb.mxu3 %v2645_v27  ;;  %v2629_v11 = vpack.c.bf16 %v2621_v15, %v2621_v15  ;;  %v6155_v27 = vld [vmem:[%s7698_s6] sm:$0xff]  ;;  %v2678_v38 = vpack.c.b16 %v2675_v22, %v2674_v47 }
 0x8e2   :  { %v2676_v14 = vunpack.c.l.b16 %v2629_v11  ;;  %v5043_v11 = vpop.eup %5042 }
 0x8e3   :  { %v2158_v25 = vmul.f32 %v5043_v11, %v2126_v30  ;;  %vm2164_vm5 = vweird.f32 %v5043_v11 }
 0x8e4   :  { %2658 = vmatpush.bf16.msrb.mxu3 %v2644_v53  ;;  %vm2165_vm7 = vmor %vm2163_vm6, %vm2164_vm5 }
 0x8e5   :  { %v2612_v32 = vpop.f32.mrf.mxu2  ;;  %v2159_v44 = vmul.f32 %v5043_v11, %v2158_v25 }
 0x8e6   :  { %v2622_v12 = vmul.f32 %v5187_v58, %v2612_v32 }
 0x8e7   :  { %v2160_v41 = vmul.f32 0.5, %v2159_v44 }
 0x8e8   :  { %2896 = vmatpush.bf16.msra.mxu3 %v6149_v45  ;;  %v2630_v61 = vpack.c.bf16 %v2622_v12, %v2622_v12  ;;  %v96_v12 = vpack.c.bf16 %v88_v3, %v87_v59 }
 0x8e9   :  { %v2161_v0 = vsub.f32 1.5, %v2160_v41 }
 0x8ea   :  { %v2677_v15 = vunpack.c.l.b16 %v2630_v61  ;;  %4732 = vmatmul.msk.bf16.gmra.mxu0 %vm110_vm0, %v96_v12 }
 0x8eb   :  { %v2162_v52 = vmul.f32 %v5043_v11, %v2161_v0 }
 0x8ec   :  { %2897 = vmatpush.bf16.msra.mxu3 %v6155_v27  ;;  %v2679_v53 = vpack.c.b16 %v2677_v15, %v2676_v14 }
 0x8ed   :  { %v2166_v56 = vsel %vm2165_vm7, %v5043_v11, %v2162_v52 }
 0x8ee   :  { %2691 = vmatpush.bf16.msrb.mxu0 %v2679_v53  ;;  %v2170_v25 = vmul.f32 %v2166_v56, %v5981_v16 }
 0x8f0   :  { %v2175_v52 = vmul.f32 %v6022_v48, %v2170_v25 }
 0x8f2   :  { %2692 = vmatpush.bf16.msrb.mxu0 %v2678_v38  ;;  %v2180_v12 = vadd.f32 %v6025_v17, %v2175_v52 }
 0x8f4   :  { %v6180_v25 = vmul.f32 0.5, %v2180_v12 }
 0x8f6   :  { %7749 = vst [vmem:[#allocation16_spill] sm:$0xff] %v6180_v25  ;;  %vm2192_vm2 = vcmp.ge.f32.partialorder %v6180_v25, 0.5 }
 0x903   :  { %v2116_v58 = vpop.xlane.xlu1 %2115 }
 0x904   :  { %v2121_v23 = vmul.f32 0.0078125, %v2116_v58 }
 0x906   :  { %v2125_v40 = vadd.f32 1e-05, %v2121_v23 }
 0x908   :  { %5044 = vrsqrt.f32 %v2125_v40  ;;  %vm2153_vm10 = vweird.f32 %v2125_v40 }
 0x90b   :  { %v288_v29 = vpop.xlane.xlu1 %287 }
 0x90c   :  { %v330_v32 = vmul.f32 0.03125, %v288_v29 }
 0x90e   :  { %v5045_v14 = vpop.eup %5044  ;;  %v346_v61 = vadd.f32 1e-05, %v330_v32 }
 0x90f   :  { %v2148_v47 = vmul.f32 %v5045_v14, %v2125_v40  ;;  %v651_v22 = vpop.xlane.xlu2 %650  ;;  %vm2154_vm9 = vweird.f32 %v5045_v14 }
 0x910   :  { %5046 = vrsqrt.f32 %v346_v61  ;;  %v687_v15 = vmul.f32 0.03125, %v651_v22  ;;  %vm2155_vm11 = vmor %vm2153_vm10, %vm2154_vm9  ;;  %vm386_vm14 = vweird.f32 %v346_v61 }
 0x911   :  { %v2149_v53 = vmul.f32 %v5045_v14, %v2148_v47 }
 0x912   :  { %v6169_v38 = vsub.f32 %v6003_v20, %v687_v15 }
 0x913   :  { %v2150_v44 = vmul.f32 0.5, %v2149_v53  ;;  %v312_v41 = vpop.xlane.xlu1 %311 }
 0x914   :  { %v338_v30 = vmul.f32 0.03125, %v312_v41  ;;  %v719_v58 = vmul.f32 %v6169_v38, %v6169_v38 }
 0x915   :  { %v2151_v23 = vsub.f32 1.5, %v2150_v44 }
 0x916   :  { %v5047_v11 = vpop.eup %5046  ;;  %v354_v0 = vadd.f32 1e-05, %v338_v30  ;;  %756 = vrot.lane.b32.xlu0 %v719_v58, %s5258_s19 }
 0x917   :  { %v2152_v29 = vmul.f32 %v5045_v14, %v2151_v23  ;;  %v381_v32 = vmul.f32 %v5047_v11, %v346_v61  ;;  %vm387_vm13 = vweird.f32 %v5047_v11 }
 0x918   :  { %5048 = vrsqrt.f32 %v354_v0  ;;  %vm388_vm15 = vmor %vm386_vm14, %vm387_vm13  ;;  %vm466_vm6 = vweird.f32 %v354_v0 }
 0x919   :  { %v2156_v16 = vsel %vm2155_vm11, %v5045_v14, %v2152_v29  ;;  %v382_v59 = vmul.f32 %v5047_v11, %v381_v32  ;;  %v7751_v29 = vmov 1.0|1.0  }
 0x91a   :  { %v2169_v3 = vmul.f32 %v2156_v16, %v6072_v19 }
 0x91b   :  { %v383_v56 = vmul.f32 0.5, %v382_v59 }
 0x91c   :  { %v2174_v47 = vmul.f32 %v6022_v48, %v2169_v3 }
 0x91d   :  { %v384_v22 = vsub.f32 1.5, %v383_v56  ;;  %v4824_v56 = vsel %vm2418_vm3, 1.0, %v7743_v2 }
 0x91e   :  { %v5049_v15 = vpop.eup %5048  ;;  %v2179_v53 = vadd.f32 %v6025_v17, %v2174_v47 }
 0x91f   :  { %v385_v40 = vmul.f32 %v5047_v11, %v384_v22  ;;  %v461_v44 = vmul.f32 %v5049_v15, %v354_v0  ;;  %vm467_vm5 = vweird.f32 %v5049_v15 }
 0x920   :  { %v2183_v14 = vmul.f32 0.5, %v2179_v53  ;;  %vm468_vm7 = vmor %vm466_vm6, %vm467_vm5 }
 0x921   :  { %v389_v41 = vsel %vm388_vm15, %v5047_v11, %v385_v40  ;;  %v462_v30 = vmul.f32 %v5049_v15, %v461_v44  ;;  %v2474_v40 = vpack.c.bf16 %v4824_v56, %v4824_v56 }
 0x922   :  { %v522_v19 = vmul.f32 %v389_v41, %v6077_v21  ;;  %vm2191_vm1 = vcmp.ge.f32.partialorder %v2183_v14, 0.5 }
 0x923   :  { %v463_v58 = vmul.f32 0.5, %v462_v30  ;;  %v6184_v23 = vsel %vm2191_vm1, 0.0, %v2183_v14  ;;  %vm4817_vm8 = vmpackc.low %vm2192_vm2, %vm2191_vm1  ;;  %v2634_v41 = vunpack.c.l.b16 %v2474_v40 }
 0x924   :  { %7750 = vst [vmem:[#allocation17_spill] sm:$0xff] %v6184_v23  ;;  %v539_v52 = vmul.f32 %v5473_v8, %v522_v19  ;;  %4818 = vmatmul.msk.bf16.gmra.mxu3 %vm4817_vm8, %v7751_v29 }
 0x925   :  { %v464_v61 = vsub.f32 1.5, %v463_v58 }
 0x926   :  { %v556_v11 = vadd.f32 %v5476_v13, %v539_v52 }
 0x927   :  { %v465_v32 = vmul.f32 %v5049_v15, %v464_v61 }
 0x928   :  { %v2405_v21 = vsub.f32 %v556_v11, %v5658_v42 }
 0x929   :  { %v469_v16 = vsel %vm468_vm7, %v5049_v15, %v465_v32 }
 0x92a   :  { %v2409_v59 = vmul.f32 0.5, %v2405_v21  ;;  %v530_v3 = vmul.f32 %v469_v16, %v6085_v43 }
 0x92b   :  { %v595_v12 = vpop.permute.xlu1 %594 }
 0x92c   :  { %v547_v47 = vmul.f32 %v5473_v8, %v530_v3  ;;  %v646_v22 = vsel %vm110_vm0, %v595_v12, 0.0  ;;  %v2413_v53 = vadd.f32 %v2409_v59, %v5658_v42  ;;  %v4826_v42 = vsel %vm2420_vm4, 1.0, %v7743_v2 }
 0x92d   :  { %647 = vadd.xlane.f32.xlu1 %v646_v22  ;;  %v2476_v11 = vpack.c.bf16 %v4826_v42, %v4826_v42 }
 0x92e   :  { %v564_v0 = vadd.f32 %v5476_v13, %v547_v47  ;;  %vm2417_vm9 = vcmp.ge.f32.partialorder %v2413_v53, 0.5  ;;  %v1107_v47 = vpop.permute.xlu0 %1106 }
 0x92f   :  { %v6200_v15 = vsel %vm2417_vm9, 0.0, %v2413_v53  ;;  %v4823_v43 = vsel %vm2417_vm9, 1.0, %v7743_v2  ;;  %v2668_v3 = vunpack.c.l.b16 %v2476_v11  ;;  %v1166_v22 = vsel %vm110_vm0, %v1107_v47, 0.0 }
 0x930   :  { %v2473_v44 = vpack.c.bf16 %v4823_v43, %v4823_v43  ;;  %v2407_v14 = vsub.f32 %v564_v0, %v5641_v62 }
 0x932   :  { %v2633_v54 = vunpack.c.l.b16 %v2473_v44  ;;  %v2411_v30 = vmul.f32 0.5, %v2407_v14  ;;  %v6226_v44 = vpop.f32.mrf.mxu3 }
 0x933   :  { %v1091_v19 = vpop.permute.xlu1 %1090  ;;  %7752 = vst [vmem:[#allocation18_spill] sm:$0xff] %v6226_v44 }
 0x934   :  { %v1142_v58 = vsel %vm110_vm0, %v1091_v19, 0.0  ;;  %v2635_v52 = vpack.c.b16 %v2634_v41, %v2633_v54  ;;  %v2415_v61 = vadd.f32 %v2411_v30, %v5641_v62  ;;  %v673_v62 = vsel %vm110_vm0, %v6159_v5, 0.0 }
 0x935   :  { %1143 = vadd.xlane.f32.xlu2 %v1142_v58 }
 0x936   :  { %4839 = vmatmul.msk.bf16.vlgmr.msrb.gmra.mxu3 %vm110_vm0, %v2635_v52  ;;  %vm2419_vm3 = vcmp.ge.f32.partialorder %v2415_v61, 0.5  ;;  %v1147_v53 = vpop.xlane.xlu0 %1146 }
 0x937   :  { %v6210_v32 = vsel %vm2419_vm3, 0.0, %v2415_v61  ;;  %v4825_v21 = vsel %vm2419_vm3, 1.0, %v7743_v2  ;;  %v1183_v0 = vmul.f32 0.03125, %v1147_v53 }
 0x938   :  { %v2475_v16 = vpack.c.bf16 %v4825_v21, %v4825_v21 }
 0x939   :  { %v6221_v40 = vsub.f32 %v6003_v20, %v1183_v0 }
 0x93a   :  { %v2667_v59 = vunpack.c.l.b16 %v2475_v16  ;;  %v6228_v5 = vpop.f32.mrf.mxu3 }
 0x93b   :  { %v611_v12 = vpop.permute.xlu1 %610  ;;  %v1215_v43 = vmul.f32 %v6221_v40, %v6221_v40  ;;  %7753 = vst [vmem:[#allocation19_spill] sm:$0xff] %v6228_v5 }
 0x93c   :  { %v670_v1 = vsel %vm110_vm0, %v611_v12, 0.0  ;;  %v2669_v56 = vpack.c.b16 %v2668_v3, %v2667_v59 }
 0x93d   :  { %671 = vadd.xlane.f32.xlu2 %v670_v1 }
 0x93e   :  { %4840 = vmatmul.msk.bf16.vlgmr.msrb.gmra.mxu0 %vm110_vm0, %v2669_v56 }
 0x945   :  { %674 = vadd.xlane.f32.xlu2 %v673_v62 }
 0x946   :  { %1108 = vrot.lane.b32.xlu1 %v6016_v26, %s5257_s18 }
 0x967   :  { %v6232_v54 = vpop.f32.mrf.mxu0 }
 0x96f   :  { %v6236_v58 = vpop.f32.mrf.mxu0 }
 0x970   :  { %1167 = vadd.xlane.f32.xlu1 %v1166_v22 }
 0x989   :  { %1252 = vrot.lane.b32.xlu1 %v1215_v43, %s5257_s18 }
 0x9a0   :  { %v648_v30 = vpop.xlane.xlu1 %647 }
 0x9a7   :  { %v6230_v14 = vpop.f32.mrf.mxu3 }
 0x9a8   :  { %7754 = vst [vmem:[#allocation20_spill] sm:$0xff] %v6230_v14  ;;  %v1144_v41 = vpop.xlane.xlu2 %1143 }
 0x9af   :  { %v6234_v42 = vpop.f32.mrf.mxu3 }
 0x9b0   :  { %v672_v19 = vpop.xlane.xlu2 %671  ;;  %7755 = vst [vmem:[#allocation21_spill] sm:$0xff] %v6234_v42 }
 0x9b8   :  { %v1109_v52 = vpop.permute.xlu1 %1108  ;;  %v675_v61 = vpop.xlane.xlu2 %674 }
 0x9b9   :  { %v695_v11 = vmul.f32 0.03125, %v675_v61  ;;  %v2660_v21 = vpop.f32.mrf.mxu3  ;;  %v1169_v16 = vsel %vm110_vm0, %v1109_v52, 0.0 }
 0x9ba   :  { %v2699_v59 = vsub.f32 %v2660_v21, %v5709_v35  ;;  %1170 = vadd.xlane.f32.xlu2 %v1169_v16 }
 0x9bb   :  { %v6241_v3 = vsub.f32 %v6016_v26, %v695_v11  ;;  %v2694_v12 = vpop.f32.mrf.mxu0 }
 0x9bc   :  { %v2703_v1 = vmul.f32 0.5, %v2699_v59  ;;  %v2701_v56 = vsub.f32 %v2694_v12, %v5716_v46  ;;  %v686_v12 = vmul.f32 0.03125, %v648_v30  ;;  %v1182_v30 = vmul.f32 0.03125, %v1144_v41 }
 0x9bd   :  { %v727_v62 = vmul.f32 %v6241_v3, %v6241_v3 }
 0x9be   :  { %v2707_v47 = vadd.f32 %v2703_v1, %v5709_v35  ;;  %v2705_v22 = vmul.f32 0.5, %v2701_v56 }
 0x9bf   :  { %772 = vrot.lane.b32.xlu0 %v727_v62, %s5258_s19 }
 0x9c0   :  { %vm2711_vm4 = vcmp.ge.f32.partialorder %v2707_v47, 0.25  ;;  %v2709_v53 = vadd.f32 %v2705_v22, %v5716_v46 }
 0x9c1   :  { %v2662_v0 = vpop.f32.mrf.mxu3  ;;  %v6249_v43 = vsel %vm2711_vm4, 0.0, %v2707_v47  ;;  %v4841_v1 = vsel %vm2711_vm4, 1.0, %v7743_v2 }
 0x9c2   :  { %7756 = vst [vmem:[#allocation22_spill] sm:$0xff] %v6249_v43  ;;  %vm2713_vm10 = vcmp.ge.f32.partialorder %v2709_v53, 0.25  ;;  %v2700_v52 = vsub.f32 %v2662_v0, %v5713_v51 }
 0x9c3   :  { %v2696_v61 = vpop.f32.mrf.mxu0  ;;  %v6253_v11 = vsel %vm2713_vm10, 0.0, %v2709_v53  ;;  %v4843_v22 = vsel %vm2713_vm10, 1.0, %v7743_v2  ;;  %v694_v53 = vmul.f32 0.03125, %v672_v19 }
 0x9c4   :  { %7757 = vst [vmem:[#allocation23_spill] sm:$0xff] %v6253_v11  ;;  %v2704_v21 = vmul.f32 0.5, %v2700_v52  ;;  %v2702_v16 = vsub.f32 %v2696_v61, %v5720_v50 }
 0x9c6   :  { %v2708_v35 = vadd.f32 %v2704_v21, %v5713_v51  ;;  %v2706_v59 = vmul.f32 0.5, %v2702_v16  ;;  %v6268_v51 = vsub.f32 %v6126_v31, %v686_v12  ;;  %v6275_v21 = vsub.f32 %v6126_v31, %v1182_v30 }
 0x9c8   :  { %vm2712_vm11 = vcmp.ge.f32.partialorder %v2708_v35, 0.25  ;;  %v2710_v46 = vadd.f32 %v2706_v59, %v5720_v50  ;;  %v718_v61 = vmul.f32 %v6268_v51, %v6268_v51  ;;  %v1214_v16 = vmul.f32 %v6275_v21, %v6275_v21 }
 0x9c9   :  { %v4842_v56 = vsel %vm2712_vm11, 1.0, %v7743_v2  ;;  %v6260_v62 = vsel %vm2712_vm11, 0.0, %v2708_v35  ;;  %v6281_v35 = vsub.f32 %v6006_v57, %v694_v53 }
 0x9ca   :  { %7758 = vst [vmem:[#allocation24_spill] sm:$0xff] %v6260_v62  ;;  %v2727_v47 = vpack.c.bf16 %v4842_v56, %v4841_v1  ;;  %vm2714_vm13 = vcmp.ge.f32.partialorder %v2710_v46, 0.25 }
 0x9cb   :  { %v4844_v0 = vsel %vm2714_vm13, 1.0, %v7743_v2  ;;  %v6265_v52 = vsel %vm2714_vm13, 0.0, %v2710_v46  ;;  %v726_v41 = vmul.f32 %v6281_v35, %v6281_v35  ;;  %v757_v46 = vpop.permute.xlu0 %756 }
 0x9cc   :  { %7759 = vst [vmem:[#allocation25_spill] sm:$0xff] %v6265_v52  ;;  %4845 = vmatmul.msk.bf16.vlgmr.msrb.gmra.mxu2 %vm110_vm0, %v2727_v47  ;;  %v2728_v50 = vpack.c.bf16 %v4844_v0, %v4843_v22  ;;  %v809_v1 = vsel %vm110_vm0, %v757_v46, 0.0 }
 0x9d2   :  { %754 = vrot.lane.b32.xlu2 %v718_v61, %s5258_s19 }
 0x9da   :  { %1250 = vrot.lane.b32.xlu2 %v1214_v16, %s5257_s18 }
 0x9dc   :  { %4846 = vmatmul.msk.bf16.gmra.mxu2 %vm110_vm0, %v2728_v50 }
 0x9e2   :  { %770 = vrot.lane.b32.xlu2 %v726_v41, %s5258_s19 }
 0x9e3   :  { %v1168_v59 = vpop.xlane.xlu1 %1167 }
 0x9e4   :  { %v1190_v12 = vmul.f32 0.03125, %v1168_v59 }
 0x9e6   :  { %v6288_v19 = vsub.f32 %v6006_v57, %v1190_v12 }
 0x9e8   :  { %v1222_v56 = vmul.f32 %v6288_v19, %v6288_v19 }
 0x9e9   :  { %810 = vadd.xlane.f32.xlu0 %v809_v1 }
 0x9ea   :  { %1266 = vrot.lane.b32.xlu1 %v1222_v56, %s5257_s18 }
 0x9fb   :  { %v1253_v53 = vpop.permute.xlu1 %1252 }
 0x9fc   :  { %v1305_v41 = vsel %vm110_vm0, %v1253_v53, 0.0 }
 0xa2d   :  { %v1171_v47 = vpop.xlane.xlu2 %1170 }
 0xa2e   :  { %v1191_v22 = vmul.f32 0.03125, %v1171_v47 }
 0xa30   :  { %v6295_v0 = vsub.f32 %v6016_v26, %v1191_v22 }
 0xa31   :  { %v773_v59 = vpop.permute.xlu0 %772 }
 0xa32   :  { %v1223_v50 = vmul.f32 %v6295_v0, %v6295_v0  ;;  %v833_v46 = vsel %vm110_vm0, %v773_v59, 0.0 }
 0xa34   :  { %1268 = vrot.lane.b32.xlu1 %v1223_v50, %s5257_s18 }
 0xa35   :  { %v755_v30 = vpop.permute.xlu2 %754 }
 0xa36   :  { %v806_v61 = vsel %vm110_vm0, %v755_v30, 0.0 }
 0xa37   :  { %807 = vadd.xlane.f32.xlu2 %v806_v61 }
 0xa3d   :  { %v1251_v16 = vpop.permute.xlu2 %1250 }
 0xa3e   :  { %v1302_v30 = vsel %vm110_vm0, %v1251_v16, 0.0 }
 0xa3f   :  { %1306 = vadd.xlane.f32.xlu2 %v1305_v41 }
 0xa45   :  { %v771_v12 = vpop.permute.xlu2 %770 }
 0xa46   :  { %v830_v1 = vsel %vm110_vm0, %v771_v12, 0.0 }
 0xa47   :  { %834 = vadd.xlane.f32.xlu2 %v833_v46  ;;  %831 = vadd.xlane.f32.xlu0 %v830_v1 }
 0xa4f   :  { %v2744_v56 = vpop.f32.mrf.mxu2 }
 0xa50   :  { %v6307_v41 = vadd.f32 %v2744_v56, %v5729_v60 }
 0xa52   :  { %v2754_v59 = vsel %vm110_vm0, %v6307_v41, 0.0 }
 0xa57   :  { %v2746_v47 = vpop.f32.mrf.mxu2 }
 0xa5c   :  { %v1267_v22 = vpop.permute.xlu1 %1266  ;;  %v811_v50 = vpop.xlane.xlu0 %810 }
 0xa5d   :  { %v847_v14 = vmul.f32 0.03125, %v811_v50  ;;  %v1326_v61 = vsel %vm110_vm0, %v1267_v22, 0.0 }
 0xa5e   :  { %1303 = vadd.xlane.f32.xlu1 %v1302_v30  ;;  %1327 = vadd.xlane.f32.xlu0 %v1326_v61 }
 0xa5f   :  { %v863_v53 = vadd.f32 1e-05, %v847_v14  ;;  %v2749_v12 = vpop.f32.mrf.mxu2 }
 0xa60   :  { %v6312_v50 = vadd.f32 %v2749_v12, %v5729_v60 }
 0xa61   :  { %5050 = vrsqrt.f32 %v863_v53  ;;  %vm930_vm15 = vweird.f32 %v863_v53 }
 0xa62   :  { %v2760_v22 = vsel %vm110_vm0, %v6312_v50, 0.0 }
 0xa66   :  { %2755 = vadd.xlane.f32.xlu0 %v2754_v59 }
 0xa67   :  { %v5051_v46 = vpop.eup %5050 }
 0xa68   :  { %v925_v1 = vmul.f32 %v5051_v46, %v863_v53  ;;  %vm931_vm14 = vweird.f32 %v5051_v46 }
 0xa69   :  { %vm932_vm1 = vmor %vm930_vm15, %vm931_vm14 }
 0xa6a   :  { %v926_v16 = vmul.f32 %v5051_v46, %v925_v1 }
 0xa6c   :  { %v927_v5 = vmul.f32 0.5, %v926_v16 }
 0xa6e   :  { %v928_v14 = vsub.f32 1.5, %v927_v5  ;;  %2761 = vadd.xlane.f32.xlu0 %v2760_v22 }
 0xa70   :  { %v929_v56 = vmul.f32 %v5051_v46, %v928_v14 }
 0xa72   :  { %v933_v30 = vsel %vm932_vm1, %v5051_v46, %v929_v56 }
 0xa73   :  { %v1039_v61 = vmul.f32 %v933_v30, %v6169_v38  ;;  %v6326_v38 = vadd.f32 %v2746_v47, %v5729_v60  ;;  %v2751_v30 = vpop.f32.mrf.mxu2 }
 0xa75   :  { %v1055_v59 = vmul.f32 %v1039_v61, %v5473_v8  ;;  %v6331_v61 = vadd.f32 %v2751_v30, %v5729_v60 }
 0xa77   :  { %v1071_v42 = vadd.f32 %v1055_v59, %v5476_v13  ;;  %v2763_v47 = vsel %vm110_vm0, %v6331_v61, 0.0 }
 0xa79   :  { %v3200_v12 = vsub.f32 %v1071_v42, %v5877_v6  ;;  %v2757_v42 = vsel %vm110_vm0, %v6326_v38, 0.0 }
 0xa7b   :  { %v3204_v1 = vmul.f32 0.5, %v3200_v12 }
 0xa7d   :  { %v3208_v16 = vadd.f32 %v3204_v1, %v5877_v6 }
 0xa7f   :  { %vm3212_vm8 = vcmp.ge.f32.partialorder %v3208_v16, 0.5 }
 0xa80   :  { %v6322_v5 = vsel %vm3212_vm8, 0.0, %v3208_v16 }
 0xa81   :  { %7760 = vst [vmem:[#allocation26_spill] sm:$0xff] %v6322_v5 }
 0xaa6   :  { %v1269_v22 = vpop.permute.xlu1 %1268 }
 0xaa7   :  { %v1329_v53 = vsel %vm110_vm0, %v1269_v22, 0.0 }
 0xaa8   :  { %1330 = vadd.xlane.f32.xlu2 %v1329_v53 }
 0xaaa   :  { %v808_v46 = vpop.xlane.xlu2 %807 }
 0xaab   :  { %v846_v14 = vmul.f32 0.03125, %v808_v46 }
 0xaad   :  { %v862_v56 = vadd.f32 1e-05, %v846_v14 }
 0xaaf   :  { %5052 = vrsqrt.f32 %v862_v56  ;;  %vm920_vm6 = vweird.f32 %v862_v56 }
 0xab0   :  { %2758 = vadd.xlane.f32.xlu2 %v2757_v42 }
 0xab2   :  { %v1307_v6 = vpop.xlane.xlu2 %1306 }
 0xab3   :  { %v1343_v59 = vmul.f32 0.03125, %v1307_v6 }
 0xab5   :  { %v5053_v12 = vpop.eup %5052  ;;  %v1359_v1 = vadd.f32 1e-05, %v1343_v59 }
 0xab6   :  { %v915_v22 = vmul.f32 %v5053_v12, %v862_v56  ;;  %vm921_vm5 = vweird.f32 %v5053_v12 }
 0xab7   :  { %5054 = vrsqrt.f32 %v1359_v1  ;;  %vm922_vm7 = vmor %vm920_vm6, %vm921_vm5  ;;  %vm1426_vm3 = vweird.f32 %v1359_v1 }
 0xab8   :  { %v916_v53 = vmul.f32 %v5053_v12, %v915_v22  ;;  %2764 = vadd.xlane.f32.xlu2 %v2763_v47 }
 0xaba   :  { %v917_v46 = vmul.f32 0.5, %v916_v53  ;;  %v832_v14 = vpop.xlane.xlu0 %831  ;;  %v835_v44 = vpop.xlane.xlu2 %834 }
 0xabb   :  { %v854_v5 = vmul.f32 0.03125, %v832_v14  ;;  %v855_v52 = vmul.f32 0.03125, %v835_v44 }
 0xabc   :  { %v918_v42 = vsub.f32 1.5, %v917_v46 }
 0xabd   :  { %v5055_v25 = vpop.eup %5054  ;;  %v870_v30 = vadd.f32 1e-05, %v854_v5  ;;  %v871_v60 = vadd.f32 1e-05, %v855_v52 }
 0xabe   :  { %v919_v6 = vmul.f32 %v5053_v12, %v918_v42  ;;  %v1421_v59 = vmul.f32 %v5055_v25, %v1359_v1  ;;  %vm1427_vm9 = vweird.f32 %v5055_v25 }
 0xabf   :  { %5056 = vrsqrt.f32 %v870_v30  ;;  %vm1428_vm4 = vmor %vm1426_vm3, %vm1427_vm9  ;;  %vm1000_vm14 = vweird.f32 %v870_v30  ;;  %vm1010_vm1 = vweird.f32 %v871_v60 }
 0xac0   :  { %v923_v23 = vsel %vm922_vm7, %v5053_v12, %v919_v6  ;;  %v1422_v29 = vmul.f32 %v5055_v25, %v1421_v59  ;;  %5058 = vrsqrt.f32 %v871_v60 }
 0xac1   :  { %v1038_v22 = vmul.f32 %v923_v23, %v6268_v51 }
 0xac2   :  { %v1423_v47 = vmul.f32 0.5, %v1422_v29 }
 0xac3   :  { %v1054_v53 = vmul.f32 %v1038_v22, %v5473_v8  ;;  %v4870_v22 = vsel %vm3212_vm8, 1.0, %v7743_v2 }
 0xac4   :  { %v1424_v14 = vsub.f32 1.5, %v1423_v47  ;;  %v3260_v62 = vpack.c.bf16 %v4870_v22, %v4870_v22 }
 0xac5   :  { %v5057_v44 = vpop.eup %5056  ;;  %v1070_v46 = vadd.f32 %v1054_v53, %v5476_v13 }
 0xac6   :  { %v5059_v5 = vpop.eup %5058  ;;  %v1425_v52 = vmul.f32 %v5055_v25, %v1424_v14  ;;  %v995_v56 = vmul.f32 %v5057_v44, %v870_v30  ;;  %vm1001_vm10 = vweird.f32 %v5057_v44 }
 0xac7   :  { %v1005_v42 = vmul.f32 %v5059_v5, %v871_v60  ;;  %v3199_v12 = vsub.f32 %v1070_v46, %v5906_v34  ;;  %vm1011_vm11 = vweird.f32 %v5059_v5  ;;  %vm1002_vm15 = vmor %vm1000_vm14, %vm1001_vm10 }
 0xac8   :  { %v1429_v6 = vsel %vm1428_vm4, %v5055_v25, %v1425_v52  ;;  %v996_v59 = vmul.f32 %v5057_v44, %v995_v56  ;;  %vm1012_vm8 = vmor %vm1010_vm1, %vm1011_vm11 }
 0xac9   :  { %v1535_v23 = vmul.f32 %v1429_v6, %v6221_v40  ;;  %v1006_v29 = vmul.f32 %v5059_v5, %v1005_v42  ;;  %v3203_v51 = vmul.f32 0.5, %v3199_v12  ;;  %v3278_v12 = vunpack.c.l.b16 %v3260_v62 }
 0xaca   :  { %v997_v47 = vmul.f32 0.5, %v996_v59 }
 0xacb   :  { %v1551_v53 = vmul.f32 %v1535_v23, %v5473_v8  ;;  %v1007_v11 = vmul.f32 0.5, %v1006_v29  ;;  %v3207_v1 = vadd.f32 %v3203_v51, %v5906_v34 }
 0xacc   :  { %v998_v14 = vsub.f32 1.5, %v997_v47 }
 0xacd   :  { %v1008_v43 = vsub.f32 1.5, %v1007_v11  ;;  %vm3211_vm13 = vcmp.ge.f32.partialorder %v3207_v1, 0.5  ;;  %v1567_v25 = vadd.f32 %v1551_v53, %v5476_v13 }
 0xace   :  { %v999_v40 = vmul.f32 %v5057_v44, %v998_v14  ;;  %v4869_v46 = vsel %vm3211_vm13, 1.0, %v7743_v2  ;;  %v6346_v16 = vsel %vm3211_vm13, 0.0, %v3207_v1 }
 0xacf   :  { %v1009_v52 = vmul.f32 %v5059_v5, %v1008_v43  ;;  %v3259_v56 = vpack.c.bf16 %v4869_v46, %v4869_v46  ;;  %v3220_v34 = vsub.f32 %v1567_v25, %v5956_v7 }
 0xad0   :  { %v1003_v42 = vsel %vm1002_vm15, %v5057_v44, %v999_v40 }
 0xad1   :  { %v1046_v11 = vmul.f32 %v1003_v42, %v6281_v35  ;;  %v1013_v6 = vsel %vm1012_vm8, %v5059_v5, %v1009_v52  ;;  %v1304_v59 = vpop.xlane.xlu1 %1303  ;;  %v1328_v23 = vpop.xlane.xlu0 %1327  ;;  %v3277_v29 = vunpack.c.l.b16 %v3259_v56  ;;  %v3224_v30 = vmul.f32 0.5, %v3220_v34 }
 0xad2   :  { %v1047_v51 = vmul.f32 %v1013_v6, %v6241_v3  ;;  %v1342_v22 = vmul.f32 0.03125, %v1304_v59  ;;  %v1350_v47 = vmul.f32 0.03125, %v1328_v23 }
 0xad3   :  { %v1062_v43 = vmul.f32 %v1046_v11, %v5473_v8  ;;  %v3279_v60 = vpack.c.b16 %v3278_v12, %v3277_v29  ;;  %v3228_v53 = vadd.f32 %v3224_v30, %v5956_v7 }
 0xad4   :  { %v1063_v44 = vmul.f32 %v1047_v51, %v5473_v8  ;;  %v1358_v1 = vadd.f32 1e-05, %v1342_v22  ;;  %v1366_v62 = vadd.f32 1e-05, %v1350_v47 }
 0xad5   :  { %v1078_v35 = vadd.f32 %v1062_v43, %v5476_v13  ;;  %3280 = vrot.lane.b32.xlu1 %v3279_v60, %s5258_s19  ;;  %vm3232_vm5 = vcmp.ge.f32.partialorder %v3228_v53, 0.5 }
 0xad6   :  { %5060 = vrsqrt.f32 %v1358_v1  ;;  %v1079_v5 = vadd.f32 %v1063_v44, %v5476_v13  ;;  %v6359_v14 = vsel %vm3232_vm5, 0.0, %v3228_v53  ;;  %vm1416_vm4 = vweird.f32 %v1358_v1 }
 0xad7   :  { %5062 = vrsqrt.f32 %v1366_v62  ;;  %v3201_v3 = vsub.f32 %v1078_v35, %v5895_v39  ;;  %vm1496_vm11 = vweird.f32 %v1366_v62 }
 0xad8   :  { %v3202_v7 = vsub.f32 %v1079_v5, %v5914_v10 }
 0xad9   :  { %v3205_v25 = vmul.f32 0.5, %v3201_v3 }
 0xada   :  { %v3206_v40 = vmul.f32 0.5, %v3202_v7 }
 0xadb   :  { %v3209_v46 = vadd.f32 %v3205_v25, %v5895_v39 }
 0xadc   :  { %v5061_v52 = vpop.eup %5060  ;;  %v3210_v56 = vadd.f32 %v3206_v40, %v5914_v10 }
 0xadd   :  { %v5063_v34 = vpop.eup %5062  ;;  %v1411_v42 = vmul.f32 %v5061_v52, %v1358_v1  ;;  %vm3213_vm6 = vcmp.ge.f32.partialorder %v3209_v46, 0.5  ;;  %vm1417_vm9 = vweird.f32 %v5061_v52 }
 0xade   :  { %v1491_v12 = vmul.f32 %v5063_v34, %v1366_v62  ;;  %vm3214_vm7 = vcmp.ge.f32.partialorder %v3210_v56, 0.5  ;;  %v6364_v11 = vsel %vm3213_vm6, 0.0, %v3209_v46  ;;  %v4871_v59 = vsel %vm3213_vm6, 1.0, %v7743_v2  ;;  %vm1418_vm10 = vmor %vm1416_vm4, %vm1417_vm9 }
 0xadf   :  { %v1412_v6 = vmul.f32 %v5061_v52, %v1411_v42  ;;  %v4872_v23 = vsel %vm3214_vm7, 1.0, %v7743_v2  ;;  %v6368_v29 = vsel %vm3214_vm7, 0.0, %v3210_v56  ;;  %v3261_v51 = vpack.c.bf16 %v4871_v59, %v4871_v59 }
 0xae0   :  { %v1492_v30 = vmul.f32 %v5063_v34, %v1491_v12  ;;  %v3262_v39 = vpack.c.bf16 %v4872_v23, %v4872_v23  ;;  %vm1497_vm3 = vweird.f32 %v5063_v34 }
 0xae1   :  { %v1413_v22 = vmul.f32 0.5, %v1412_v6  ;;  %v3334_v10 = vunpack.c.l.b16 %v3261_v51  ;;  %vm1498_vm13 = vmor %vm1496_vm11, %vm1497_vm3 }
 0xae2   :  { %v1493_v47 = vmul.f32 0.5, %v1492_v30  ;;  %v3335_v43 = vunpack.c.l.b16 %v3262_v39 }
 0xae3   :  { %v1414_v60 = vsub.f32 1.5, %v1413_v22 }
 0xae4   :  { %v1494_v44 = vsub.f32 1.5, %v1493_v47  ;;  %v3336_v35 = vpack.c.b16 %v3335_v43, %v3334_v10  ;;  %v2756_v43 = vpop.xlane.xlu0 %2755 }
 0xae5   :  { %v1415_v5 = vmul.f32 %v5061_v52, %v1414_v60 }
 0xae6   :  { %v1495_v3 = vmul.f32 %v5063_v34, %v1494_v44  ;;  %3337 = vrot.lane.b32.xlu1 %v3336_v35, %s5258_s19 }
 0xae7   :  { %v1419_v7 = vsel %vm1418_vm10, %v5061_v52, %v1415_v5  ;;  %v4874_v52 = vsel %vm3232_vm5, 1.0, %v7743_v2 }
 0xae8   :  { %v1534_v25 = vmul.f32 %v1419_v7, %v6275_v21  ;;  %v1499_v40 = vsel %vm1498_vm13, %v5063_v34, %v1495_v3  ;;  %v3272_v23 = vpack.c.bf16 %v4874_v52, %v4874_v52 }
 0xae9   :  { %v1542_v46 = vmul.f32 %v1499_v40, %v6288_v19 }
 0xaea   :  { %v1550_v56 = vmul.f32 %v1534_v25, %v5473_v8  ;;  %v3302_v10 = vunpack.c.l.b16 %v3272_v23 }
 0xaeb   :  { %v1558_v42 = vmul.f32 %v1542_v46, %v5473_v8 }
 0xaec   :  { %v1566_v12 = vadd.f32 %v1550_v56, %v5476_v13  ;;  %v2762_v3 = vpop.xlane.xlu0 %2761 }
 0xaed   :  { %v1574_v1 = vadd.f32 %v1558_v42, %v5476_v13  ;;  %v2768_v56 = vmul.f32 0.03125, %v2762_v3 }
 0xaee   :  { %v3219_v6 = vsub.f32 %v1566_v12, %v5890_v4 }
 0xaef   :  { %v3221_v62 = vsub.f32 %v1574_v1, %v5924_v36 }
 0xaf0   :  { %v3223_v59 = vmul.f32 0.5, %v3219_v6  ;;  %v6402_v6 = vsub.f32 %v6312_v50, %v2768_v56 }
 0xaf1   :  { %v3225_v21 = vmul.f32 0.5, %v3221_v62 }
 0xaf2   :  { %v3227_v34 = vadd.f32 %v3223_v59, %v5890_v4  ;;  %v2766_v4 = vmul.f32 0.03125, %v2756_v43 }
 0xaf3   :  { %v3229_v19 = vadd.f32 %v3225_v21, %v5924_v36 }
 0xaf4   :  { %vm3231_vm14 = vcmp.ge.f32.partialorder %v3227_v34, 0.5  ;;  %v6391_v44 = vsub.f32 %v6307_v41, %v2766_v4 }
 0xaf5   :  { %v6383_v30 = vsel %vm3231_vm14, 0.0, %v3227_v34  ;;  %v4873_v51 = vsel %vm3231_vm14, 1.0, %v7743_v2  ;;  %vm3233_vm15 = vcmp.ge.f32.partialorder %v3229_v19, 0.5 }
 0xaf6   :  { %v3271_v39 = vpack.c.bf16 %v4873_v51, %v4873_v51  ;;  %v6387_v22 = vsel %vm3233_vm15, 0.0, %v3229_v19  ;;  %v2774_v5 = vmul.f32 %v6391_v44, %v6391_v44 }
 0xaf8   :  { %v3301_v47 = vunpack.c.l.b16 %v3271_v39  ;;  %v2778_v40 = vsel %vm110_vm0, %v2774_v5, 0.0 }
 0xafa   :  { %v3303_v53 = vpack.c.b16 %v3302_v10, %v3301_v47 }
 0xafc   :  { %3304 = vrot.lane.b32.xlu0 %v3303_v53, %s5257_s18 }
 0xb1b   :  { %v1331_v60 = vpop.xlane.xlu2 %1330 }
 0xb1c   :  { %v1351_v36 = vmul.f32 0.03125, %v1331_v60 }
 0xb1e   :  { %v1367_v35 = vadd.f32 1e-05, %v1351_v36 }
 0xb20   :  { %5064 = vrsqrt.f32 %v1367_v35  ;;  %vm1506_vm8 = vweird.f32 %v1367_v35 }
 0xb23   :  { %v2759_v7 = vpop.xlane.xlu2 %2758 }
 0xb24   :  { %v2767_v25 = vmul.f32 0.03125, %v2759_v7 }
 0xb26   :  { %v5065_v46 = vpop.eup %5064  ;;  %v6397_v42 = vsub.f32 %v6326_v38, %v2767_v25  ;;  %2779 = vadd.xlane.f32.xlu0 %v2778_v40  ;;  %v2776_v38 = vmul.f32 %v6402_v6, %v6402_v6 }
 0xb27   :  { %v1501_v12 = vmul.f32 %v5065_v46, %v1367_v35  ;;  %vm1507_vm1 = vweird.f32 %v5065_v46 }
 0xb28   :  { %v2775_v41 = vmul.f32 %v6397_v42, %v6397_v42  ;;  %vm1508_vm5 = vmor %vm1506_vm8, %vm1507_vm1  ;;  %v2784_v47 = vsel %vm110_vm0, %v2776_v38, 0.0 }
 0xb29   :  { %v1502_v1 = vmul.f32 %v5065_v46, %v1501_v12 }
 0xb2a   :  { %v2781_v62 = vsel %vm110_vm0, %v2775_v41, 0.0  ;;  %v223_v41 = vsel %vm110_vm0, %v6016_v26, 0.0 }
 0xb2b   :  { %v1503_v59 = vmul.f32 0.5, %v1502_v1  ;;  %2782 = vadd.xlane.f32.xlu2 %v2781_v62  ;;  %v2765_v52 = vpop.xlane.xlu2 %2764 }
 0xb2c   :  { %v2769_v34 = vmul.f32 0.03125, %v2765_v52 }
 0xb2d   :  { %v1504_v21 = vsub.f32 1.5, %v1503_v59 }
 0xb2e   :  { %v6409_v50 = vsub.f32 %v6331_v61, %v2769_v34 }
 0xb2f   :  { %v1505_v23 = vmul.f32 %v5065_v46, %v1504_v21 }
 0xb30   :  { %v2777_v43 = vmul.f32 %v6409_v50, %v6409_v50 }
 0xb31   :  { %v1509_v51 = vsel %vm1508_vm5, %v5065_v46, %v1505_v23 }
 0xb32   :  { %v1543_v39 = vmul.f32 %v1509_v51, %v6295_v0  ;;  %v2787_v60 = vsel %vm110_vm0, %v2777_v43, 0.0  ;;  %v4875_v0 = vsel %vm3233_vm15, 1.0, %v7743_v2 }
 0xb33   :  { %2785 = vadd.xlane.f32.xlu2 %v2784_v47  ;;  %v3273_v35 = vpack.c.bf16 %v4875_v0, %v4875_v0 }
 0xb34   :  { %v1559_v10 = vmul.f32 %v1543_v39, %v5473_v8 }
 0xb35   :  { %v3358_v25 = vunpack.c.l.b16 %v3273_v35 }
 0xb36   :  { %v1575_v53 = vadd.f32 %v1559_v10, %v5476_v13 }
 0xb38   :  { %v3222_v4 = vsub.f32 %v1575_v53, %v5944_v33 }
 0xb3a   :  { %v3226_v36 = vmul.f32 0.5, %v3222_v4 }
 0xb3b   :  { %2788 = vadd.xlane.f32.xlu2 %v2787_v60 }
 0xb3c   :  { %v3230_v61 = vadd.f32 %v3226_v36, %v5944_v33  ;;  %v196_v33 = vsel %vm110_vm0, %v6126_v31, 0.0 }
 0xb3e   :  { %vm3234_vm6 = vcmp.ge.f32.partialorder %v3230_v61, 0.5 }
 0xb3f   :  { %v6421_v5 = vsel %vm3234_vm6, 0.0, %v3230_v61  ;;  %v4876_v3 = vsel %vm3234_vm6, 1.0, %v7743_v2 }
 0xb40   :  { %v3274_v7 = vpack.c.bf16 %v4876_v3, %v4876_v3 }
 0xb42   :  { %v3359_v40 = vunpack.c.l.b16 %v3274_v7 }
 0xb44   :  { %v3360_v46 = vpack.c.b16 %v3359_v40, %v3358_v25 }
 0xb47   :  { %v3281_v56 = vpop.permute.xlu1 %3280 }
 0xb4f   :  { %3283 = vxpose.xlu0.c.b16.start.end [1/1] (short) (narrow) %v3281_v56, 32 }
 0xb53   :  { %3361 = vrot.lane.b32.xlu2 %v3360_v46, %s5257_s18 }
 0xb58   :  { %v3338_v12 = vpop.permute.xlu1 %3337 }
 0xb59   :  { %3340 = vxpose.xlu1.c.b16.start.end [1/1] (short) (narrow) %v3338_v12, 32 }
 0xb6e   :  { %v3305_v19 = vpop.permute.xlu0 %3304 }
 0xb6f   :  { %3320 = vmatpush.bf16.msra.mxu2 %v3305_v19 }
 0xb73   :  { %3670 = vmatpush.bf16.msrb.mxu2 %v6149_v45 }
 0xb77   :  { %3671 = vmatpush.bf16.msrb.mxu2 %v6155_v27 }
 0xb7c   :  { %197 = vadd.xlane.f32.xlu2 %v196_v33 }
 0xb84   :  { %224 = vadd.xlane.f32.xlu2 %v223_v41 }
 0xb99   :  { %v2780_v1 = vpop.xlane.xlu0 %2779 }
 0xb9a   :  { %v2790_v62 = vmul.f32 0.03125, %v2780_v1 }
 0xb9c   :  { %v2794_v59 = vadd.f32 1e-05, %v2790_v62 }
 0xb9e   :  { %5066 = vrsqrt.f32 %v2794_v59  ;;  %v2783_v52 = vpop.xlane.xlu2 %2782  ;;  %vm2804_vm9 = vweird.f32 %v2794_v59 }
 0xb9f   :  { %v2791_v21 = vmul.f32 0.03125, %v2783_v52 }
 0xba1   :  { %v2795_v34 = vadd.f32 1e-05, %v2791_v21 }
 0xba3   :  { %5068 = vrsqrt.f32 %v2795_v34  ;;  %vm2814_vm10 = vweird.f32 %v2795_v34 }
 0xba4   :  { %v5067_v38 = vpop.eup %5066 }
 0xba5   :  { %v2799_v45 = vmul.f32 %v5067_v38, %v2794_v59  ;;  %vm2805_vm7 = vweird.f32 %v5067_v38 }
 0xba6   :  { %v2786_v23 = vpop.xlane.xlu2 %2785  ;;  %vm2806_vm3 = vmor %vm2804_vm9, %vm2805_vm7 }
 0xba7   :  { %v2800_v27 = vmul.f32 %v5067_v38, %v2799_v45  ;;  %v2792_v51 = vmul.f32 0.03125, %v2786_v23 }
 0xba9   :  { %v5069_v39 = vpop.eup %5068  ;;  %v2801_v47 = vmul.f32 0.5, %v2800_v27  ;;  %v2796_v10 = vadd.f32 1e-05, %v2792_v51 }
 0xbaa   :  { %v2809_v53 = vmul.f32 %v5069_v39, %v2795_v34  ;;  %vm2815_vm4 = vweird.f32 %v5069_v39  ;;  %v5190_v34 = vld [vmem:[%s7700_s8 + $0x38] sm:$0xff] }
 0xbab   :  { %v2802_v43 = vsub.f32 1.5, %v2801_v47  ;;  %5070 = vrsqrt.f32 %v2796_v10  ;;  %vm2816_vm11 = vmor %vm2814_vm10, %vm2815_vm4  ;;  %vm2824_vm14 = vweird.f32 %v2796_v10 }
 0xbac   :  { %v2810_v4 = vmul.f32 %v5069_v39, %v2809_v53 }
 0xbad   :  { %v2803_v60 = vmul.f32 %v5067_v38, %v2802_v43  ;;  %v5191_v43 = vld [vmem:[%s7700_s8 + $0x30] sm:$0xff] }
 0xbae   :  { %v2811_v36 = vmul.f32 0.5, %v2810_v4  ;;  %v2789_v0 = vpop.xlane.xlu2 %2788 }
 0xbaf   :  { %v2807_v61 = vsel %vm2806_vm3, %v5067_v38, %v2803_v60  ;;  %v2793_v35 = vmul.f32 0.03125, %v2789_v0 }
 0xbb0   :  { %v2838_v3 = vmul.f32 %v2807_v61, %v6391_v44  ;;  %v2812_v7 = vsub.f32 1.5, %v2811_v36 }
 0xbb1   :  { %v5071_v25 = vpop.eup %5070  ;;  %v2797_v40 = vadd.f32 1e-05, %v2793_v35 }
 0xbb2   :  { %v2842_v46 = vmul.f32 %v2838_v3, %v5808_v37  ;;  %v2813_v56 = vmul.f32 %v5069_v39, %v2812_v7  ;;  %v2819_v12 = vmul.f32 %v5071_v25, %v2796_v10  ;;  %vm2825_vm13 = vweird.f32 %v5071_v25  ;;  %v5192_v3 = vld [vmem:[%s7700_s8 + $0x28] sm:$0xff] }
 0xbb3   :  { %5072 = vrsqrt.f32 %v2797_v40  ;;  %vm2826_vm15 = vmor %vm2824_vm14, %vm2825_vm13  ;;  %vm2834_vm6 = vweird.f32 %v2797_v40 }
 0xbb4   :  { %v2846_v19 = vadd.f32 %v2842_v46, %v5811_v49  ;;  %v2817_v33 = vsel %vm2816_vm11, %v5069_v39, %v2813_v56  ;;  %v2820_v41 = vmul.f32 %v5071_v25, %v2819_v12  ;;  %v5194_v12 = vld [vmem:[%s7692_s0 + $0x18] sm:$0xff] }
 0xbb5   :  { %v2839_v1 = vmul.f32 %v2817_v33, %v6397_v42 }
 0xbb6   :  { %v2850_v62 = vsub.f32 %v2846_v19, %v5818_v24  ;;  %v2821_v44 = vmul.f32 0.5, %v2820_v41  ;;  %v3362_v59 = vpop.permute.xlu2 %3361  ;;  %v5195_v41 = vld [vmem:[%s7700_s8 + $0x20] sm:$0xff] }
 0xbb7   :  { %v2843_v52 = vmul.f32 %v2839_v1, %v5808_v37  ;;  %3377 = vmatpush.bf16.msra.mxu0 %v3362_v59 }
 0xbb8   :  { %v2854_v21 = vmul.f32 0.5, %v2850_v62  ;;  %v2822_v38 = vsub.f32 1.5, %v2821_v44 }
 0xbb9   :  { %v5073_v45 = vpop.eup %5072  ;;  %v2847_v23 = vadd.f32 %v2843_v52, %v5811_v49 }
 0xbba   :  { %v2823_v27 = vmul.f32 %v5071_v25, %v2822_v38  ;;  %v2829_v42 = vmul.f32 %v5073_v45, %v2797_v40  ;;  %v2858_v51 = vadd.f32 %v2854_v21, %v5818_v24  ;;  %vm2835_vm8 = vweird.f32 %v5073_v45  ;;  %v5196_v38 = vld [vmem:[%s7700_s8 + $0x18] sm:$0xff] }
 0xbbb   :  { %3801 = vmatpush.bf16.msrb.mxu0 %v5190_v34  ;;  %v2851_v39 = vsub.f32 %v2847_v23, %v5826_v55  ;;  %vm2836_vm7 = vmor %vm2834_vm6, %vm2835_vm8  ;;  %v220_v21 = vsel %vm110_vm0, %v6006_v57, 0.0 }
 0xbbc   :  { %v2827_v47 = vsel %vm2826_vm15, %v5071_v25, %v2823_v27  ;;  %v2830_v53 = vmul.f32 %v5073_v45, %v2829_v42  ;;  %vm2862_vm1 = vcmp.ge.f32.partialorder %v2858_v51, 0.5  ;;  %v199_v27 = vsel %vm110_vm0, %v6003_v20, 0.0 }
 0xbbd   :  { %v2855_v4 = vmul.f32 0.5, %v2851_v39  ;;  %v2840_v60 = vmul.f32 %v2827_v47, %v6402_v6  ;;  %v6447_v36 = vsel %vm2862_vm1, 0.0, %v2858_v51  ;;  %v4847_v35 = vsel %vm2862_vm1, 1.0, %v7743_v2  ;;  %v5198_v39 = vld [vmem:[%s7700_s8 + $0x8] sm:$0xff] }
 0xbbe   :  { %v2831_v10 = vmul.f32 0.5, %v2830_v53 }
 0xbbf   :  { %3802 = vmatpush.bf16.msrb.mxu0 %v5191_v43  ;;  %v2844_v0 = vmul.f32 %v2840_v60, %v5808_v37  ;;  %v2859_v24 = vadd.f32 %v2855_v4, %v5826_v55  ;;  %v5193_v55 = vld [vmem:[%s7692_s0 + $0x10] sm:$0xff] }
 0xbc0   :  { %v2832_v61 = vsub.f32 1.5, %v2831_v10  ;;  %v6462_v56 = vadd.f32 %v5193_v55, %v4847_v35  ;;  %v5199_v43 = vld [vmem:[%s7692_s0 + $0x50] sm:$0xff]  ;;  %v5201_v10 = vld [vmem:[%s7700_s8] sm:$0xff] }
 0xbc1   :  { %vm2863_vm5 = vcmp.ge.f32.partialorder %v2859_v24, 0.5  ;;  %v2848_v7 = vadd.f32 %v2844_v0, %v5811_v49 }
 0xbc2   :  { %v2833_v6 = vmul.f32 %v5073_v45, %v2832_v61  ;;  %v4848_v25 = vsel %vm2863_vm5, 1.0, %v7743_v2  ;;  %v6457_v46 = vsel %vm2863_vm5, 0.0, %v2859_v24  ;;  %7761 = vst [vmem:[#allocation27_spill] sm:$0xff] %v6462_v56  ;;  %v6519_v24 = vadd.f32 %v5392_v28, %v5366_v18 }
 0xbc3   :  { %3803 = vmatpush.bf16.msrb.mxu0 %v5192_v3  ;;  %v6467_v19 = vadd.f32 %v5194_v12, %v4848_v25  ;;  %v2852_v33 = vsub.f32 %v2848_v7, %v5845_v9  ;;  %v6525_v61 = vadd.f32 %v6236_v58, %v5366_v18 }
 0xbc4   :  { %v2837_v40 = vsel %vm2836_vm7, %v5073_v45, %v2833_v6 }
 0xbc5   :  { %7762 = vst [vmem:[#allocation28_spill] sm:$0xff] %v6467_v19  ;;  %v2841_v1 = vmul.f32 %v2837_v40, %v6409_v50  ;;  %v2882_v62 = vpack.c.bf16 %v6467_v19, %v6462_v56  ;;  %v2856_v44 = vmul.f32 0.5, %v2852_v33 }
 0xbc7   :  { %3804 = vmatpush.bf16.msrb.mxu0 %v5195_v41  ;;  %v2845_v59 = vmul.f32 %v2841_v1, %v5808_v37  ;;  %4851 = vmatmul.msk.bf16.vlgmr.msra.gmra.mxu3 %vm110_vm0, %v2882_v62  ;;  %v2860_v52 = vadd.f32 %v2856_v44, %v5845_v9  ;;  %v5197_v9 = vld [vmem:[%s7700_s8 + $0x10] sm:$0xff] }
 0xbc9   :  { %221 = vadd.xlane.f32.xlu1 %v220_v21  ;;  %v2849_v50 = vadd.f32 %v2845_v59, %v5811_v49  ;;  %vm2864_vm9 = vcmp.ge.f32.partialorder %v2860_v52, 0.5 }
 0xbca   :  { %v6485_v34 = vsel %vm2864_vm9, 0.0, %v2860_v52  ;;  %v4849_v51 = vsel %vm2864_vm9, 1.0, %v7743_v2 }
 0xbcb   :  { %3805 = vmatpush.bf16.msrb.mxu0 %v5196_v38  ;;  %v2853_v45 = vsub.f32 %v2849_v50, %v5851_v63  ;;  %v6504_v4 = vadd.f32 %v5199_v43, %v4849_v51 }
 0xbcd   :  { %v2857_v23 = vmul.f32 0.5, %v2853_v45  ;;  %7763 = vst [vmem:[#allocation29_spill] sm:$0xff] %v6504_v4 }
 0xbcf   :  { %3806 = vmatpush.bf16.msrb.mxu0 %v5197_v9  ;;  %v2861_v42 = vadd.f32 %v2857_v23, %v5851_v63  ;;  %v5200_v63 = vld [vmem:[%s7692_s0 + $0x58] sm:$0xff]  ;;  %v7765_v23 = vld [vmem:[#allocation11_spill] sm:$0xff] }
 0xbd0   :  { %200 = vadd.xlane.f32.xlu0 %v199_v27 }
 0xbd1   :  { %vm2865_vm3 = vcmp.ge.f32.partialorder %v2861_v42, 0.5 }
 0xbd2   :  { %v6498_v47 = vsel %vm2865_vm3, 0.0, %v2861_v42  ;;  %v4850_v53 = vsel %vm2865_vm3, 1.0, %v7743_v2 }
 0xbd3   :  { %3807 = vmatpush.bf16.msrb.mxu0 %v5198_v39  ;;  %v6509_v60 = vadd.f32 %v5200_v63, %v4850_v53 }
 0xbd5   :  { %7764 = vst [vmem:[#allocation30_spill] sm:$0xff] %v6509_v60  ;;  %v2883_v0 = vpack.c.bf16 %v6509_v60, %v6504_v4 }
 0xbd7   :  { %3808 = vmatpush.bf16.msrb.mxu0 %v5201_v10  ;;  %4852 = vmatmul.msk.bf16.gmra.mxu3 %vm110_vm0, %v2883_v0 }
 0xbe2   :  { %600 = vrot.lane.b32.xlu1 %v6519_v24, %s5258_s19 }
 0xbea   :  { %616 = vrot.lane.b32.xlu1 %v6525_v61, %s5258_s19 }
 0xbef   :  { %v198_v35 = vpop.xlane.xlu2 %197 }
 0xbf0   :  { %v236_v3 = vmul.f32 0.03125, %v198_v35 }
 0xbf2   :  { %v252_v7 = vsub.f32 %v6126_v31, %v236_v3 }
 0xbf4   :  { %v268_v6 = vmul.f32 %v252_v7, %v252_v7 }
 0xbf6   :  { %v292_v25 = vsel %vm110_vm0, %v268_v6, 0.0 }
 0xbf7   :  { %293 = vadd.xlane.f32.xlu2 %v292_v25  ;;  %v225_v52 = vpop.xlane.xlu2 %224 }
 0xbf8   :  { %v245_v21 = vmul.f32 0.03125, %v225_v52 }
 0xbfa   :  { %v6547_v50 = vsub.f32 %v6016_v26, %v245_v21 }
 0xbfb   :  { %v3291_v28 = vpop.trf.xlu0 }
 0xbfc   :  { %4877 = vmatmul.msk.bf16.vlgmr.msra.gmra.mxu2 %vm1694_vm12, %v3291_v28  ;;  %v277_v45 = vmul.f32 %v6547_v50, %v6547_v50 }
 0xc05   :  { %v3348_v55 = vpop.trf.xlu1 }
 0xc06   :  { %4879 = vmatmul.msk.bf16.vlgmr.msra.gmra.mxu0 %vm1694_vm12, %v3348_v55 }
 0xc0b   :  { %v3292_v12 = vpop.trf.xlu0 }
 0xc0c   :  { %4878 = vmatmul.msk.bf16.gmra.mxu2 %vm1694_vm12, %v3292_v12 }
 0xc15   :  { %v3349_v58 = vpop.trf.xlu1 }
 0xc16   :  { %4880 = vmatmul.msk.bf16.gmra.mxu0 %vm1694_vm12, %v3349_v58 }
 0xc3c   :  { %v222_v33 = vpop.xlane.xlu1 %221 }
 0xc3d   :  { %v244_v31 = vmul.f32 0.03125, %v222_v33 }
 0xc3f   :  { %v6541_v44 = vsub.f32 %v6006_v57, %v244_v31  ;;  %v319_v57 = vsel %vm110_vm0, %v277_v45, 0.0  ;;  %v5202_v45 = vld [vmem:[%s7695_s3 + $0x10] sm:$0xff] }
 0xc41   :  { %v276_v38 = vmul.f32 %v6541_v44, %v6541_v44 }
 0xc43   :  { %v201_v40 = vpop.xlane.xlu0 %200 }
 0xc44   :  { %v237_v41 = vmul.f32 0.03125, %v201_v40 }
 0xc46   :  { %v6536_v1 = vsub.f32 %v6003_v20, %v237_v41  ;;  %v316_v20 = vsel %vm110_vm0, %v276_v38, 0.0 }
 0xc48   :  { %v269_v62 = vmul.f32 %v6536_v1, %v6536_v1 }
 0xc4a   :  { %v295_v59 = vsel %vm110_vm0, %v269_v62, 0.0  ;;  %v2899_v9 = vpop.f32.mrf.mxu3 }
 0xc4b   :  { %296 = vadd.xlane.f32.xlu2 %v295_v59  ;;  %v6554_v27 = vadd.f32 %v2899_v9, %v7765_v23 }
 0xc52   :  { %v2901_v42 = vpop.f32.mrf.mxu3 }
 0xc53   :  { %317 = vadd.xlane.f32.xlu2 %v316_v20  ;;  %v6558_v51 = vadd.f32 %v2901_v42, %v7765_v23  ;;  %v5203_v42 = vld [vmem:[%s7695_s3] sm:$0xff] }
 0xc5a   :  { %v2904_v53 = vpop.f32.mrf.mxu3 }
 0xc5b   :  { %320 = vadd.xlane.f32.xlu2 %v319_v57  ;;  %v6562_v63 = vadd.f32 %v2904_v53, %v7765_v23 }
 0xc62   :  { %v2906_v0 = vpop.f32.mrf.mxu3 }
 0xc63   :  { %2909 = vadd.xlane.f32.xlu2 %v6554_v27  ;;  %v6566_v6 = vadd.f32 %v2906_v0, %v7765_v23 }
 0xc6a   :  { %v294_v26 = vpop.xlane.xlu2 %293 }
 0xc6b   :  { %v332_v39 = vmul.f32 0.03125, %v294_v26  ;;  %2911 = vadd.xlane.f32.xlu2 %v6558_v51  ;;  %v5204_v26 = vld [vmem:[%s7695_s3 + $0x8] sm:$0xff] }
 0xc6d   :  { %v348_v43 = vadd.f32 1e-05, %v332_v39 }
 0xc6f   :  { %5074 = vrsqrt.f32 %v348_v43  ;;  %vm406_vm10 = vweird.f32 %v348_v43 }
 0xc73   :  { %2913 = vadd.xlane.f32.xlu2 %v6562_v63 }
 0xc75   :  { %v5075_v10 = vpop.eup %5074 }
 0xc76   :  { %v401_v35 = vmul.f32 %v5075_v10, %v348_v43  ;;  %vm407_vm4 = vweird.f32 %v5075_v10 }
 0xc77   :  { %vm408_vm11 = vmor %vm406_vm10, %vm407_vm4 }
 0xc78   :  { %v402_v3 = vmul.f32 %v5075_v10, %v401_v35 }
 0xc7a   :  { %v403_v25 = vmul.f32 0.5, %v402_v3  ;;  %v5205_v3 = vld [vmem:[%s7695_s3 + $0x18] sm:$0xff] }
 0xc7b   :  { %2915 = vadd.xlane.f32.xlu2 %v6566_v6 }
 0xc7c   :  { %v404_v28 = vsub.f32 1.5, %v403_v25 }
 0xc7e   :  { %v405_v55 = vmul.f32 %v5075_v10, %v404_v28 }
 0xc7f   :  { %v3322_v12 = vpop.f32.mrf.mxu2 }
 0xc80   :  { %v409_v58 = vsel %vm408_vm11, %v5075_v10, %v405_v55 }
 0xc81   :  { %v524_v33 = vmul.f32 %v409_v58, %v252_v7 }
 0xc83   :  { %v541_v40 = vmul.f32 %v5473_v8, %v524_v33  ;;  %v3379_v41 = vpop.f32.mrf.mxu0 }
 0xc84   :  { %v3393_v28 = vmul.f32 %v5203_v42, %v3379_v41 }
 0xc85   :  { %v558_v31 = vadd.f32 %v5476_v13, %v541_v40 }
 0xc87   :  { %v3179_v62 = vsub.f32 %v558_v31, %v6200_v15  ;;  %v3324_v59 = vpop.f32.mrf.mxu2 }
 0xc88   :  { %v3390_v39 = vmul.f32 %v5204_v26, %v3324_v59 }
 0xc89   :  { %v3183_v52 = vmul.f32 0.5, %v3179_v62 }
 0xc8a   :  { %v3398_v35 = vpack.c.bf16 %v3390_v39, %v3390_v39 }
 0xc8b   :  { %v3381_v21 = vpop.f32.mrf.mxu0  ;;  %v6573_v38 = vadd.f32 %v3183_v52, %v6200_v15  ;;  %v3389_v15 = vmul.f32 %v5203_v42, %v3322_v12 }
 0xc8c   :  { %v3394_v55 = vmul.f32 %v5204_v26, %v3381_v21  ;;  %v3415_v62 = vunpack.c.l.b16 %v3398_v35 }
 0xc8d   :  { %vm3191_vm13 = vcmp.ge.f32.partialorder %v6573_v38, 0.5  ;;  %v3397_v0 = vpack.c.bf16 %v3389_v15, %v3389_v15 }
 0xc8e   :  { %v6579_v20 = vsel %vm3191_vm13, 0.0, %v6573_v38 }
 0xc8f   :  { %v3327_v7 = vpop.f32.mrf.mxu2  ;;  %v3414_v31 = vunpack.c.l.b16 %v3397_v0 }
 0xc90   :  { %v3391_v9 = vmul.f32 %v5202_v45, %v3327_v7  ;;  %v3401_v7 = vpack.c.bf16 %v3393_v28, %v3393_v28 }
 0xc91   :  { %v3418_v39 = vpack.c.b16 %v3415_v62, %v3414_v31 }
 0xc92   :  { %v3399_v53 = vpack.c.bf16 %v3391_v9, %v3391_v9  ;;  %v3448_v60 = vunpack.c.l.b16 %v3401_v7 }
 0xc93   :  { %v3384_v57 = vpop.f32.mrf.mxu0 }
 0xc94   :  { %v3395_v43 = vmul.f32 %v5202_v45, %v3384_v57  ;;  %v3416_v58 = vunpack.c.l.b16 %v3399_v53  ;;  %v3402_v45 = vpack.c.bf16 %v3394_v55, %v3394_v55 }
 0xc96   :  { %v3403_v33 = vpack.c.bf16 %v3395_v43, %v3395_v43 }
 0xc97   :  { %v3329_v10 = vpop.f32.mrf.mxu2 }
 0xc98   :  { %v3392_v25 = vmul.f32 %v5205_v3, %v3329_v10  ;;  %v3450_v9 = vunpack.c.l.b16 %v3403_v33  ;;  %v3449_v10 = vunpack.c.l.b16 %v3402_v45 }
 0xc9a   :  { %v3400_v12 = vpack.c.bf16 %v3392_v25, %v3392_v25  ;;  %v3452_v21 = vpack.c.b16 %v3449_v10, %v3448_v60 }
 0xc9b   :  { %v3386_v40 = vpop.f32.mrf.mxu0 }
 0xc9c   :  { %v3417_v52 = vunpack.c.l.b16 %v3400_v12  ;;  %v3396_v59 = vmul.f32 %v5205_v3, %v3386_v40 }
 0xc9e   :  { %v3419_v57 = vpack.c.b16 %v3417_v52, %v3416_v58  ;;  %v3404_v15 = vpack.c.bf16 %v3396_v59, %v3396_v59 }
 0xca0   :  { %v3451_v19 = vunpack.c.l.b16 %v3404_v15  ;;  %3431 = vmatpush.bf16.msrb.mxu3 %v3419_v57 }
 0xca2   :  { %v3453_v41 = vpack.c.b16 %v3451_v19, %v3450_v9 }
 0xca4   :  { %3432 = vmatpush.bf16.msrb.mxu3 %v3418_v39 }
 0xca8   :  { %3465 = vmatpush.bf16.msra.mxu3 %v3453_v41 }
 0xcac   :  { %3466 = vmatpush.bf16.msra.mxu3 %v3452_v21 }
 0xcbe   :  { %v297_v42 = vpop.xlane.xlu2 %296 }
 0xcbf   :  { %v333_v26 = vmul.f32 0.03125, %v297_v42 }
 0xcc1   :  { %v349_v53 = vadd.f32 1e-05, %v333_v26  ;;  %v7766_v26 = vld [vmem:[#allocation14_spill] sm:$0xff] }
 0xcc3   :  { %5076 = vrsqrt.f32 %v349_v53  ;;  %vm416_vm15 = vweird.f32 %v349_v53 }
 0xcc6   :  { %v318_v43 = vpop.xlane.xlu2 %317 }
 0xcc7   :  { %v340_v0 = vmul.f32 0.03125, %v318_v43 }
 0xcc9   :  { %v5077_v35 = vpop.eup %5076  ;;  %v356_v3 = vadd.f32 1e-05, %v340_v0 }
 0xcca   :  { %v411_v25 = vmul.f32 %v5077_v35, %v349_v53  ;;  %vm417_vm14 = vweird.f32 %v5077_v35 }
 0xccb   :  { %5078 = vrsqrt.f32 %v356_v3  ;;  %vm418_vm1 = vmor %vm416_vm15, %vm417_vm14  ;;  %vm486_vm5 = vweird.f32 %v356_v3 }
 0xccc   :  { %v412_v28 = vmul.f32 %v5077_v35, %v411_v25 }
 0xcce   :  { %v413_v55 = vmul.f32 0.5, %v412_v28  ;;  %v321_v58 = vpop.xlane.xlu2 %320 }
 0xccf   :  { %v341_v33 = vmul.f32 0.03125, %v321_v58 }
 0xcd0   :  { %v414_v12 = vsub.f32 1.5, %v413_v55 }
 0xcd1   :  { %v5079_v19 = vpop.eup %5078  ;;  %v357_v60 = vadd.f32 1e-05, %v341_v33 }
 0xcd2   :  { %v415_v40 = vmul.f32 %v5077_v35, %v414_v12  ;;  %v481_v31 = vmul.f32 %v5079_v19, %v356_v3  ;;  %vm487_vm8 = vweird.f32 %v5079_v19 }
 0xcd3   :  { %5080 = vrsqrt.f32 %v357_v60  ;;  %vm488_vm6 = vmor %vm486_vm5, %vm487_vm8  ;;  %vm496_vm3 = vweird.f32 %v357_v60 }
 0xcd4   :  { %v419_v62 = vsel %vm418_vm1, %v5077_v35, %v415_v40  ;;  %v482_v52 = vmul.f32 %v5079_v19, %v481_v31 }
 0xcd5   :  { %v525_v59 = vmul.f32 %v419_v62, %v6536_v1 }
 0xcd6   :  { %v483_v7 = vmul.f32 0.5, %v482_v52  ;;  %v2910_v45 = vpop.xlane.xlu2 %2909 }
 0xcd7   :  { %v542_v9 = vmul.f32 %v5473_v8, %v525_v59  ;;  %v2917_v57 = vmul.f32 0.0078125, %v2910_v45 }
 0xcd8   :  { %v484_v15 = vsub.f32 1.5, %v483_v7 }
 0xcd9   :  { %v5081_v39 = vpop.eup %5080  ;;  %v559_v10 = vadd.f32 %v5476_v13, %v542_v9  ;;  %v6597_v41 = vsub.f32 %v6554_v27, %v2917_v57  ;;  %v4865_v27 = vsel %vm3191_vm13, 1.0, %v7743_v2 }
 0xcda   :  { %v485_v21 = vmul.f32 %v5079_v19, %v484_v15  ;;  %v491_v42 = vmul.f32 %v5081_v39, %v357_v60  ;;  %vm497_vm7 = vweird.f32 %v5081_v39 }
 0xcdb   :  { %v3180_v53 = vsub.f32 %v559_v10, %v7766_v26  ;;  %v2925_v1 = vmul.f32 %v6597_v41, %v6597_v41  ;;  %vm498_vm4 = vmor %vm496_vm3, %vm497_vm7 }
 0xcdc   :  { %v489_v43 = vsel %vm488_vm6, %v5079_v19, %v485_v21  ;;  %v492_v0 = vmul.f32 %v5081_v39, %v491_v42 }
 0xcdd   :  { %v3184_v35 = vmul.f32 0.5, %v3180_v53  ;;  %v532_v25 = vmul.f32 %v489_v43, %v6541_v44  ;;  %2929 = vadd.xlane.f32.xlu2 %v2925_v1  ;;  %v3247_v44 = vpack.c.bf16 %v4865_v27, %v4865_v27 }
 0xcde   :  { %v493_v28 = vmul.f32 0.5, %v492_v0  ;;  %v2912_v55 = vpop.xlane.xlu2 %2911 }
 0xcdf   :  { %v549_v3 = vmul.f32 %v5473_v8, %v532_v25  ;;  %v2918_v58 = vmul.f32 0.0078125, %v2912_v55  ;;  %v3188_v33 = vadd.f32 %v3184_v35, %v7766_v26  ;;  %v3407_v57 = vunpack.c.l.b16 %v3247_v44 }
 0xce0   :  { %v494_v12 = vsub.f32 1.5, %v493_v28 }
 0xce1   :  { %v566_v19 = vadd.f32 %v5476_v13, %v549_v3  ;;  %v6610_v40 = vsub.f32 %v6558_v51, %v2918_v58  ;;  %vm3192_vm9 = vcmp.ge.f32.partialorder %v3188_v33, 0.5 }
 0xce2   :  { %v495_v31 = vmul.f32 %v5081_v39, %v494_v12  ;;  %v4866_v62 = vsel %vm3192_vm9, 1.0, %v7743_v2  ;;  %v6613_v38 = vsel %vm3192_vm9, 0.0, %v3188_v33 }
 0xce3   :  { %v3181_v52 = vsub.f32 %v566_v19, %v6210_v32  ;;  %v2926_v59 = vmul.f32 %v6610_v40, %v6610_v40  ;;  %v3248_v7 = vpack.c.bf16 %v4866_v62, %v4866_v62  ;;  %v7769_v62 = vld [vmem:[#allocation5_spill] sm:$0xff] }
 0xce4   :  { %v499_v45 = vsel %vm498_vm4, %v5081_v39, %v495_v31 }
 0xce5   :  { %v3185_v9 = vmul.f32 0.5, %v3181_v52  ;;  %v533_v51 = vmul.f32 %v499_v45, %v6547_v50  ;;  %2931 = vadd.xlane.f32.xlu2 %v2926_v59  ;;  %v3408_v15 = vunpack.c.l.b16 %v3248_v7  ;;  %v7768_v50 = vld [vmem:[#allocation15_spill] sm:$0xff]  ;;  %v6654_v52 = vadd.f32 %v6232_v54, %v5366_v18  ;;  %v601_v59 = vpop.permute.xlu1 %600 }
 0xce6   :  { %v2914_v10 = vpop.xlane.xlu2 %2913  ;;  %v655_v7 = vsel %vm110_vm0, %v601_v59, 0.0 }
 0xce7   :  { %v550_v60 = vmul.f32 %v5473_v8, %v533_v51  ;;  %v2919_v21 = vmul.f32 0.0078125, %v2914_v10  ;;  %v3409_v42 = vpack.c.b16 %v3408_v15, %v3407_v57  ;;  %v3189_v26 = vadd.f32 %v3185_v9, %v6210_v32 }
 0xce9   :  { %v567_v53 = vadd.f32 %v5476_v13, %v550_v60  ;;  %v6623_v1 = vsub.f32 %v6562_v63, %v2919_v21  ;;  %4881 = vmatmul.msk.bf16.vlgmr.msrb.gmra.mxu3 %vm110_vm0, %v3409_v42  ;;  %vm3193_vm10 = vcmp.ge.f32.partialorder %v3189_v26, 0.5 }
 0xcea   :  { %v6626_v39 = vsel %vm3193_vm10, 0.0, %v3189_v26  ;;  %v4867_v32 = vsel %vm3193_vm10, 1.0, %v7743_v2 }
 0xceb   :  { %7767 = vst [vmem:[#allocation11_spill] sm:$0xff] %v6626_v39  ;;  %v3182_v43 = vsub.f32 %v567_v53, %v7768_v50  ;;  %v2927_v0 = vmul.f32 %v6623_v1, %v6623_v1  ;;  %v3249_v27 = vpack.c.bf16 %v4867_v32, %v4867_v32 }
 0xced   :  { %v3186_v35 = vmul.f32 0.5, %v3182_v43  ;;  %2933 = vadd.xlane.f32.xlu2 %v2927_v0  ;;  %v3441_v19 = vunpack.c.l.b16 %v3249_v27 }
 0xcee   :  { %v2916_v25 = vpop.xlane.xlu2 %2915 }
 0xcef   :  { %v2920_v28 = vmul.f32 0.0078125, %v2916_v25  ;;  %v3190_v55 = vadd.f32 %v3186_v35, %v7768_v50 }
 0xcf1   :  { %v6634_v63 = vsub.f32 %v6566_v6, %v2920_v28  ;;  %vm3194_vm11 = vcmp.ge.f32.partialorder %v3190_v55, 0.5  ;;  %v6644_v6 = vadd.f32 %v7769_v62, %v5366_v18 }
 0xcf2   :  { %v4868_v3 = vsel %vm3194_vm11, 1.0, %v7743_v2  ;;  %v6637_v58 = vsel %vm3194_vm11, 0.0, %v3190_v55 }
 0xcf3   :  { %v2928_v33 = vmul.f32 %v6634_v63, %v6634_v63  ;;  %v3250_v12 = vpack.c.bf16 %v4868_v3, %v4868_v3 }
 0xcf5   :  { %2935 = vadd.xlane.f32.xlu0 %v2928_v33  ;;  %v3442_v44 = vunpack.c.l.b16 %v3250_v12 }
 0xcf7   :  { %v3443_v31 = vpack.c.b16 %v3442_v44, %v3441_v19 }
 0xcf9   :  { %4882 = vmatmul.msk.bf16.vlgmr.msra.gmra.mxu3 %vm110_vm0, %v3443_v31 }
 0xd05   :  { %598 = vrot.lane.b32.xlu2 %v6644_v6, %s5258_s19 }
 0xd09   :  { %1094 = vrot.lane.b32.xlu0 %v6644_v6, %s5257_s18 }
 0xd0d   :  { %1096 = vrot.lane.b32.xlu2 %v6519_v24, %s5257_s18 }
 0xd11   :  { %614 = vrot.lane.b32.xlu0 %v6654_v52, %s5258_s19 }
 0xd19   :  { %1110 = vrot.lane.b32.xlu0 %v6654_v52, %s5257_s18 }
 0xd36   :  { %656 = vadd.xlane.f32.xlu2 %v655_v7 }
 0xd50   :  { %v2930_v45 = vpop.xlane.xlu2 %2929 }
 0xd51   :  { %v2937_v9 = vmul.f32 0.0078125, %v2930_v45 }
 0xd53   :  { %v2941_v51 = vadd.f32 1e-05, %v2937_v9 }
 0xd55   :  { %5082 = vrsqrt.f32 %v2941_v51  ;;  %vm2951_vm14 = vweird.f32 %v2941_v51 }
 0xd58   :  { %v2932_v57 = vpop.xlane.xlu2 %2931 }
 0xd59   :  { %v2938_v15 = vmul.f32 0.0078125, %v2932_v57  ;;  %v7771_v57 = vld [vmem:[#allocation13_spill] sm:$0xff] }
 0xd5b   :  { %v5083_v10 = vpop.eup %5082  ;;  %v2942_v60 = vadd.f32 1e-05, %v2938_v15 }
 0xd5c   :  { %v2946_v18 = vmul.f32 %v5083_v10, %v2941_v51  ;;  %vm2952_vm13 = vweird.f32 %v5083_v10 }
 0xd5d   :  { %5084 = vrsqrt.f32 %v2942_v60  ;;  %vm2953_vm15 = vmor %vm2951_vm14, %vm2952_vm13  ;;  %vm2961_vm8 = vweird.f32 %v2942_v60 }
 0xd5e   :  { %v2947_v54 = vmul.f32 %v5083_v10, %v2946_v18 }
 0xd60   :  { %v2948_v21 = vmul.f32 0.5, %v2947_v54  ;;  %v2934_v42 = vpop.xlane.xlu2 %2933 }
 0xd61   :  { %v2939_v26 = vmul.f32 0.0078125, %v2934_v42 }
 0xd62   :  { %v2949_v53 = vsub.f32 1.5, %v2948_v21 }
 0xd63   :  { %v5085_v50 = vpop.eup %5084  ;;  %v2943_v43 = vadd.f32 1e-05, %v2939_v26 }
 0xd64   :  { %v2950_v0 = vmul.f32 %v5083_v10, %v2949_v53  ;;  %v2956_v35 = vmul.f32 %v5085_v50, %v2942_v60  ;;  %vm2962_vm1 = vweird.f32 %v5085_v50 }
 0xd65   :  { %5086 = vrsqrt.f32 %v2943_v43  ;;  %vm2963_vm5 = vmor %vm2961_vm8, %vm2962_vm1  ;;  %vm2971_vm3 = vweird.f32 %v2943_v43 }
 0xd66   :  { %v2954_v25 = vsel %vm2953_vm15, %v5083_v10, %v2950_v0  ;;  %v2957_v32 = vmul.f32 %v5085_v50, %v2956_v35 }
 0xd67   :  { %v2985_v28 = vmul.f32 %v2954_v25, %v6597_v41  ;;  %v7770_v41 = vld [vmem:[#allocation22_spill] sm:$0xff] }
 0xd68   :  { %v2958_v55 = vmul.f32 0.5, %v2957_v32  ;;  %v2936_v27 = vpop.xlane.xlu0 %2935  ;;  %v599_v3 = vpop.permute.xlu2 %598 }
 0xd69   :  { %v2989_v33 = vmul.f32 %v2985_v28, %v6022_v48  ;;  %v2940_v12 = vmul.f32 0.0078125, %v2936_v27  ;;  %v652_v19 = vsel %vm110_vm0, %v599_v3, 0.0  ;;  %v7772_v3 = vld [vmem:[#allocation24_spill] sm:$0xff] }
 0xd6a   :  { %v2959_v44 = vsub.f32 1.5, %v2958_v55  ;;  %653 = vadd.xlane.f32.xlu1 %v652_v19 }
 0xd6b   :  { %v5087_v31 = vpop.eup %5086  ;;  %v2944_v62 = vadd.f32 1e-05, %v2940_v12  ;;  %v2993_v59 = vadd.f32 %v2989_v33, %v6025_v17  ;;  %v7773_v12 = vld [vmem:[#allocation12_spill] sm:$0xff] }
 0xd6c   :  { %v2960_v7 = vmul.f32 %v5085_v50, %v2959_v44  ;;  %v2966_v45 = vmul.f32 %v5087_v31, %v2943_v43  ;;  %v3434_v9 = vpop.f32.mrf.mxu3  ;;  %vm2972_vm6 = vweird.f32 %v5087_v31 }
 0xd6d   :  { %5088 = vrsqrt.f32 %v2944_v62  ;;  %v3473_v51 = vsub.f32 %v3434_v9, %v7770_v41  ;;  %v2997_v15 = vsub.f32 %v2993_v59, %v7771_v57  ;;  %vm2973_vm4 = vmor %vm2971_vm3, %vm2972_vm6  ;;  %vm2981_vm10 = vweird.f32 %v2944_v62 }
 0xd6e   :  { %v2964_v10 = vsel %vm2963_vm5, %v5085_v50, %v2960_v7  ;;  %v2967_v18 = vmul.f32 %v5087_v31, %v2966_v45 }
 0xd6f   :  { %v2986_v54 = vmul.f32 %v2964_v10, %v6610_v40  ;;  %v3477_v21 = vmul.f32 0.5, %v3473_v51  ;;  %v3001_v42 = vmul.f32 0.5, %v2997_v15 }
 0xd70   :  { %v2968_v26 = vmul.f32 0.5, %v2967_v18  ;;  %v1097_v53 = vpop.permute.xlu2 %1096 }
 0xd71   :  { %v2990_v0 = vmul.f32 %v2986_v54, %v6022_v48  ;;  %v3481_v60 = vadd.f32 %v3477_v21, %v7770_v41  ;;  %v1151_v35 = vsel %vm110_vm0, %v1097_v53, 0.0  ;;  %v3005_v25 = vadd.f32 %v3001_v42, %v7771_v57 }
 0xd72   :  { %v2969_v32 = vsub.f32 1.5, %v2968_v26  ;;  %1152 = vadd.xlane.f32.xlu0 %v1151_v35 }
 0xd73   :  { %v5089_v28 = vpop.eup %5088  ;;  %vm3485_vm7 = vcmp.ge.f32.partialorder %v3481_v60, 0.25  ;;  %v2994_v50 = vadd.f32 %v2990_v0, %v6025_v17  ;;  %vm3009_vm9 = vcmp.ge.f32.partialorder %v3005_v25, 0.5 }
 0xd74   :  { %v2970_v40 = vmul.f32 %v5087_v31, %v2969_v32  ;;  %v2976_v55 = vmul.f32 %v5089_v28, %v2944_v62  ;;  %v3436_v27 = vpop.f32.mrf.mxu3  ;;  %v6676_v44 = vsel %vm3009_vm9, 0.0, %v3005_v25  ;;  %v6679_v59 = vsel %vm3485_vm7, 0.0, %v3481_v60  ;;  %v7775_v60 = vld [vmem:[#allocation23_spill] sm:$0xff] }
 0xd75   :  { %v3474_v33 = vsub.f32 %v3436_v27, %v7772_v3  ;;  %v2998_v19 = vsub.f32 %v2994_v50, %v7773_v12  ;;  %7774 = vst [vmem:[#allocation14_spill] sm:$0xff] %v6679_v59  ;;  %vm2982_vm11 = vweird.f32 %v5089_v28  ;;  %v4883_v54 = vsel %vm3485_vm7, 1.0, %v7743_v2  ;;  %v7777_v50 = vld [vmem:[#allocation17_spill] sm:$0xff] }
 0xd76   :  { %v2974_v7 = vsel %vm2973_vm4, %v5087_v31, %v2970_v40  ;;  %v2977_v45 = vmul.f32 %v5089_v28, %v2976_v55  ;;  %vm2983_vm1 = vmor %vm2981_vm10, %vm2982_vm11  ;;  %v7776_v32 = vmov 1.0|1.0  }
 0xd77   :  { %v2987_v9 = vmul.f32 %v2974_v7, %v6623_v1  ;;  %v3478_v41 = vmul.f32 0.5, %v3474_v33  ;;  %v3002_v51 = vmul.f32 0.5, %v2998_v19 }
 0xd78   :  { %v2978_v43 = vmul.f32 0.5, %v2977_v45 }
 0xd79   :  { %v3482_v57 = vadd.f32 %v3478_v41, %v7772_v3  ;;  %v3006_v15 = vadd.f32 %v3002_v51, %v7773_v12  ;;  %v2991_v10 = vmul.f32 %v2987_v9, %v6022_v48  ;;  %v7779_v41 = vld [vmem:[#allocation16_spill] sm:$0xff] }
 0xd7a   :  { %v2979_v18 = vsub.f32 1.5, %v2978_v43 }
 0xd7b   :  { %vm3486_vm13 = vcmp.ge.f32.partialorder %v3482_v57, 0.25  ;;  %v1095_v31 = vpop.permute.xlu0 %1094  ;;  %vm3010_vm14 = vcmp.ge.f32.partialorder %v3006_v15, 0.5  ;;  %v2995_v1 = vadd.f32 %v2991_v10, %v6025_v17 }
 0xd7c   :  { %v2980_v21 = vmul.f32 %v5089_v28, %v2979_v18  ;;  %v4884_v42 = vsel %vm3486_vm13, 1.0, %v7743_v2  ;;  %v1148_v26 = vsel %vm110_vm0, %v1095_v31, 0.0  ;;  %v3468_v53 = vpop.f32.mrf.mxu3  ;;  %v6691_v0 = vsel %vm3010_vm14, 0.0, %v3006_v15  ;;  %vm4857_vm15 = vmpackc.low %vm3010_vm14, %vm3009_vm9  ;;  %v7781_v15 = vld [vmem:[#allocation25_spill] sm:$0xff] }
 0xd7d   :  { %v3501_v62 = vpack.c.bf16 %v4884_v42, %v4883_v54  ;;  %v3475_v35 = vsub.f32 %v3468_v53, %v7775_v60  ;;  %1149 = vadd.xlane.f32.xlu2 %v1148_v26  ;;  %4858 = vmatmul.msk.bf16.vlgmr.msrb.gmra.mxu1 %vm4857_vm15, %v7776_v32  ;;  %v2999_v40 = vsub.f32 %v2995_v1, %v7777_v50  ;;  %v6698_v55 = vsel %vm3486_vm13, 0.0, %v3482_v57 }
 0xd7e   :  { %7778 = vst [vmem:[#allocation15_spill] sm:$0xff] %v6698_v55  ;;  %v2984_v27 = vsel %vm2983_vm1, %v5089_v28, %v2980_v21 }
 0xd7f   :  { %v2988_v3 = vmul.f32 %v2984_v27, %v6634_v63  ;;  %v3479_v33 = vmul.f32 0.5, %v3475_v35  ;;  %v3003_v12 = vmul.f32 0.5, %v2999_v40  ;;  %v2196_v63 = vsel %vm2192_vm2, 0.0, %v7779_v41 }
 0xd81   :  { %v3483_v25 = vadd.f32 %v3479_v33, %v7775_v60  ;;  %v2992_v19 = vmul.f32 %v2988_v3, %v6022_v48  ;;  %v3007_v7 = vadd.f32 %v3003_v12, %v7777_v50  ;;  %v617_v50 = vpop.permute.xlu1 %616 }
 0xd82   :  { %v679_v3 = vsel %vm110_vm0, %v617_v50, 0.0 }
 0xd83   :  { %vm3487_vm8 = vcmp.ge.f32.partialorder %v3483_v25, 0.25  ;;  %v615_v45 = vpop.permute.xlu0 %614  ;;  %1112 = vrot.lane.b32.xlu1 %v6525_v61, %s5257_s18  ;;  %v2996_v9 = vadd.f32 %v2992_v19, %v6025_v17  ;;  %vm3011_vm5 = vcmp.ge.f32.partialorder %v3007_v7, 0.5 }
 0xd84   :  { %v676_v28 = vsel %vm110_vm0, %v615_v45, 0.0  ;;  %v3470_v51 = vpop.f32.mrf.mxu3  ;;  %v6712_v43 = vsel %vm3011_vm5, 0.0, %v3007_v7  ;;  %v6715_v57 = vsel %vm3487_vm8, 0.0, %v3483_v25  ;;  %v4885_v26 = vsel %vm3487_vm8, 1.0, %v7743_v2 }
 0xd85   :  { %7780 = vst [vmem:[#allocation5_spill] sm:$0xff] %v6715_v57  ;;  %v3476_v10 = vsub.f32 %v3470_v51, %v7781_v15  ;;  %677 = vadd.xlane.f32.xlu2 %v676_v28  ;;  %v3000_v18 = vsub.f32 %v2996_v9, %v2196_v63 }
 0xd87   :  { %v3480_v54 = vmul.f32 0.5, %v3476_v10  ;;  %v3004_v31 = vmul.f32 0.5, %v3000_v18 }
 0xd89   :  { %v3484_v1 = vadd.f32 %v3480_v54, %v7781_v15  ;;  %v3008_v21 = vadd.f32 %v3004_v31, %v2196_v63 }
 0xd8b   :  { %vm3488_vm6 = vcmp.ge.f32.partialorder %v3484_v1, 0.25  ;;  %vm3012_vm2 = vcmp.ge.f32.partialorder %v3008_v21, 0.5  ;;  %v1111_v25 = vpop.permute.xlu0 %1110 }
 0xd8c   :  { %v6719_v42 = vsel %vm3012_vm2, 0.0, %v3008_v21  ;;  %vm4859_vm7 = vmpackc.low %vm3012_vm2, %vm3011_vm5  ;;  %v4886_v53 = vsel %vm3488_vm6, 1.0, %v7743_v2  ;;  %v6725_v60 = vsel %vm3488_vm6, 0.0, %v3484_v1  ;;  %v1172_v19 = vsel %vm110_vm0, %v1111_v25, 0.0 }
 0xd8d   :  { %7782 = vst [vmem:[#allocation22_spill] sm:$0xff] %v6725_v60  ;;  %4860 = vmatmul.msk.bf16.gmra.mxu1 %vm4859_vm7, %v7776_v32  ;;  %v3502_v35 = vpack.c.bf16 %v4886_v53, %v4885_v26 }
 0xd9d   :  { %4887 = vmatmul.msk.bf16.vlgmr.msra.gmra.mxu1 %vm110_vm0, %v3501_v62 }
 0xda9   :  { %v657_v40 = vpop.xlane.xlu2 %656 }
 0xdaa   :  { %v689_v27 = vmul.f32 0.03125, %v657_v40  ;;  %v7786_v40 = vld [vmem:[#allocation6_spill] sm:$0xff] }
 0xdac   :  { %v6731_v33 = vsub.f32 %v6519_v24, %v689_v27 }
 0xdad   :  { %4888 = vmatmul.msk.bf16.gmra.mxu1 %vm110_vm0, %v3502_v35  ;;  %680 = vadd.xlane.f32.xlu1 %v679_v3 }
 0xdae   :  { %v721_v12 = vmul.f32 %v6731_v33, %v6731_v33 }
 0xdb0   :  { %760 = vrot.lane.b32.xlu0 %v721_v12, %s5258_s19 }
 0xdb5   :  { %1173 = vadd.xlane.f32.xlu1 %v1172_v19 }
 0xddd   :  { %v654_v62 = vpop.xlane.xlu1 %653 }
 0xdde   :  { %v688_v7 = vmul.f32 0.03125, %v654_v62 }
 0xde0   :  { %v6739_v45 = vsub.f32 %v6644_v6, %v688_v7 }
 0xde2   :  { %v720_v9 = vmul.f32 %v6739_v45, %v6739_v45 }
 0xde4   :  { %758 = vrot.lane.b32.xlu2 %v720_v9, %s5258_s19 }
 0xde5   :  { %v1153_v28 = vpop.xlane.xlu0 %1152 }
 0xde6   :  { %v1185_v15 = vmul.f32 0.03125, %v1153_v28 }
 0xde8   :  { %v6751_v18 = vsub.f32 %v6519_v24, %v1185_v15 }
 0xdea   :  { %v1217_v31 = vmul.f32 %v6751_v18, %v6751_v18 }
 0xdf0   :  { %v1150_v41 = vpop.xlane.xlu2 %1149 }
 0xdf1   :  { %v1184_v63 = vmul.f32 0.03125, %v1150_v41 }
 0xdf3   :  { %v6745_v51 = vsub.f32 %v6644_v6, %v1184_v63 }
 0xdf5   :  { %v1216_v10 = vmul.f32 %v6745_v51, %v6745_v51  ;;  %v1113_v21 = vpop.permute.xlu1 %1112 }
 0xdf6   :  { %v1175_v53 = vsel %vm110_vm0, %v1113_v21, 0.0 }
 0xdf7   :  { %1254 = vrot.lane.b32.xlu1 %v1216_v10, %s5257_s18 }
 0xdf8   :  { %v678_v15 = vpop.xlane.xlu2 %677 }
 0xdfa   :  { %v6753_v54 = vpop.f32.mrf.mxu1 }
 0xdfb   :  { %7783 = vst [vmem:[#allocation13_spill] sm:$0xff] %v6753_v54 }
 0xdff   :  { %1256 = vrot.lane.b32.xlu1 %v1217_v31, %s5257_s18 }
 0xe02   :  { %v6758_v1 = vpop.f32.mrf.mxu1 }
 0xe03   :  { %7784 = vst [vmem:[#allocation24_spill] sm:$0xff] %v6758_v1 }
 0xe0a   :  { %v6760_v26 = vpop.f32.mrf.mxu1 }
 0xe0d   :  { %1176 = vadd.xlane.f32.xlu2 %v1175_v53  ;;  %v696_v53 = vmul.f32 0.03125, %v678_v15 }
 0xe12   :  { %v6763_v35 = vpop.f32.mrf.mxu1 }
 0xe13   :  { %7785 = vst [vmem:[#allocation12_spill] sm:$0xff] %v6763_v35 }
 0xe1a   :  { %v3518_v50 = vpop.f32.mrf.mxu1 }
 0xe1b   :  { %v3519_v27 = vadd.f32 %v3518_v50, %v7786_v40 }
 0xe1d   :  { %v3528_v3 = vsel %vm110_vm0, %v3519_v27, 0.0 }
 0xe1e   :  { %3529 = vadd.xlane.f32.xlu2 %v3528_v3  ;;  %v6775_v3 = vsub.f32 %v6654_v52, %v696_v53 }
 0xe20   :  { %v681_v10 = vpop.xlane.xlu1 %680 }
 0xe22   :  { %v3520_v12 = vpop.f32.mrf.mxu1 }
 0xe23   :  { %v3521_v25 = vadd.f32 %v3520_v12, %v7786_v40 }
 0xe25   :  { %v3531_v19 = vsel %vm110_vm0, %v3521_v25, 0.0 }
 0xe26   :  { %3532 = vadd.xlane.f32.xlu0 %v3531_v19  ;;  %v728_v19 = vmul.f32 %v6775_v3, %v6775_v3 }
 0xe28   :  { %v1174_v50 = vpop.xlane.xlu1 %1173 }
 0xe29   :  { %v1192_v12 = vmul.f32 0.03125, %v1174_v50 }
 0xe2a   :  { %v3523_v62 = vpop.f32.mrf.mxu1 }
 0xe2b   :  { %v3524_v7 = vadd.f32 %v3523_v62, %v7786_v40  ;;  %v6780_v62 = vsub.f32 %v6654_v52, %v1192_v12 }
 0xe2d   :  { %v3534_v9 = vsel %vm110_vm0, %v3524_v7, 0.0 }
 0xe2e   :  { %3535 = vadd.xlane.f32.xlu2 %v3534_v9  ;;  %v1224_v9 = vmul.f32 %v6780_v62, %v6780_v62 }
 0xe32   :  { %v3525_v41 = vpop.f32.mrf.mxu1 }
 0xe33   :  { %v3526_v63 = vadd.f32 %v3525_v41, %v7786_v40 }
 0xe35   :  { %v3537_v28 = vsel %vm110_vm0, %v3526_v63, 0.0 }
 0xe36   :  { %3538 = vadd.xlane.f32.xlu2 %v3537_v28  ;;  %v761_v28 = vpop.permute.xlu0 %760 }
 0xe3e   :  { %v759_v31 = vpop.permute.xlu2 %758 }
 0xe3f   :  { %v812_v21 = vsel %vm110_vm0, %v759_v31, 0.0 }
 0xe40   :  { %813 = vadd.xlane.f32.xlu0 %v812_v21 }
 0xe4e   :  { %774 = vrot.lane.b32.xlu2 %v728_v19, %s5258_s19 }
 0xe54   :  { %1270 = vrot.lane.b32.xlu0 %v1224_v9, %s5257_s18 }
 0xe80   :  { %v1177_v41 = vpop.xlane.xlu2 %1176 }
 0xe91   :  { %v3530_v15 = vpop.xlane.xlu2 %3529 }
 0xe92   :  { %v3540_v31 = vmul.f32 0.03125, %v3530_v15 }
 0xe94   :  { %v6786_v21 = vsub.f32 %v3519_v27, %v3540_v31 }
 0xe96   :  { %v3548_v53 = vmul.f32 %v6786_v21, %v6786_v21 }
 0xe98   :  { %v3552_v50 = vsel %vm110_vm0, %v3548_v53, 0.0 }
 0xe99   :  { %v3533_v12 = vpop.xlane.xlu0 %3532  ;;  %3553 = vadd.xlane.f32.xlu2 %v3552_v50 }
 0xe9a   :  { %v3541_v4 = vmul.f32 0.03125, %v3533_v12 }
 0xe9c   :  { %v6791_v19 = vsub.f32 %v3521_v25, %v3541_v4  ;;  %v1255_v4 = vpop.permute.xlu1 %1254 }
 0xe9e   :  { %v3549_v56 = vmul.f32 %v6791_v19, %v6791_v19 }
 0xea0   :  { %v3555_v9 = vsel %vm110_vm0, %v3549_v56, 0.0  ;;  %v1193_v56 = vmul.f32 0.03125, %v1177_v41 }
 0xea1   :  { %3556 = vadd.xlane.f32.xlu2 %v3555_v9  ;;  %v3536_v35 = vpop.xlane.xlu2 %3535 }
 0xea2   :  { %v3542_v15 = vmul.f32 0.03125, %v3536_v35  ;;  %v6807_v35 = vsub.f32 %v6525_v61, %v1193_v56 }
 0xea4   :  { %v6796_v27 = vsub.f32 %v3524_v7, %v3542_v15  ;;  %v1257_v54 = vpop.permute.xlu1 %1256 }
 0xea6   :  { %v3550_v31 = vmul.f32 %v6796_v27, %v6796_v27 }
 0xea8   :  { %v3558_v53 = vsel %vm110_vm0, %v3550_v31, 0.0 }
 0xea9   :  { %3559 = vadd.xlane.f32.xlu1 %v3558_v53  ;;  %v3539_v50 = vpop.xlane.xlu2 %3538  ;;  %v1225_v53 = vmul.f32 %v6807_v35, %v6807_v35 }
 0xeaa   :  { %v3543_v12 = vmul.f32 0.03125, %v3539_v50  ;;  %v697_v50 = vmul.f32 0.03125, %v681_v10 }
 0xeac   :  { %v6801_v25 = vsub.f32 %v3526_v63, %v3543_v12  ;;  %v1311_v63 = vsel %vm110_vm0, %v1257_v54, 0.0 }
 0xeae   :  { %v3551_v1 = vmul.f32 %v6801_v25, %v6801_v25 }
 0xeb0   :  { %v3561_v9 = vsel %vm110_vm0, %v3551_v1, 0.0  ;;  %v6814_v1 = vsub.f32 %v6525_v61, %v697_v50 }
 0xeb1   :  { %3562 = vadd.xlane.f32.xlu0 %v3561_v9 }
 0xeb2   :  { %v729_v56 = vmul.f32 %v6814_v1, %v6814_v1 }
 0xeb3   :  { %v814_v7 = vpop.xlane.xlu0 %813 }
 0xeb4   :  { %v848_v15 = vmul.f32 0.03125, %v814_v7 }
 0xeb6   :  { %v864_v31 = vadd.f32 1e-05, %v848_v15 }
 0xeb8   :  { %5090 = vrsqrt.f32 %v864_v31  ;;  %vm940_vm3 = vweird.f32 %v864_v31 }
 0xeb9   :  { %1272 = vrot.lane.b32.xlu2 %v1225_v53, %s5257_s18  ;;  %1312 = vadd.xlane.f32.xlu0 %v1311_v63 }
 0xebe   :  { %v5091_v41 = vpop.eup %5090 }
 0xebf   :  { %v935_v12 = vmul.f32 %v5091_v41, %v864_v31  ;;  %vm941_vm9 = vweird.f32 %v5091_v41  ;;  %v775_v31 = vpop.permute.xlu2 %774 }
 0xec0   :  { %vm942_vm4 = vmor %vm940_vm3, %vm941_vm9 }
 0xec1   :  { %v936_v9 = vmul.f32 %v5091_v41, %v935_v12 }
 0xec2   :  { %776 = vrot.lane.b32.xlu1 %v729_v56, %s5258_s19  ;;  %v1308_v56 = vsel %vm110_vm0, %v1255_v4, 0.0 }
 0xec3   :  { %v937_v7 = vmul.f32 0.5, %v936_v9  ;;  %v815_v9 = vsel %vm110_vm0, %v761_v28, 0.0 }
 0xec5   :  { %v938_v15 = vsub.f32 1.5, %v937_v7 }
 0xec6   :  { %v6829_v4 = vpop.permute.xlu0 %1270 }
 0xec7   :  { %v939_v10 = vmul.f32 %v5091_v41, %v938_v15 }
 0xec9   :  { %v943_v54 = vsel %vm942_vm4, %v5091_v41, %v939_v10  ;;  %v836_v41 = vsel %vm110_vm0, %v775_v31, 0.0 }
 0xeca   :  { %v1040_v53 = vmul.f32 %v943_v54, %v6739_v45 }
 0xecc   :  { %v1056_v50 = vmul.f32 %v1040_v53, %v5473_v8 }
 0xece   :  { %v1072_v63 = vadd.f32 %v1056_v50, %v5476_v13 }
 0xed0   :  { %v3969_v40 = vsub.f32 %v1072_v63, %v6346_v16 }
 0xed2   :  { %v3973_v60 = vmul.f32 0.5, %v3969_v40 }
 0xed4   :  { %v6824_v12 = vadd.f32 %v3973_v60, %v6346_v16 }
 0xee2   :  { %1309 = vadd.xlane.f32.xlu2 %v1308_v56 }
 0xeec   :  { %816 = vadd.xlane.f32.xlu1 %v815_v9 }
 0xef4   :  { %837 = vadd.xlane.f32.xlu1 %v836_v41 }
 0xf0c   :  { %v3554_v45 = vpop.xlane.xlu2 %3553 }
 0xf0d   :  { %v3564_v7 = vmul.f32 0.03125, %v3554_v45 }
 0xf0f   :  { %v3568_v15 = vadd.f32 1e-05, %v3564_v7 }
 0xf11   :  { %5092 = vrsqrt.f32 %v3568_v15  ;;  %vm3578_vm11 = vweird.f32 %v3568_v15 }
 0xf14   :  { %v3557_v10 = vpop.xlane.xlu2 %3556 }
 0xf15   :  { %v3565_v54 = vmul.f32 0.03125, %v3557_v10 }
 0xf17   :  { %v5093_v40 = vpop.eup %5092  ;;  %v3569_v53 = vadd.f32 1e-05, %v3565_v54 }
 0xf18   :  { %v3573_v16 = vmul.f32 %v5093_v40, %v3568_v15  ;;  %vm3579_vm10 = vweird.f32 %v5093_v40 }
 0xf19   :  { %5094 = vrsqrt.f32 %v3569_v53  ;;  %vm3580_vm13 = vmor %vm3578_vm11, %vm3579_vm10  ;;  %vm3588_vm15 = vweird.f32 %v3569_v53 }
 0xf1a   :  { %v3574_v60 = vmul.f32 %v5093_v40, %v3573_v16 }
 0xf1c   :  { %v3575_v50 = vmul.f32 0.5, %v3574_v60  ;;  %v3560_v28 = vpop.xlane.xlu1 %3559  ;;  %v1273_v63 = vpop.permute.xlu2 %1272 }
 0xf1d   :  { %v3566_v56 = vmul.f32 0.03125, %v3560_v28  ;;  %v1335_v9 = vsel %vm110_vm0, %v1273_v63, 0.0 }
 0xf1e   :  { %v3576_v31 = vsub.f32 1.5, %v3575_v50  ;;  %1336 = vadd.xlane.f32.xlu2 %v1335_v9 }
 0xf1f   :  { %v5095_v41 = vpop.eup %5094  ;;  %v3570_v45 = vadd.f32 1e-05, %v3566_v56 }
 0xf20   :  { %v3577_v7 = vmul.f32 %v5093_v40, %v3576_v31  ;;  %v3583_v10 = vmul.f32 %v5095_v41, %v3569_v53  ;;  %vm3589_vm14 = vweird.f32 %v5095_v41 }
 0xf21   :  { %5096 = vrsqrt.f32 %v3570_v45  ;;  %vm3590_vm1 = vmor %vm3588_vm15, %vm3589_vm14  ;;  %vm3598_vm6 = vweird.f32 %v3570_v45 }
 0xf22   :  { %v3581_v54 = vsel %vm3580_vm13, %v5093_v40, %v3577_v7  ;;  %v3584_v16 = vmul.f32 %v5095_v41, %v3583_v10 }
 0xf23   :  { %v3612_v57 = vmul.f32 %v3581_v54, %v6786_v21 }
 0xf24   :  { %v3585_v60 = vmul.f32 0.5, %v3584_v16  ;;  %v3563_v55 = vpop.xlane.xlu0 %3562 }
 0xf25   :  { %v3616_v28 = vmul.f32 %v3612_v57, %v5808_v37  ;;  %v3567_v59 = vmul.f32 0.03125, %v3563_v55 }
 0xf26   :  { %v3586_v63 = vsub.f32 1.5, %v3585_v60 }
 0xf27   :  { %v5097_v50 = vpop.eup %5096  ;;  %v3620_v9 = vadd.f32 %v3616_v28, %v5811_v49  ;;  %v3571_v56 = vadd.f32 1e-05, %v3567_v59 }
 0xf28   :  { %v3587_v31 = vmul.f32 %v5095_v41, %v3586_v63  ;;  %v3593_v15 = vmul.f32 %v5097_v50, %v3570_v45  ;;  %vm3599_vm8 = vweird.f32 %v5097_v50 }
 0xf29   :  { %v3624_v39 = vsub.f32 %v3620_v9, %v6447_v36  ;;  %5098 = vrsqrt.f32 %v3571_v56  ;;  %vm3600_vm2 = vmor %vm3598_vm6, %vm3599_vm8  ;;  %vm3608_vm3 = vweird.f32 %v3571_v56 }
 0xf2a   :  { %v3591_v40 = vsel %vm3590_vm1, %v5095_v41, %v3587_v31  ;;  %v3594_v21 = vmul.f32 %v5097_v50, %v3593_v15 }
 0xf2b   :  { %v3628_v7 = vmul.f32 0.5, %v3624_v39  ;;  %v3613_v10 = vmul.f32 %v3591_v40, %v6791_v19 }
 0xf2c   :  { %v3595_v57 = vmul.f32 0.5, %v3594_v21  ;;  %v1313_v60 = vpop.xlane.xlu0 %1312 }
 0xf2d   :  { %v3632_v55 = vadd.f32 %v3628_v7, %v6447_v36  ;;  %v3617_v54 = vmul.f32 %v3613_v10, %v5808_v37  ;;  %v1345_v9 = vmul.f32 0.03125, %v1313_v60 }
 0xf2e   :  { %v3596_v16 = vsub.f32 1.5, %v3595_v57 }
 0xf2f   :  { %v5099_v59 = vpop.eup %5098  ;;  %v3621_v53 = vadd.f32 %v3617_v54, %v5811_v49  ;;  %vm3636_vm5 = vcmp.ge.f32.partialorder %v3632_v55, 0.5  ;;  %v1361_v54 = vadd.f32 1e-05, %v1345_v9 }
 0xf30   :  { %v3597_v28 = vmul.f32 %v5097_v50, %v3596_v16  ;;  %v3603_v63 = vmul.f32 %v5099_v59, %v3571_v56  ;;  %v6842_v36 = vsel %vm3636_vm5, 0.0, %v3632_v55  ;;  %vm3609_vm7 = vweird.f32 %v5099_v59 }
 0xf31   :  { %v3625_v41 = vsub.f32 %v3621_v53, %v6457_v46  ;;  %vm3610_vm4 = vmor %vm3608_vm3, %vm3609_vm7  ;;  %5100 = vrsqrt.f32 %v1361_v54  ;;  %vm1446_vm14 = vweird.f32 %v1361_v54 }
 0xf32   :  { %v3601_v39 = vsel %vm3600_vm2, %v5097_v50, %v3597_v28  ;;  %v3604_v19 = vmul.f32 %v5099_v59, %v3603_v63  ;;  %v4889_v50 = vsel %vm3636_vm5, 1.0, %v7743_v2  ;;  %v5207_v28 = vld [vmem:[%s7692_s0 + $0x28] sm:$0xff] }
 0xf33   :  { %v3629_v31 = vmul.f32 0.5, %v3625_v41  ;;  %v3614_v15 = vmul.f32 %v3601_v39, %v6796_v27 }
 0xf34   :  { %v3605_v40 = vmul.f32 0.5, %v3604_v19  ;;  %v777_v21 = vpop.permute.xlu1 %776 }
 0xf35   :  { %v3633_v7 = vadd.f32 %v3629_v31, %v6457_v46  ;;  %v3618_v10 = vmul.f32 %v3614_v15, %v5808_v37  ;;  %v839_v45 = vsel %vm110_vm0, %v777_v21, 0.0  ;;  %v5206_v46 = vld [vmem:[%s7692_s0 + $0x20] sm:$0xff]  ;;  %v1332_v31 = vsel %vm110_vm0, %v6829_v4, 0.0 }
 0xf36   :  { %v3606_v57 = vsub.f32 1.5, %v3605_v40  ;;  %840 = vadd.xlane.f32.xlu1 %v839_v45  ;;  %v6855_v60 = vadd.f32 %v5206_v46, %v4889_v50  ;;  %v5209_v46 = vld [vmem:[%s7692_s0 + $0x68] sm:$0xff] }
 0xf37   :  { %v3622_v16 = vadd.f32 %v3618_v10, %v5811_v49  ;;  %vm3637_vm9 = vcmp.ge.f32.partialorder %v3633_v7, 0.5 }
 0xf38   :  { %v3607_v53 = vmul.f32 %v5099_v59, %v3606_v57  ;;  %v4890_v27 = vsel %vm3637_vm9, 1.0, %v7743_v2  ;;  %v6863_v41 = vsel %vm3637_vm9, 0.0, %v3633_v7 }
 0xf39   :  { %v6860_v55 = vadd.f32 %v5207_v28, %v4890_v27  ;;  %v3626_v63 = vsub.f32 %v3622_v16, %v6485_v34 }
 0xf3a   :  { %v3611_v56 = vsel %vm3610_vm4, %v5099_v59, %v3607_v53  ;;  %v5101_v59 = vpop.eup %5100  ;;  %v5208_v53 = vld [vmem:[%s7692_s0 + $0x60] sm:$0xff]  ;;  %vm3981_vm4 = vcmp.ge.f32.partialorder %v6824_v12, 0.5 }
 0xf3b   :  { %v3615_v39 = vmul.f32 %v3611_v56, %v6801_v25  ;;  %v3656_v19 = vpack.c.bf16 %v6860_v55, %v6855_v60  ;;  %v3630_v9 = vmul.f32 0.5, %v3626_v63  ;;  %v1441_v10 = vmul.f32 %v5101_v59, %v1361_v54 }
 0xf3c   :  { %vm1447_vm13 = vweird.f32 %v5101_v59 }
 0xf3d   :  { %v3619_v15 = vmul.f32 %v3615_v39, %v5808_v37  ;;  %4893 = vmatmul.msk.bf16.vlgmr.msrb.gmra.mxu2 %vm110_vm0, %v3656_v19  ;;  %v3634_v40 = vadd.f32 %v3630_v9, %v6485_v34  ;;  %v1442_v50 = vmul.f32 %v5101_v59, %v1441_v10  ;;  %vm1448_vm15 = vmor %vm1446_vm14, %vm1447_vm13 }
 0xf3e   :  { %1333 = vadd.xlane.f32.xlu1 %v1332_v31 }
 0xf3f   :  { %v3623_v21 = vadd.f32 %v3619_v15, %v5811_v49  ;;  %vm3638_vm10 = vcmp.ge.f32.partialorder %v3634_v40, 0.5 }
 0xf40   :  { %v6874_v7 = vsel %vm3638_vm10, 0.0, %v3634_v40  ;;  %v4891_v4 = vsel %vm3638_vm10, 1.0, %v7743_v2 }
 0xf41   :  { %v3627_v25 = vsub.f32 %v3623_v21, %v6498_v47  ;;  %v6885_v27 = vadd.f32 %v5208_v53, %v4891_v4 }
 0xf43   :  { %v3631_v45 = vmul.f32 0.5, %v3627_v25 }
 0xf45   :  { %v3635_v57 = vadd.f32 %v3631_v45, %v6498_v47  ;;  %v1443_v47 = vmul.f32 0.5, %v1442_v50 }
 0xf47   :  { %vm3639_vm11 = vcmp.ge.f32.partialorder %v3635_v57, 0.5  ;;  %v1444_v56 = vsub.f32 1.5, %v1443_v47 }
 0xf48   :  { %v6879_v16 = vsel %vm3639_vm11, 0.0, %v3635_v57  ;;  %v4892_v34 = vsel %vm3639_vm11, 1.0, %v7743_v2 }
 0xf49   :  { %v6890_v28 = vadd.f32 %v5209_v46, %v4892_v34  ;;  %v1445_v39 = vmul.f32 %v5101_v59, %v1444_v56 }
 0xf4b   :  { %v3657_v63 = vpack.c.bf16 %v6890_v28, %v6885_v27  ;;  %v1449_v31 = vsel %vm1448_vm15, %v5101_v59, %v1445_v39 }
 0xf4c   :  { %v1537_v40 = vmul.f32 %v1449_v31, %v6751_v18 }
 0xf4d   :  { %4894 = vmatmul.msk.bf16.gmra.mxu2 %vm110_vm0, %v3657_v63 }
 0xf4e   :  { %v1553_v21 = vmul.f32 %v1537_v40, %v5473_v8 }
 0xf50   :  { %v1569_v4 = vadd.f32 %v1553_v21, %v5476_v13 }
 0xf52   :  { %v3986_v53 = vsub.f32 %v1569_v4, %v6359_v14 }
 0xf54   :  { %v3990_v47 = vmul.f32 0.5, %v3986_v53 }
 0xf55   :  { %v1310_v19 = vpop.xlane.xlu2 %1309 }
 0xf56   :  { %v1344_v9 = vmul.f32 0.03125, %v1310_v19  ;;  %v3994_v31 = vadd.f32 %v3990_v47, %v6359_v14 }
 0xf58   :  { %v1360_v15 = vadd.f32 1e-05, %v1344_v9  ;;  %vm3998_vm2 = vcmp.ge.f32.partialorder %v3994_v31, 0.5 }
 0xf5a   :  { %5102 = vrsqrt.f32 %v1360_v15  ;;  %vm1436_vm8 = vweird.f32 %v1360_v15 }
 0xf5f   :  { %v817_v25 = vpop.xlane.xlu1 %816 }
 0xf60   :  { %v5103_v10 = vpop.eup %5102  ;;  %v849_v45 = vmul.f32 0.03125, %v817_v25 }
 0xf61   :  { %v1431_v57 = vmul.f32 %v5103_v10, %v1360_v15  ;;  %vm1437_vm1 = vweird.f32 %v5103_v10 }
 0xf62   :  { %v865_v50 = vadd.f32 1e-05, %v849_v45  ;;  %vm1438_vm5 = vmor %vm1436_vm8, %vm1437_vm1 }
 0xf63   :  { %v1432_v34 = vmul.f32 %v5103_v10, %v1431_v57 }
 0xf64   :  { %5104 = vrsqrt.f32 %v865_v50  ;;  %vm950_vm7 = vweird.f32 %v865_v50 }
 0xf65   :  { %v1433_v54 = vmul.f32 0.5, %v1432_v34 }
 0xf67   :  { %v1434_v46 = vsub.f32 1.5, %v1433_v54 }
 0xf69   :  { %v1435_v59 = vmul.f32 %v5103_v10, %v1434_v46 }
 0xf6a   :  { %v5105_v18 = vpop.eup %5104 }
 0xf6b   :  { %v1439_v63 = vsel %vm1438_vm5, %v5103_v10, %v1435_v59  ;;  %v945_v56 = vmul.f32 %v5105_v18, %v865_v50  ;;  %vm951_vm6 = vweird.f32 %v5105_v18 }
 0xf6c   :  { %v1536_v39 = vmul.f32 %v1439_v63, %v6745_v51  ;;  %vm952_vm9 = vmor %vm950_vm7, %vm951_vm6  ;;  %v4916_v51 = vsel %vm3998_vm2, 1.0, %v7743_v2  ;;  %v7787_v63 = vld [vmem:[#allocation26_spill] sm:$0xff] }
 0xf6d   :  { %v946_v19 = vmul.f32 %v5105_v18, %v945_v56  ;;  %v4034_v54 = vpack.c.bf16 %v4916_v51, %v4916_v51 }
 0xf6e   :  { %v1552_v9 = vmul.f32 %v1536_v39, %v5473_v8 }
 0xf6f   :  { %v947_v40 = vmul.f32 0.5, %v946_v19  ;;  %v4064_v50 = vunpack.c.l.b16 %v4034_v54 }
 0xf70   :  { %v1568_v21 = vadd.f32 %v1552_v9, %v5476_v13  ;;  %v838_v9 = vpop.xlane.xlu1 %837 }
 0xf71   :  { %v948_v25 = vsub.f32 1.5, %v947_v40 }
 0xf72   :  { %v3985_v45 = vsub.f32 %v1568_v21, %v6383_v30  ;;  %v856_v21 = vmul.f32 0.03125, %v838_v9 }
 0xf73   :  { %v949_v15 = vmul.f32 %v5105_v18, %v948_v25 }
 0xf74   :  { %v3989_v10 = vmul.f32 0.5, %v3985_v45 }
 0xf75   :  { %v953_v57 = vsel %vm952_vm9, %v5105_v18, %v949_v15 }
 0xf76   :  { %v1041_v4 = vmul.f32 %v953_v57, %v6731_v33  ;;  %v3993_v34 = vadd.f32 %v3989_v10, %v6383_v30  ;;  %v4911_v33 = vsel %vm3981_vm4, 1.0, %v7743_v2  ;;  %v872_v10 = vadd.f32 1e-05, %v856_v21 }
 0xf77   :  { %v4021_v19 = vpack.c.bf16 %v4911_v33, %v4911_v33 }
 0xf78   :  { %v1057_v14 = vmul.f32 %v1041_v4, %v5473_v8  ;;  %vm3997_vm3 = vcmp.ge.f32.partialorder %v3993_v34, 0.5  ;;  %5106 = vrsqrt.f32 %v872_v10  ;;  %vm1020_vm13 = vweird.f32 %v872_v10 }
 0xf79   :  { %v4915_v53 = vsel %vm3997_vm3, 1.0, %v7743_v2  ;;  %v4039_v25 = vunpack.c.l.b16 %v4021_v19 }
 0xf7a   :  { %v1073_v46 = vadd.f32 %v1057_v14, %v5476_v13  ;;  %v4033_v59 = vpack.c.bf16 %v4915_v53, %v4915_v53 }
 0xf7c   :  { %v4063_v47 = vunpack.c.l.b16 %v4033_v59  ;;  %v3970_v56 = vsub.f32 %v1073_v46, %v7787_v63 }
 0xf7e   :  { %v4065_v18 = vpack.c.b16 %v4064_v50, %v4063_v47  ;;  %v3974_v39 = vmul.f32 0.5, %v3970_v56  ;;  %v5107_v51 = vpop.eup %5106 }
 0xf7f   :  { %v1015_v34 = vmul.f32 %v5107_v51, %v872_v10  ;;  %vm1021_vm11 = vweird.f32 %v5107_v51 }
 0xf80   :  { %4066 = vrot.lane.b32.xlu0 %v4065_v18, %s5257_s18  ;;  %v3978_v30 = vadd.f32 %v3974_v39, %v7787_v63  ;;  %vm1022_vm14 = vmor %vm1020_vm13, %vm1021_vm11 }
 0xf81   :  { %v1016_v14 = vmul.f32 %v5107_v51, %v1015_v34 }
 0xf82   :  { %vm3982_vm10 = vcmp.ge.f32.partialorder %v3978_v30, 0.5 }
 0xf83   :  { %v4912_v31 = vsel %vm3982_vm10, 1.0, %v7743_v2  ;;  %v1017_v53 = vmul.f32 0.5, %v1016_v14 }
 0xf84   :  { %v4022_v40 = vpack.c.bf16 %v4912_v31, %v4912_v31 }
 0xf85   :  { %v1018_v59 = vsub.f32 1.5, %v1017_v53 }
 0xf86   :  { %v4040_v45 = vunpack.c.l.b16 %v4022_v40 }
 0xf87   :  { %v1019_v50 = vmul.f32 %v5107_v51, %v1018_v59 }
 0xf88   :  { %v4041_v15 = vpack.c.b16 %v4040_v45, %v4039_v25 }
 0xf89   :  { %v1023_v39 = vsel %vm1022_vm14, %v5107_v51, %v1019_v50 }
 0xf8a   :  { %4042 = vrot.lane.b32.xlu1 %v4041_v15, %s5258_s19  ;;  %v1048_v19 = vmul.f32 %v1023_v39, %v6775_v3 }
 0xf8c   :  { %v1064_v40 = vmul.f32 %v1048_v19, %v5473_v8 }
 0xf91   :  { %v1337_v12 = vpop.xlane.xlu2 %1336 }
 0xf92   :  { %v1353_v57 = vmul.f32 0.03125, %v1337_v12  ;;  %v1080_v12 = vadd.f32 %v1064_v40, %v5476_v13 }
 0xf94   :  { %v1369_v4 = vadd.f32 1e-05, %v1353_v57 }
 0xf96   :  { %5108 = vrsqrt.f32 %v1369_v4  ;;  %vm1526_vm1 = vweird.f32 %v1369_v4 }
 0xf9c   :  { %v5109_v54 = vpop.eup %5108 }
 0xf9d   :  { %v1521_v46 = vmul.f32 %v5109_v54, %v1369_v4  ;;  %vm1527_vm15 = vweird.f32 %v5109_v54  ;;  %v3971_v4 = vsub.f32 %v1080_v12, %v6364_v11 }
 0xf9e   :  { %vm1528_vm8 = vmor %vm1526_vm1, %vm1527_vm15 }
 0xf9f   :  { %v1522_v47 = vmul.f32 %v5109_v54, %v1521_v46 }
 0xfa1   :  { %v1523_v63 = vmul.f32 0.5, %v1522_v47  ;;  %v3975_v47 = vmul.f32 0.5, %v3971_v4 }
 0xfa3   :  { %v1524_v33 = vsub.f32 1.5, %v1523_v63  ;;  %v3979_v39 = vadd.f32 %v3975_v47, %v6364_v11 }
 0xfa5   :  { %v1525_v9 = vmul.f32 %v5109_v54, %v1524_v33  ;;  %vm3983_vm4 = vcmp.ge.f32.partialorder %v3979_v39, 0.5  ;;  %v5211_v39 = vld [vmem:[%s7696_s4] sm:$0xff] }
 0xfa7   :  { %v1529_v25 = vsel %vm1528_vm8, %v5109_v54, %v1525_v9 }
 0xfa8   :  { %v1545_v57 = vmul.f32 %v1529_v25, %v6807_v35 }
 0xfa9   :  { %v841_v56 = vpop.xlane.xlu1 %840 }
 0xfaa   :  { %v857_v18 = vmul.f32 0.03125, %v841_v56  ;;  %v1561_v34 = vmul.f32 %v1545_v57, %v5473_v8 }
 0xfac   :  { %v873_v30 = vadd.f32 1e-05, %v857_v18  ;;  %v1577_v59 = vadd.f32 %v1561_v34, %v5476_v13 }
 0xfae   :  { %5110 = vrsqrt.f32 %v873_v30  ;;  %vm1030_vm6 = vweird.f32 %v873_v30  ;;  %v3988_v33 = vsub.f32 %v1577_v59, %v6421_v5 }
 0xfb0   :  { %v3992_v40 = vmul.f32 0.5, %v3988_v33 }
 0xfb1   :  { %v1334_v31 = vpop.xlane.xlu1 %1333 }
 0xfb2   :  { %v1352_v21 = vmul.f32 0.03125, %v1334_v31  ;;  %v3996_v12 = vadd.f32 %v3992_v40, %v6421_v5 }
 0xfb4   :  { %v5111_v45 = vpop.eup %5110  ;;  %v1368_v15 = vadd.f32 1e-05, %v1352_v21  ;;  %vm4000_vm11 = vcmp.ge.f32.partialorder %v3996_v12, 0.5  ;;  %v5212_v12 = vld [vmem:[%s7700_s8 + $0x38] sm:$0xff] }
 0xfb5   :  { %v1025_v10 = vmul.f32 %v5111_v45, %v873_v30  ;;  %vm1031_vm5 = vweird.f32 %v5111_v45 }
 0xfb6   :  { %5112 = vrsqrt.f32 %v1368_v15  ;;  %vm1032_vm2 = vmor %vm1030_vm6, %vm1031_vm5  ;;  %vm1516_vm9 = vweird.f32 %v1368_v15 }
 0xfb7   :  { %v1026_v51 = vmul.f32 %v5111_v45, %v1025_v10 }
 0xfb9   :  { %v1027_v3 = vmul.f32 0.5, %v1026_v51 }
 0xfbb   :  { %v1028_v14 = vsub.f32 1.5, %v1027_v3 }
 0xfbc   :  { %v5113_v53 = vpop.eup %5112 }
 0xfbd   :  { %v1029_v46 = vmul.f32 %v5111_v45, %v1028_v14  ;;  %v1511_v54 = vmul.f32 %v5113_v53, %v1368_v15  ;;  %vm1517_vm7 = vweird.f32 %v5113_v53 }
 0xfbe   :  { %vm1518_vm3 = vmor %vm1516_vm9, %vm1517_vm7 }
 0xfbf   :  { %v1033_v50 = vsel %vm1032_vm2, %v5111_v45, %v1029_v46  ;;  %v1512_v63 = vmul.f32 %v5113_v53, %v1511_v54  ;;  %v4913_v45 = vsel %vm3983_vm4, 1.0, %v7743_v2 }
 0xfc0   :  { %v1049_v35 = vmul.f32 %v1033_v50, %v6814_v1  ;;  %v4023_v15 = vpack.c.bf16 %v4913_v45, %v4913_v45 }
 0xfc1   :  { %v1513_v56 = vmul.f32 0.5, %v1512_v63 }
 0xfc2   :  { %v1065_v18 = vmul.f32 %v1049_v35, %v5473_v8  ;;  %v3673_v35 = vpop.f32.mrf.mxu2 }
 0xfc3   :  { %v1514_v19 = vsub.f32 1.5, %v1513_v56  ;;  %v3674_v33 = vadd.f32 %v3673_v35, %v7765_v23 }
 0xfc4   :  { %v1081_v30 = vadd.f32 %v1065_v18, %v5476_v13 }
 0xfc5   :  { %v1515_v9 = vmul.f32 %v5113_v53, %v1514_v19 }
 0xfc6   :  { %v3972_v31 = vsub.f32 %v1081_v30, %v6368_v29 }
 0xfc7   :  { %v1519_v21 = vsel %vm1518_vm3, %v5113_v53, %v1515_v9  ;;  %v4918_v53 = vsel %vm4000_vm11, 1.0, %v7743_v2  ;;  %v205_v9 = vsel %vm110_vm0, %v6519_v24, 0.0 }
 0xfc8   :  { %v1544_v1 = vmul.f32 %v1519_v21, %v6780_v62  ;;  %v3976_v25 = vmul.f32 0.5, %v3972_v31  ;;  %v4096_v62 = vunpack.c.l.b16 %v4023_v15  ;;  %v4036_v5 = vpack.c.bf16 %v4918_v53, %v4918_v53  ;;  %v5214_v15 = vld [vmem:[%s7700_s8 + $0x28] sm:$0xff] }
 0xfca   :  { %v1560_v11 = vmul.f32 %v1544_v1, %v5473_v8  ;;  %v3980_v10 = vadd.f32 %v3976_v25, %v6368_v29  ;;  %v4121_v50 = vunpack.c.l.b16 %v4036_v5  ;;  %v3675_v18 = vpop.f32.mrf.mxu2  ;;  %v229_v1 = vsel %vm110_vm0, %v6525_v61, 0.0 }
 0xfcb   :  { %v3676_v30 = vadd.f32 %v3675_v18, %v7765_v23  ;;  %v226_v25 = vsel %vm110_vm0, %v6654_v52, 0.0 }
 0xfcc   :  { %v1576_v57 = vadd.f32 %v1560_v11, %v5476_v13  ;;  %vm3984_vm10 = vcmp.ge.f32.partialorder %v3980_v10, 0.5 }
 0xfcd   :  { %v4914_v51 = vsel %vm3984_vm10, 1.0, %v7743_v2 }
 0xfce   :  { %v4024_v3 = vpack.c.bf16 %v4914_v51, %v4914_v51  ;;  %v3987_v34 = vsub.f32 %v1576_v57, %v6387_v22  ;;  %v5213_v57 = vld [vmem:[%s7700_s8 + $0x30] sm:$0xff]  ;;  %v5215_v51 = vld [vmem:[%s7700_s8 + $0x20] sm:$0xff] }
 0xfd0   :  { %v4097_v4 = vunpack.c.l.b16 %v4024_v3  ;;  %v3991_v14 = vmul.f32 0.5, %v3987_v34  ;;  %v5216_v3 = vld [vmem:[%s7700_s8 + $0x18] sm:$0xff]  ;;  %v5217_v34 = vld [vmem:[%s7700_s8 + $0x10] sm:$0xff] }
 0xfd2   :  { %v4098_v46 = vpack.c.b16 %v4097_v4, %v4096_v62  ;;  %v3995_v29 = vadd.f32 %v3991_v14, %v6387_v22  ;;  %v5210_v22 = vld [vmem:[%s7696_s4 + $0x8] sm:$0xff]  ;;  %v3678_v19 = vpop.f32.mrf.mxu2  ;;  %v5219_v4 = vld [vmem:[%s7700_s8] sm:$0xff] }
 0xfd3   :  { %v6955_v21 = vadd.f32 %v3678_v19, %v7765_v23  ;;  %v5218_v62 = vld [vmem:[%s7700_s8 + $0x8] sm:$0xff]  ;;  %s5263_s8 = smov 8  }
 0xfd4   :  { %4099 = vrot.lane.b32.xlu2 %v4098_v46, %s5258_s19  ;;  %vm3999_vm13 = vcmp.ge.f32.partialorder %v3995_v29, 0.5 }
 0xfd5   :  { %v4917_v54 = vsel %vm3999_vm13, 1.0, %v7743_v2 }
 0xfd6   :  { %v4035_v59 = vpack.c.bf16 %v4917_v54, %v4917_v54 }
 0xfd8   :  { %v4120_v47 = vunpack.c.l.b16 %v4035_v59 }
 0xfda   :  { %v4122_v63 = vpack.c.b16 %v4121_v50, %v4120_v47  ;;  %v3680_v31 = vpop.f32.mrf.mxu2 }
 0xfdb   :  { %v3681_v40 = vadd.f32 %v3680_v31, %v7765_v23 }
 0xfdc   :  { %4123 = vrot.lane.b32.xlu1 %v4122_v63, %s5257_s18 }
 0xff2   :  { %v4067_v56 = vpop.permute.xlu0 %4066 }
 0xff3   :  { %4082 = vmatpush.bf16.msrb.mxu3 %v4067_v56 }
 0xff7   :  { %4273 = vmatpush.bf16.msra.mxu3 %v5210_v22 }
 0xffb   :  { %4274 = vmatpush.bf16.msra.mxu3 %v5211_v39 }
 0xffc   :  { %v4043_v45 = vpop.permute.xlu1 %4042 }
 0xffd   :  { %3683 = vadd.xlane.f32.xlu2 %v3674_v33 }
0x1005   :  { %206 = vadd.xlane.f32.xlu2 %v205_v9 }
0x1006   :  { %3685 = vadd.xlane.f32.xlu1 %v3676_v30 }
0x100d   :  { %3689 = vadd.xlane.f32.xlu2 %v3681_v40 }
0x100e   :  { %3687 = vadd.xlane.f32.xlu1 %v6955_v21 }
0x1015   :  { %230 = vadd.xlane.f32.xlu2 %v229_v1 }
0x1016   :  { %227 = vadd.xlane.f32.xlu1 %v226_v25  ;;  %v72_v25 = vld [vmem:[%s7701_s9] sm:$0x7] }
0x102e   :  { %v4100_v11 = vpop.permute.xlu2 %4099 }
0x102f   :  { %4981 = vxpose.binary.xlu0.c.b16.start.end [1/2] (short) (narrow) %v4100_v11, %v4043_v45, 32  ;;  %v202_v45 = vsel %vm110_vm0, %v6644_v6, 0.0 }
0x104e   :  { %v4124_v10 = vpop.permute.xlu1 %4123 }
0x104f   :  { %4139 = vmatpush.bf16.msrb.mxu1 %v4124_v10 }
0x1053   :  { %4551 = vmatpush.bf16.msra.mxu1 %v5212_v12  ;;  %v7789_v12 = vld [vmem:[#allocation21_spill] sm:$0xff] }
0x1057   :  { %4552 = vmatpush.bf16.msra.mxu1 %v5213_v57 }
0x105b   :  { %4553 = vmatpush.bf16.msra.mxu1 %v5214_v15 }
0x105f   :  { %4554 = vmatpush.bf16.msra.mxu1 %v5215_v51 }
0x1063   :  { %4555 = vmatpush.bf16.msra.mxu1 %v5216_v3 }
0x1067   :  { %4556 = vmatpush.bf16.msra.mxu1 %v5217_v34 }
0x106b   :  { %4557 = vmatpush.bf16.msra.mxu1 %v5218_v62 }
0x106f   :  { %4558 = vmatpush.bf16.msra.mxu1 %v5219_v4 }
0x1070   :  { %v3684_v14 = vpop.xlane.xlu2 %3683 }
0x1071   :  { %v3691_v53 = vmul.f32 0.0078125, %v3684_v14 }
0x1073   :  { %v6986_v46 = vsub.f32 %v3674_v33, %v3691_v53 }
0x1075   :  { %v3699_v29 = vmul.f32 %v6986_v46, %v6986_v46 }
0x1077   :  { %3703 = vadd.xlane.f32.xlu1 %v3699_v29 }
0x1078   :  { %v207_v5 = vpop.xlane.xlu2 %206 }
0x1079   :  { %v3686_v54 = vpop.xlane.xlu1 %3685  ;;  %v239_v47 = vmul.f32 0.03125, %v207_v5 }
0x107a   :  { %v3692_v59 = vmul.f32 0.0078125, %v3686_v54 }
0x107b   :  { %v6995_v35 = vsub.f32 %v6519_v24, %v239_v47 }
0x107c   :  { %v6990_v50 = vsub.f32 %v3676_v30, %v3692_v59 }
0x107d   :  { %v271_v18 = vmul.f32 %v6995_v35, %v6995_v35 }
0x107e   :  { %v3700_v63 = vmul.f32 %v6990_v50, %v6990_v50 }
0x107f   :  { %v301_v39 = vsel %vm110_vm0, %v271_v18, 0.0 }
0x1080   :  { %3705 = vadd.xlane.f32.xlu2 %v3700_v63  ;;  %v3690_v56 = vpop.xlane.xlu2 %3689 }
0x1081   :  { %v3694_v22 = vmul.f32 0.0078125, %v3690_v56  ;;  %v3688_v34 = vpop.xlane.xlu1 %3687 }
0x1083   :  { %v7000_v19 = vsub.f32 %v3681_v40, %v3694_v22  ;;  %v7013_v40 = vperm.slane %v72_v25, 0 }
0x1085   :  { %v3702_v9 = vmul.f32 %v7000_v19, %v7000_v19  ;;  %v7025_v57 = vadd.f32 %v7789_v12, %v7013_v40  ;;  %v7031_v51 = vadd.f32 %v6760_v26, %v7013_v40 }
0x1087   :  { %v2284_v15 = vsel %vm110_vm0, %v7025_v57, 0.0  ;;  %v3052_v3 = vsel %vm110_vm0, %v7031_v51, 0.0 }
0x1088   :  { %302 = vadd.xlane.f32.xlu2 %v301_v39  ;;  %v231_v33 = vpop.xlane.xlu2 %230 }
0x1089   :  { %v247_v30 = vmul.f32 0.03125, %v231_v33  ;;  %v228_v4 = vpop.xlane.xlu1 %227 }
0x108b   :  { %v7005_v31 = vsub.f32 %v6525_v61, %v247_v30  ;;  %v7788_v61 = vld [vmem:[#allocation18_spill] sm:$0xff] }
0x108c   :  { %v7019_v11 = vadd.f32 %v7788_v61, %v7013_v40 }
0x108d   :  { %v279_v24 = vmul.f32 %v7005_v31, %v7005_v31 }
0x108e   :  { %v2275_v10 = vsel %vm110_vm0, %v7019_v11, 0.0 }
0x108f   :  { %v325_v1 = vsel %vm110_vm0, %v279_v24, 0.0 }
0x1090   :  { %3709 = vadd.xlane.f32.xlu2 %v3702_v9 }
0x1098   :  { %326 = vadd.xlane.f32.xlu2 %v325_v1 }
0x10b0   :  { %203 = vadd.xlane.f32.xlu0 %v202_v45 }
0x10b8   :  { %2276 = vadd.xlane.f32.xlu0 %v2275_v10 }
0x10c0   :  { %2285 = vadd.xlane.f32.xlu0 %v2284_v15 }
0x10c8   :  { %3053 = vadd.xlane.f32.xlu0 %v3052_v3 }
0x10db   :  { %v4982_v62 = vpop.trf.xlu0 }
0x10dc   :  { %4919 = vmatmul.msk.bf16.vlgmr.msrb.gmra.mxu3 %vm1694_vm12, %v4982_v62 }
0x10e3   :  { %v4983_v14 = vpop.trf.xlu0 }
0x10e4   :  { %4921 = vmatmul.msk.bf16.vlgmr.msrb.gmra.mxu1 %vm1694_vm12, %v4983_v14 }
0x10ea   :  { %v3704_v53 = vpop.xlane.xlu1 %3703 }
0x10eb   :  { %v3711_v29 = vmul.f32 0.0078125, %v3704_v53  ;;  %v4984_v5 = vpop.trf.xlu0 }
0x10ec   :  { %4920 = vmatmul.msk.bf16.gmra.mxu3 %vm1694_vm12, %v4984_v5 }
0x10ed   :  { %v3715_v54 = vadd.f32 1e-05, %v3711_v29 }
0x10ef   :  { %5114 = vrsqrt.f32 %v3715_v54  ;;  %vm3725_vm15 = vweird.f32 %v3715_v54 }
0x10f3   :  { %v3706_v26 = vpop.xlane.xlu2 %3705  ;;  %v4985_v59 = vpop.trf.xlu0 }
0x10f4   :  { %v3712_v47 = vmul.f32 0.0078125, %v3706_v26  ;;  %4922 = vmatmul.msk.bf16.gmra.mxu1 %vm1694_vm12, %v4985_v59 }
0x10f5   :  { %v5115_v63 = vpop.eup %5114 }
0x10f6   :  { %v3720_v56 = vmul.f32 %v5115_v63, %v3715_v54  ;;  %v3716_v18 = vadd.f32 1e-05, %v3712_v47  ;;  %vm3726_vm14 = vweird.f32 %v5115_v63 }
0x10f7   :  { %vm3727_vm1 = vmor %vm3725_vm15, %vm3726_vm14 }
0x10f8   :  { %v3721_v22 = vmul.f32 %v5115_v63, %v3720_v56  ;;  %5116 = vrsqrt.f32 %v3716_v18  ;;  %vm3735_vm8 = vweird.f32 %v3716_v18 }
0x10fa   :  { %v3722_v39 = vmul.f32 0.5, %v3721_v22 }
0x10fc   :  { %v3723_v33 = vsub.f32 1.5, %v3722_v39  ;;  %v3693_v39 = vmul.f32 0.0078125, %v3688_v34 }
0x10fe   :  { %v5117_v30 = vpop.eup %5116  ;;  %v3724_v9 = vmul.f32 %v5115_v63, %v3723_v33 }
0x10ff   :  { %v3730_v24 = vmul.f32 %v5117_v30, %v3716_v18  ;;  %vm3736_vm12 = vweird.f32 %v5117_v30 }
0x1100   :  { %v3728_v1 = vsel %vm3727_vm1, %v5115_v63, %v3724_v9  ;;  %vm3737_vm5 = vmor %vm3735_vm8, %vm3736_vm12 }
0x1101   :  { %v3759_v25 = vmul.f32 %v3728_v1, %v6986_v46  ;;  %v3731_v45 = vmul.f32 %v5117_v30, %v3730_v24 }
0x1103   :  { %v3763_v61 = vmul.f32 %v3759_v25, %v6022_v48  ;;  %v3732_v10 = vmul.f32 0.5, %v3731_v45 }
0x1105   :  { %v3733_v12 = vsub.f32 1.5, %v3732_v10  ;;  %v3767_v15 = vadd.f32 %v3763_v61, %v6025_v17 }
0x1107   :  { %v3734_v3 = vmul.f32 %v5117_v30, %v3733_v12  ;;  %v3771_v62 = vsub.f32 %v3767_v15, %v6676_v44 }
0x1109   :  { %v3738_v14 = vsel %vm3737_vm5, %v5117_v30, %v3734_v3  ;;  %v3775_v53 = vmul.f32 0.5, %v3771_v62  ;;  %v246_v30 = vmul.f32 0.03125, %v228_v4  ;;  %v5220_v4 = vld [vmem:[%s7695_s3 + $0x10] sm:$0xff]  ;;  %v303_v3 = vpop.xlane.xlu2 %302  ;;  %v5222_v62 = vld [vmem:[%s7695_s3 + $0x8] sm:$0xff] }
0x110a   :  { %v3760_v29 = vmul.f32 %v3738_v14, %v6990_v50 }
0x110b   :  { %v3779_v5 = vadd.f32 %v3775_v53, %v6676_v44  ;;  %v7066_v24 = vsub.f32 %v6654_v52, %v246_v30  ;;  %v5221_v52 = vld [vmem:[%s7695_s3] sm:$0xff] }
0x110c   :  { %v3764_v46 = vmul.f32 %v3760_v29, %v6022_v48 }
0x110d   :  { %vm3783_vm6 = vcmp.ge.f32.partialorder %v3779_v5, 0.5 }
0x110e   :  { %v3768_v54 = vadd.f32 %v3764_v46, %v6025_v17  ;;  %v7047_v26 = vsel %vm3783_vm6, 0.0, %v3779_v5 }
0x1110   :  { %v3772_v59 = vsub.f32 %v3768_v54, %v6691_v0 }
0x1112   :  { %v3776_v47 = vmul.f32 0.5, %v3772_v59 }
0x1114   :  { %v3780_v63 = vadd.f32 %v3776_v47, %v6691_v0  ;;  %v7061_v0 = vsub.f32 %v6955_v21, %v3693_v39 }
0x1116   :  { %vm3784_vm2 = vcmp.ge.f32.partialorder %v3780_v63, 0.5  ;;  %v3701_v9 = vmul.f32 %v7061_v0, %v7061_v0 }
0x1117   :  { %v7051_v56 = vsel %vm3784_vm2, 0.0, %v3780_v63  ;;  %vm4899_vm7 = vmpackc.low %vm3784_vm2, %vm3783_vm6 }
0x1118   :  { %4900 = vmatmul.msk.bf16.vlgmr.msrb.gmra.mxu0 %vm4899_vm7, %v7776_v32 }
0x1123   :  { %v204_v50 = vpop.xlane.xlu0 %203 }
0x1124   :  { %v238_v44 = vmul.f32 0.03125, %v204_v50  ;;  %v5223_v50 = vld [vmem:[%s7695_s3 + $0x18] sm:$0xff] }
0x1126   :  { %v7055_v18 = vsub.f32 %v6644_v6, %v238_v44  ;;  %v278_v6 = vmul.f32 %v7066_v24, %v7066_v24 }
0x1128   :  { %v270_v22 = vmul.f32 %v7055_v18, %v7055_v18  ;;  %v322_v1 = vsel %vm110_vm0, %v278_v6, 0.0 }
0x112a   :  { %v298_v33 = vsel %vm110_vm0, %v270_v22, 0.0  ;;  %v335_v22 = vmul.f32 0.03125, %v303_v3 }
0x112b   :  { %299 = vadd.xlane.f32.xlu1 %v298_v33 }
0x1133   :  { %3707 = vadd.xlane.f32.xlu1 %v3701_v9 }
0x113b   :  { %323 = vadd.xlane.f32.xlu1 %v322_v1 }
0x115f   :  { %v4084_v34 = vpop.f32.mrf.mxu3 }
0x1160   :  { %v4151_v15 = vmul.f32 %v5221_v52, %v4084_v34 }
0x1161   :  { %v4141_v25 = vpop.f32.mrf.mxu1 }
0x1162   :  { %v4155_v29 = vmul.f32 %v5221_v52, %v4141_v25  ;;  %v4159_v54 = vpack.c.bf16 %v4151_v15, %v4151_v15 }
0x1164   :  { %v4163_v39 = vpack.c.bf16 %v4155_v29, %v4155_v29  ;;  %v4176_v34 = vunpack.c.l.b16 %v4159_v54  ;;  %v5224_v29 = vld [vmem:[%s7698_s6 + $0x8] sm:$0xff] }
0x1167   :  { %v4086_v45 = vpop.f32.mrf.mxu3 }
0x1168   :  { %v4152_v14 = vmul.f32 %v5222_v62, %v4086_v45 }
0x1169   :  { %v4143_v61 = vpop.f32.mrf.mxu1 }
0x116a   :  { %v4156_v5 = vmul.f32 %v5222_v62, %v4143_v61  ;;  %v4160_v47 = vpack.c.bf16 %v4152_v14, %v4152_v14 }
0x116c   :  { %v4164_v30 = vpack.c.bf16 %v4156_v5, %v4156_v5  ;;  %v4177_v25 = vunpack.c.l.b16 %v4160_v47 }
0x116e   :  { %v4211_v52 = vunpack.c.l.b16 %v4164_v30  ;;  %v4180_v14 = vpack.c.b16 %v4177_v25, %v4176_v34 }
0x116f   :  { %v4089_v21 = vpop.f32.mrf.mxu3 }
0x1170   :  { %v4153_v12 = vmul.f32 %v5220_v4, %v4089_v21 }
0x1171   :  { %v4146_v10 = vpop.f32.mrf.mxu1 }
0x1172   :  { %v4157_v53 = vmul.f32 %v5220_v4, %v4146_v10  ;;  %v4161_v46 = vpack.c.bf16 %v4153_v12, %v4153_v12  ;;  %v351_v10 = vadd.f32 1e-05, %v335_v22  ;;  %v3710_v4 = vpop.xlane.xlu2 %3709  ;;  %v4210_v12 = vunpack.c.l.b16 %v4163_v39 }
0x1173   :  { %v3714_v54 = vmul.f32 0.0078125, %v3710_v4 }
0x1174   :  { %v4165_v63 = vpack.c.bf16 %v4157_v53, %v4157_v53  ;;  %v4178_v9 = vunpack.c.l.b16 %v4161_v46  ;;  %5118 = vrsqrt.f32 %v351_v10  ;;  %v4214_v3 = vpack.c.b16 %v4211_v52, %v4210_v12 }
0x1175   :  { %vm436_vm3 = vweird.f32 %v351_v10 }
0x1176   :  { %v4212_v45 = vunpack.c.l.b16 %v4165_v63 }
0x1177   :  { %v4091_v59 = vpop.f32.mrf.mxu3 }
0x1178   :  { %v4154_v44 = vmul.f32 %v5223_v50, %v4091_v59  ;;  %v5225_v59 = vld [vmem:[%s7698_s6] sm:$0xff] }
0x1179   :  { %v4148_v33 = vpop.f32.mrf.mxu1 }
0x117a   :  { %v4162_v6 = vpack.c.bf16 %v4154_v44, %v4154_v44  ;;  %v4158_v1 = vmul.f32 %v5223_v50, %v4148_v33  ;;  %v5119_v5 = vpop.eup %5118  ;;  %v327_v46 = vpop.xlane.xlu2 %326  ;;  %v3718_v50 = vadd.f32 1e-05, %v3714_v54 }
0x117b   :  { %v431_v47 = vmul.f32 %v5119_v5, %v351_v10  ;;  %v343_v63 = vmul.f32 0.03125, %v327_v46  ;;  %vm437_vm9 = vweird.f32 %v5119_v5 }
0x117c   :  { %v4179_v61 = vunpack.c.l.b16 %v4162_v6  ;;  %v4166_v21 = vpack.c.bf16 %v4158_v1, %v4158_v1  ;;  %5120 = vrsqrt.f32 %v3718_v50  ;;  %vm438_vm4 = vmor %vm436_vm3, %vm437_vm9  ;;  %vm3755_vm11 = vweird.f32 %v3718_v50 }
0x117d   :  { %v432_v44 = vmul.f32 %v5119_v5, %v431_v47  ;;  %v359_v22 = vadd.f32 1e-05, %v343_v63 }
0x117e   :  { %v4181_v15 = vpack.c.b16 %v4179_v61, %v4178_v9  ;;  %v4213_v62 = vunpack.c.l.b16 %v4166_v21 }
0x117f   :  { %v433_v39 = vmul.f32 0.5, %v432_v44  ;;  %5122 = vrsqrt.f32 %v359_v22  ;;  %vm516_vm15 = vweird.f32 %v359_v22 }
0x1180   :  { %v4215_v53 = vpack.c.b16 %v4213_v62, %v4212_v45  ;;  %4193 = vmatpush.bf16.msra.mxu2 %v4181_v15 }
0x1181   :  { %v434_v9 = vsub.f32 1.5, %v433_v39 }
0x1182   :  { %4227 = vmatpush.bf16.msra.mxu0 %v4215_v53  ;;  %v5121_v30 = vpop.eup %5120 }
0x1183   :  { %v3750_v1 = vmul.f32 %v5121_v30, %v3718_v50  ;;  %v435_v34 = vmul.f32 %v5119_v5, %v434_v9  ;;  %vm3756_vm10 = vweird.f32 %v5121_v30 }
0x1184   :  { %4194 = vmatpush.bf16.msra.mxu2 %v4180_v14  ;;  %vm3757_vm14 = vmor %vm3755_vm11, %vm3756_vm10 }
0x1185   :  { %v5123_v6 = vpop.eup %5122  ;;  %v3751_v61 = vmul.f32 %v5121_v30, %v3750_v1  ;;  %v439_v12 = vsel %vm438_vm4, %v5119_v5, %v435_v34 }
0x1186   :  { %4228 = vmatpush.bf16.msra.mxu0 %v4214_v3  ;;  %v511_v25 = vmul.f32 %v5123_v6, %v359_v22  ;;  %v527_v53 = vmul.f32 %v439_v12, %v6995_v35  ;;  %vm517_vm13 = vweird.f32 %v5123_v6 }
0x1187   :  { %v3752_v3 = vmul.f32 0.5, %v3751_v61  ;;  %vm518_vm1 = vmor %vm516_vm15, %vm517_vm13 }
0x1188   :  { %4424 = vmatpush.bf16.msrb.mxu2 %v5224_v29  ;;  %v512_v15 = vmul.f32 %v5123_v6, %v511_v25  ;;  %v544_v29 = vmul.f32 %v5473_v8, %v527_v53 }
0x1189   :  { %v3753_v46 = vsub.f32 1.5, %v3752_v3 }
0x118a   :  { %v513_v10 = vmul.f32 0.5, %v512_v15  ;;  %v561_v44 = vadd.f32 %v5476_v13, %v544_v29 }
0x118b   :  { %v3754_v39 = vmul.f32 %v5121_v30, %v3753_v46 }
0x118c   :  { %4425 = vmatpush.bf16.msrb.mxu2 %v5225_v59  ;;  %v514_v47 = vsub.f32 1.5, %v513_v10  ;;  %v3954_v34 = vsub.f32 %v561_v44, %v6613_v38 }
0x118d   :  { %v3758_v25 = vsel %vm3757_vm14, %v5121_v30, %v3754_v39 }
0x118e   :  { %v515_v1 = vmul.f32 %v5123_v6, %v514_v47  ;;  %v3958_v50 = vmul.f32 0.5, %v3954_v34 }
0x1190   :  { %v519_v12 = vsel %vm518_vm1, %v5123_v6, %v515_v1 }
0x1191   :  { %v535_v29 = vmul.f32 %v519_v12, %v7005_v31 }
0x1195   :  { %v7089_v33 = vpop.f32.mrf.mxu0 }
0x119d   :  { %v3812_v45 = vpop.f32.mrf.mxu0 }
0x119e   :  { %v7092_v21 = vadd.f32 %v3812_v45, %v7013_v40  ;;  %v300_v4 = vpop.xlane.xlu1 %299 }
0x119f   :  { %v334_v52 = vmul.f32 0.03125, %v300_v4 }
0x11a0   :  { %v3823_v62 = vsel %vm110_vm0, %v7092_v21, 0.0 }
0x11a1   :  { %v350_v14 = vadd.f32 1e-05, %v334_v52  ;;  %3824 = vadd.xlane.f32.xlu0 %v3823_v62  ;;  %v3762_v62 = vmul.f32 %v3758_v25, %v7000_v19  ;;  %v552_v19 = vmul.f32 %v5473_v8, %v535_v29 }
0x11a3   :  { %5124 = vrsqrt.f32 %v350_v14  ;;  %vm426_vm8 = vweird.f32 %v350_v14  ;;  %v3766_v46 = vmul.f32 %v3762_v62, %v6022_v48 }
0x11a5   :  { %v3770_v39 = vadd.f32 %v3766_v46, %v6025_v17 }
0x11a6   :  { %v3708_v54 = vpop.xlane.xlu1 %3707 }
0x11a7   :  { %v3713_v59 = vmul.f32 0.0078125, %v3708_v54  ;;  %v3962_v54 = vadd.f32 %v3958_v50, %v6613_v38 }
0x11a9   :  { %v5125_v63 = vpop.eup %5124  ;;  %v3717_v5 = vadd.f32 1e-05, %v3713_v59  ;;  %vm3966_vm2 = vcmp.ge.f32.partialorder %v3962_v54, 0.5 }
0x11aa   :  { %v421_v9 = vmul.f32 %v5125_v63, %v350_v14  ;;  %vm427_vm12 = vweird.f32 %v5125_v63  ;;  %v4908_v34 = vsel %vm3966_vm2, 1.0, %v7743_v2 }
0x11ab   :  { %5126 = vrsqrt.f32 %v3717_v5  ;;  %vm428_vm5 = vmor %vm426_vm8, %vm427_vm12  ;;  %vm3745_vm7 = vweird.f32 %v3717_v5  ;;  %v4010_v62 = vpack.c.bf16 %v4908_v34, %v4908_v34 }
0x11ac   :  { %v422_v35 = vmul.f32 %v5125_v63, %v421_v9 }
0x11ae   :  { %v423_v45 = vmul.f32 0.5, %v422_v35  ;;  %v324_v61 = vpop.xlane.xlu1 %323 }
0x11af   :  { %v342_v4 = vmul.f32 0.03125, %v324_v61  ;;  %v3774_v61 = vsub.f32 %v3770_v39, %v6719_v42 }
0x11b0   :  { %v424_v52 = vsub.f32 1.5, %v423_v45 }
0x11b1   :  { %v5127_v15 = vpop.eup %5126  ;;  %v358_v53 = vadd.f32 1e-05, %v342_v4 }
0x11b2   :  { %v425_v3 = vmul.f32 %v5125_v63, %v424_v52  ;;  %v3740_v10 = vmul.f32 %v5127_v15, %v3717_v5  ;;  %vm3746_vm6 = vweird.f32 %v5127_v15 }
0x11b3   :  { %5128 = vrsqrt.f32 %v358_v53  ;;  %vm3747_vm9 = vmor %vm3745_vm7, %vm3746_vm6  ;;  %vm506_vm10 = vweird.f32 %v358_v53 }
0x11b4   :  { %v429_v22 = vsel %vm428_vm5, %v5125_v63, %v425_v3  ;;  %v3741_v30 = vmul.f32 %v5127_v15, %v3740_v10  ;;  %v3778_v3 = vmul.f32 0.5, %v3774_v61 }
0x11b5   :  { %v526_v6 = vmul.f32 %v429_v22, %v7055_v18  ;;  %v569_v18 = vadd.f32 %v5476_v13, %v552_v19 }
0x11b6   :  { %v3742_v59 = vmul.f32 0.5, %v3741_v30  ;;  %v7122_v19 = vadd.f32 %v3778_v3, %v6719_v42  ;;  %v7790_v42 = vld [vmem:[#allocation11_spill] sm:$0xff] }
0x11b7   :  { %v543_v47 = vmul.f32 %v5473_v8, %v526_v6  ;;  %v3956_v12 = vsub.f32 %v569_v18, %v6637_v58 }
0x11b8   :  { %v3743_v44 = vsub.f32 1.5, %v3742_v59  ;;  %vm3786_vm14 = vcmp.ge.f32.partialorder %v7122_v19, 0.5 }
0x11b9   :  { %v5129_v14 = vpop.eup %5128  ;;  %v560_v31 = vadd.f32 %v5476_v13, %v543_v47 }
0x11ba   :  { %v3744_v63 = vmul.f32 %v5127_v15, %v3743_v44  ;;  %v501_v9 = vmul.f32 %v5129_v14, %v358_v53  ;;  %vm507_vm3 = vweird.f32 %v5129_v14 }
0x11bb   :  { %v3953_v38 = vsub.f32 %v560_v31, %v6579_v20  ;;  %vm508_vm11 = vmor %vm506_vm10, %vm507_vm3 }
0x11bc   :  { %v3748_v1 = vsel %vm3747_vm9, %v5127_v15, %v3744_v63  ;;  %v502_v35 = vmul.f32 %v5129_v14, %v501_v9 }
0x11bd   :  { %v3957_v25 = vmul.f32 0.5, %v3953_v38  ;;  %v3761_v45 = vmul.f32 %v3748_v1, %v7061_v0  ;;  %v3960_v0 = vmul.f32 0.5, %v3956_v12 }
0x11be   :  { %v503_v4 = vmul.f32 0.5, %v502_v35 }
0x11bf   :  { %v3961_v5 = vadd.f32 %v3957_v25, %v6579_v20  ;;  %v3765_v52 = vmul.f32 %v3761_v45, %v6022_v48  ;;  %v4170_v20 = vunpack.c.l.b16 %v4010_v62  ;;  %v3964_v47 = vadd.f32 %v3960_v0, %v6637_v58  ;;  %v7791_v25 = vld [vmem:[#allocation14_spill] sm:$0xff] }
0x11c0   :  { %v504_v50 = vsub.f32 1.5, %v503_v4 }
0x11c1   :  { %vm3965_vm4 = vcmp.ge.f32.partialorder %v3961_v5, 0.5  ;;  %v3769_v15 = vadd.f32 %v3765_v52, %v6025_v17  ;;  %vm3968_vm1 = vcmp.ge.f32.partialorder %v3964_v47, 0.5  ;;  %v7792_v52 = vld [vmem:[#allocation15_spill] sm:$0xff] }
0x11c2   :  { %v4907_v10 = vsel %vm3965_vm4, 1.0, %v7743_v2  ;;  %v505_v29 = vmul.f32 %v5129_v14, %v504_v50 }
0x11c3   :  { %v4009_v22 = vpack.c.bf16 %v4907_v10, %v4907_v10  ;;  %v3773_v30 = vsub.f32 %v3769_v15, %v6712_v43  ;;  %v7793_v10 = vld [vmem:[#allocation5_spill] sm:$0xff] }
0x11c4   :  { %v509_v46 = vsel %vm508_vm11, %v5129_v14, %v505_v29 }
0x11c5   :  { %v534_v6 = vmul.f32 %v509_v46, %v7066_v24  ;;  %v4169_v54 = vunpack.c.l.b16 %v4009_v22  ;;  %v3777_v59 = vmul.f32 0.5, %v3773_v30 }
0x11c7   :  { %v551_v44 = vmul.f32 %v5473_v8, %v534_v6  ;;  %v4171_v31 = vpack.c.b16 %v4170_v20, %v4169_v54  ;;  %v3781_v53 = vadd.f32 %v3777_v59, %v6712_v43  ;;  %v4910_v43 = vsel %vm3968_vm1, 1.0, %v7743_v2  ;;  %v7794_v54 = vld [vmem:[#allocation22_spill] sm:$0xff] }
0x11c8   :  { %v4012_v14 = vpack.c.bf16 %v4910_v43, %v4910_v43 }
0x11c9   :  { %v568_v39 = vadd.f32 %v5476_v13, %v551_v44  ;;  %4923 = vmatmul.msk.bf16.vlgmr.msra.gmra.mxu2 %vm110_vm0, %v4171_v31  ;;  %vm3785_vm13 = vcmp.ge.f32.partialorder %v3781_v53, 0.5 }
0x11ca   :  { %v7130_v24 = vsel %vm3785_vm13, 0.0, %v3781_v53  ;;  %vm4901_vm15 = vmpackc.low %vm3786_vm14, %vm3785_vm13  ;;  %v4204_v38 = vunpack.c.l.b16 %v4012_v14 }
0x11cb   :  { %v3955_v58 = vsub.f32 %v568_v39, %v7790_v42  ;;  %4902 = vmatmul.msk.bf16.gmra.mxu0 %vm4901_vm15, %v7776_v32 }
0x11cd   :  { %v3959_v8 = vmul.f32 0.5, %v3955_v58  ;;  %v7795_v58 = vld [vmem:[#allocation6_spill] sm:$0xff] }
0x11cf   :  { %v3963_v13 = vadd.f32 %v3959_v8, %v7790_v42 }
0x11d1   :  { %vm3967_vm12 = vcmp.ge.f32.partialorder %v3963_v13, 0.5 }
0x11d2   :  { %v4909_v63 = vsel %vm3967_vm12, 1.0, %v7743_v2 }
0x11d3   :  { %v4011_v9 = vpack.c.bf16 %v4909_v63, %v4909_v63 }
0x11d5   :  { %v4203_v18 = vunpack.c.l.b16 %v4011_v9 }
0x11d7   :  { %v4205_v1 = vpack.c.b16 %v4204_v38, %v4203_v18 }
0x11db   :  { %4924 = vmatmul.msk.bf16.vlgmr.msra.gmra.mxu0 %vm110_vm0, %v4205_v1 }
0x1248   :  { %v7140_v35 = vpop.f32.mrf.mxu0 }
0x124c   :  { %v4196_v34 = vpop.f32.mrf.mxu2 }
0x124d   :  { %v4235_v45 = vsub.f32 %v4196_v34, %v7791_v25 }
0x124f   :  { %v4239_v4 = vmul.f32 0.5, %v4235_v45 }
0x1250   :  { %v7143_v61 = vpop.f32.mrf.mxu0 }
0x1251   :  { %v4243_v5 = vadd.f32 %v4239_v4, %v7791_v25 }
0x1253   :  { %vm4247_vm8 = vcmp.ge.f32.partialorder %v4243_v5, 0.25 }
0x1254   :  { %v4198_v12 = vpop.f32.mrf.mxu2  ;;  %v4925_v0 = vsel %vm4247_vm8, 1.0, %v7743_v2 }
0x1255   :  { %v4236_v62 = vsub.f32 %v4198_v12, %v7792_v52 }
0x1257   :  { %v4240_v50 = vmul.f32 0.5, %v4236_v62 }
0x1258   :  { %v4230_v15 = vpop.f32.mrf.mxu0 }
0x1259   :  { %v4244_v3 = vadd.f32 %v4240_v50, %v7792_v52  ;;  %v4237_v29 = vsub.f32 %v4230_v15, %v7793_v10 }
0x125b   :  { %vm4248_vm5 = vcmp.ge.f32.partialorder %v4244_v3, 0.25  ;;  %v4241_v46 = vmul.f32 0.5, %v4237_v29 }
0x125c   :  { %v4926_v22 = vsel %vm4248_vm5, 1.0, %v7743_v2 }
0x125d   :  { %v4259_v30 = vpack.c.bf16 %v4926_v22, %v4925_v0  ;;  %v4245_v6 = vadd.f32 %v4241_v46, %v7793_v10 }
0x125f   :  { %4929 = vmatmul.msk.bf16.vlgmr.msra.gmra.mxu3 %vm110_vm0, %v4259_v30  ;;  %vm4249_vm6 = vcmp.ge.f32.partialorder %v4245_v6, 0.25 }
0x1260   :  { %v4232_v20 = vpop.f32.mrf.mxu0  ;;  %v4927_v31 = vsel %vm4249_vm6, 1.0, %v7743_v2 }
0x1261   :  { %v4238_v59 = vsub.f32 %v4232_v20, %v7794_v54 }
0x1263   :  { %v4242_v47 = vmul.f32 0.5, %v4238_v59 }
0x1265   :  { %v4246_v44 = vadd.f32 %v4242_v47, %v7794_v54 }
0x1267   :  { %vm4250_vm2 = vcmp.ge.f32.partialorder %v4246_v44, 0.25 }
0x1268   :  { %v4928_v53 = vsel %vm4250_vm2, 1.0, %v7743_v2 }
0x1269   :  { %v4260_v39 = vpack.c.bf16 %v4928_v53, %v4927_v31 }
0x126f   :  { %4930 = vmatmul.msk.bf16.gmra.mxu3 %vm110_vm0, %v4260_v39 }
0x12e2   :  { %v4276_v42 = vpop.f32.mrf.mxu3 }
0x12e3   :  { %v4277_v8 = vadd.f32 %v4276_v42, %v7795_v58 }
0x12e5   :  { %v4286_v43 = vsel %vm110_vm0, %v4277_v8, 0.0 }
0x12e6   :  { %4287 = vadd.xlane.f32.xlu1 %v4286_v43 }
0x12ea   :  { %v4278_v13 = vpop.f32.mrf.mxu3 }
0x12eb   :  { %v4279_v14 = vadd.f32 %v4278_v13, %v7795_v58 }
0x12ed   :  { %v4289_v63 = vsel %vm110_vm0, %v4279_v14, 0.0 }
0x12ee   :  { %4290 = vadd.xlane.f32.xlu2 %v4289_v63 }
0x12f2   :  { %v4281_v9 = vpop.f32.mrf.mxu3 }
0x12f3   :  { %v4282_v18 = vadd.f32 %v4281_v9, %v7795_v58 }
0x12f5   :  { %v4292_v38 = vsel %vm110_vm0, %v4282_v18, 0.0 }
0x12f6   :  { %4293 = vadd.xlane.f32.xlu1 %v4292_v38 }
0x12fa   :  { %v4283_v1 = vpop.f32.mrf.mxu3 }
0x12fb   :  { %v4284_v34 = vadd.f32 %v4283_v1, %v7795_v58 }
0x12fd   :  { %v4295_v25 = vsel %vm110_vm0, %v4284_v34, 0.0 }
0x12fe   :  { %4296 = vadd.xlane.f32.xlu2 %v4295_v25 }
0x1359   :  { %v4288_v45 = vpop.xlane.xlu1 %4287 }
0x135a   :  { %v4298_v4 = vmul.f32 0.03125, %v4288_v45 }
0x135c   :  { %v4302_v12 = vsub.f32 %v4277_v8, %v4298_v4 }
0x135e   :  { %v4306_v5 = vmul.f32 %v4302_v12, %v4302_v12 }
0x1360   :  { %v4310_v52 = vsel %vm110_vm0, %v4306_v5, 0.0 }
0x1361   :  { %v4291_v62 = vpop.xlane.xlu2 %4290  ;;  %4311 = vadd.xlane.f32.xlu1 %v4310_v52 }
0x1362   :  { %v4299_v50 = vmul.f32 0.03125, %v4291_v62 }
0x1364   :  { %v4303_v15 = vsub.f32 %v4279_v14, %v4299_v50 }
0x1366   :  { %v4307_v3 = vmul.f32 %v4303_v15, %v4303_v15 }
0x1368   :  { %v4313_v10 = vsel %vm110_vm0, %v4307_v3, 0.0 }
0x1369   :  { %4314 = vadd.xlane.f32.xlu2 %v4313_v10  ;;  %v4294_v29 = vpop.xlane.xlu1 %4293 }
0x136a   :  { %v4300_v0 = vmul.f32 0.03125, %v4294_v29 }
0x136c   :  { %v7168_v22 = vsub.f32 %v4282_v18, %v4300_v0 }
0x136e   :  { %v4308_v30 = vmul.f32 %v7168_v22, %v7168_v22 }
0x1370   :  { %v4316_v46 = vsel %vm110_vm0, %v4308_v30, 0.0 }
0x1371   :  { %v4297_v20 = vpop.xlane.xlu2 %4296  ;;  %4317 = vadd.xlane.f32.xlu1 %v4316_v46 }
0x1372   :  { %v4301_v6 = vmul.f32 0.03125, %v4297_v20 }
0x1374   :  { %v7173_v54 = vsub.f32 %v4284_v34, %v4301_v6 }
0x1376   :  { %v4309_v59 = vmul.f32 %v7173_v54, %v7173_v54 }
0x1378   :  { %v4319_v47 = vsel %vm110_vm0, %v4309_v59, 0.0 }
0x1379   :  { %4320 = vadd.xlane.f32.xlu2 %v4319_v47 }
0x13d4   :  { %v4312_v44 = vpop.xlane.xlu1 %4311 }
0x13d5   :  { %v4322_v31 = vmul.f32 0.03125, %v4312_v44 }
0x13d7   :  { %v4326_v53 = vadd.f32 1e-05, %v4322_v31 }
0x13d9   :  { %5130 = vrsqrt.f32 %v4326_v53  ;;  %vm4336_vm9 = vweird.f32 %v4326_v53 }
0x13dc   :  { %v4315_v39 = vpop.xlane.xlu2 %4314 }
0x13dd   :  { %v4323_v42 = vmul.f32 0.03125, %v4315_v39 }
0x13df   :  { %v5131_v58 = vpop.eup %5130  ;;  %v4327_v8 = vadd.f32 1e-05, %v4323_v42 }
0x13e0   :  { %v4331_v43 = vmul.f32 %v5131_v58, %v4326_v53  ;;  %vm4337_vm7 = vweird.f32 %v5131_v58 }
0x13e1   :  { %5132 = vrsqrt.f32 %v4327_v8  ;;  %vm4338_vm3 = vmor %vm4336_vm9, %vm4337_vm7  ;;  %vm4346_vm10 = vweird.f32 %v4327_v8 }
0x13e2   :  { %v4332_v13 = vmul.f32 %v5131_v58, %v4331_v43 }
0x13e4   :  { %v4333_v14 = vmul.f32 0.5, %v4332_v13  ;;  %v4318_v63 = vpop.xlane.xlu1 %4317 }
0x13e5   :  { %v4324_v9 = vmul.f32 0.03125, %v4318_v63 }
0x13e6   :  { %v4334_v18 = vsub.f32 1.5, %v4333_v14 }
0x13e7   :  { %v5133_v38 = vpop.eup %5132  ;;  %v4328_v1 = vadd.f32 1e-05, %v4324_v9 }
0x13e8   :  { %v4335_v34 = vmul.f32 %v5131_v58, %v4334_v18  ;;  %v4341_v25 = vmul.f32 %v5133_v38, %v4327_v8  ;;  %vm4347_vm4 = vweird.f32 %v5133_v38 }
0x13e9   :  { %5134 = vrsqrt.f32 %v4328_v1  ;;  %vm4348_vm11 = vmor %vm4346_vm10, %vm4347_vm4  ;;  %vm4356_vm15 = vweird.f32 %v4328_v1 }
0x13ea   :  { %v4339_v45 = vsel %vm4338_vm3, %v5131_v58, %v4335_v34  ;;  %v4342_v4 = vmul.f32 %v5133_v38, %v4341_v25 }
0x13eb   :  { %v4370_v5 = vmul.f32 %v4339_v45, %v4302_v12 }
0x13ec   :  { %v4343_v52 = vmul.f32 0.5, %v4342_v4  ;;  %v4321_v62 = vpop.xlane.xlu2 %4320 }
0x13ed   :  { %v4374_v50 = vmul.f32 %v4370_v5, %v5808_v37  ;;  %v4325_v3 = vmul.f32 0.03125, %v4321_v62 }
0x13ee   :  { %v4344_v10 = vsub.f32 1.5, %v4343_v52 }
0x13ef   :  { %v5135_v29 = vpop.eup %5134  ;;  %v4378_v0 = vadd.f32 %v4374_v50, %v5811_v49  ;;  %v4329_v30 = vadd.f32 1e-05, %v4325_v3 }
0x13f0   :  { %v4345_v46 = vmul.f32 %v5133_v38, %v4344_v10  ;;  %v4351_v20 = vmul.f32 %v5135_v29, %v4328_v1  ;;  %vm4357_vm13 = vweird.f32 %v5135_v29 }
0x13f1   :  { %v4382_v6 = vsub.f32 %v4378_v0, %v6842_v36  ;;  %5136 = vrsqrt.f32 %v4329_v30  ;;  %vm4358_vm1 = vmor %vm4356_vm15, %vm4357_vm13  ;;  %vm4366_vm6 = vweird.f32 %v4329_v30 }
0x13f2   :  { %v4349_v59 = vsel %vm4348_vm11, %v5133_v38, %v4345_v46  ;;  %v4352_v12 = vmul.f32 %v5135_v29, %v4351_v20 }
0x13f3   :  { %v4386_v47 = vmul.f32 0.5, %v4382_v6  ;;  %v4371_v44 = vmul.f32 %v4349_v59, %v4303_v15 }
0x13f4   :  { %v4353_v31 = vmul.f32 0.5, %v4352_v12 }
0x13f5   :  { %v4375_v53 = vmul.f32 %v4371_v44, %v5808_v37  ;;  %v4390_v58 = vadd.f32 %v4386_v47, %v6842_v36 }
0x13f6   :  { %v4354_v39 = vsub.f32 1.5, %v4353_v31 }
0x13f7   :  { %v5137_v42 = vpop.eup %5136  ;;  %v4379_v43 = vadd.f32 %v4375_v53, %v5811_v49  ;;  %vm4394_vm12 = vcmp.ge.f32.partialorder %v4390_v58, 0.5 }
0x13f8   :  { %v4355_v8 = vmul.f32 %v5135_v29, %v4354_v39  ;;  %v4361_v13 = vmul.f32 %v5137_v42, %v4329_v30  ;;  %v4931_v36 = vsel %vm4394_vm12, 1.0, %v7743_v2  ;;  %vm4367_vm8 = vweird.f32 %v5137_v42 }
0x13f9   :  { %v4383_v14 = vsub.f32 %v4379_v43, %v6863_v41  ;;  %vm4368_vm2 = vmor %vm4366_vm6, %vm4367_vm8 }
0x13fa   :  { %v4359_v63 = vsel %vm4358_vm1, %v5135_v29, %v4355_v8  ;;  %v4362_v9 = vmul.f32 %v5137_v42, %v4361_v13 }
0x13fb   :  { %v4387_v15 = vmul.f32 0.5, %v4383_v14  ;;  %v4372_v18 = vmul.f32 %v4359_v63, %v7168_v22  ;;  %v5226_v22 = vld [vmem:[%s7692_s0 + $0x30] sm:$0xff] }
0x13fc   :  { %v4363_v38 = vmul.f32 0.5, %v4362_v9  ;;  %v7194_v52 = vadd.f32 %v5226_v22, %v4931_v36  ;;  %v7796_v22 = vld [vmem:[#allocation19_spill] sm:$0xff] }
0x13fd   :  { %v4391_v34 = vadd.f32 %v4387_v15, %v6863_v41  ;;  %v4376_v25 = vmul.f32 %v4372_v18, %v5808_v37  ;;  %v5227_v41 = vld [vmem:[%s7692_s0 + $0x38] sm:$0xff] }
0x13fe   :  { %v4364_v45 = vsub.f32 1.5, %v4363_v38 }
0x13ff   :  { %vm4395_vm5 = vcmp.ge.f32.partialorder %v4391_v34, 0.5  ;;  %v4380_v1 = vadd.f32 %v4376_v25, %v5811_v49 }
0x1400   :  { %v4932_v4 = vsel %vm4395_vm5, 1.0, %v7743_v2  ;;  %v4365_v5 = vmul.f32 %v5137_v42, %v4364_v45 }
0x1401   :  { %v7199_v62 = vadd.f32 %v5227_v41, %v4932_v4  ;;  %v4384_v50 = vsub.f32 %v4380_v1, %v6874_v7  ;;  %v7244_v41 = vadd.f32 %v7796_v22, %v7013_v40 }
0x1402   :  { %v4369_v3 = vsel %vm4368_vm2, %v5137_v42, %v4365_v5 }
0x1403   :  { %v4373_v10 = vmul.f32 %v4369_v3, %v7173_v54  ;;  %v4410_v29 = vpack.c.bf16 %v7199_v62, %v7194_v52  ;;  %v4388_v0 = vmul.f32 0.5, %v4384_v50 }
0x1405   :  { %v4377_v30 = vmul.f32 %v4373_v10, %v5808_v37  ;;  %4935 = vmatmul.msk.bf16.vlgmr.msrb.gmra.mxu2 %vm110_vm0, %v4410_v29  ;;  %v4392_v20 = vadd.f32 %v4388_v0, %v6874_v7  ;;  %v5228_v37 = vld [vmem:[%s7692_s0 + $0x70] sm:$0xff]  ;;  %v2278_v10 = vsel %vm110_vm0, %v7244_v41, 0.0  ;;  %v7797_v29 = vld [vmem:[#allocation20_spill] sm:$0xff] }
0x1406   :  { %v7254_v0 = vadd.f32 %v7797_v29, %v7013_v40 }
0x1407   :  { %v4381_v46 = vadd.f32 %v4377_v30, %v5811_v49  ;;  %vm4396_vm7 = vcmp.ge.f32.partialorder %v4392_v20, 0.5  ;;  %v5229_v49 = vld [vmem:[%s7692_s0 + $0x78] sm:$0xff]  ;;  %v7798_v30 = vld [vmem:[#allocation13_spill] sm:$0xff] }
0x1408   :  { %v4933_v54 = vsel %vm4396_vm7, 1.0, %v7743_v2  ;;  %v2281_v20 = vsel %vm110_vm0, %v7254_v0, 0.0 }
0x1409   :  { %v4385_v6 = vsub.f32 %v4381_v46, %v6879_v16  ;;  %v7216_v44 = vadd.f32 %v5228_v37, %v4933_v54  ;;  %v7258_v46 = vadd.f32 %v7798_v30, %v7013_v40  ;;  %v7800_v54 = vld [vmem:[#allocation12_spill] sm:$0xff] }
0x140b   :  { %v4389_v59 = vmul.f32 0.5, %v4385_v6  ;;  %v3046_v6 = vsel %vm110_vm0, %v7258_v46, 0.0 }
0x140d   :  { %v4393_v12 = vadd.f32 %v4389_v59, %v6879_v16  ;;  %v7799_v59 = vld [vmem:[#allocation24_spill] sm:$0xff] }
0x140f   :  { %vm4397_vm9 = vcmp.ge.f32.partialorder %v4393_v12, 0.5  ;;  %v7266_v12 = vadd.f32 %v7799_v59, %v7013_v40 }
0x1410   :  { %v4934_v47 = vsel %vm4397_vm9, 1.0, %v7743_v2 }
0x1411   :  { %v7221_v7 = vadd.f32 %v5229_v49, %v4934_v47  ;;  %v7270_v47 = vadd.f32 %v7800_v54, %v7013_v40  ;;  %v3049_v37 = vsel %vm110_vm0, %v7266_v12, 0.0 }
0x1413   :  { %v4411_v16 = vpack.c.bf16 %v7221_v7, %v7216_v44  ;;  %v3055_v49 = vsel %vm110_vm0, %v7270_v47, 0.0 }
0x1415   :  { %4936 = vmatmul.msk.bf16.gmra.mxu2 %vm110_vm0, %v4411_v16  ;;  %v7278_v16 = vadd.f32 %v7089_v33, %v7013_v40 }
0x1488   :  { %v4427_v31 = vpop.f32.mrf.mxu2 }
0x1489   :  { %v4428_v53 = vadd.f32 %v4427_v31, %v7765_v23  ;;  %v7282_v31 = vadd.f32 %v7140_v35, %v7013_v40 }
0x148b   :  { %4437 = vadd.xlane.f32.xlu1 %v4428_v53 }
0x1490   :  { %v4429_v39 = vpop.f32.mrf.mxu2 }
0x1491   :  { %v4430_v42 = vadd.f32 %v4429_v39, %v7765_v23  ;;  %v3826_v39 = vsel %vm110_vm0, %v7282_v31, 0.0 }
0x1493   :  { %4439 = vadd.xlane.f32.xlu2 %v4430_v42 }
0x1498   :  { %v4432_v58 = vpop.f32.mrf.mxu2 }
0x1499   :  { %v4433_v43 = vadd.f32 %v4432_v58, %v7765_v23 }
0x149b   :  { %4441 = vadd.xlane.f32.xlu1 %v4433_v43 }
0x14a0   :  { %v4434_v8 = vpop.f32.mrf.mxu2 }
0x14a1   :  { %v4435_v13 = vadd.f32 %v4434_v8, %v7765_v23 }
0x14a3   :  { %4443 = vadd.xlane.f32.xlu2 %v4435_v13 }
0x14fe   :  { %v4438_v14 = vpop.xlane.xlu1 %4437 }
0x14ff   :  { %v4445_v63 = vmul.f32 0.0078125, %v4438_v14 }
0x1501   :  { %v7230_v9 = vsub.f32 %v4428_v53, %v4445_v63  ;;  %v3820_v53 = vsel %vm110_vm0, %v7278_v16, 0.0 }
0x1503   :  { %v4453_v15 = vmul.f32 %v7230_v9, %v7230_v9 }
0x1505   :  { %4457 = vadd.xlane.f32.xlu1 %v4453_v15 }
0x1506   :  { %v4440_v18 = vpop.xlane.xlu2 %4439 }
0x1507   :  { %v4446_v38 = vmul.f32 0.0078125, %v4440_v18 }
0x1509   :  { %v7234_v34 = vsub.f32 %v4430_v42, %v4446_v38  ;;  %v7290_v42 = vadd.f32 %v7143_v61, %v7013_v40 }
0x150b   :  { %v4454_v25 = vmul.f32 %v7234_v34, %v7234_v34  ;;  %v3829_v33 = vsel %vm110_vm0, %v7290_v42, 0.0 }
0x150d   :  { %4459 = vadd.xlane.f32.xlu2 %v4454_v25 }
0x150e   :  { %v4442_v36 = vpop.xlane.xlu1 %4441 }
0x150f   :  { %v4447_v45 = vmul.f32 0.0078125, %v4442_v36 }
0x1511   :  { %v7238_v23 = vsub.f32 %v4433_v43, %v4447_v45 }
0x1513   :  { %v4455_v1 = vmul.f32 %v7238_v23, %v7238_v23 }
0x1515   :  { %4461 = vadd.xlane.f32.xlu1 %v4455_v1 }
0x1516   :  { %v4444_v4 = vpop.xlane.xlu2 %4443 }
0x1517   :  { %v4448_v5 = vmul.f32 0.0078125, %v4444_v4 }
0x1519   :  { %v7246_v50 = vsub.f32 %v4435_v13, %v4448_v5 }
0x151b   :  { %v4456_v3 = vmul.f32 %v7246_v50, %v7246_v50 }
0x151d   :  { %4463 = vadd.xlane.f32.xlu2 %v4456_v3  ;;  %2279 = vadd.xlane.f32.xlu1 %v2278_v10 }
0x1525   :  { %2282 = vadd.xlane.f32.xlu2 %v2281_v20  ;;  %3047 = vadd.xlane.f32.xlu1 %v3046_v6 }
0x152d   :  { %3050 = vadd.xlane.f32.xlu2 %v3049_v37  ;;  %3056 = vadd.xlane.f32.xlu1 %v3055_v49 }
0x1535   :  { %3821 = vadd.xlane.f32.xlu2 %v3820_v53  ;;  %3827 = vadd.xlane.f32.xlu1 %v3826_v39 }
0x153d   :  { %3830 = vadd.xlane.f32.xlu2 %v3829_v33 }
0x1578   :  { %v4458_v58 = vpop.xlane.xlu1 %4457 }
0x1579   :  { %v4465_v43 = vmul.f32 0.0078125, %v4458_v58 }
0x157b   :  { %v4469_v35 = vadd.f32 1e-05, %v4465_v43 }
0x157d   :  { %5138 = vrsqrt.f32 %v4469_v35  ;;  %vm4479_vm4 = vweird.f32 %v4469_v35 }
0x1580   :  { %v4460_v8 = vpop.xlane.xlu2 %4459 }
0x1581   :  { %v4466_v13 = vmul.f32 0.0078125, %v4460_v8 }
0x1583   :  { %v5139_v14 = vpop.eup %5138  ;;  %v4470_v63 = vadd.f32 1e-05, %v4466_v13 }
0x1584   :  { %v4474_v15 = vmul.f32 %v5139_v14, %v4469_v35  ;;  %vm4480_vm3 = vweird.f32 %v5139_v14 }
0x1585   :  { %5140 = vrsqrt.f32 %v4470_v63  ;;  %vm4481_vm10 = vmor %vm4479_vm4, %vm4480_vm3  ;;  %vm4489_vm13 = vweird.f32 %v4470_v63 }
0x1586   :  { %v4475_v18 = vmul.f32 %v5139_v14, %v4474_v15 }
0x1588   :  { %v4476_v38 = vmul.f32 0.5, %v4475_v18  ;;  %v4462_v25 = vpop.xlane.xlu1 %4461 }
0x1589   :  { %v4467_v36 = vmul.f32 0.0078125, %v4462_v25 }
0x158a   :  { %v4477_v61 = vsub.f32 1.5, %v4476_v38 }
0x158b   :  { %v5141_v45 = vpop.eup %5140  ;;  %v4471_v1 = vadd.f32 1e-05, %v4467_v36 }
0x158c   :  { %v4478_v4 = vmul.f32 %v5139_v14, %v4477_v61  ;;  %v4484_v5 = vmul.f32 %v5141_v45, %v4470_v63  ;;  %vm4490_vm11 = vweird.f32 %v5141_v45 }
0x158d   :  { %5142 = vrsqrt.f32 %v4471_v1  ;;  %vm4491_vm15 = vmor %vm4489_vm13, %vm4490_vm11  ;;  %vm4499_vm12 = vweird.f32 %v4471_v1 }
0x158e   :  { %v4482_v22 = vsel %vm4481_vm10, %v5139_v14, %v4478_v4  ;;  %v4485_v3 = vmul.f32 %v5141_v45, %v4484_v5 }
0x158f   :  { %v4513_v10 = vmul.f32 %v4482_v22, %v7230_v9 }
0x1590   :  { %v4486_v29 = vmul.f32 0.5, %v4485_v3  ;;  %v4464_v30 = vpop.xlane.xlu2 %4463 }
0x1591   :  { %v4517_v20 = vmul.f32 %v4513_v10, %v6022_v48  ;;  %v4468_v6 = vmul.f32 0.0078125, %v4464_v30 }
0x1592   :  { %v4487_v59 = vsub.f32 1.5, %v4486_v29 }
0x1593   :  { %v5143_v54 = vpop.eup %5142  ;;  %v4521_v37 = vadd.f32 %v4517_v20, %v6025_v17  ;;  %v4472_v49 = vadd.f32 1e-05, %v4468_v6 }
0x1594   :  { %v4488_v53 = vmul.f32 %v5141_v45, %v4487_v59  ;;  %v4494_v39 = vmul.f32 %v5143_v54, %v4471_v1  ;;  %vm4500_vm1 = vweird.f32 %v5143_v54  ;;  %v3790_v59 = vsel %vm3786_vm14, 0.0, %v7122_v19  ;;  %v2280_v19 = vpop.xlane.xlu1 %2279 }
0x1595   :  { %5144 = vrsqrt.f32 %v4472_v49  ;;  %v4525_v43 = vsub.f32 %v4521_v37, %v7047_v26  ;;  %vm4501_vm8 = vmor %vm4499_vm12, %vm4500_vm1  ;;  %vm4509_vm7 = vweird.f32 %v4472_v49 }
0x1596   :  { %v4492_v33 = vsel %vm4491_vm15, %v5141_v45, %v4488_v53  ;;  %v4495_v58 = vmul.f32 %v5143_v54, %v4494_v39  ;;  %v2277_v39 = vpop.xlane.xlu0 %2276 }
0x1597   :  { %v4514_v9 = vmul.f32 %v4492_v33, %v7234_v34  ;;  %v4529_v18 = vmul.f32 0.5, %v4525_v43  ;;  %v2287_v33 = vmul.f32 0.03125, %v2277_v39 }
0x1598   :  { %v4496_v35 = vmul.f32 0.5, %v4495_v58 }
0x1599   :  { %v4518_v8 = vmul.f32 %v4514_v9, %v6022_v48  ;;  %v4533_v4 = vadd.f32 %v4529_v18, %v7047_v26  ;;  %v7326_v9 = vsub.f32 %v7019_v11, %v2287_v33 }
0x159a   :  { %v4497_v13 = vsub.f32 1.5, %v4496_v35  ;;  %v2283_v35 = vpop.xlane.xlu2 %2282 }
0x159b   :  { %v5145_v14 = vpop.eup %5144  ;;  %v4522_v15 = vadd.f32 %v4518_v8, %v6025_v17  ;;  %vm4537_vm6 = vcmp.ge.f32.partialorder %v4533_v4, 0.5  ;;  %v2288_v8 = vmul.f32 0.03125, %v2280_v19 }
0x159c   :  { %v4498_v38 = vmul.f32 %v5143_v54, %v4497_v13  ;;  %v4504_v63 = vmul.f32 %v5145_v14, %v4472_v49  ;;  %vm4510_vm5 = vweird.f32 %v5145_v14  ;;  %v2295_v13 = vmul.f32 %v7326_v9, %v7326_v9 }
0x159d   :  { %v4526_v25 = vsub.f32 %v4522_v15, %v7051_v56  ;;  %vm4511_vm3 = vmor %vm4509_vm7, %vm4510_vm5  ;;  %v3048_v15 = vpop.xlane.xlu1 %3047 }
0x159e   :  { %v4502_v36 = vsel %vm4501_vm8, %v5143_v54, %v4498_v38  ;;  %v4505_v61 = vmul.f32 %v5145_v14, %v4504_v63  ;;  %v2286_v43 = vpop.xlane.xlu0 %2285  ;;  %v7336_v63 = vsub.f32 %v7244_v41, %v2288_v8 }
0x159f   :  { %v4515_v34 = vmul.f32 %v4502_v36, %v7238_v23  ;;  %v4530_v45 = vmul.f32 0.5, %v4526_v25  ;;  %v2299_v25 = vsel %vm110_vm0, %v2295_v13, 0.0 }
0x15a0   :  { %v4506_v5 = vmul.f32 0.5, %v4505_v61  ;;  %v2296_v4 = vmul.f32 %v7336_v63, %v7336_v63 }
0x15a1   :  { %v4534_v22 = vadd.f32 %v4530_v45, %v7051_v56  ;;  %v4519_v3 = vmul.f32 %v4515_v34, %v6022_v48  ;;  %v2289_v34 = vmul.f32 0.03125, %v2283_v35  ;;  %v3058_v45 = vmul.f32 0.03125, %v3048_v15 }
0x15a2   :  { %v4507_v10 = vsub.f32 1.5, %v4506_v5 }
0x15a3   :  { %vm4538_vm2 = vcmp.ge.f32.partialorder %v4534_v22, 0.5  ;;  %v4523_v1 = vadd.f32 %v4519_v3, %v6025_v17  ;;  %v3051_v22 = vpop.xlane.xlu2 %3050 }
0x15a4   :  { %v4508_v29 = vmul.f32 %v5145_v14, %v4507_v10  ;;  %vm4941_vm9 = vmpackc.low %vm4538_vm2, %vm4537_vm6 }
0x15a5   :  { %4942 = vmatmul.msk.bf16.vlgmr.msra.gmra.mxu1 %vm4941_vm9, %v7776_v32  ;;  %v4527_v30 = vsub.f32 %v4523_v1, %v7130_v24  ;;  %v3057_v1 = vpop.xlane.xlu1 %3056 }
0x15a6   :  { %v4512_v23 = vsel %vm4511_vm3, %v5145_v14, %v4508_v29  ;;  %v2290_v14 = vmul.f32 0.03125, %v2286_v43  ;;  %v3054_v61 = vpop.xlane.xlu0 %3053  ;;  %v7355_v29 = vsub.f32 %v7258_v46, %v3058_v45 }
0x15a7   :  { %v4516_v26 = vmul.f32 %v4512_v23, %v7246_v50  ;;  %v4531_v6 = vmul.f32 0.5, %v4527_v30  ;;  %v3060_v5 = vmul.f32 0.03125, %v3054_v61 }
0x15a8   :  { %v7342_v36 = vsub.f32 %v7025_v57, %v2290_v14  ;;  %v7352_v57 = vsub.f32 %v7254_v0, %v2289_v34  ;;  %v3061_v0 = vmul.f32 0.03125, %v3057_v1 }
0x15a9   :  { %v4520_v56 = vmul.f32 %v4516_v26, %v6022_v48  ;;  %v4535_v49 = vadd.f32 %v4531_v6, %v7130_v24  ;;  %v2302_v26 = vsel %vm110_vm0, %v2296_v4, 0.0  ;;  %v7361_v30 = vsub.f32 %v7031_v51, %v3060_v5 }
0x15aa   :  { %v2298_v3 = vmul.f32 %v7342_v36, %v7342_v36  ;;  %v2297_v46 = vmul.f32 %v7352_v57, %v7352_v57  ;;  %v3066_v6 = vmul.f32 %v7355_v29, %v7355_v29 }
0x15ab   :  { %v4524_v20 = vadd.f32 %v4520_v56, %v6025_v17  ;;  %vm4539_vm4 = vcmp.ge.f32.partialorder %v4535_v49, 0.5  ;;  %v3822_v51 = vpop.xlane.xlu2 %3821  ;;  %v7374_v49 = vsub.f32 %v7270_v47, %v3061_v0 }
0x15ac   :  { %v3832_v33 = vmul.f32 0.03125, %v3822_v51 }
0x15ad   :  { %v4528_v54 = vsub.f32 %v4524_v20, %v3790_v59  ;;  %v3059_v20 = vmul.f32 0.03125, %v3051_v22  ;;  %v3069_v47 = vmul.f32 %v7374_v49, %v7374_v49 }
0x15ae   :  { %v3825_v56 = vpop.xlane.xlu0 %3824 }
0x15af   :  { %v4532_v37 = vmul.f32 0.5, %v4528_v54  ;;  %v3068_v54 = vmul.f32 %v7361_v30, %v7361_v30  ;;  %v3079_v8 = vsel %vm110_vm0, %v3069_v47, 0.0 }
0x15b1   :  { %v4536_v53 = vadd.f32 %v4532_v37, %v3790_v59  ;;  %v3833_v59 = vmul.f32 0.03125, %v3825_v56  ;;  %v7371_v37 = vsub.f32 %v7266_v12, %v3059_v20  ;;  %v3076_v19 = vsel %vm110_vm0, %v3068_v54, 0.0 }
0x15b3   :  { %vm4540_vm10 = vcmp.ge.f32.partialorder %v4536_v53, 0.5  ;;  %v2305_v53 = vsel %vm110_vm0, %v2297_v46, 0.0  ;;  %v7379_v39 = vsub.f32 %v7092_v21, %v3833_v59  ;;  %v3067_v12 = vmul.f32 %v7371_v37, %v7371_v37  ;;  %v3831_v13 = vpop.xlane.xlu2 %3830 }
0x15b4   :  { %vm4943_vm11 = vmpackc.low %vm4540_vm10, %vm4539_vm4  ;;  %v7389_v21 = vsub.f32 %v7278_v16, %v3832_v33  ;;  %v3835_v15 = vmul.f32 0.03125, %v3831_v13 }
0x15b5   :  { %4944 = vmatmul.msk.bf16.gmra.mxu1 %vm4943_vm11, %v7776_v32  ;;  %v3841_v43 = vmul.f32 %v7379_v39, %v7379_v39  ;;  %v3073_v35 = vsel %vm110_vm0, %v3067_v12, 0.0 }
0x15b7   :  { %v3847_v14 = vsel %vm110_vm0, %v3841_v43, 0.0 }
0x1622   :  { %v4560_v50 = vpop.f32.mrf.mxu1 }
0x1623   :  { %v7318_v48 = vadd.f32 %v4560_v50, %v7013_v40  ;;  %v3070_v50 = vsel %vm110_vm0, %v3066_v6, 0.0 }
0x1625   :  { %v4570_v17 = vsel %vm110_vm0, %v7318_v48, 0.0 }
0x1626   :  { %4571 = vadd.xlane.f32.xlu0 %v4570_v17  ;;  %v3828_v17 = vpop.xlane.xlu1 %3827 }
0x162a   :  { %v4562_v58 = vpop.f32.mrf.mxu1 }
0x162b   :  { %v7323_v24 = vadd.f32 %v4562_v58, %v7013_v40  ;;  %v3834_v58 = vmul.f32 0.03125, %v3828_v17 }
0x162d   :  { %v4573_v32 = vsel %vm110_vm0, %v7323_v24, 0.0 }
0x162e   :  { %4574 = vadd.xlane.f32.xlu1 %v4573_v32  ;;  %v7392_v32 = vsub.f32 %v7282_v31, %v3834_v58  ;;  %v7402_v31 = vsub.f32 %v7290_v42, %v3835_v15 }
0x1630   :  { %v3842_v16 = vmul.f32 %v7392_v32, %v7392_v32  ;;  %v3843_v61 = vmul.f32 %v7402_v31, %v7402_v31 }
0x1632   :  { %v4565_v18 = vpop.f32.mrf.mxu1  ;;  %v3853_v34 = vsel %vm110_vm0, %v3843_v61, 0.0 }
0x1633   :  { %v7333_v38 = vadd.f32 %v4565_v18, %v7013_v40  ;;  %v3840_v18 = vmul.f32 %v7389_v21, %v7389_v21 }
0x1635   :  { %v4576_v11 = vsel %vm110_vm0, %v7333_v38, 0.0 }
0x1636   :  { %4577 = vadd.xlane.f32.xlu2 %v4576_v11  ;;  %2300 = vadd.xlane.f32.xlu1 %v2299_v25  ;;  %v3844_v11 = vsel %vm110_vm0, %v3840_v18, 0.0  ;;  %v3850_v25 = vsel %vm110_vm0, %v3842_v16, 0.0 }
0x163a   :  { %v4567_v41 = vpop.f32.mrf.mxu1 }
0x163b   :  { %v7349_v10 = vadd.f32 %v4567_v41, %v7013_v40  ;;  %v2308_v40 = vsel %vm110_vm0, %v2298_v3, 0.0 }
0x163d   :  { %v4579_v23 = vsel %vm110_vm0, %v7349_v10, 0.0 }
0x163e   :  { %4580 = vadd.xlane.f32.xlu0 %v4579_v23  ;;  %2303 = vadd.xlane.f32.xlu2 %v2302_v26 }
0x163f   :  { %2309 = vadd.xlane.f32.xlu1 %v2308_v40 }
0x1646   :  { %2306 = vadd.xlane.f32.xlu0 %v2305_v53  ;;  %3071 = vadd.xlane.f32.xlu2 %v3070_v50 }
0x1647   :  { %3077 = vadd.xlane.f32.xlu1 %v3076_v19 }
0x164e   :  { %3074 = vadd.xlane.f32.xlu0 %v3073_v35  ;;  %3080 = vadd.xlane.f32.xlu2 %v3079_v8 }
0x164f   :  { %3848 = vadd.xlane.f32.xlu1 %v3847_v14 }
0x1656   :  { %3845 = vadd.xlane.f32.xlu0 %v3844_v11  ;;  %3851 = vadd.xlane.f32.xlu2 %v3850_v25 }
0x165e   :  { %3854 = vadd.xlane.f32.xlu0 %v3853_v34 }
0x1699   :  { %v4572_v45 = vpop.xlane.xlu0 %4571 }
0x169a   :  { %v4582_v4 = vmul.f32 0.03125, %v4572_v45 }
0x169c   :  { %v7410_v5 = vsub.f32 %v7318_v48, %v4582_v4 }
0x169e   :  { %v4590_v42 = vmul.f32 %v7410_v5, %v7410_v5 }
0x16a0   :  { %v4594_v22 = vsel %vm110_vm0, %v4590_v42, 0.0 }
0x16a1   :  { %v4575_v41 = vpop.xlane.xlu1 %4574  ;;  %4595 = vadd.xlane.f32.xlu1 %v4594_v22 }
0x16a2   :  { %v4583_v3 = vmul.f32 0.03125, %v4575_v41  ;;  %v5230_v41 = vld [vmem:[%s7701_s9] sm:$0x7]  ;;  %s5261_s9 = smov [#allocation2]  }
0x16a3   :  { %s4703_s12 = sshll.u32 %s5261_s9, 4  ;;  %s4704_s12 = int_to_ptr.vmem [resolvable:$true] %s4703_s12 }
0x16a4   :  { %v7416_v1 = vsub.f32 %v7323_v24, %v4583_v3  ;;  %v7445_v3 = vperm.slane %v5230_v41, 1 }
0x16a6   :  { %v4591_v23 = vmul.f32 %v7416_v1, %v7416_v1 }
0x16a8   :  { %v4597_v26 = vsel %vm110_vm0, %v4591_v23, 0.0 }
0x16a9   :  { %v4578_v40 = vpop.xlane.xlu2 %4577  ;;  %4598 = vadd.xlane.f32.xlu2 %v4597_v26  ;;  %v2301_v48 = vpop.xlane.xlu1 %2300 }
0x16aa   :  { %v4584_v56 = vmul.f32 0.03125, %v4578_v40  ;;  %v2311_v20 = vmul.f32 0.03125, %v2301_v48  ;;  %v7450_v48 = vperm.slane %v5230_v41, 2 }
0x16ac   :  { %v7422_v0 = vsub.f32 %v7333_v38, %v4584_v56  ;;  %v2315_v46 = vadd.f32 1e-05, %v2311_v20 }
0x16ae   :  { %5146 = vrsqrt.f32 %v2315_v46  ;;  %v4592_v6 = vmul.f32 %v7422_v0, %v7422_v0  ;;  %vm2325_vm13 = vweird.f32 %v2315_v46 }
0x16b0   :  { %v4600_v24 = vsel %vm110_vm0, %v4592_v6, 0.0 }
0x16b1   :  { %4601 = vadd.xlane.f32.xlu0 %v4600_v24  ;;  %v2304_v59 = vpop.xlane.xlu2 %2303  ;;  %v4581_v54 = vpop.xlane.xlu0 %4580 }
0x16b2   :  { %v2312_v51 = vmul.f32 0.03125, %v2304_v59  ;;  %v2310_v53 = vpop.xlane.xlu1 %2309  ;;  %v4585_v50 = vmul.f32 0.03125, %v4581_v54 }
0x16b3   :  { %v2314_v17 = vmul.f32 0.03125, %v2310_v53 }
0x16b4   :  { %v5147_v19 = vpop.eup %5146  ;;  %v2316_v33 = vadd.f32 1e-05, %v2312_v51  ;;  %v7428_v58 = vsub.f32 %v7349_v10, %v4585_v50 }
0x16b5   :  { %v2320_v38 = vmul.f32 %v5147_v19, %v2315_v46  ;;  %v7430_v12 = vadd.f32 1e-05, %v2314_v17  ;;  %vm2326_vm14 = vweird.f32 %v5147_v19 }
0x16b6   :  { %5148 = vrsqrt.f32 %v2316_v33  ;;  %v4593_v47 = vmul.f32 %v7428_v58, %v7428_v58  ;;  %vm2327_vm15 = vmor %vm2325_vm13, %vm2326_vm14  ;;  %vm2335_vm12 = vweird.f32 %v2316_v33 }
0x16b7   :  { %v2321_v43 = vmul.f32 %v5147_v19, %v2320_v38  ;;  %5150 = vrsqrt.f32 %v7430_v12  ;;  %vm2355_vm5 = vweird.f32 %v7430_v12 }
0x16b8   :  { %v4603_v35 = vsel %vm110_vm0, %v4593_v47, 0.0 }
0x16b9   :  { %v2322_v8 = vmul.f32 0.5, %v2321_v43  ;;  %v3072_v13 = vpop.xlane.xlu2 %3071  ;;  %4604 = vadd.xlane.f32.xlu1 %v4603_v35  ;;  %v2307_v14 = vpop.xlane.xlu0 %2306 }
0x16ba   :  { %v3082_v15 = vmul.f32 0.03125, %v3072_v13  ;;  %v3078_v18 = vpop.xlane.xlu1 %3077  ;;  %v2313_v10 = vmul.f32 0.03125, %v2307_v14 }
0x16bb   :  { %v2323_v16 = vsub.f32 1.5, %v2322_v8  ;;  %v3084_v11 = vmul.f32 0.03125, %v3078_v18 }
0x16bc   :  { %v5149_v25 = vpop.eup %5148  ;;  %v7436_v61 = vadd.f32 1e-05, %v3082_v15  ;;  %v7438_v34 = vadd.f32 1e-05, %v2313_v10 }
0x16bd   :  { %v5151_v45 = vpop.eup %5150  ;;  %v2324_v4 = vmul.f32 %v5147_v19, %v2323_v16  ;;  %v2330_v42 = vmul.f32 %v5149_v25, %v2316_v33  ;;  %v7440_v22 = vadd.f32 1e-05, %v3084_v11  ;;  %vm2336_vm1 = vweird.f32 %v5149_v25 }
0x16be   :  { %v2350_v23 = vmul.f32 %v5151_v45, %v7430_v12  ;;  %5152 = vrsqrt.f32 %v7436_v61  ;;  %vm2356_vm8 = vweird.f32 %v5151_v45  ;;  %vm2337_vm6 = vmor %vm2335_vm12, %vm2336_vm1  ;;  %vm3096_vm4 = vweird.f32 %v7436_v61 }
0x16bf   :  { %v2328_v26 = vsel %vm2327_vm15, %v5147_v19, %v2324_v4  ;;  %v2331_v40 = vmul.f32 %v5149_v25, %v2330_v42  ;;  %5154 = vrsqrt.f32 %v7440_v22  ;;  %vm2357_vm2 = vmor %vm2355_vm5, %vm2356_vm8  ;;  %vm3116_vm11 = vweird.f32 %v7440_v22 }
0x16c0   :  { %v2359_v56 = vmul.f32 %v2328_v26, %v7326_v9  ;;  %v2351_v20 = vmul.f32 %v5151_v45, %v2350_v23  ;;  %5156 = vrsqrt.f32 %v7438_v34  ;;  %vm2345_vm12 = vweird.f32 %v7438_v34 }
0x16c1   :  { %v2332_v46 = vmul.f32 0.5, %v2331_v40  ;;  %v3081_v6 = vpop.xlane.xlu2 %3080  ;;  %v3075_v24 = vpop.xlane.xlu0 %3074 }
0x16c2   :  { %v2364_v59 = vmul.f32 %v7445_v3, %v2359_v56  ;;  %v2352_v54 = vmul.f32 0.5, %v2351_v20  ;;  %v3085_v51 = vmul.f32 0.03125, %v3081_v6  ;;  %v3849_v53 = vpop.xlane.xlu1 %3848  ;;  %v3083_v50 = vmul.f32 0.03125, %v3075_v24  ;;  %v7801_v56 = vld [vmem:[#allocation7_spill] sm:$0xff] }
0x16c3   :  { %v2333_v17 = vsub.f32 1.5, %v2332_v46  ;;  %v3857_v19 = vmul.f32 0.03125, %v3849_v53 }
0x16c4   :  { %v5153_v38 = vpop.eup %5152  ;;  %v2369_v47 = vadd.f32 %v7450_v48, %v2364_v59  ;;  %v2353_v9 = vsub.f32 1.5, %v2352_v54  ;;  %v7458_v13 = vadd.f32 1e-05, %v3085_v51  ;;  %v7465_v16 = vadd.f32 1e-05, %v3083_v50 }
0x16c5   :  { %v5155_v43 = vpop.eup %5154  ;;  %v2334_v35 = vmul.f32 %v5149_v25, %v2333_v17  ;;  %v3091_v8 = vmul.f32 %v5153_v38, %v7436_v61  ;;  %v7469_v4 = vadd.f32 1e-05, %v3857_v19  ;;  %vm3097_vm9 = vweird.f32 %v5153_v38 }
0x16c6   :  { %v7460_v14 = vpop.eup %5156  ;;  %v7462_v15 = vmul.f32 0.5, %v2369_v47  ;;  %v2354_v18 = vmul.f32 %v5151_v45, %v2353_v9  ;;  %v3111_v10 = vmul.f32 %v5155_v43, %v7440_v22  ;;  %vm3117_vm3 = vweird.f32 %v5155_v43  ;;  %vm3098_vm10 = vmor %vm3096_vm4, %vm3097_vm9 }
0x16c7   :  { %v2338_v33 = vsel %vm2337_vm6, %v5149_v25, %v2334_v35  ;;  %v3092_v11 = vmul.f32 %v5153_v38, %v3091_v8  ;;  %v2340_v12 = vmul.f32 %v7460_v14, %v7438_v34  ;;  %5158 = vrsqrt.f32 %v7458_v13  ;;  %vm3118_vm14 = vmor %vm3116_vm11, %vm3117_vm3 }
0x16c8   :  { %vm2381_vm7 = vcmp.ge.f32.partialorder %v7462_v15, 0.5  ;;  %v2360_v42 = vmul.f32 %v2338_v33, %v7336_v63  ;;  %v2358_v41 = vsel %vm2357_vm2, %v5151_v45, %v2354_v18  ;;  %v3112_v23 = vmul.f32 %v5155_v43, %v3111_v10 }
0x16c9   :  { %v4819_v26 = vsel %vm2381_vm7, 1.0, %v7743_v2  ;;  %v2362_v40 = vmul.f32 %v2358_v41, %v7342_v36  ;;  %v3093_v25 = vmul.f32 0.5, %v3092_v11  ;;  %v2341_v24 = vmul.f32 %v7460_v14, %v2340_v12  ;;  %v3846_v47 = vpop.xlane.xlu0 %3845  ;;  %v3852_v8 = vpop.xlane.xlu2 %3851  ;;  %v7802_v12 = vld [vmem:[#allocation8_spill] sm:$0xff] }
0x16ca   :  { %v2397_v20 = vadd.f32 %v4819_v26, %v7801_v56  ;;  %v2365_v46 = vmul.f32 %v7445_v3, %v2360_v42  ;;  %v3113_v6 = vmul.f32 0.5, %v3112_v23  ;;  %5160 = vrsqrt.f32 %v7469_v4  ;;  %v7803_v26 = vld [vmem:[#allocation10_spill] sm:$0xff] }
0x16cb   :  { %v2367_v59 = vmul.f32 %v7445_v3, %v2362_v40  ;;  %v3094_v63 = vsub.f32 1.5, %v3093_v25  ;;  %v2342_v54 = vmul.f32 0.5, %v2341_v24  ;;  %5162 = vrsqrt.f32 %v7465_v16 }
0x16cc   :  { %2401 = vst.msk [vmem:[#allocation2] sm:$0xff] %vm110_vm0, %v2397_v20  ;;  %v2370_v45 = vadd.f32 %v7450_v48, %v2365_v46  ;;  %v3114_v36 = vsub.f32 1.5, %v3113_v6  ;;  %vm2346_vm13 = vweird.f32 %v7460_v14  ;;  %v3858_v41 = vmul.f32 0.03125, %v3852_v8 }
0x16cd   :  { %v2372_v51 = vadd.f32 %v7450_v48, %v2367_v59  ;;  %v3095_v53 = vmul.f32 %v5153_v38, %v3094_v63  ;;  %v2343_v19 = vsub.f32 1.5, %v2342_v54  ;;  %v7499_v33 = vpop.eup %5158  ;;  %vm2347_vm8 = vmor %vm2345_vm12, %vm2346_vm13  ;;  %v3856_v25 = vmul.f32 0.03125, %v3846_v47 }
0x16ce   :  { %v7488_v50 = vmul.f32 0.5, %v2370_v45  ;;  %v3115_v17 = vmul.f32 %v5155_v43, %v3114_v36  ;;  %v3121_v40 = vmul.f32 %v7499_v33, %v7458_v13  ;;  %v2385_v56 = vsel %vm2381_vm7, 0.0, %v7462_v15 }
0x16cf   :  { %v7492_v9 = vmul.f32 0.5, %v2372_v51  ;;  %v3099_v35 = vsel %vm3098_vm10, %v5153_v38, %v3095_v53  ;;  %v2344_v10 = vmul.f32 %v7460_v14, %v2343_v19  ;;  %vm3126_vm5 = vweird.f32 %v7458_v13 }
0x16d0   :  { %vm2382_vm15 = vcmp.ge.f32.partialorder %v7488_v50, 0.5  ;;  %v3130_v61 = vmul.f32 %v3099_v35, %v7355_v29  ;;  %v3119_v18 = vsel %vm3118_vm14, %v5155_v43, %v3115_v17  ;;  %v7507_v11 = vpop.eup %5160  ;;  %v3122_v24 = vmul.f32 %v7499_v33, %v3121_v40 }
0x16d1   :  { %v4820_v22 = vsel %vm2382_vm15, 1.0, %v7743_v2  ;;  %vm2384_vm1 = vcmp.ge.f32.partialorder %v7492_v9, 0.5  ;;  %v3132_v38 = vmul.f32 %v3119_v18, %v7361_v30  ;;  %v7516_v23 = vpop.eup %5162  ;;  %v2348_v34 = vsel %vm2347_vm8, %v7460_v14, %v2344_v10  ;;  %v3855_v47 = vpop.xlane.xlu0 %3854 }
0x16d2   :  { %v2398_v42 = vadd.f32 %v4820_v22, %v7802_v12  ;;  %v4822_v29 = vsel %vm2384_vm1, 1.0, %v7743_v2  ;;  %v3134_v43 = vmul.f32 %v3130_v61, %v7445_v3  ;;  %v2361_v46 = vmul.f32 %v2348_v34, %v7352_v57  ;;  %v7804_v34 = vld [vmem:[#allocation9_spill] sm:$0xff] }
0x16d3   :  { %v2400_v30 = vadd.f32 %v4822_v29, %v7803_v26  ;;  %v3875_v6 = vmul.f32 %v7507_v11, %v7469_v4  ;;  %v3136_v14 = vmul.f32 %v3132_v38, %v7445_v3  ;;  %v3101_v15 = vmul.f32 %v7516_v23, %v7465_v16 }
0x16d4   :  { %2402 = vst.msk [vmem:[#allocation2 + $0x8] sm:$0xff] %vm110_vm0, %v2398_v42  ;;  %v3138_v20 = vadd.f32 %v3134_v43, %v7450_v48  ;;  %v2366_v63 = vmul.f32 %v7445_v3, %v2361_v46  ;;  %vm3106_vm6 = vweird.f32 %v7465_v16  ;;  %v3123_v57 = vmul.f32 0.5, %v3122_v24 }
0x16d5   :  { %2404 = vst.msk [vmem:[#allocation2 + $0x48] sm:$0xff] %vm110_vm0, %v2400_v30  ;;  %v3876_v45 = vmul.f32 %v7507_v11, %v3875_v6  ;;  %v3102_v36 = vmul.f32 %v7516_v23, %v3101_v15  ;;  %v7540_v54 = vadd.f32 1e-05, %v3858_v41  ;;  %v7542_v51 = vadd.f32 1e-05, %v3856_v25  ;;  %v7807_v15 = vld [vmem:[#allocation27_spill] sm:$0xff] }
0x16d6   :  { %v3142_v59 = vsub.f32 %v3138_v20, %v2385_v56  ;;  %v2371_v17 = vadd.f32 %v7450_v48, %v2366_v63  ;;  %vm3127_vm2 = vweird.f32 %v7499_v33  ;;  %v3140_v35 = vadd.f32 %v3136_v14, %v7450_v48 }
0x16d7   :  { %v3877_v19 = vmul.f32 0.5, %v3876_v45  ;;  %v3124_v8 = vsub.f32 1.5, %v3123_v57  ;;  %v3103_v61 = vmul.f32 0.5, %v3102_v36  ;;  %5164 = vrsqrt.f32 %v7540_v54  ;;  %vm3128_vm3 = vmor %vm3126_vm5, %vm3127_vm2 }
0x16d8   :  { %v3146_v53 = vmul.f32 0.5, %v3142_v59  ;;  %v2375_v10 = vmul.f32 0.5, %v2371_v17  ;;  %5166 = vrsqrt.f32 %v7542_v51  ;;  %vm3107_vm7 = vweird.f32 %v7516_v23 }
0x16d9   :  { %v3878_v22 = vsub.f32 1.5, %v3877_v19  ;;  %v3125_v38 = vmul.f32 %v7499_v33, %v3124_v8  ;;  %v3104_v12 = vsub.f32 1.5, %v3103_v61  ;;  %v3859_v42 = vmul.f32 0.03125, %v3855_v47  ;;  %vm3108_vm11 = vmor %vm3106_vm6, %vm3107_vm7 }
0x16da   :  { %v7548_v18 = vadd.f32 %v3146_v53, %v2385_v56  ;;  %vm2383_vm9 = vcmp.ge.f32.partialorder %v2375_v10, 0.5  ;;  %vm3881_vm4 = vweird.f32 %v7507_v11  ;;  %vm3880_vm14 = vweird.f32 %v7469_v4 }
0x16db   :  { %v3879_v29 = vmul.f32 %v7507_v11, %v3878_v22  ;;  %v2387_v43 = vsel %vm2383_vm9, 0.0, %v2375_v10  ;;  %v4821_v41 = vsel %vm2383_vm9, 1.0, %v7743_v2  ;;  %v3129_v26 = vsel %vm3128_vm3, %v7499_v33, %v3125_v38  ;;  %vm7578_vm13 = vmor %vm3880_vm14, %vm3881_vm4 }
0x16dc   :  { %vm3154_vm10 = vcmp.ge.f32.partialorder %v7548_v18, 0.5  ;;  %v3105_v30 = vmul.f32 %v7516_v23, %v3104_v12  ;;  %v2399_v40 = vadd.f32 %v4821_v41, %v7804_v34  ;;  %v3144_v25 = vsub.f32 %v3140_v35, %v2387_v43 }
0x16dd   :  { %v3133_v56 = vmul.f32 %v3129_v26, %v7374_v49  ;;  %v5165_v13 = vpop.eup %5164  ;;  %v4861_v46 = vsel %vm3154_vm10, 1.0, %v7743_v2  ;;  %v7572_v33 = vadd.f32 1e-05, %v3859_v42  ;;  %v3883_v24 = vsel %vm7578_vm13, %v7507_v11, %v3879_v29 }
0x16de   :  { %v3109_v20 = vsel %vm3108_vm11, %v7516_v23, %v3105_v30  ;;  %v5167_v6 = vpop.eup %5166  ;;  %2403 = vst.msk [vmem:[#allocation2 + $0x40] sm:$0xff] %vm110_vm0, %v2399_v40  ;;  %v3148_v14 = vmul.f32 0.5, %v3144_v25  ;;  %v3885_v23 = vmul.f32 %v5165_v13, %v7540_v54  ;;  %v3170_v59 = vadd.f32 %v4861_v46, %v7807_v15  ;;  %v7810_v15 = vld [vmem:[#allocation28_spill] sm:$0xff] }
0x16df   :  { %v3137_v49 = vmul.f32 %v3133_v56, %v7445_v3  ;;  %v3131_v4 = vmul.f32 %v3109_v20, %v7371_v37  ;;  %v3865_v63 = vmul.f32 %v5167_v6, %v7542_v51  ;;  %v2386_v37 = vsel %vm2382_vm15, 0.0, %v7488_v50 }
0x16e0   :  { %v3152_v45 = vadd.f32 %v3148_v14, %v2387_v43  ;;  %v3886_v53 = vmul.f32 %v5165_v13, %v3885_v23  ;;  %v2388_v17 = vsel %vm2384_vm1, 0.0, %v7492_v9  ;;  %3175 = vst.msk [vmem:[#allocation2 + $0x10] sm:$0xff] %vm110_vm0, %v3170_v59  ;;  %5168 = vrsqrt.f32 %v7572_v33  ;;  %v7808_v9 = vld [vmem:[#allocation29_spill] sm:$0xff]  ;;  %v7809_v14 = vld [vmem:[#allocation30_spill] sm:$0xff] }
0x16e1   :  { %v3141_v57 = vadd.f32 %v3137_v49, %v7450_v48  ;;  %v3135_v36 = vmul.f32 %v3131_v4, %v7445_v3  ;;  %v3866_v11 = vmul.f32 %v5167_v6, %v3865_v63  ;;  %v3905_v8 = vmul.f32 %v3883_v24, %v7379_v39 }
0x16e2   :  { %vm3156_vm12 = vcmp.ge.f32.partialorder %v3152_v45, 0.5  ;;  %v3887_v35 = vmul.f32 0.5, %v3886_v53  ;;  %vm3891_vm15 = vweird.f32 %v5165_v13  ;;  %vm3871_vm1 = vweird.f32 %v5167_v6 }
0x16e3   :  { %v3145_v19 = vsub.f32 %v3141_v57, %v2388_v17  ;;  %v3139_v47 = vadd.f32 %v3135_v36, %v7450_v48  ;;  %v4863_v61 = vsel %vm3156_vm12, 1.0, %v7743_v2  ;;  %v3867_v50 = vmul.f32 0.5, %v3866_v11 }
0x16e4   :  { %v3172_v38 = vadd.f32 %v4863_v61, %v7808_v9  ;;  %v3888_v12 = vsub.f32 1.5, %v3887_v35  ;;  %vm3890_vm8 = vweird.f32 %v7540_v54  ;;  %v3909_v26 = vmul.f32 %v3905_v8, %v7445_v3 }
0x16e5   :  { %v3149_v10 = vmul.f32 0.5, %v3145_v19  ;;  %v3143_v22 = vsub.f32 %v3139_v47, %v2386_v37  ;;  %v3868_v42 = vsub.f32 1.5, %v3867_v50  ;;  %vm3892_vm5 = vmor %vm3890_vm8, %vm3891_vm15  ;;  %vm3870_vm6 = vweird.f32 %v7542_v51 }
0x16e6   :  { %3177 = vst.msk [vmem:[#allocation2 + $0x50] sm:$0xff] %vm110_vm0, %v3172_v38  ;;  %v3889_v41 = vmul.f32 %v5165_v13, %v3888_v12  ;;  %v5169_v39 = vpop.eup %5168  ;;  %vm3872_vm2 = vmor %vm3870_vm6, %vm3871_vm1  ;;  %v3913_v51 = vadd.f32 %v3909_v26, %v7450_v48  ;;  %v3160_v63 = vsel %vm3156_vm12, 0.0, %v3152_v45  ;;  %vm3900_vm4 = vweird.f32 %v7572_v33 }
0x16e7   :  { %v7604_v29 = vadd.f32 %v3149_v10, %v2388_v17  ;;  %v3147_v43 = vmul.f32 0.5, %v3143_v22  ;;  %v3869_v30 = vmul.f32 %v5167_v6, %v3868_v42  ;;  %v3895_v25 = vmul.f32 %v5169_v39, %v7572_v33 }
0x16e8   :  { %v3893_v40 = vsel %vm3892_vm5, %v5165_v13, %v3889_v41  ;;  %vm3901_vm3 = vweird.f32 %v5169_v39 }
0x16e9   :  { %v3151_v34 = vadd.f32 %v3147_v43, %v2386_v37  ;;  %vm3157_vm7 = vcmp.ge.f32.partialorder %v7604_v29, 0.5  ;;  %v3906_v56 = vmul.f32 %v3893_v40, %v7392_v32  ;;  %v3873_v20 = vsel %vm3872_vm2, %v5167_v6, %v3869_v30  ;;  %vm3902_vm11 = vmor %vm3900_vm4, %vm3901_vm3 }
0x16ea   :  { %v4864_v54 = vsel %vm3157_vm7, 1.0, %v7743_v2  ;;  %v3904_v46 = vmul.f32 %v3873_v20, %v7389_v21  ;;  %v3896_v16 = vmul.f32 %v5169_v39, %v3895_v25  ;;  %v3158_v37 = vsel %vm3154_vm10, 0.0, %v7548_v18 }
0x16eb   :  { %v3173_v49 = vadd.f32 %v4864_v54, %v7809_v14  ;;  %v3910_v13 = vmul.f32 %v3906_v56, %v7445_v3  ;;  %vm3155_vm9 = vcmp.ge.f32.partialorder %v3151_v34, 0.5  ;;  %v3161_v41 = vsel %vm3157_vm7, 0.0, %v7604_v29 }
0x16ec   :  { %v3908_v4 = vmul.f32 %v3904_v46, %v7445_v3  ;;  %v3897_v32 = vmul.f32 0.5, %v3896_v16  ;;  %v3159_v6 = vsel %vm3155_vm9, 0.0, %v3151_v34  ;;  %v4862_v23 = vsel %vm3155_vm9, 1.0, %v7743_v2 }
0x16ed   :  { %3178 = vst.msk [vmem:[#allocation2 + $0x58] sm:$0xff] %vm110_vm0, %v3173_v49  ;;  %v3914_v24 = vadd.f32 %v3910_v13, %v7450_v48  ;;  %v3171_v21 = vadd.f32 %v4862_v23, %v7810_v15  ;;  %v3917_v59 = vsub.f32 %v3913_v51, %v3159_v6 }
0x16ee   :  { %v3912_v57 = vadd.f32 %v3908_v4, %v7450_v48  ;;  %v3898_v36 = vsub.f32 1.5, %v3897_v32 }
0x16ef   :  { %v3918_v53 = vsub.f32 %v3914_v24, %v3160_v63  ;;  %3176 = vst.msk [vmem:[#allocation2 + $0x18] sm:$0xff] %vm110_vm0, %v3171_v21  ;;  %v3921_v17 = vmul.f32 0.5, %v3917_v59 }
0x16f0   :  { %v3916_v11 = vsub.f32 %v3912_v57, %v3158_v37  ;;  %v3899_v19 = vmul.f32 %v5169_v39, %v3898_v36 }
0x16f1   :  { %v3922_v47 = vmul.f32 0.5, %v3918_v53  ;;  %v3925_v35 = vadd.f32 %v3921_v17, %v3159_v6 }
0x16f2   :  { %v3920_v45 = vmul.f32 0.5, %v3916_v11  ;;  %v3903_v8 = vsel %vm3902_vm11, %v5169_v39, %v3899_v19 }
0x16f3   :  { %v3926_v61 = vadd.f32 %v3922_v47, %v3160_v63  ;;  %v3907_v50 = vmul.f32 %v3903_v8, %v7402_v31  ;;  %vm3929_vm14 = vcmp.ge.f32.partialorder %v3925_v35, 0.5 }
0x16f4   :  { %v3924_v10 = vadd.f32 %v3920_v45, %v3158_v37  ;;  %v7634_v22 = vsel %vm3929_vm14, 0.0, %v3925_v35  ;;  %v4904_v18 = vsel %vm3929_vm14, 1.0, %v7743_v2 }
0x16f5   :  { %v3911_v9 = vmul.f32 %v3907_v50, %v7445_v3  ;;  %v3945_v38 = vadd.f32 %v4904_v18, %v6860_v55  ;;  %vm3930_vm10 = vcmp.ge.f32.partialorder %v3926_v61, 0.5 }
0x16f6   :  { %vm3928_vm13 = vcmp.ge.f32.partialorder %v3924_v10, 0.5  ;;  %v7639_v33 = vsel %vm3930_vm10, 0.0, %v3926_v61  ;;  %v4905_v12 = vsel %vm3930_vm10, 1.0, %v7743_v2 }
0x16f7   :  { %v3915_v42 = vadd.f32 %v3911_v9, %v7450_v48  ;;  %v4903_v31 = vsel %vm3928_vm13, 1.0, %v7743_v2  ;;  %3950 = vst.msk [vmem:[#allocation2 + $0x28] sm:$0xff] %vm110_vm0, %v3945_v38  ;;  %v3946_v43 = vadd.f32 %v4905_v12, %v6885_v27  ;;  %v3932_v19 = vsel %vm3928_vm13, 0.0, %v3924_v10 }
0x16f8   :  { %v3944_v55 = vadd.f32 %v4903_v31, %v6855_v60 }
0x16f9   :  { %v3919_v39 = vsub.f32 %v3915_v42, %v3161_v41  ;;  %3951 = vst.msk [vmem:[#allocation2 + $0x60] sm:$0xff] %vm110_vm0, %v3946_v43 }
0x16fa   :  { %3949 = vst.msk [vmem:[#allocation2 + $0x20] sm:$0xff] %vm110_vm0, %v3944_v55 }
0x16fb   :  { %v3923_v26 = vmul.f32 0.5, %v3919_v39 }
0x16fd   :  { %v3927_v30 = vadd.f32 %v3923_v26, %v3161_v41 }
0x16ff   :  { %vm3931_vm12 = vcmp.ge.f32.partialorder %v3927_v30, 0.5 }
0x1700   :  { %v7653_v34 = vsel %vm3931_vm12, 0.0, %v3927_v30  ;;  %v4906_v40 = vsel %vm3931_vm12, 1.0, %v7743_v2 }
0x1701   :  { %v3947_v27 = vadd.f32 %v4906_v40, %v6890_v28 }
0x1703   :  { %3952 = vst.msk [vmem:[#allocation2 + $0x68] sm:$0xff] %vm110_vm0, %v3947_v27 }
0x1714   :  { %v4596_v25 = vpop.xlane.xlu1 %4595 }
0x1715   :  { %v4606_v29 = vmul.f32 0.03125, %v4596_v25 }
0x1717   :  { %v4610_v56 = vadd.f32 1e-05, %v4606_v29 }
0x1719   :  { %5170 = vrsqrt.f32 %v4610_v56  ;;  %vm4620_vm1 = vweird.f32 %v4610_v56 }
0x171c   :  { %v4599_v60 = vpop.xlane.xlu2 %4598 }
0x171d   :  { %v4607_v20 = vmul.f32 0.03125, %v4599_v60 }
0x171f   :  { %v5171_v54 = vpop.eup %5170  ;;  %v4611_v46 = vadd.f32 1e-05, %v4607_v20 }
0x1720   :  { %v4615_v14 = vmul.f32 %v5171_v54, %v4610_v56  ;;  %vm4621_vm15 = vweird.f32 %v5171_v54 }
0x1721   :  { %5172 = vrsqrt.f32 %v4611_v46  ;;  %vm4622_vm8 = vmor %vm4620_vm1, %vm4621_vm15  ;;  %vm4630_vm6 = vweird.f32 %v4611_v46 }
0x1722   :  { %v4616_v49 = vmul.f32 %v5171_v54, %v4615_v14 }
0x1724   :  { %v4617_v16 = vmul.f32 0.5, %v4616_v49  ;;  %v4602_v51 = vpop.xlane.xlu0 %4601 }
0x1725   :  { %v4608_v13 = vmul.f32 0.03125, %v4602_v51 }
0x1726   :  { %v4618_v4 = vsub.f32 1.5, %v4617_v16 }
0x1727   :  { %v5173_v32 = vpop.eup %5172  ;;  %v4612_v28 = vadd.f32 1e-05, %v4608_v13 }
0x1728   :  { %v4619_v6 = vmul.f32 %v5171_v54, %v4618_v4  ;;  %v4625_v23 = vmul.f32 %v5173_v32, %v4611_v46  ;;  %vm4631_vm5 = vweird.f32 %v5173_v32 }
0x1729   :  { %5174 = vrsqrt.f32 %v4612_v28  ;;  %vm4632_vm2 = vmor %vm4630_vm6, %vm4631_vm5  ;;  %vm4640_vm3 = vweird.f32 %v4612_v28 }
0x172a   :  { %v4623_v24 = vsel %vm4622_vm8, %v5171_v54, %v4619_v6  ;;  %v4626_v15 = vmul.f32 %v5173_v32, %v4625_v23 }
0x172b   :  { %v4654_v21 = vmul.f32 %v4623_v24, %v7410_v5 }
0x172c   :  { %v4627_v59 = vmul.f32 0.5, %v4626_v15  ;;  %v4605_v63 = vpop.xlane.xlu1 %4604 }
0x172d   :  { %v4658_v57 = vmul.f32 %v4654_v21, %v7445_v3  ;;  %v4609_v36 = vmul.f32 0.03125, %v4605_v63 }
0x172e   :  { %v4628_v53 = vsub.f32 1.5, %v4627_v59 }
0x172f   :  { %v5175_v37 = vpop.eup %5174  ;;  %v4662_v17 = vadd.f32 %v4658_v57, %v7450_v48  ;;  %v4613_v11 = vadd.f32 1e-05, %v4609_v36 }
0x1730   :  { %v4629_v47 = vmul.f32 %v5173_v32, %v4628_v53  ;;  %v4635_v35 = vmul.f32 %v5175_v37, %v4612_v28  ;;  %vm4641_vm7 = vweird.f32 %v5175_v37 }
0x1731   :  { %v4666_v45 = vsub.f32 %v4662_v17, %v3932_v19  ;;  %5176 = vrsqrt.f32 %v4613_v11  ;;  %vm4642_vm4 = vmor %vm4640_vm3, %vm4641_vm7  ;;  %vm4650_vm10 = vweird.f32 %v4613_v11 }
0x1732   :  { %v4633_v5 = vsel %vm4632_vm2, %v5173_v32, %v4629_v47  ;;  %v4636_v8 = vmul.f32 %v5175_v37, %v4635_v35 }
0x1733   :  { %v4670_v61 = vmul.f32 0.5, %v4666_v45  ;;  %v4655_v50 = vmul.f32 %v4633_v5, %v7416_v1 }
0x1734   :  { %v4637_v18 = vmul.f32 0.5, %v4636_v8 }
0x1735   :  { %v4674_v9 = vadd.f32 %v4670_v61, %v3932_v19  ;;  %v4659_v38 = vmul.f32 %v4655_v50, %v7445_v3 }
0x1736   :  { %v4638_v12 = vsub.f32 1.5, %v4637_v18 }
0x1737   :  { %v5177_v42 = vpop.eup %5176  ;;  %vm4678_vm9 = vcmp.ge.f32.partialorder %v4674_v9, 0.5  ;;  %v4663_v10 = vadd.f32 %v4659_v38, %v7450_v48 }
0x1738   :  { %v4945_v31 = vsel %vm4678_vm9, 1.0, %v7743_v2  ;;  %v4639_v43 = vmul.f32 %v5175_v37, %v4638_v12  ;;  %v4645_v41 = vmul.f32 %v5177_v42, %v4613_v11  ;;  %vm4651_vm11 = vweird.f32 %v5177_v42 }
0x1739   :  { %v4690_v55 = vadd.f32 %v4945_v31, %v7194_v52  ;;  %v4667_v39 = vsub.f32 %v4663_v10, %v7634_v22  ;;  %vm4652_vm13 = vmor %vm4650_vm10, %vm4651_vm11 }
0x173a   :  { %v4643_v1 = vsel %vm4642_vm4, %v5175_v37, %v4639_v43  ;;  %v4646_v26 = vmul.f32 %v5177_v42, %v4645_v41 }
0x173b   :  { %4695 = vst.msk [vmem:[#allocation2 + $0x30] sm:$0xff] %vm110_vm0, %v4690_v55  ;;  %v4671_v30 = vmul.f32 0.5, %v4667_v39  ;;  %v4656_v40 = vmul.f32 %v4643_v1, %v7422_v0 }
0x173c   :  { %v4647_v27 = vmul.f32 0.5, %v4646_v26 }
0x173d   :  { %v4675_v25 = vadd.f32 %v4671_v30, %v7634_v22  ;;  %v4660_v29 = vmul.f32 %v4656_v40, %v7445_v3 }
0x173e   :  { %v4648_v56 = vsub.f32 1.5, %v4647_v27 }
0x173f   :  { %vm4679_vm14 = vcmp.ge.f32.partialorder %v4675_v25, 0.5  ;;  %v4664_v52 = vadd.f32 %v4660_v29, %v7450_v48 }
0x1740   :  { %v4946_v60 = vsel %vm4679_vm14, 1.0, %v7743_v2  ;;  %v4649_v20 = vmul.f32 %v5177_v42, %v4648_v56 }
0x1741   :  { %v4691_v54 = vadd.f32 %v4946_v60, %v7199_v62  ;;  %v4668_v46 = vsub.f32 %v4664_v52, %v7639_v33 }
0x1742   :  { %v4653_v0 = vsel %vm4652_vm13, %v5177_v42, %v4649_v20 }
0x1743   :  { %4696 = vst.msk [vmem:[#allocation2 + $0x38] sm:$0xff] %vm110_vm0, %v4691_v54  ;;  %v4672_v22 = vmul.f32 0.5, %v4668_v46  ;;  %v4657_v14 = vmul.f32 %v4653_v0, %v7428_v58 }
0x1745   :  { %v4676_v49 = vadd.f32 %v4672_v22, %v7639_v33  ;;  %v4661_v16 = vmul.f32 %v4657_v14, %v7445_v3 }
0x1747   :  { %vm4680_vm12 = vcmp.ge.f32.partialorder %v4676_v49, 0.5  ;;  %v4665_v51 = vadd.f32 %v4661_v16, %v7450_v48 }
0x1748   :  { %v4947_v13 = vsel %vm4680_vm12, 1.0, %v7743_v2 }
0x1749   :  { %v4692_v62 = vadd.f32 %v4947_v13, %v7216_v44  ;;  %v4669_v4 = vsub.f32 %v4665_v51, %v7653_v34 }
0x174b   :  { %4697 = vst.msk [vmem:[#allocation2 + $0x70] sm:$0xff] %vm110_vm0, %v4692_v62  ;;  %v4673_v32 = vmul.f32 0.5, %v4669_v4 }
0x174d   :  { %v4677_v28 = vadd.f32 %v4673_v32, %v7653_v34 }
0x174f   :  { %vm4681_vm15 = vcmp.ge.f32.partialorder %v4677_v28, 0.5 }
0x1750   :  { %v4948_v58 = vsel %vm4681_vm15, 1.0, %v7743_v2 }
0x1751   :  { %v4693_v44 = vadd.f32 %v4948_v58, %v7221_v7 }
0x1753   :  { %4698 = vst.msk [vmem:[#allocation2 + $0x78] sm:$0xff] %vm110_vm0, %v4693_v44 }
0x1754   :  { %4711 = dma.vmem_to_hbm [thread:$0]  %s4704_s12, 2048, %s4706_s15, [#allocation3], %s5262_s5, %s5262_s5, %s5263_s8  }
0x1755   :  { %5255 = dma.done.wait [#allocation3], 2048  }
0x1756   :  { %5256 = vsyncadd [#allocation3], 4294965248 }
0x1757   :  { %4716 = vsyncpa [#allocation3], 1 }

</bundles_post_ra>
